<compile_context>
chip_gen: v7x
topology: tpu7x:2x2x1
jax: 0.10.0
libtpu: 0.0.40
codegen_flags: <defaults>
</compile_context>

<pallas_src>
import functools
import numpy as np
import jax
import jax.numpy as jnp
from jax import lax
from jax.experimental import pallas as pl
from jax.experimental.pallas import tpu as pltpu


def _round_up(x, m):
    return (x + m - 1) // m * m


# ----------------------------------------------------------------------------- kernel
def mann_fused_kernel(x_ref, w1_ref, b1_ref, w2_ref, b2_ref, out_ref):
    """x_ref: (T, Bp, Dp); w1: (Dp+H1, 4*H1); w2: (H1+H2p, 4*H2p);
    biases: (1, 4*H); out_ref: (T, Bp, H2p). Entire time loop in one invocation."""
    T, Bp, _ = x_ref.shape
    H1 = w1_ref.shape[1] // 4          # 128
    H2 = w2_ref.shape[1] // 4          # padded layer-2 hidden (=128)

    # Hoist loop-invariant bias broadcasts out of the time loop.
    b1 = jnp.broadcast_to(b1_ref[...], (Bp, 4 * H1))
    b2 = jnp.broadcast_to(b2_ref[...], (Bp, 4 * H2))

    def step(t, carry):
        h1, c1, h2, c2 = carry

        # ---- LSTM layer 1: fused [x_t, h1] @ [W_ih1; W_hh1] (one MXU pass) ----
        xh = jnp.concatenate([x_ref[t], h1], axis=-1)               # (Bp, Dp+H1)
        g1 = jnp.dot(xh, w1_ref[...],
                     preferred_element_type=jnp.float32) + b1       # (Bp, 4*H1)
        i1 = jax.nn.sigmoid(g1[:, 0 * H1:1 * H1])
        f1 = jax.nn.sigmoid(g1[:, 1 * H1:2 * H1])
        gg1 = jnp.tanh(g1[:, 2 * H1:3 * H1])
        o1 = jax.nn.sigmoid(g1[:, 3 * H1:4 * H1])
        c1 = f1 * c1 + i1 * gg1
        h1 = o1 * jnp.tanh(c1)

        # ---- LSTM layer 2 (hidden padded to 128 lanes; padded lanes stay 0) ----
        hh = jnp.concatenate([h1, h2], axis=-1)                     # (Bp, H1+H2)
        g2 = jnp.dot(hh, w2_ref[...],
                     preferred_element_type=jnp.float32) + b2       # (Bp, 4*H2)
        i2 = jax.nn.sigmoid(g2[:, 0 * H2:1 * H2])
        f2 = jax.nn.sigmoid(g2[:, 1 * H2:2 * H2])
        gg2 = jnp.tanh(g2[:, 2 * H2:3 * H2])
        o2 = jax.nn.sigmoid(g2[:, 3 * H2:4 * H2])
        c2 = f2 * c2 + i2 * gg2
        h2 = o2 * jnp.tanh(c2)

        out_ref[t] = h2.astype(out_ref.dtype)    # full (Bp,128) unmasked lane-dense store
        return (h1, c1, h2, c2)

    z1 = jnp.zeros((Bp, H1), jnp.float32)
    z2 = jnp.zeros((Bp, H2), jnp.float32)
    lax.fori_loop(0, T, step, (z1, z1, z2, z2), unroll=True)


# ----------------------------------------------------------------------------- wrappers
def run_stacked_lstm_pallas(x, fused_params, num_classes):
    """x: (T, B, D) time-major float32. Returns (T, B, num_classes)."""
    T, B, D = x.shape
    w1, b1, w2, b2 = fused_params
    H1 = w1.shape[1] // 4
    Dp = w1.shape[0] - H1
    H2p = w2.shape[1] // 4
    Bp = _round_up(B, 8)                       # sublane-pad the batch

    x_pad = jnp.zeros((T, Bp, Dp), jnp.float32).at[:, :B, :D].set(x)

    out = pl.pallas_call(
        mann_fused_kernel,
        out_shape=jax.ShapeDtypeStruct((T, Bp, H2p), jnp.float32),
        grid_spec=pltpu.PrefetchScalarGridSpec(
            num_scalar_prefetch=0,
            grid=(1,),                          # single invocation; loop lives in-kernel
            in_specs=[
                pl.BlockSpec((T, Bp, Dp), lambda i: (0, 0, 0)),
                pl.BlockSpec((Dp + H1, 4 * H1), lambda i: (0, 0)),
                pl.BlockSpec((1, 4 * H1), lambda i: (0, 0)),
                pl.BlockSpec((H1 + H2p, 4 * H2p), lambda i: (0, 0)),
                pl.BlockSpec((1, 4 * H2p), lambda i: (0, 0)),
            ],
            out_specs=pl.BlockSpec((T, Bp, H2p), lambda i: (0, 0, 0)),
        ),
        compiler_params=pltpu.CompilerParams(
            dimension_semantics=("arbitrary",)),
    )(x_pad, w1, b1, w2, b2)

    # Slice away batch / lane padding outside the kernel.
    return out[:, :B, :num_classes]


def mann_forward(input_images, input_labels, fused_params, num_classes, embed_size):
    """Glue (reshape / query-label masking / concat / transpose) in plain JAX,
    LSTM hot path in the fused Pallas kernel."""
    B = input_labels.shape[0]
    N = input_labels.shape[-1]
    imgs = input_images.reshape(B, -1, embed_size)            # (B, T, E)
    labels = input_labels.reshape(B, -1, N)                   # (B, T, N)
    labels = labels.at[:, -num_classes:].set(0.0)             # zero query labels
    x = jnp.concatenate([imgs, labels], axis=-1)              # np.dstack
    x = jnp.transpose(x, (1, 0, 2))                           # -> (T, B, D) time-major
    return run_stacked_lstm_pallas(x, fused_params, num_classes)


# ----------------------------------------------------------------------------- params
def init_mann_params(key, num_classes, embed_size, hidden=128):
    """PyTorch-style LSTM init (uniform +-1/sqrt(hidden)). Weights stored
    pre-transposed as (in_features, 4*hidden); the two PyTorch biases pre-summed."""
    D = embed_size + num_classes
    k1 = 1.0 / np.sqrt(hidden)
    k2 = 1.0 / np.sqrt(num_classes)
    keys = jax.random.split(key, 8)
    u = jax.random.uniform
    w_ih1 = u(keys[0], (D, 4 * hidden), jnp.float32, -k1, k1)
    w_hh1 = u(keys[1], (hidden, 4 * hidden), jnp.float32, -k1, k1)
    b1 = (u(keys[2], (1, 4 * hidden), jnp.float32, -k1, k1)
          + u(keys[3], (1, 4 * hidden), jnp.float32, -k1, k1))
    w_ih2 = u(keys[4], (hidden, 4 * num_classes), jnp.float32, -k2, k2)
    w_hh2 = u(keys[5], (num_classes, 4 * num_classes), jnp.float32, -k2, k2)
    b2 = (u(keys[6], (1, 4 * num_classes), jnp.float32, -k2, k2)
          + u(keys[7], (1, 4 * num_classes), jnp.float32, -k2, k2))
    return (w_ih1, w_hh1, b1, w_ih2, w_hh2, b2)


def prepare_fused_params(params, num_classes, embed_size, hidden=128, lane=128):
    """Build the kernel's fused, lane-padded weights:
       W1 = [W_ih1 (D rows, zero-padded to Dp); W_hh1]            -> (Dp+H1, 4*H1)
       W2 = [W_ih2 ; W_hh2] with layer-2 hidden padded to 128,
            each gate placed in its own 128-wide column block.    -> (H1+H2p, 4*H2p)"""
    w_ih1, w_hh1, b1, w_ih2, w_hh2, b2 = params
    D = embed_size + num_classes
    Dp = _round_up(D, lane)
    H1 = hidden
    H2 = num_classes
    H2p = _round_up(H2, lane)

    w1 = jnp.zeros((Dp + H1, 4 * H1), jnp.float32)
    w1 = w1.at[:D, :].set(w_ih1)
    w1 = w1.at[Dp:, :].set(w_hh1)

    w2 = jnp.zeros((H1 + H2p, 4 * H2p), jnp.float32)
    b2p = jnp.zeros((1, 4 * H2p), jnp.float32)
    for g in range(4):
        w2 = w2.at[:H1, g * H2p:g * H2p + H2].set(w_ih2[:, g * H2:(g + 1) * H2])
        w2 = w2.at[H1:H1 + H2, g * H2p:g * H2p + H2].set(w_hh2[:, g * H2:(g + 1) * H2])
        b2p = b2p.at[:, g * H2p:g * H2p + H2].set(b2[:, g * H2:(g + 1) * H2])
    return (w1, b1, w2, b2p)


# ----------------------------------------------------------------------------- reference
def _lstm_ref(x, w_ih, w_hh, b, H):
    """Pure-JAX single-layer LSTM (PyTorch semantics), time-major x."""
    B = x.shape[1]

    def step(carry, xt):
        h, c = carry
        g = xt @ w_ih + h @ w_hh + b
        i = jax.nn.sigmoid(g[:, 0 * H:1 * H])
        f = jax.nn.sigmoid(g[:, 1 * H:2 * H])
        gg = jnp.tanh(g[:, 2 * H:3 * H])
        o = jax.nn.sigmoid(g[:, 3 * H:4 * H])
        c = f * c + i * gg
        h = o * jnp.tanh(c)
        return (h, c), h

    init = (jnp.zeros((B, H), jnp.float32), jnp.zeros((B, H), jnp.float32))
    _, ys = jax.lax.scan(step, init, x)
    return ys


# ----------------------------------------------------------------------------- main
if __name__ == "__main__":
    num_classes = 4          # N
    sample_per_class = 1     # K  -> K+1 = 2 shots per class in the episode
    embed_size = 124         # embed_size + num_classes = 128 (lane aligned)
    B = 2
    hidden = 128
    # NOTE: on v7x with larger batches, add a leading "parallel" grid axis over
    # batch tiles to use both TensorCores; at B=2 a single core is the right call.

    key = jax.random.PRNGKey(0)
    k_img, k_lab, k_par = jax.random.split(key, 3)

    input_images = jax.random.normal(
        k_img, (B, sample_per_class + 1, num_classes, embed_size), jnp.float32)
    lab_idx = jax.random.randint(
        k_lab, (B, sample_per_class + 1, num_classes), 0, num_classes)
    input_labels = jax.nn.one_hot(lab_idx, num_classes, dtype=jnp.float32)

    params = init_mann_params(k_par, num_classes, embed_size, hidden)
    fused_params = prepare_fused_params(params, num_classes, embed_size, hidden)

    fwd = jax.jit(functools.partial(
        mann_forward, num_classes=num_classes, embed_size=embed_size))
    out = fwd(input_images, input_labels, fused_params)
    out = jax.block_until_ready(out)          # (T=8, B=2, N=4)

    # Silent correctness check against a pure-JAX reference of the same math
    # (original unfused / unpadded parameters).
    imgs = input_images.reshape(B, -1, embed_size)
    labs = input_labels.reshape(B, -1, num_classes)
    labs = labs.at[:, -num_classes:].set(0.0)
    x_ref = jnp.transpose(jnp.concatenate([imgs, labs], -1), (1, 0, 2))
    w_ih1, w_hh1, b1, w_ih2, w_hh2, b2 = params
    h1_seq = _lstm_ref(x_ref, w_ih1, w_hh1, b1, hidden)
    ref = _lstm_ref(h1_seq, w_ih2, w_hh2, b2, num_classes)
    np.testing.assert_allclose(np.asarray(out), np.asarray(ref),
                               rtol=1e-4, atol=1e-4)

    print("KERNEL_OK")
</pallas_src>

<mosaic_0001>
module attributes {stable_mosaic.version = 11 : i64} {
  func.func @mann_fused_kernel(%arg0: i32, %arg1: memref<8x8x128xf32, #tpu.memory_space<vmem>>, %arg2: memref<256x512xf32, #tpu.memory_space<vmem>>, %arg3: memref<1x512xf32, #tpu.memory_space<vmem>>, %arg4: memref<256x512xf32, #tpu.memory_space<vmem>>, %arg5: memref<1x512xf32, #tpu.memory_space<vmem>>, %arg6: memref<8x8x128xf32, #tpu.memory_space<vmem>>) attributes {dimension_semantics = [#tpu.dimension_semantics<arbitrary>], iteration_bounds = array<i64: 1>, scalar_prefetch = 0 : i64, scratch_operands = 0 : i64, tpu.core_type = #tpu.core_type<tc>, window_params = [{pipeline_mode = #tpu.pipeline_mode<synchronous>, transform_indices = @transform_0, window_bounds = array<i64: 8, 8, 128>}, {pipeline_mode = #tpu.pipeline_mode<synchronous>, transform_indices = @transform_1, window_bounds = array<i64: 256, 512>}, {pipeline_mode = #tpu.pipeline_mode<synchronous>, transform_indices = @transform_2, window_bounds = array<i64: 1, 512>}, {pipeline_mode = #tpu.pipeline_mode<synchronous>, transform_indices = @transform_3, window_bounds = array<i64: 256, 512>}, {pipeline_mode = #tpu.pipeline_mode<synchronous>, transform_indices = @transform_4, window_bounds = array<i64: 1, 512>}, {pipeline_mode = #tpu.pipeline_mode<synchronous>, transform_indices = @transform_5, window_bounds = array<i64: 8, 8, 128>}]} {
    %c0 = arith.constant 0 : index
    %c0_0 = arith.constant 0 : index
    %0 = vector.load %arg3[%c0, %c0_0] : memref<1x512xf32, #tpu.memory_space<vmem>>, vector<1x512xf32>
    %1 = vector.shape_cast %0 : vector<1x512xf32> to vector<1x512xf32>
    %2 = vector.broadcast %1 : vector<1x512xf32> to vector<8x512xf32>
    %c0_1 = arith.constant 0 : index
    %c0_2 = arith.constant 0 : index
    %3 = vector.load %arg5[%c0_1, %c0_2] : memref<1x512xf32, #tpu.memory_space<vmem>>, vector<1x512xf32>
    %4 = vector.shape_cast %3 : vector<1x512xf32> to vector<1x512xf32>
    %5 = vector.broadcast %4 : vector<1x512xf32> to vector<8x512xf32>
    %cst = arith.constant 0.000000e+00 : f32
    %6 = vector.broadcast %cst : f32 to vector<8x128xf32>
    %cst_3 = arith.constant 0.000000e+00 : f32
    %7 = vector.broadcast %cst_3 : f32 to vector<8x128xf32>
    %c0_i32 = arith.constant 0 : i32
    %8 = arith.index_cast %c0_i32 : i32 to index
    %c0_4 = arith.constant 0 : index
    %c0_5 = arith.constant 0 : index
    %9 = vector.load %arg1[%8, %c0_4, %c0_5] : memref<8x8x128xf32, #tpu.memory_space<vmem>>, vector<1x8x128xf32>
    %10 = vector.shape_cast %9 : vector<1x8x128xf32> to vector<8x128xf32>
    %11 = tpu.concatenate %10, %6 in 1 : vector<8x128xf32>, vector<8x128xf32> -> vector<8x256xf32>
    %c0_6 = arith.constant 0 : index
    %c0_7 = arith.constant 0 : index
    %12 = vector.load %arg2[%c0_6, %c0_7] : memref<256x512xf32, #tpu.memory_space<vmem>>, vector<256x512xf32>
    %cst_8 = arith.constant dense<0.000000e+00> : vector<8x512xf32>
    %13 = tpu.matmul %11, %12, %cst_8 {dimension_numbers = #tpu.dot_dimension_numbers<[1], [0], [0], [1], [0, 0, 1, 1], [], []>} : vector<8x256xf32>, vector<256x512xf32>, vector<8x512xf32> -> vector<8x512xf32>
    %14 = arith.addf %13, %2 : vector<8x512xf32>
    %15 = vector.extract_strided_slice %14 {offsets = [0, 0], sizes = [8, 128], strides = [1, 1]} : vector<8x512xf32> to vector<8x128xf32>
    %16 = arith.negf %15 : vector<8x128xf32>
    %17 = math.exp %16 : vector<8x128xf32>
    %cst_9 = arith.constant 1.000000e+00 : f32
    %18 = vector.broadcast %cst_9 : f32 to vector<8x128xf32>
    %19 = arith.addf %18, %17 : vector<8x128xf32>
    %20 = arith.divf %18, %19 : vector<8x128xf32>
    %21 = vector.extract_strided_slice %14 {offsets = [0, 128], sizes = [8, 128], strides = [1, 1]} : vector<8x512xf32> to vector<8x128xf32>
    %22 = arith.negf %21 : vector<8x128xf32>
    %23 = math.exp %22 : vector<8x128xf32>
    %cst_10 = arith.constant 1.000000e+00 : f32
    %24 = vector.broadcast %cst_10 : f32 to vector<8x128xf32>
    %25 = arith.addf %24, %23 : vector<8x128xf32>
    %26 = arith.divf %24, %25 : vector<8x128xf32>
    %27 = vector.extract_strided_slice %14 {offsets = [0, 256], sizes = [8, 128], strides = [1, 1]} : vector<8x512xf32> to vector<8x128xf32>
    %28 = math.tanh %27 : vector<8x128xf32>
    %29 = vector.extract_strided_slice %14 {offsets = [0, 384], sizes = [8, 128], strides = [1, 1]} : vector<8x512xf32> to vector<8x128xf32>
    %30 = arith.negf %29 : vector<8x128xf32>
    %31 = math.exp %30 : vector<8x128xf32>
    %cst_11 = arith.constant 1.000000e+00 : f32
    %32 = vector.broadcast %cst_11 : f32 to vector<8x128xf32>
    %33 = arith.addf %32, %31 : vector<8x128xf32>
    %34 = arith.divf %32, %33 : vector<8x128xf32>
    %35 = arith.mulf %26, %6 : vector<8x128xf32>
    %36 = arith.mulf %20, %28 : vector<8x128xf32>
    %37 = arith.addf %35, %36 : vector<8x128xf32>
    %38 = math.tanh %37 : vector<8x128xf32>
    %39 = arith.mulf %34, %38 : vector<8x128xf32>
    %40 = tpu.concatenate %39, %7 in 1 : vector<8x128xf32>, vector<8x128xf32> -> vector<8x256xf32>
    %c0_12 = arith.constant 0 : index
    %c0_13 = arith.constant 0 : index
    %41 = vector.load %arg4[%c0_12, %c0_13] : memref<256x512xf32, #tpu.memory_space<vmem>>, vector<256x512xf32>
    %cst_14 = arith.constant dense<0.000000e+00> : vector<8x512xf32>
    %42 = tpu.matmul %40, %41, %cst_14 {dimension_numbers = #tpu.dot_dimension_numbers<[1], [0], [0], [1], [0, 0, 1, 1], [], []>} : vector<8x256xf32>, vector<256x512xf32>, vector<8x512xf32> -> vector<8x512xf32>
    %43 = arith.addf %42, %5 : vector<8x512xf32>
    %44 = vector.extract_strided_slice %43 {offsets = [0, 0], sizes = [8, 128], strides = [1, 1]} : vector<8x512xf32> to vector<8x128xf32>
    %45 = arith.negf %44 : vector<8x128xf32>
    %46 = math.exp %45 : vector<8x128xf32>
    %cst_15 = arith.constant 1.000000e+00 : f32
    %47 = vector.broadcast %cst_15 : f32 to vector<8x128xf32>
    %48 = arith.addf %47, %46 : vector<8x128xf32>
    %49 = arith.divf %47, %48 : vector<8x128xf32>
    %50 = vector.extract_strided_slice %43 {offsets = [0, 128], sizes = [8, 128], strides = [1, 1]} : vector<8x512xf32> to vector<8x128xf32>
    %51 = arith.negf %50 : vector<8x128xf32>
    %52 = math.exp %51 : vector<8x128xf32>
    %cst_16 = arith.constant 1.000000e+00 : f32
    %53 = vector.broadcast %cst_16 : f32 to vector<8x128xf32>
    %54 = arith.addf %53, %52 : vector<8x128xf32>
    %55 = arith.divf %53, %54 : vector<8x128xf32>
    %56 = vector.extract_strided_slice %43 {offsets = [0, 256], sizes = [8, 128], strides = [1, 1]} : vector<8x512xf32> to vector<8x128xf32>
    %57 = math.tanh %56 : vector<8x128xf32>
    %58 = vector.extract_strided_slice %43 {offsets = [0, 384], sizes = [8, 128], strides = [1, 1]} : vector<8x512xf32> to vector<8x128xf32>
    %59 = arith.negf %58 : vector<8x128xf32>
    %60 = math.exp %59 : vector<8x128xf32>
    %cst_17 = arith.constant 1.000000e+00 : f32
    %61 = vector.broadcast %cst_17 : f32 to vector<8x128xf32>
    %62 = arith.addf %61, %60 : vector<8x128xf32>
    %63 = arith.divf %61, %62 : vector<8x128xf32>
    %64 = arith.mulf %55, %7 : vector<8x128xf32>
    %65 = arith.mulf %49, %57 : vector<8x128xf32>
    %66 = arith.addf %64, %65 : vector<8x128xf32>
    %67 = math.tanh %66 : vector<8x128xf32>
    %68 = arith.mulf %63, %67 : vector<8x128xf32>
    %69 = arith.index_cast %c0_i32 : i32 to index
    %c0_18 = arith.constant 0 : index
    %c0_19 = arith.constant 0 : index
    %70 = vector.load %arg6[%69, %c0_18, %c0_19] : memref<8x8x128xf32, #tpu.memory_space<vmem>>, vector<1x8x128xf32>
    %71 = vector.shape_cast %70 : vector<1x8x128xf32> to vector<8x128xf32>
    %72 = vector.shape_cast %68 : vector<8x128xf32> to vector<1x8x128xf32>
    tpu.vector_store %arg6[%69, %c0_18, %c0_19], %72 {strides = array<i32>} : memref<8x8x128xf32, #tpu.memory_space<vmem>>, vector<1x8x128xf32>,
    %c1_i32 = arith.constant 1 : i32
    %73 = arith.index_cast %c1_i32 : i32 to index
    %c0_20 = arith.constant 0 : index
    %c0_21 = arith.constant 0 : index
    %74 = vector.load %arg1[%73, %c0_20, %c0_21] : memref<8x8x128xf32, #tpu.memory_space<vmem>>, vector<1x8x128xf32>
    %75 = vector.shape_cast %74 : vector<1x8x128xf32> to vector<8x128xf32>
    %76 = tpu.concatenate %75, %39 in 1 : vector<8x128xf32>, vector<8x128xf32> -> vector<8x256xf32>
    %c0_22 = arith.constant 0 : index
    %c0_23 = arith.constant 0 : index
    %77 = vector.load %arg2[%c0_22, %c0_23] : memref<256x512xf32, #tpu.memory_space<vmem>>, vector<256x512xf32>
    %cst_24 = arith.constant dense<0.000000e+00> : vector<8x512xf32>
    %78 = tpu.matmul %76, %77, %cst_24 {dimension_numbers = #tpu.dot_dimension_numbers<[1], [0], [0], [1], [0, 0, 1, 1], [], []>} : vector<8x256xf32>, vector<256x512xf32>, vector<8x512xf32> -> vector<8x512xf32>
    %79 = arith.addf %78, %2 : vector<8x512xf32>
    %80 = vector.extract_strided_slice %79 {offsets = [0, 0], sizes = [8, 128], strides = [1, 1]} : vector<8x512xf32> to vector<8x128xf32>
    %81 = arith.negf %80 : vector<8x128xf32>
    %82 = math.exp %81 : vector<8x128xf32>
    %cst_25 = arith.constant 1.000000e+00 : f32
    %83 = vector.broadcast %cst_25 : f32 to vector<8x128xf32>
    %84 = arith.addf %83, %82 : vector<8x128xf32>
    %85 = arith.divf %83, %84 : vector<8x128xf32>
    %86 = vector.extract_strided_slice %79 {offsets = [0, 128], sizes = [8, 128], strides = [1, 1]} : vector<8x512xf32> to vector<8x128xf32>
    %87 = arith.negf %86 : vector<8x128xf32>
    %88 = math.exp %87 : vector<8x128xf32>
    %cst_26 = arith.constant 1.000000e+00 : f32
    %89 = vector.broadcast %cst_26 : f32 to vector<8x128xf32>
    %90 = arith.addf %89, %88 : vector<8x128xf32>
    %91 = arith.divf %89, %90 : vector<8x128xf32>
    %92 = vector.extract_strided_slice %79 {offsets = [0, 256], sizes = [8, 128], strides = [1, 1]} : vector<8x512xf32> to vector<8x128xf32>
    %93 = math.tanh %92 : vector<8x128xf32>
    %94 = vector.extract_strided_slice %79 {offsets = [0, 384], sizes = [8, 128], strides = [1, 1]} : vector<8x512xf32> to vector<8x128xf32>
    %95 = arith.negf %94 : vector<8x128xf32>
    %96 = math.exp %95 : vector<8x128xf32>
    %cst_27 = arith.constant 1.000000e+00 : f32
    %97 = vector.broadcast %cst_27 : f32 to vector<8x128xf32>
    %98 = arith.addf %97, %96 : vector<8x128xf32>
    %99 = arith.divf %97, %98 : vector<8x128xf32>
    %100 = arith.mulf %91, %37 : vector<8x128xf32>
    %101 = arith.mulf %85, %93 : vector<8x128xf32>
    %102 = arith.addf %100, %101 : vector<8x128xf32>
    %103 = math.tanh %102 : vector<8x128xf32>
    %104 = arith.mulf %99, %103 : vector<8x128xf32>
    %105 = tpu.concatenate %104, %68 in 1 : vector<8x128xf32>, vector<8x128xf32> -> vector<8x256xf32>
    %c0_28 = arith.constant 0 : index
    %c0_29 = arith.constant 0 : index
    %106 = vector.load %arg4[%c0_28, %c0_29] : memref<256x512xf32, #tpu.memory_space<vmem>>, vector<256x512xf32>
    %cst_30 = arith.constant dense<0.000000e+00> : vector<8x512xf32>
    %107 = tpu.matmul %105, %106, %cst_30 {dimension_numbers = #tpu.dot_dimension_numbers<[1], [0], [0], [1], [0, 0, 1, 1], [], []>} : vector<8x256xf32>, vector<256x512xf32>, vector<8x512xf32> -> vector<8x512xf32>
    %108 = arith.addf %107, %5 : vector<8x512xf32>
    %109 = vector.extract_strided_slice %108 {offsets = [0, 0], sizes = [8, 128], strides = [1, 1]} : vector<8x512xf32> to vector<8x128xf32>
    %110 = arith.negf %109 : vector<8x128xf32>
    %111 = math.exp %110 : vector<8x128xf32>
    %cst_31 = arith.constant 1.000000e+00 : f32
    %112 = vector.broadcast %cst_31 : f32 to vector<8x128xf32>
    %113 = arith.addf %112, %111 : vector<8x128xf32>
    %114 = arith.divf %112, %113 : vector<8x128xf32>
    %115 = vector.extract_strided_slice %108 {offsets = [0, 128], sizes = [8, 128], strides = [1, 1]} : vector<8x512xf32> to vector<8x128xf32>
    %116 = arith.negf %115 : vector<8x128xf32>
    %117 = math.exp %116 : vector<8x128xf32>
    %cst_32 = arith.constant 1.000000e+00 : f32
    %118 = vector.broadcast %cst_32 : f32 to vector<8x128xf32>
    %119 = arith.addf %118, %117 : vector<8x128xf32>
    %120 = arith.divf %118, %119 : vector<8x128xf32>
    %121 = vector.extract_strided_slice %108 {offsets = [0, 256], sizes = [8, 128], strides = [1, 1]} : vector<8x512xf32> to vector<8x128xf32>
    %122 = math.tanh %121 : vector<8x128xf32>
    %123 = vector.extract_strided_slice %108 {offsets = [0, 384], sizes = [8, 128], strides = [1, 1]} : vector<8x512xf32> to vector<8x128xf32>
    %124 = arith.negf %123 : vector<8x128xf32>
    %125 = math.exp %124 : vector<8x128xf32>
    %cst_33 = arith.constant 1.000000e+00 : f32
    %126 = vector.broadcast %cst_33 : f32 to vector<8x128xf32>
    %127 = arith.addf %126, %125 : vector<8x128xf32>
    %128 = arith.divf %126, %127 : vector<8x128xf32>
    %129 = arith.mulf %120, %66 : vector<8x128xf32>
    %130 = arith.mulf %114, %122 : vector<8x128xf32>
    %131 = arith.addf %129, %130 : vector<8x128xf32>
    %132 = math.tanh %131 : vector<8x128xf32>
    %133 = arith.mulf %128, %132 : vector<8x128xf32>
    %134 = arith.index_cast %c1_i32 : i32 to index
    %c0_34 = arith.constant 0 : index
    %c0_35 = arith.constant 0 : index
    %135 = vector.load %arg6[%134, %c0_34, %c0_35] : memref<8x8x128xf32, #tpu.memory_space<vmem>>, vector<1x8x128xf32>
    %136 = vector.shape_cast %135 : vector<1x8x128xf32> to vector<8x128xf32>
    %137 = vector.shape_cast %133 : vector<8x128xf32> to vector<1x8x128xf32>
    tpu.vector_store %arg6[%134, %c0_34, %c0_35], %137 {strides = array<i32>} : memref<8x8x128xf32, #tpu.memory_space<vmem>>, vector<1x8x128xf32>,
    %c2_i32 = arith.constant 2 : i32
    %138 = arith.index_cast %c2_i32 : i32 to index
    %c0_36 = arith.constant 0 : index
    %c0_37 = arith.constant 0 : index
    %139 = vector.load %arg1[%138, %c0_36, %c0_37] : memref<8x8x128xf32, #tpu.memory_space<vmem>>, vector<1x8x128xf32>
    %140 = vector.shape_cast %139 : vector<1x8x128xf32> to vector<8x128xf32>
    %141 = tpu.concatenate %140, %104 in 1 : vector<8x128xf32>, vector<8x128xf32> -> vector<8x256xf32>
    %c0_38 = arith.constant 0 : index
    %c0_39 = arith.constant 0 : index
    %142 = vector.load %arg2[%c0_38, %c0_39] : memref<256x512xf32, #tpu.memory_space<vmem>>, vector<256x512xf32>
    %cst_40 = arith.constant dense<0.000000e+00> : vector<8x512xf32>
    %143 = tpu.matmul %141, %142, %cst_40 {dimension_numbers = #tpu.dot_dimension_numbers<[1], [0], [0], [1], [0, 0, 1, 1], [], []>} : vector<8x256xf32>, vector<256x512xf32>, vector<8x512xf32> -> vector<8x512xf32>
    %144 = arith.addf %143, %2 : vector<8x512xf32>
    %145 = vector.extract_strided_slice %144 {offsets = [0, 0], sizes = [8, 128], strides = [1, 1]} : vector<8x512xf32> to vector<8x128xf32>
    %146 = arith.negf %145 : vector<8x128xf32>
    %147 = math.exp %146 : vector<8x128xf32>
    %cst_41 = arith.constant 1.000000e+00 : f32
    %148 = vector.broadcast %cst_41 : f32 to vector<8x128xf32>
    %149 = arith.addf %148, %147 : vector<8x128xf32>
    %150 = arith.divf %148, %149 : vector<8x128xf32>
    %151 = vector.extract_strided_slice %144 {offsets = [0, 128], sizes = [8, 128], strides = [1, 1]} : vector<8x512xf32> to vector<8x128xf32>
    %152 = arith.negf %151 : vector<8x128xf32>
    %153 = math.exp %152 : vector<8x128xf32>
    %cst_42 = arith.constant 1.000000e+00 : f32
    %154 = vector.broadcast %cst_42 : f32 to vector<8x128xf32>
    %155 = arith.addf %154, %153 : vector<8x128xf32>
    %156 = arith.divf %154, %155 : vector<8x128xf32>
    %157 = vector.extract_strided_slice %144 {offsets = [0, 256], sizes = [8, 128], strides = [1, 1]} : vector<8x512xf32> to vector<8x128xf32>
    %158 = math.tanh %157 : vector<8x128xf32>
    %159 = vector.extract_strided_slice %144 {offsets = [0, 384], sizes = [8, 128], strides = [1, 1]} : vector<8x512xf32> to vector<8x128xf32>
    %160 = arith.negf %159 : vector<8x128xf32>
    %161 = math.exp %160 : vector<8x128xf32>
    %cst_43 = arith.constant 1.000000e+00 : f32
    %162 = vector.broadcast %cst_43 : f32 to vector<8x128xf32>
    %163 = arith.addf %162, %161 : vector<8x128xf32>
    %164 = arith.divf %162, %163 : vector<8x128xf32>
    %165 = arith.mulf %156, %102 : vector<8x128xf32>
    %166 = arith.mulf %150, %158 : vector<8x128xf32>
    %167 = arith.addf %165, %166 : vector<8x128xf32>
    %168 = math.tanh %167 : vector<8x128xf32>
    %169 = arith.mulf %164, %168 : vector<8x128xf32>
    %170 = tpu.concatenate %169, %133 in 1 : vector<8x128xf32>, vector<8x128xf32> -> vector<8x256xf32>
    %c0_44 = arith.constant 0 : index
    %c0_45 = arith.constant 0 : index
    %171 = vector.load %arg4[%c0_44, %c0_45] : memref<256x512xf32, #tpu.memory_space<vmem>>, vector<256x512xf32>
    %cst_46 = arith.constant dense<0.000000e+00> : vector<8x512xf32>
    %172 = tpu.matmul %170, %171, %cst_46 {dimension_numbers = #tpu.dot_dimension_numbers<[1], [0], [0], [1], [0, 0, 1, 1], [], []>} : vector<8x256xf32>, vector<256x512xf32>, vector<8x512xf32> -> vector<8x512xf32>
    %173 = arith.addf %172, %5 : vector<8x512xf32>
    %174 = vector.extract_strided_slice %173 {offsets = [0, 0], sizes = [8, 128], strides = [1, 1]} : vector<8x512xf32> to vector<8x128xf32>
    %175 = arith.negf %174 : vector<8x128xf32>
    %176 = math.exp %175 : vector<8x128xf32>
    %cst_47 = arith.constant 1.000000e+00 : f32
    %177 = vector.broadcast %cst_47 : f32 to vector<8x128xf32>
    %178 = arith.addf %177, %176 : vector<8x128xf32>
    %179 = arith.divf %177, %178 : vector<8x128xf32>
    %180 = vector.extract_strided_slice %173 {offsets = [0, 128], sizes = [8, 128], strides = [1, 1]} : vector<8x512xf32> to vector<8x128xf32>
    %181 = arith.negf %180 : vector<8x128xf32>
    %182 = math.exp %181 : vector<8x128xf32>
    %cst_48 = arith.constant 1.000000e+00 : f32
    %183 = vector.broadcast %cst_48 : f32 to vector<8x128xf32>
    %184 = arith.addf %183, %182 : vector<8x128xf32>
    %185 = arith.divf %183, %184 : vector<8x128xf32>
    %186 = vector.extract_strided_slice %173 {offsets = [0, 256], sizes = [8, 128], strides = [1, 1]} : vector<8x512xf32> to vector<8x128xf32>
    %187 = math.tanh %186 : vector<8x128xf32>
    %188 = vector.extract_strided_slice %173 {offsets = [0, 384], sizes = [8, 128], strides = [1, 1]} : vector<8x512xf32> to vector<8x128xf32>
    %189 = arith.negf %188 : vector<8x128xf32>
    %190 = math.exp %189 : vector<8x128xf32>
    %cst_49 = arith.constant 1.000000e+00 : f32
    %191 = vector.broadcast %cst_49 : f32 to vector<8x128xf32>
    %192 = arith.addf %191, %190 : vector<8x128xf32>
    %193 = arith.divf %191, %192 : vector<8x128xf32>
    %194 = arith.mulf %185, %131 : vector<8x128xf32>
    %195 = arith.mulf %179, %187 : vector<8x128xf32>
    %196 = arith.addf %194, %195 : vector<8x128xf32>
    %197 = math.tanh %196 : vector<8x128xf32>
    %198 = arith.mulf %193, %197 : vector<8x128xf32>
    %199 = arith.index_cast %c2_i32 : i32 to index
    %c0_50 = arith.constant 0 : index
    %c0_51 = arith.constant 0 : index
    %200 = vector.load %arg6[%199, %c0_50, %c0_51] : memref<8x8x128xf32, #tpu.memory_space<vmem>>, vector<1x8x128xf32>
    %201 = vector.shape_cast %200 : vector<1x8x128xf32> to vector<8x128xf32>
    %202 = vector.shape_cast %198 : vector<8x128xf32> to vector<1x8x128xf32>
    tpu.vector_store %arg6[%199, %c0_50, %c0_51], %202 {strides = array<i32>} : memref<8x8x128xf32, #tpu.memory_space<vmem>>, vector<1x8x128xf32>,
    %c3_i32 = arith.constant 3 : i32
    %203 = arith.index_cast %c3_i32 : i32 to index
    %c0_52 = arith.constant 0 : index
    %c0_53 = arith.constant 0 : index
    %204 = vector.load %arg1[%203, %c0_52, %c0_53] : memref<8x8x128xf32, #tpu.memory_space<vmem>>, vector<1x8x128xf32>
    %205 = vector.shape_cast %204 : vector<1x8x128xf32> to vector<8x128xf32>
    %206 = tpu.concatenate %205, %169 in 1 : vector<8x128xf32>, vector<8x128xf32> -> vector<8x256xf32>
    %c0_54 = arith.constant 0 : index
    %c0_55 = arith.constant 0 : index
    %207 = vector.load %arg2[%c0_54, %c0_55] : memref<256x512xf32, #tpu.memory_space<vmem>>, vector<256x512xf32>
    %cst_56 = arith.constant dense<0.000000e+00> : vector<8x512xf32>
    %208 = tpu.matmul %206, %207, %cst_56 {dimension_numbers = #tpu.dot_dimension_numbers<[1], [0], [0], [1], [0, 0, 1, 1], [], []>} : vector<8x256xf32>, vector<256x512xf32>, vector<8x512xf32> -> vector<8x512xf32>
    %209 = arith.addf %208, %2 : vector<8x512xf32>
    %210 = vector.extract_strided_slice %209 {offsets = [0, 0], sizes = [8, 128], strides = [1, 1]} : vector<8x512xf32> to vector<8x128xf32>
    %211 = arith.negf %210 : vector<8x128xf32>
    %212 = math.exp %211 : vector<8x128xf32>
    %cst_57 = arith.constant 1.000000e+00 : f32
    %213 = vector.broadcast %cst_57 : f32 to vector<8x128xf32>
    %214 = arith.addf %213, %212 : vector<8x128xf32>
    %215 = arith.divf %213, %214 : vector<8x128xf32>
    %216 = vector.extract_strided_slice %209 {offsets = [0, 128], sizes = [8, 128], strides = [1, 1]} : vector<8x512xf32> to vector<8x128xf32>
    %217 = arith.negf %216 : vector<8x128xf32>
    %218 = math.exp %217 : vector<8x128xf32>
    %cst_58 = arith.constant 1.000000e+00 : f32
    %219 = vector.broadcast %cst_58 : f32 to vector<8x128xf32>
    %220 = arith.addf %219, %218 : vector<8x128xf32>
    %221 = arith.divf %219, %220 : vector<8x128xf32>
    %222 = vector.extract_strided_slice %209 {offsets = [0, 256], sizes = [8, 128], strides = [1, 1]} : vector<8x512xf32> to vector<8x128xf32>
    %223 = math.tanh %222 : vector<8x128xf32>
    %224 = vector.extract_strided_slice %209 {offsets = [0, 384], sizes = [8, 128], strides = [1, 1]} : vector<8x512xf32> to vector<8x128xf32>
    %225 = arith.negf %224 : vector<8x128xf32>
    %226 = math.exp %225 : vector<8x128xf32>
    %cst_59 = arith.constant 1.000000e+00 : f32
    %227 = vector.broadcast %cst_59 : f32 to vector<8x128xf32>
    %228 = arith.addf %227, %226 : vector<8x128xf32>
    %229 = arith.divf %227, %228 : vector<8x128xf32>
    %230 = arith.mulf %221, %167 : vector<8x128xf32>
    %231 = arith.mulf %215, %223 : vector<8x128xf32>
    %232 = arith.addf %230, %231 : vector<8x128xf32>
    %233 = math.tanh %232 : vector<8x128xf32>
    %234 = arith.mulf %229, %233 : vector<8x128xf32>
    %235 = tpu.concatenate %234, %198 in 1 : vector<8x128xf32>, vector<8x128xf32> -> vector<8x256xf32>
    %c0_60 = arith.constant 0 : index
    %c0_61 = arith.constant 0 : index
    %236 = vector.load %arg4[%c0_60, %c0_61] : memref<256x512xf32, #tpu.memory_space<vmem>>, vector<256x512xf32>
    %cst_62 = arith.constant dense<0.000000e+00> : vector<8x512xf32>
    %237 = tpu.matmul %235, %236, %cst_62 {dimension_numbers = #tpu.dot_dimension_numbers<[1], [0], [0], [1], [0, 0, 1, 1], [], []>} : vector<8x256xf32>, vector<256x512xf32>, vector<8x512xf32> -> vector<8x512xf32>
    %238 = arith.addf %237, %5 : vector<8x512xf32>
    %239 = vector.extract_strided_slice %238 {offsets = [0, 0], sizes = [8, 128], strides = [1, 1]} : vector<8x512xf32> to vector<8x128xf32>
    %240 = arith.negf %239 : vector<8x128xf32>
    %241 = math.exp %240 : vector<8x128xf32>
    %cst_63 = arith.constant 1.000000e+00 : f32
    %242 = vector.broadcast %cst_63 : f32 to vector<8x128xf32>
    %243 = arith.addf %242, %241 : vector<8x128xf32>
    %244 = arith.divf %242, %243 : vector<8x128xf32>
    %245 = vector.extract_strided_slice %238 {offsets = [0, 128], sizes = [8, 128], strides = [1, 1]} : vector<8x512xf32> to vector<8x128xf32>
    %246 = arith.negf %245 : vector<8x128xf32>
    %247 = math.exp %246 : vector<8x128xf32>
    %cst_64 = arith.constant 1.000000e+00 : f32
    %248 = vector.broadcast %cst_64 : f32 to vector<8x128xf32>
    %249 = arith.addf %248, %247 : vector<8x128xf32>
    %250 = arith.divf %248, %249 : vector<8x128xf32>
    %251 = vector.extract_strided_slice %238 {offsets = [0, 256], sizes = [8, 128], strides = [1, 1]} : vector<8x512xf32> to vector<8x128xf32>
    %252 = math.tanh %251 : vector<8x128xf32>
    %253 = vector.extract_strided_slice %238 {offsets = [0, 384], sizes = [8, 128], strides = [1, 1]} : vector<8x512xf32> to vector<8x128xf32>
    %254 = arith.negf %253 : vector<8x128xf32>
    %255 = math.exp %254 : vector<8x128xf32>
    %cst_65 = arith.constant 1.000000e+00 : f32
    %256 = vector.broadcast %cst_65 : f32 to vector<8x128xf32>
    %257 = arith.addf %256, %255 : vector<8x128xf32>
    %258 = arith.divf %256, %257 : vector<8x128xf32>
    %259 = arith.mulf %250, %196 : vector<8x128xf32>
    %260 = arith.mulf %244, %252 : vector<8x128xf32>
    %261 = arith.addf %259, %260 : vector<8x128xf32>
    %262 = math.tanh %261 : vector<8x128xf32>
    %263 = arith.mulf %258, %262 : vector<8x128xf32>
    %264 = arith.index_cast %c3_i32 : i32 to index
    %c0_66 = arith.constant 0 : index
    %c0_67 = arith.constant 0 : index
    %265 = vector.load %arg6[%264, %c0_66, %c0_67] : memref<8x8x128xf32, #tpu.memory_space<vmem>>, vector<1x8x128xf32>
    %266 = vector.shape_cast %265 : vector<1x8x128xf32> to vector<8x128xf32>
    %267 = vector.shape_cast %263 : vector<8x128xf32> to vector<1x8x128xf32>
    tpu.vector_store %arg6[%264, %c0_66, %c0_67], %267 {strides = array<i32>} : memref<8x8x128xf32, #tpu.memory_space<vmem>>, vector<1x8x128xf32>,
    %c4_i32 = arith.constant 4 : i32
    %268 = arith.index_cast %c4_i32 : i32 to index
    %c0_68 = arith.constant 0 : index
    %c0_69 = arith.constant 0 : index
    %269 = vector.load %arg1[%268, %c0_68, %c0_69] : memref<8x8x128xf32, #tpu.memory_space<vmem>>, vector<1x8x128xf32>
    %270 = vector.shape_cast %269 : vector<1x8x128xf32> to vector<8x128xf32>
    %271 = tpu.concatenate %270, %234 in 1 : vector<8x128xf32>, vector<8x128xf32> -> vector<8x256xf32>
    %c0_70 = arith.constant 0 : index
    %c0_71 = arith.constant 0 : index
    %272 = vector.load %arg2[%c0_70, %c0_71] : memref<256x512xf32, #tpu.memory_space<vmem>>, vector<256x512xf32>
    %cst_72 = arith.constant dense<0.000000e+00> : vector<8x512xf32>
    %273 = tpu.matmul %271, %272, %cst_72 {dimension_numbers = #tpu.dot_dimension_numbers<[1], [0], [0], [1], [0, 0, 1, 1], [], []>} : vector<8x256xf32>, vector<256x512xf32>, vector<8x512xf32> -> vector<8x512xf32>
    %274 = arith.addf %273, %2 : vector<8x512xf32>
    %275 = vector.extract_strided_slice %274 {offsets = [0, 0], sizes = [8, 128], strides = [1, 1]} : vector<8x512xf32> to vector<8x128xf32>
    %276 = arith.negf %275 : vector<8x128xf32>
    %277 = math.exp %276 : vector<8x128xf32>
    %cst_73 = arith.constant 1.000000e+00 : f32
    %278 = vector.broadcast %cst_73 : f32 to vector<8x128xf32>
    %279 = arith.addf %278, %277 : vector<8x128xf32>
    %280 = arith.divf %278, %279 : vector<8x128xf32>
    %281 = vector.extract_strided_slice %274 {offsets = [0, 128], sizes = [8, 128], strides = [1, 1]} : vector<8x512xf32> to vector<8x128xf32>
    %282 = arith.negf %281 : vector<8x128xf32>
    %283 = math.exp %282 : vector<8x128xf32>
    %cst_74 = arith.constant 1.000000e+00 : f32
    %284 = vector.broadcast %cst_74 : f32 to vector<8x128xf32>
    %285 = arith.addf %284, %283 : vector<8x128xf32>
    %286 = arith.divf %284, %285 : vector<8x128xf32>
    %287 = vector.extract_strided_slice %274 {offsets = [0, 256], sizes = [8, 128], strides = [1, 1]} : vector<8x512xf32> to vector<8x128xf32>
    %288 = math.tanh %287 : vector<8x128xf32>
    %289 = vector.extract_strided_slice %274 {offsets = [0, 384], sizes = [8, 128], strides = [1, 1]} : vector<8x512xf32> to vector<8x128xf32>
    %290 = arith.negf %289 : vector<8x128xf32>
    %291 = math.exp %290 : vector<8x128xf32>
    %cst_75 = arith.constant 1.000000e+00 : f32
    %292 = vector.broadcast %cst_75 : f32 to vector<8x128xf32>
    %293 = arith.addf %292, %291 : vector<8x128xf32>
    %294 = arith.divf %292, %293 : vector<8x128xf32>
    %295 = arith.mulf %286, %232 : vector<8x128xf32>
    %296 = arith.mulf %280, %288 : vector<8x128xf32>
    %297 = arith.addf %295, %296 : vector<8x128xf32>
    %298 = math.tanh %297 : vector<8x128xf32>
    %299 = arith.mulf %294, %298 : vector<8x128xf32>
    %300 = tpu.concatenate %299, %263 in 1 : vector<8x128xf32>, vector<8x128xf32> -> vector<8x256xf32>
    %c0_76 = arith.constant 0 : index
    %c0_77 = arith.constant 0 : index
    %301 = vector.load %arg4[%c0_76, %c0_77] : memref<256x512xf32, #tpu.memory_space<vmem>>, vector<256x512xf32>
    %cst_78 = arith.constant dense<0.000000e+00> : vector<8x512xf32>
    %302 = tpu.matmul %300, %301, %cst_78 {dimension_numbers = #tpu.dot_dimension_numbers<[1], [0], [0], [1], [0, 0, 1, 1], [], []>} : vector<8x256xf32>, vector<256x512xf32>, vector<8x512xf32> -> vector<8x512xf32>
    %303 = arith.addf %302, %5 : vector<8x512xf32>
    %304 = vector.extract_strided_slice %303 {offsets = [0, 0], sizes = [8, 128], strides = [1, 1]} : vector<8x512xf32> to vector<8x128xf32>
    %305 = arith.negf %304 : vector<8x128xf32>
    %306 = math.exp %305 : vector<8x128xf32>
    %cst_79 = arith.constant 1.000000e+00 : f32
    %307 = vector.broadcast %cst_79 : f32 to vector<8x128xf32>
    %308 = arith.addf %307, %306 : vector<8x128xf32>
    %309 = arith.divf %307, %308 : vector<8x128xf32>
    %310 = vector.extract_strided_slice %303 {offsets = [0, 128], sizes = [8, 128], strides = [1, 1]} : vector<8x512xf32> to vector<8x128xf32>
    %311 = arith.negf %310 : vector<8x128xf32>
    %312 = math.exp %311 : vector<8x128xf32>
    %cst_80 = arith.constant 1.000000e+00 : f32
    %313 = vector.broadcast %cst_80 : f32 to vector<8x128xf32>
    %314 = arith.addf %313, %312 : vector<8x128xf32>
    %315 = arith.divf %313, %314 : vector<8x128xf32>
    %316 = vector.extract_strided_slice %303 {offsets = [0, 256], sizes = [8, 128], strides = [1, 1]} : vector<8x512xf32> to vector<8x128xf32>
    %317 = math.tanh %316 : vector<8x128xf32>
    %318 = vector.extract_strided_slice %303 {offsets = [0, 384], sizes = [8, 128], strides = [1, 1]} : vector<8x512xf32> to vector<8x128xf32>
    %319 = arith.negf %318 : vector<8x128xf32>
    %320 = math.exp %319 : vector<8x128xf32>
    %cst_81 = arith.constant 1.000000e+00 : f32
    %321 = vector.broadcast %cst_81 : f32 to vector<8x128xf32>
    %322 = arith.addf %321, %320 : vector<8x128xf32>
    %323 = arith.divf %321, %322 : vector<8x128xf32>
    %324 = arith.mulf %315, %261 : vector<8x128xf32>
    %325 = arith.mulf %309, %317 : vector<8x128xf32>
    %326 = arith.addf %324, %325 : vector<8x128xf32>
    %327 = math.tanh %326 : vector<8x128xf32>
    %328 = arith.mulf %323, %327 : vector<8x128xf32>
    %329 = arith.index_cast %c4_i32 : i32 to index
    %c0_82 = arith.constant 0 : index
    %c0_83 = arith.constant 0 : index
    %330 = vector.load %arg6[%329, %c0_82, %c0_83] : memref<8x8x128xf32, #tpu.memory_space<vmem>>, vector<1x8x128xf32>
    %331 = vector.shape_cast %330 : vector<1x8x128xf32> to vector<8x128xf32>
    %332 = vector.shape_cast %328 : vector<8x128xf32> to vector<1x8x128xf32>
    tpu.vector_store %arg6[%329, %c0_82, %c0_83], %332 {strides = array<i32>} : memref<8x8x128xf32, #tpu.memory_space<vmem>>, vector<1x8x128xf32>,
    %c5_i32 = arith.constant 5 : i32
    %333 = arith.index_cast %c5_i32 : i32 to index
    %c0_84 = arith.constant 0 : index
    %c0_85 = arith.constant 0 : index
    %334 = vector.load %arg1[%333, %c0_84, %c0_85] : memref<8x8x128xf32, #tpu.memory_space<vmem>>, vector<1x8x128xf32>
    %335 = vector.shape_cast %334 : vector<1x8x128xf32> to vector<8x128xf32>
    %336 = tpu.concatenate %335, %299 in 1 : vector<8x128xf32>, vector<8x128xf32> -> vector<8x256xf32>
    %c0_86 = arith.constant 0 : index
    %c0_87 = arith.constant 0 : index
    %337 = vector.load %arg2[%c0_86, %c0_87] : memref<256x512xf32, #tpu.memory_space<vmem>>, vector<256x512xf32>
    %cst_88 = arith.constant dense<0.000000e+00> : vector<8x512xf32>
    %338 = tpu.matmul %336, %337, %cst_88 {dimension_numbers = #tpu.dot_dimension_numbers<[1], [0], [0], [1], [0, 0, 1, 1], [], []>} : vector<8x256xf32>, vector<256x512xf32>, vector<8x512xf32> -> vector<8x512xf32>
    %339 = arith.addf %338, %2 : vector<8x512xf32>
    %340 = vector.extract_strided_slice %339 {offsets = [0, 0], sizes = [8, 128], strides = [1, 1]} : vector<8x512xf32> to vector<8x128xf32>
    %341 = arith.negf %340 : vector<8x128xf32>
    %342 = math.exp %341 : vector<8x128xf32>
    %cst_89 = arith.constant 1.000000e+00 : f32
    %343 = vector.broadcast %cst_89 : f32 to vector<8x128xf32>
    %344 = arith.addf %343, %342 : vector<8x128xf32>
    %345 = arith.divf %343, %344 : vector<8x128xf32>
    %346 = vector.extract_strided_slice %339 {offsets = [0, 128], sizes = [8, 128], strides = [1, 1]} : vector<8x512xf32> to vector<8x128xf32>
    %347 = arith.negf %346 : vector<8x128xf32>
    %348 = math.exp %347 : vector<8x128xf32>
    %cst_90 = arith.constant 1.000000e+00 : f32
    %349 = vector.broadcast %cst_90 : f32 to vector<8x128xf32>
    %350 = arith.addf %349, %348 : vector<8x128xf32>
    %351 = arith.divf %349, %350 : vector<8x128xf32>
    %352 = vector.extract_strided_slice %339 {offsets = [0, 256], sizes = [8, 128], strides = [1, 1]} : vector<8x512xf32> to vector<8x128xf32>
    %353 = math.tanh %352 : vector<8x128xf32>
    %354 = vector.extract_strided_slice %339 {offsets = [0, 384], sizes = [8, 128], strides = [1, 1]} : vector<8x512xf32> to vector<8x128xf32>
    %355 = arith.negf %354 : vector<8x128xf32>
    %356 = math.exp %355 : vector<8x128xf32>
    %cst_91 = arith.constant 1.000000e+00 : f32
    %357 = vector.broadcast %cst_91 : f32 to vector<8x128xf32>
    %358 = arith.addf %357, %356 : vector<8x128xf32>
    %359 = arith.divf %357, %358 : vector<8x128xf32>
    %360 = arith.mulf %351, %297 : vector<8x128xf32>
    %361 = arith.mulf %345, %353 : vector<8x128xf32>
    %362 = arith.addf %360, %361 : vector<8x128xf32>
    %363 = math.tanh %362 : vector<8x128xf32>
    %364 = arith.mulf %359, %363 : vector<8x128xf32>
    %365 = tpu.concatenate %364, %328 in 1 : vector<8x128xf32>, vector<8x128xf32> -> vector<8x256xf32>
    %c0_92 = arith.constant 0 : index
    %c0_93 = arith.constant 0 : index
    %366 = vector.load %arg4[%c0_92, %c0_93] : memref<256x512xf32, #tpu.memory_space<vmem>>, vector<256x512xf32>
    %cst_94 = arith.constant dense<0.000000e+00> : vector<8x512xf32>
    %367 = tpu.matmul %365, %366, %cst_94 {dimension_numbers = #tpu.dot_dimension_numbers<[1], [0], [0], [1], [0, 0, 1, 1], [], []>} : vector<8x256xf32>, vector<256x512xf32>, vector<8x512xf32> -> vector<8x512xf32>
    %368 = arith.addf %367, %5 : vector<8x512xf32>
    %369 = vector.extract_strided_slice %368 {offsets = [0, 0], sizes = [8, 128], strides = [1, 1]} : vector<8x512xf32> to vector<8x128xf32>
    %370 = arith.negf %369 : vector<8x128xf32>
    %371 = math.exp %370 : vector<8x128xf32>
    %cst_95 = arith.constant 1.000000e+00 : f32
    %372 = vector.broadcast %cst_95 : f32 to vector<8x128xf32>
    %373 = arith.addf %372, %371 : vector<8x128xf32>
    %374 = arith.divf %372, %373 : vector<8x128xf32>
    %375 = vector.extract_strided_slice %368 {offsets = [0, 128], sizes = [8, 128], strides = [1, 1]} : vector<8x512xf32> to vector<8x128xf32>
    %376 = arith.negf %375 : vector<8x128xf32>
    %377 = math.exp %376 : vector<8x128xf32>
    %cst_96 = arith.constant 1.000000e+00 : f32
    %378 = vector.broadcast %cst_96 : f32 to vector<8x128xf32>
    %379 = arith.addf %378, %377 : vector<8x128xf32>
    %380 = arith.divf %378, %379 : vector<8x128xf32>
    %381 = vector.extract_strided_slice %368 {offsets = [0, 256], sizes = [8, 128], strides = [1, 1]} : vector<8x512xf32> to vector<8x128xf32>
    %382 = math.tanh %381 : vector<8x128xf32>
    %383 = vector.extract_strided_slice %368 {offsets = [0, 384], sizes = [8, 128], strides = [1, 1]} : vector<8x512xf32> to vector<8x128xf32>
    %384 = arith.negf %383 : vector<8x128xf32>
    %385 = math.exp %384 : vector<8x128xf32>
    %cst_97 = arith.constant 1.000000e+00 : f32
    %386 = vector.broadcast %cst_97 : f32 to vector<8x128xf32>
    %387 = arith.addf %386, %385 : vector<8x128xf32>
    %388 = arith.divf %386, %387 : vector<8x128xf32>
    %389 = arith.mulf %380, %326 : vector<8x128xf32>
    %390 = arith.mulf %374, %382 : vector<8x128xf32>
    %391 = arith.addf %389, %390 : vector<8x128xf32>
    %392 = math.tanh %391 : vector<8x128xf32>
    %393 = arith.mulf %388, %392 : vector<8x128xf32>
    %394 = arith.index_cast %c5_i32 : i32 to index
    %c0_98 = arith.constant 0 : index
    %c0_99 = arith.constant 0 : index
    %395 = vector.load %arg6[%394, %c0_98, %c0_99] : memref<8x8x128xf32, #tpu.memory_space<vmem>>, vector<1x8x128xf32>
    %396 = vector.shape_cast %395 : vector<1x8x128xf32> to vector<8x128xf32>
    %397 = vector.shape_cast %393 : vector<8x128xf32> to vector<1x8x128xf32>
    tpu.vector_store %arg6[%394, %c0_98, %c0_99], %397 {strides = array<i32>} : memref<8x8x128xf32, #tpu.memory_space<vmem>>, vector<1x8x128xf32>,
    %c6_i32 = arith.constant 6 : i32
    %398 = arith.index_cast %c6_i32 : i32 to index
    %c0_100 = arith.constant 0 : index
    %c0_101 = arith.constant 0 : index
    %399 = vector.load %arg1[%398, %c0_100, %c0_101] : memref<8x8x128xf32, #tpu.memory_space<vmem>>, vector<1x8x128xf32>
    %400 = vector.shape_cast %399 : vector<1x8x128xf32> to vector<8x128xf32>
    %401 = tpu.concatenate %400, %364 in 1 : vector<8x128xf32>, vector<8x128xf32> -> vector<8x256xf32>
    %c0_102 = arith.constant 0 : index
    %c0_103 = arith.constant 0 : index
    %402 = vector.load %arg2[%c0_102, %c0_103] : memref<256x512xf32, #tpu.memory_space<vmem>>, vector<256x512xf32>
    %cst_104 = arith.constant dense<0.000000e+00> : vector<8x512xf32>
    %403 = tpu.matmul %401, %402, %cst_104 {dimension_numbers = #tpu.dot_dimension_numbers<[1], [0], [0], [1], [0, 0, 1, 1], [], []>} : vector<8x256xf32>, vector<256x512xf32>, vector<8x512xf32> -> vector<8x512xf32>
    %404 = arith.addf %403, %2 : vector<8x512xf32>
    %405 = vector.extract_strided_slice %404 {offsets = [0, 0], sizes = [8, 128], strides = [1, 1]} : vector<8x512xf32> to vector<8x128xf32>
    %406 = arith.negf %405 : vector<8x128xf32>
    %407 = math.exp %406 : vector<8x128xf32>
    %cst_105 = arith.constant 1.000000e+00 : f32
    %408 = vector.broadcast %cst_105 : f32 to vector<8x128xf32>
    %409 = arith.addf %408, %407 : vector<8x128xf32>
    %410 = arith.divf %408, %409 : vector<8x128xf32>
    %411 = vector.extract_strided_slice %404 {offsets = [0, 128], sizes = [8, 128], strides = [1, 1]} : vector<8x512xf32> to vector<8x128xf32>
    %412 = arith.negf %411 : vector<8x128xf32>
    %413 = math.exp %412 : vector<8x128xf32>
    %cst_106 = arith.constant 1.000000e+00 : f32
    %414 = vector.broadcast %cst_106 : f32 to vector<8x128xf32>
    %415 = arith.addf %414, %413 : vector<8x128xf32>
    %416 = arith.divf %414, %415 : vector<8x128xf32>
    %417 = vector.extract_strided_slice %404 {offsets = [0, 256], sizes = [8, 128], strides = [1, 1]} : vector<8x512xf32> to vector<8x128xf32>
    %418 = math.tanh %417 : vector<8x128xf32>
    %419 = vector.extract_strided_slice %404 {offsets = [0, 384], sizes = [8, 128], strides = [1, 1]} : vector<8x512xf32> to vector<8x128xf32>
    %420 = arith.negf %419 : vector<8x128xf32>
    %421 = math.exp %420 : vector<8x128xf32>
    %cst_107 = arith.constant 1.000000e+00 : f32
    %422 = vector.broadcast %cst_107 : f32 to vector<8x128xf32>
    %423 = arith.addf %422, %421 : vector<8x128xf32>
    %424 = arith.divf %422, %423 : vector<8x128xf32>
    %425 = arith.mulf %416, %362 : vector<8x128xf32>
    %426 = arith.mulf %410, %418 : vector<8x128xf32>
    %427 = arith.addf %425, %426 : vector<8x128xf32>
    %428 = math.tanh %427 : vector<8x128xf32>
    %429 = arith.mulf %424, %428 : vector<8x128xf32>
    %430 = tpu.concatenate %429, %393 in 1 : vector<8x128xf32>, vector<8x128xf32> -> vector<8x256xf32>
    %c0_108 = arith.constant 0 : index
    %c0_109 = arith.constant 0 : index
    %431 = vector.load %arg4[%c0_108, %c0_109] : memref<256x512xf32, #tpu.memory_space<vmem>>, vector<256x512xf32>
    %cst_110 = arith.constant dense<0.000000e+00> : vector<8x512xf32>
    %432 = tpu.matmul %430, %431, %cst_110 {dimension_numbers = #tpu.dot_dimension_numbers<[1], [0], [0], [1], [0, 0, 1, 1], [], []>} : vector<8x256xf32>, vector<256x512xf32>, vector<8x512xf32> -> vector<8x512xf32>
    %433 = arith.addf %432, %5 : vector<8x512xf32>
    %434 = vector.extract_strided_slice %433 {offsets = [0, 0], sizes = [8, 128], strides = [1, 1]} : vector<8x512xf32> to vector<8x128xf32>
    %435 = arith.negf %434 : vector<8x128xf32>
    %436 = math.exp %435 : vector<8x128xf32>
    %cst_111 = arith.constant 1.000000e+00 : f32
    %437 = vector.broadcast %cst_111 : f32 to vector<8x128xf32>
    %438 = arith.addf %437, %436 : vector<8x128xf32>
    %439 = arith.divf %437, %438 : vector<8x128xf32>
    %440 = vector.extract_strided_slice %433 {offsets = [0, 128], sizes = [8, 128], strides = [1, 1]} : vector<8x512xf32> to vector<8x128xf32>
    %441 = arith.negf %440 : vector<8x128xf32>
    %442 = math.exp %441 : vector<8x128xf32>
    %cst_112 = arith.constant 1.000000e+00 : f32
    %443 = vector.broadcast %cst_112 : f32 to vector<8x128xf32>
    %444 = arith.addf %443, %442 : vector<8x128xf32>
    %445 = arith.divf %443, %444 : vector<8x128xf32>
    %446 = vector.extract_strided_slice %433 {offsets = [0, 256], sizes = [8, 128], strides = [1, 1]} : vector<8x512xf32> to vector<8x128xf32>
    %447 = math.tanh %446 : vector<8x128xf32>
    %448 = vector.extract_strided_slice %433 {offsets = [0, 384], sizes = [8, 128], strides = [1, 1]} : vector<8x512xf32> to vector<8x128xf32>
    %449 = arith.negf %448 : vector<8x128xf32>
    %450 = math.exp %449 : vector<8x128xf32>
    %cst_113 = arith.constant 1.000000e+00 : f32
    %451 = vector.broadcast %cst_113 : f32 to vector<8x128xf32>
    %452 = arith.addf %451, %450 : vector<8x128xf32>
    %453 = arith.divf %451, %452 : vector<8x128xf32>
    %454 = arith.mulf %445, %391 : vector<8x128xf32>
    %455 = arith.mulf %439, %447 : vector<8x128xf32>
    %456 = arith.addf %454, %455 : vector<8x128xf32>
    %457 = math.tanh %456 : vector<8x128xf32>
    %458 = arith.mulf %453, %457 : vector<8x128xf32>
    %459 = arith.index_cast %c6_i32 : i32 to index
    %c0_114 = arith.constant 0 : index
    %c0_115 = arith.constant 0 : index
    %460 = vector.load %arg6[%459, %c0_114, %c0_115] : memref<8x8x128xf32, #tpu.memory_space<vmem>>, vector<1x8x128xf32>
    %461 = vector.shape_cast %460 : vector<1x8x128xf32> to vector<8x128xf32>
    %462 = vector.shape_cast %458 : vector<8x128xf32> to vector<1x8x128xf32>
    tpu.vector_store %arg6[%459, %c0_114, %c0_115], %462 {strides = array<i32>} : memref<8x8x128xf32, #tpu.memory_space<vmem>>, vector<1x8x128xf32>,
    %c7_i32 = arith.constant 7 : i32
    %463 = arith.index_cast %c7_i32 : i32 to index
    %c0_116 = arith.constant 0 : index
    %c0_117 = arith.constant 0 : index
    %464 = vector.load %arg1[%463, %c0_116, %c0_117] : memref<8x8x128xf32, #tpu.memory_space<vmem>>, vector<1x8x128xf32>
    %465 = vector.shape_cast %464 : vector<1x8x128xf32> to vector<8x128xf32>
    %466 = tpu.concatenate %465, %429 in 1 : vector<8x128xf32>, vector<8x128xf32> -> vector<8x256xf32>
    %c0_118 = arith.constant 0 : index
    %c0_119 = arith.constant 0 : index
    %467 = vector.load %arg2[%c0_118, %c0_119] : memref<256x512xf32, #tpu.memory_space<vmem>>, vector<256x512xf32>
    %cst_120 = arith.constant dense<0.000000e+00> : vector<8x512xf32>
    %468 = tpu.matmul %466, %467, %cst_120 {dimension_numbers = #tpu.dot_dimension_numbers<[1], [0], [0], [1], [0, 0, 1, 1], [], []>} : vector<8x256xf32>, vector<256x512xf32>, vector<8x512xf32> -> vector<8x512xf32>
    %469 = arith.addf %468, %2 : vector<8x512xf32>
    %470 = vector.extract_strided_slice %469 {offsets = [0, 0], sizes = [8, 128], strides = [1, 1]} : vector<8x512xf32> to vector<8x128xf32>
    %471 = arith.negf %470 : vector<8x128xf32>
    %472 = math.exp %471 : vector<8x128xf32>
    %cst_121 = arith.constant 1.000000e+00 : f32
    %473 = vector.broadcast %cst_121 : f32 to vector<8x128xf32>
    %474 = arith.addf %473, %472 : vector<8x128xf32>
    %475 = arith.divf %473, %474 : vector<8x128xf32>
    %476 = vector.extract_strided_slice %469 {offsets = [0, 128], sizes = [8, 128], strides = [1, 1]} : vector<8x512xf32> to vector<8x128xf32>
    %477 = arith.negf %476 : vector<8x128xf32>
    %478 = math.exp %477 : vector<8x128xf32>
    %cst_122 = arith.constant 1.000000e+00 : f32
    %479 = vector.broadcast %cst_122 : f32 to vector<8x128xf32>
    %480 = arith.addf %479, %478 : vector<8x128xf32>
    %481 = arith.divf %479, %480 : vector<8x128xf32>
    %482 = vector.extract_strided_slice %469 {offsets = [0, 256], sizes = [8, 128], strides = [1, 1]} : vector<8x512xf32> to vector<8x128xf32>
    %483 = math.tanh %482 : vector<8x128xf32>
    %484 = vector.extract_strided_slice %469 {offsets = [0, 384], sizes = [8, 128], strides = [1, 1]} : vector<8x512xf32> to vector<8x128xf32>
    %485 = arith.negf %484 : vector<8x128xf32>
    %486 = math.exp %485 : vector<8x128xf32>
    %cst_123 = arith.constant 1.000000e+00 : f32
    %487 = vector.broadcast %cst_123 : f32 to vector<8x128xf32>
    %488 = arith.addf %487, %486 : vector<8x128xf32>
    %489 = arith.divf %487, %488 : vector<8x128xf32>
    %490 = arith.mulf %481, %427 : vector<8x128xf32>
    %491 = arith.mulf %475, %483 : vector<8x128xf32>
    %492 = arith.addf %490, %491 : vector<8x128xf32>
    %493 = math.tanh %492 : vector<8x128xf32>
    %494 = arith.mulf %489, %493 : vector<8x128xf32>
    %495 = tpu.concatenate %494, %458 in 1 : vector<8x128xf32>, vector<8x128xf32> -> vector<8x256xf32>
    %c0_124 = arith.constant 0 : index
    %c0_125 = arith.constant 0 : index
    %496 = vector.load %arg4[%c0_124, %c0_125] : memref<256x512xf32, #tpu.memory_space<vmem>>, vector<256x512xf32>
    %cst_126 = arith.constant dense<0.000000e+00> : vector<8x512xf32>
    %497 = tpu.matmul %495, %496, %cst_126 {dimension_numbers = #tpu.dot_dimension_numbers<[1], [0], [0], [1], [0, 0, 1, 1], [], []>} : vector<8x256xf32>, vector<256x512xf32>, vector<8x512xf32> -> vector<8x512xf32>
    %498 = arith.addf %497, %5 : vector<8x512xf32>
    %499 = vector.extract_strided_slice %498 {offsets = [0, 0], sizes = [8, 128], strides = [1, 1]} : vector<8x512xf32> to vector<8x128xf32>
    %500 = arith.negf %499 : vector<8x128xf32>
    %501 = math.exp %500 : vector<8x128xf32>
    %cst_127 = arith.constant 1.000000e+00 : f32
    %502 = vector.broadcast %cst_127 : f32 to vector<8x128xf32>
    %503 = arith.addf %502, %501 : vector<8x128xf32>
    %504 = arith.divf %502, %503 : vector<8x128xf32>
    %505 = vector.extract_strided_slice %498 {offsets = [0, 128], sizes = [8, 128], strides = [1, 1]} : vector<8x512xf32> to vector<8x128xf32>
    %506 = arith.negf %505 : vector<8x128xf32>
    %507 = math.exp %506 : vector<8x128xf32>
    %cst_128 = arith.constant 1.000000e+00 : f32
    %508 = vector.broadcast %cst_128 : f32 to vector<8x128xf32>
    %509 = arith.addf %508, %507 : vector<8x128xf32>
    %510 = arith.divf %508, %509 : vector<8x128xf32>
    %511 = vector.extract_strided_slice %498 {offsets = [0, 256], sizes = [8, 128], strides = [1, 1]} : vector<8x512xf32> to vector<8x128xf32>
    %512 = math.tanh %511 : vector<8x128xf32>
    %513 = vector.extract_strided_slice %498 {offsets = [0, 384], sizes = [8, 128], strides = [1, 1]} : vector<8x512xf32> to vector<8x128xf32>
    %514 = arith.negf %513 : vector<8x128xf32>
    %515 = math.exp %514 : vector<8x128xf32>
    %cst_129 = arith.constant 1.000000e+00 : f32
    %516 = vector.broadcast %cst_129 : f32 to vector<8x128xf32>
    %517 = arith.addf %516, %515 : vector<8x128xf32>
    %518 = arith.divf %516, %517 : vector<8x128xf32>
    %519 = arith.mulf %510, %456 : vector<8x128xf32>
    %520 = arith.mulf %504, %512 : vector<8x128xf32>
    %521 = arith.addf %519, %520 : vector<8x128xf32>
    %522 = math.tanh %521 : vector<8x128xf32>
    %523 = arith.mulf %518, %522 : vector<8x128xf32>
    %524 = arith.index_cast %c7_i32 : i32 to index
    %c0_130 = arith.constant 0 : index
    %c0_131 = arith.constant 0 : index
    %525 = vector.load %arg6[%524, %c0_130, %c0_131] : memref<8x8x128xf32, #tpu.memory_space<vmem>>, vector<1x8x128xf32>
    %526 = vector.shape_cast %525 : vector<1x8x128xf32> to vector<8x128xf32>
    %527 = vector.shape_cast %523 : vector<8x128xf32> to vector<1x8x128xf32>
    tpu.vector_store %arg6[%524, %c0_130, %c0_131], %527 {strides = array<i32>} : memref<8x8x128xf32, #tpu.memory_space<vmem>>, vector<1x8x128xf32>,
    %c8_i32 = arith.constant 8 : i32
    return
  }
  func.func @transform_0(%arg0: i32) -> (i32, i32, i32) {
    %c0_i32 = arith.constant 0 : i32
    %c0_i32_0 = arith.constant 0 : i32
    %c0_i32_1 = arith.constant 0 : i32
    %c0_i32_2 = arith.constant 0 : i32
    return %c0_i32, %c0_i32_0, %c0_i32_1 : i32, i32, i32
  }
  func.func @transform_1(%arg0: i32) -> (i32, i32) {
    %c0_i32 = arith.constant 0 : i32
    %c0_i32_0 = arith.constant 0 : i32
    %c0_i32_1 = arith.constant 0 : i32
    return %c0_i32, %c0_i32_0 : i32, i32
  }
  func.func @transform_2(%arg0: i32) -> (i32, i32) {
    %c0_i32 = arith.constant 0 : i32
    %c0_i32_0 = arith.constant 0 : i32
    %c0_i32_1 = arith.constant 0 : i32
    return %c0_i32, %c0_i32_0 : i32, i32
  }
  func.func @transform_3(%arg0: i32) -> (i32, i32) {
    %c0_i32 = arith.constant 0 : i32
    %c0_i32_0 = arith.constant 0 : i32
    %c0_i32_1 = arith.constant 0 : i32
    return %c0_i32, %c0_i32_0 : i32, i32
  }
  func.func @transform_4(%arg0: i32) -> (i32, i32) {
    %c0_i32 = arith.constant 0 : i32
    %c0_i32_0 = arith.constant 0 : i32
    %c0_i32_1 = arith.constant 0 : i32
    return %c0_i32, %c0_i32_0 : i32, i32
  }
  func.func @transform_5(%arg0: i32) -> (i32, i32, i32) {
    %c0_i32 = arith.constant 0 : i32
    %c0_i32_0 = arith.constant 0 : i32
    %c0_i32_1 = arith.constant 0 : i32
    %c0_i32_2 = arith.constant 0 : i32
    return %c0_i32, %c0_i32_0, %c0_i32_1 : i32, i32, i32
  }
}

</mosaic_0001>

<bundles_post_ra>
// kernel: mann_forward.1
= control target key start
LH: loop header
LB: loop body
LE: loop exit
PB: predicated region body
PF: predicated region fallthrough
CT: control target
= control target key end

     0   :  { %10 = vsyncpa [#allocation3], 0  ;;  %s7526_s0 = inlined_call_operand.vmem [shape: f32[8,8,128], index: 0, kind: input, shape index: {}]   ;;  %s7527_s1 = inlined_call_operand.hbm [shape: f32[256,512], index: 1, kind: input, shape index: {}]   ;;  %s7528_s2 = inlined_call_operand.vmem [shape: f32[1,512], index: 2, kind: input, shape index: {}]   ;;  %s7529_s3 = inlined_call_operand.hbm [shape: f32[256,512], index: 3, kind: input, shape index: {}]   ;;  %s7530_s4 = inlined_call_operand.vmem [shape: f32[1,512], index: 4, kind: input, shape index: {}]   ;;  %s7531_s5 = inlined_call_operand.vmem [shape: f32[8,8,128], index: 5, kind: output, shape index: {}]  }
   0x1   :  { %11 = vsyncpa [#allocation5], 0  ;;  %s7251_s18 = smov [#allocation2]   ;;  %s7203_s22 = scalar_lea.hbm %s7527_s1, 16384 }
   0x2   :  { %s19_s19 = sshll.u32 %s7251_s18, 4  ;;  %p7204_p0 = scmp.ne.s32.totalorder %s7527_s1, %s7203_s22  ;;  %s20_s19 = int_to_ptr.vmem [resolvable:$true] %s19_s19 }
   0x3   :  { %p7207_p1 = scmp.lt.u32.totalorder %s7203_s22, %s7527_s1 }
   0x5   :  { %p7209_p2 = pnand %p7207_p1, %p7204_p0 }
   0x7   :  { %7212 = shalt.err (!%p7209_p2)
}
   0x8   :  { %s7213_s27 = scalar_lea.vmem %s20_s19, 16384  ;;  %p7218_p4 = scmp.lt.s32.totalorder %s20_s19, %s20_s19 }
   0x9   :  { %p7214_p3 = scmp.ne.s32.totalorder %s20_s19, %s7213_s27  ;;  %p7219_p5 = scmp.lt.s32.totalorder %s7213_s27, %s7213_s27 }
   0xb   :  { %p7220_p6 = por %p7219_p5, %p7218_p4 }
   0xd   :  { %p7221_p7 = pnand %p7220_p6, %p7214_p3 }
   0xf   :  { %7224 = shalt.err (!%p7221_p7)
}
  0x10   :  { %s7252_s28 = smov 512   ;;  %s7253_s29 = smov 32  }
  0x11   :  { %25 = dma.hbm_to_vmem [thread:$0]  %s7527_s1, 16384, %s20_s19, [#allocation3], %s7252_s28, %s7252_s28, %s7253_s29  }
  0x12   :  { %s7254_s7 = smov [#allocation4]   ;;  %s7225_s11 = scalar_lea.hbm %s7529_s3, 16384 }
  0x13   :  { %s33_s8 = sshll.u32 %s7254_s7, 4  ;;  %p7226_p8 = scmp.ne.s32.totalorder %s7529_s3, %s7225_s11  ;;  %s34_s8 = int_to_ptr.vmem [resolvable:$true] %s33_s8 }
  0x14   :  { %p7229_p9 = scmp.lt.u32.totalorder %s7225_s11, %s7529_s3 }
  0x16   :  { %p7231_p10 = pnand %p7229_p9, %p7226_p8 }
  0x18   :  { %7234 = shalt.err (!%p7231_p10)
}
  0x19   :  { %s7235_s16 = scalar_lea.vmem %s34_s8, 16384  ;;  %p7240_p12 = scmp.lt.s32.totalorder %s34_s8, %s34_s8 }
  0x1a   :  { %p7236_p11 = scmp.ne.s32.totalorder %s34_s8, %s7235_s16  ;;  %p7241_p13 = scmp.lt.s32.totalorder %s7235_s16, %s7235_s16 }
  0x1c   :  { %p7242_p0 = por %p7241_p13, %p7240_p12 }
  0x1e   :  { %p7243_p1 = pnand %p7242_p0, %p7236_p11 }
  0x20   :  { %7246 = shalt.err (!%p7243_p1)
}
  0x21   :  { %39 = dma.hbm_to_vmem [thread:$0]  %s7529_s3, 16384, %s34_s8, [#allocation5], %s7252_s28, %s7252_s28, %s7253_s29  }
  0x22   :  { %7247 = dma.done.wait [#allocation3], 16384  }
  0x23   :  { %7248 = vsyncadd [#allocation3], 4294950912 }
  0x24   :  { %7249 = dma.done.wait [#allocation5], 16384  }
  0x25   :  { %7250 = vsyncadd [#allocation5], 4294950912  ;;  %v7255_v0 = vmov 0.0   ;;  %v94_v1 = vld [vmem:[#allocation2 + $0x8] sm:$0xff]  ;;  %v93_v3 = vld [vmem:[#allocation2] sm:$0xff] }
  0x26   :  { %285 = vmatprep.mubr.f32.mxu0 %v7255_v0  ;;  %356 = vmatprep.mubr.f32.mxu1 %v7255_v0  ;;  %v98_v2 = vld [vmem:[#allocation2 + $0x28] sm:$0xff]  ;;  %v97_v5 = vld [vmem:[#allocation2 + $0x20] sm:$0xff]  ;;  %v96_v19 = vld [vmem:[#allocation2 + $0x18] sm:$0xff] }
  0x27   :  { %v4894_v4 = vpack.c.bf16 %v98_v2, %v94_v1  ;;  %v102_v6 = vld [vmem:[#allocation2 + $0x48] sm:$0xff]  ;;  %v4896_v8 = vpack.c.bf16 %v97_v5, %v93_v3  ;;  %v101_v10 = vld [vmem:[#allocation2 + $0x40] sm:$0xff]  ;;  %v100_v20 = vld [vmem:[#allocation2 + $0x38] sm:$0xff] }
  0x28   :  { %v106_v7 = vld [vmem:[#allocation2 + $0x68] sm:$0xff]  ;;  %v105_v11 = vld [vmem:[#allocation2 + $0x60] sm:$0xff]  ;;  %v4958_v22 = vpack.c.bf16 %v100_v20, %v96_v19  ;;  %v95_v23 = vld [vmem:[#allocation2 + $0x10] sm:$0xff] }
  0x29   :  { %v4898_v9 = vpack.c.bf16 %v106_v7, %v102_v6  ;;  %v110_v12 = vld [vmem:[#allocation2 + $0x88] sm:$0xff]  ;;  %4895 = vmatprep.subr.bf16.mxu0 %v4894_v4  ;;  %v4900_v14 = vpack.c.bf16 %v105_v11, %v101_v10  ;;  %v109_v15 = vld [vmem:[#allocation2 + $0x80] sm:$0xff]  ;;  %v99_v24 = vld [vmem:[#allocation2 + $0x30] sm:$0xff] }
  0x2a   :  { %v114_v13 = vld [vmem:[#allocation2 + $0xa8] sm:$0xff]  ;;  %4897 = vmatpush1.bf16.msra.mxu0 %v4896_v8  ;;  %v113_v16 = vld [vmem:[#allocation2 + $0xa0] sm:$0xff]  ;;  %v4960_v25 = vpack.c.bf16 %v99_v24, %v95_v23  ;;  %4959 = vmatprep.subr.bf16.mxu1 %v4958_v22  ;;  %v104_v27 = vld [vmem:[#allocation2 + $0x58] sm:$0xff] }
  0x2b   :  { %4899 = vmatprep.subr.bf16.mxu0 %v4898_v9  ;;  %v4902_v17 = vpack.c.bf16 %v114_v13, %v110_v12  ;;  %v118_v18 = vld [vmem:[#allocation2 + $0xc8] sm:$0xff]  ;;  %v4904_v26 = vpack.c.bf16 %v113_v16, %v109_v15  ;;  %v108_v28 = vld [vmem:[#allocation2 + $0x78] sm:$0xff]  ;;  %v103_v29 = vld [vmem:[#allocation2 + $0x50] sm:$0xff] }
  0x2c   :  { %v122_v21 = vld [vmem:[#allocation2 + $0xe8] sm:$0xff]  ;;  %v117_v31 = vld [vmem:[#allocation2 + $0xc0] sm:$0xff]  ;;  %4961 = vmatpush1.bf16.msra.mxu1 %v4960_v25  ;;  %v4962_v33 = vpack.c.bf16 %v108_v28, %v104_v27  ;;  %v107_v34 = vld [vmem:[#allocation2 + $0x70] sm:$0xff] }
  0x2d   :  { %v4906_v30 = vpack.c.bf16 %v122_v21, %v118_v18  ;;  %v121_v32 = vld [vmem:[#allocation2 + $0xe0] sm:$0xff]  ;;  %v126_v35 = vld [vmem:[#allocation2 + $0x108] sm:$0xff]  ;;  %v4964_v37 = vpack.c.bf16 %v107_v34, %v103_v29  ;;  %v112_v38 = vld [vmem:[#allocation2 + $0x98] sm:$0xff] }
  0x2e   :  { %4901 = vmatpush1.bf16.msra.mxu0 %v4900_v14  ;;  %v130_v36 = vld [vmem:[#allocation2 + $0x128] sm:$0xff]  ;;  %4963 = vmatprep.subr.bf16.mxu1 %v4962_v33  ;;  %v116_v39 = vld [vmem:[#allocation2 + $0xb8] sm:$0xff]  ;;  %v111_v40 = vld [vmem:[#allocation2 + $0x90] sm:$0xff]  ;;  %v4908_v42 = vpack.c.bf16 %v121_v32, %v117_v31 }
  0x2f   :  { %4903 = vmatprep.subr.bf16.mxu0 %v4902_v17  ;;  %v115_v41 = vld [vmem:[#allocation2 + $0xb0] sm:$0xff]  ;;  %v125_v43 = vld [vmem:[#allocation2 + $0x100] sm:$0xff]  ;;  %v4966_v45 = vpack.c.bf16 %v116_v39, %v112_v38  ;;  %v4910_v46 = vpack.c.bf16 %v130_v36, %v126_v35  ;;  %v134_v47 = vld [vmem:[#allocation2 + $0x148] sm:$0xff] }
  0x30   :  { %v129_v44 = vld [vmem:[#allocation2 + $0x120] sm:$0xff]  ;;  %4965 = vmatpush1.bf16.msra.mxu1 %v4964_v37  ;;  %v4968_v48 = vpack.c.bf16 %v115_v41, %v111_v40  ;;  %v120_v49 = vld [vmem:[#allocation2 + $0xd8] sm:$0xff]  ;;  %v138_v51 = vld [vmem:[#allocation2 + $0x168] sm:$0xff] }
  0x31   :  { %v124_v50 = vld [vmem:[#allocation2 + $0xf8] sm:$0xff]  ;;  %4967 = vmatprep.subr.bf16.mxu1 %v4966_v45  ;;  %v119_v53 = vld [vmem:[#allocation2 + $0xd0] sm:$0xff]  ;;  %v4912_v55 = vpack.c.bf16 %v129_v44, %v125_v43  ;;  %v4914_v58 = vpack.c.bf16 %v138_v51, %v134_v47  ;;  %v133_v59 = vld [vmem:[#allocation2 + $0x140] sm:$0xff] }
  0x32   :  { %4905 = vmatpush1.bf16.msra.mxu0 %v4904_v26  ;;  %v4970_v52 = vpack.c.bf16 %v124_v50, %v120_v49  ;;  %v123_v54 = vld [vmem:[#allocation2 + $0xf0] sm:$0xff]  ;;  %v128_v56 = vld [vmem:[#allocation2 + $0x118] sm:$0xff]  ;;  %v137_v60 = vld [vmem:[#allocation2 + $0x160] sm:$0xff] }
  0x33   :  { %4907 = vmatprep.subr.bf16.mxu0 %v4906_v30  ;;  %v132_v57 = vld [vmem:[#allocation2 + $0x138] sm:$0xff]  ;;  %v142_v61 = vld [vmem:[#allocation2 + $0x188] sm:$0xff]  ;;  %v4972_v62 = vpack.c.bf16 %v123_v54, %v119_v53  ;;  %v127_v2 = vld [vmem:[#allocation2 + $0x110] sm:$0xff]  ;;  %v4916_v6 = vpack.c.bf16 %v137_v60, %v133_v59 }
  0x34   :  { %4969 = vmatpush1.bf16.msra.mxu1 %v4968_v48  ;;  %v146_v63 = vld [vmem:[#allocation2 + $0x1a8] sm:$0xff]  ;;  %v4974_v1 = vpack.c.bf16 %v132_v57, %v128_v56  ;;  %v131_v3 = vld [vmem:[#allocation2 + $0x130] sm:$0xff]  ;;  %v136_v4 = vld [vmem:[#allocation2 + $0x158] sm:$0xff] }
  0x35   :  { %4971 = vmatprep.subr.bf16.mxu1 %v4970_v52  ;;  %v140_v5 = vld [vmem:[#allocation2 + $0x178] sm:$0xff]  ;;  %v4918_v7 = vpack.c.bf16 %v146_v63, %v142_v61  ;;  %v141_v8 = vld [vmem:[#allocation2 + $0x180] sm:$0xff]  ;;  %v150_v10 = vld [vmem:[#allocation2 + $0x1c8] sm:$0xff]  ;;  %v4976_v11 = vpack.c.bf16 %v131_v3, %v127_v2 }
  0x36   :  { %4909 = vmatpush1.bf16.msra.mxu0 %v4908_v42  ;;  %v145_v9 = vld [vmem:[#allocation2 + $0x1a0] sm:$0xff]  ;;  %v154_v12 = vld [vmem:[#allocation2 + $0x1e8] sm:$0xff]  ;;  %v4978_v13 = vpack.c.bf16 %v140_v5, %v136_v4  ;;  %v135_v14 = vld [vmem:[#allocation2 + $0x150] sm:$0xff] }
  0x37   :  { %4911 = vmatprep.subr.bf16.mxu0 %v4910_v46  ;;  %v139_v15 = vld [vmem:[#allocation2 + $0x170] sm:$0xff]  ;;  %v144_v16 = vld [vmem:[#allocation2 + $0x198] sm:$0xff]  ;;  %v4920_v18 = vpack.c.bf16 %v145_v9, %v141_v8  ;;  %v4922_v19 = vpack.c.bf16 %v154_v12, %v150_v10  ;;  %v149_v20 = vld [vmem:[#allocation2 + $0x1c0] sm:$0xff] }
  0x38   :  { %4973 = vmatpush1.bf16.msra.mxu1 %v4972_v62  ;;  %v148_v17 = vld [vmem:[#allocation2 + $0x1b8] sm:$0xff]  ;;  %v153_v21 = vld [vmem:[#allocation2 + $0x1e0] sm:$0xff]  ;;  %v158_v22 = vld [vmem:[#allocation2 + $0x208] sm:$0xff]  ;;  %v4980_v23 = vpack.c.bf16 %v139_v15, %v135_v14 }
  0x39   :  { %4975 = vmatprep.subr.bf16.mxu1 %v4974_v1  ;;  %v162_v24 = vld [vmem:[#allocation2 + $0x228] sm:$0xff]  ;;  %v4982_v25 = vpack.c.bf16 %v148_v17, %v144_v16  ;;  %v143_v26 = vld [vmem:[#allocation2 + $0x190] sm:$0xff]  ;;  %v152_v28 = vld [vmem:[#allocation2 + $0x1d8] sm:$0xff]  ;;  %v4924_v30 = vpack.c.bf16 %v153_v21, %v149_v20 }
  0x3a   :  { %4913 = vmatpush1.bf16.msra.mxu0 %v4912_v55  ;;  %v147_v27 = vld [vmem:[#allocation2 + $0x1b0] sm:$0xff]  ;;  %v156_v29 = vld [vmem:[#allocation2 + $0x1f8] sm:$0xff]  ;;  %v4926_v31 = vpack.c.bf16 %v162_v24, %v158_v22  ;;  %v157_v32 = vld [vmem:[#allocation2 + $0x200] sm:$0xff] }
  0x3b   :  { %4915 = vmatprep.subr.bf16.mxu0 %v4914_v58  ;;  %v161_v33 = vld [vmem:[#allocation2 + $0x220] sm:$0xff]  ;;  %v166_v34 = vld [vmem:[#allocation2 + $0x248] sm:$0xff]  ;;  %v4984_v35 = vpack.c.bf16 %v147_v27, %v143_v26  ;;  %v4986_v37 = vpack.c.bf16 %v156_v29, %v152_v28  ;;  %v151_v38 = vld [vmem:[#allocation2 + $0x1d0] sm:$0xff] }
  0x3c   :  { %4977 = vmatpush1.bf16.msra.mxu1 %v4976_v11  ;;  %v170_v36 = vld [vmem:[#allocation2 + $0x268] sm:$0xff]  ;;  %v155_v39 = vld [vmem:[#allocation2 + $0x1f0] sm:$0xff]  ;;  %v160_v40 = vld [vmem:[#allocation2 + $0x218] sm:$0xff]  ;;  %v4928_v42 = vpack.c.bf16 %v161_v33, %v157_v32 }
  0x3d   :  { %4979 = vmatprep.subr.bf16.mxu1 %v4978_v13  ;;  %v164_v41 = vld [vmem:[#allocation2 + $0x238] sm:$0xff]  ;;  %v4930_v43 = vpack.c.bf16 %v170_v36, %v166_v34  ;;  %v165_v44 = vld [vmem:[#allocation2 + $0x240] sm:$0xff]  ;;  %v174_v46 = vld [vmem:[#allocation2 + $0x288] sm:$0xff]  ;;  %v4988_v47 = vpack.c.bf16 %v155_v39, %v151_v38 }
  0x3e   :  { %4917 = vmatpush1.bf16.msra.mxu0 %v4916_v6  ;;  %v169_v45 = vld [vmem:[#allocation2 + $0x260] sm:$0xff]  ;;  %v178_v48 = vld [vmem:[#allocation2 + $0x2a8] sm:$0xff]  ;;  %v4990_v49 = vpack.c.bf16 %v164_v41, %v160_v40  ;;  %v159_v50 = vld [vmem:[#allocation2 + $0x210] sm:$0xff] }
  0x3f   :  { %4919 = vmatprep.subr.bf16.mxu0 %v4918_v7  ;;  %v163_v51 = vld [vmem:[#allocation2 + $0x230] sm:$0xff]  ;;  %v168_v52 = vld [vmem:[#allocation2 + $0x258] sm:$0xff]  ;;  %v4932_v54 = vpack.c.bf16 %v169_v45, %v165_v44  ;;  %v4934_v55 = vpack.c.bf16 %v178_v48, %v174_v46  ;;  %v173_v56 = vld [vmem:[#allocation2 + $0x280] sm:$0xff] }
  0x40   :  { %4981 = vmatpush1.bf16.msra.mxu1 %v4980_v23  ;;  %v172_v53 = vld [vmem:[#allocation2 + $0x278] sm:$0xff]  ;;  %v177_v57 = vld [vmem:[#allocation2 + $0x2a0] sm:$0xff]  ;;  %v182_v58 = vld [vmem:[#allocation2 + $0x2c8] sm:$0xff]  ;;  %v4992_v59 = vpack.c.bf16 %v163_v51, %v159_v50 }
  0x41   :  { %4983 = vmatprep.subr.bf16.mxu1 %v4982_v25  ;;  %v186_v60 = vld [vmem:[#allocation2 + $0x2e8] sm:$0xff]  ;;  %v4994_v61 = vpack.c.bf16 %v172_v53, %v168_v52  ;;  %v167_v62 = vld [vmem:[#allocation2 + $0x250] sm:$0xff]  ;;  %v176_v1 = vld [vmem:[#allocation2 + $0x298] sm:$0xff]  ;;  %v4936_v3 = vpack.c.bf16 %v177_v57, %v173_v56 }
  0x42   :  { %4921 = vmatpush1.bf16.msra.mxu0 %v4920_v18  ;;  %v171_v63 = vld [vmem:[#allocation2 + $0x270] sm:$0xff]  ;;  %v180_v2 = vld [vmem:[#allocation2 + $0x2b8] sm:$0xff]  ;;  %v4938_v4 = vpack.c.bf16 %v186_v60, %v182_v58  ;;  %v181_v5 = vld [vmem:[#allocation2 + $0x2c0] sm:$0xff] }
  0x43   :  { %4923 = vmatprep.subr.bf16.mxu0 %v4922_v19  ;;  %v185_v6 = vld [vmem:[#allocation2 + $0x2e0] sm:$0xff]  ;;  %v190_v7 = vld [vmem:[#allocation2 + $0x308] sm:$0xff]  ;;  %v4996_v8 = vpack.c.bf16 %v171_v63, %v167_v62  ;;  %v4998_v10 = vpack.c.bf16 %v180_v2, %v176_v1  ;;  %v175_v11 = vld [vmem:[#allocation2 + $0x290] sm:$0xff] }
  0x44   :  { %4985 = vmatpush1.bf16.msra.mxu1 %v4984_v35  ;;  %v194_v9 = vld [vmem:[#allocation2 + $0x328] sm:$0xff]  ;;  %v179_v12 = vld [vmem:[#allocation2 + $0x2b0] sm:$0xff]  ;;  %v184_v13 = vld [vmem:[#allocation2 + $0x2d8] sm:$0xff]  ;;  %v4940_v15 = vpack.c.bf16 %v185_v6, %v181_v5 }
  0x45   :  { %4987 = vmatprep.subr.bf16.mxu1 %v4986_v37  ;;  %v188_v14 = vld [vmem:[#allocation2 + $0x2f8] sm:$0xff]  ;;  %v4942_v16 = vpack.c.bf16 %v194_v9, %v190_v7  ;;  %v189_v17 = vld [vmem:[#allocation2 + $0x300] sm:$0xff]  ;;  %v198_v19 = vld [vmem:[#allocation2 + $0x348] sm:$0xff]  ;;  %v5000_v20 = vpack.c.bf16 %v179_v12, %v175_v11 }
  0x46   :  { %4925 = vmatpush1.bf16.msra.mxu0 %v4924_v30  ;;  %v193_v18 = vld [vmem:[#allocation2 + $0x320] sm:$0xff]  ;;  %v202_v21 = vld [vmem:[#allocation2 + $0x368] sm:$0xff]  ;;  %v5002_v22 = vpack.c.bf16 %v188_v14, %v184_v13  ;;  %v183_v23 = vld [vmem:[#allocation2 + $0x2d0] sm:$0xff] }
  0x47   :  { %4927 = vmatprep.subr.bf16.mxu0 %v4926_v31  ;;  %v187_v24 = vld [vmem:[#allocation2 + $0x2f0] sm:$0xff]  ;;  %v192_v25 = vld [vmem:[#allocation2 + $0x318] sm:$0xff]  ;;  %v4944_v27 = vpack.c.bf16 %v193_v18, %v189_v17  ;;  %v4946_v28 = vpack.c.bf16 %v202_v21, %v198_v19  ;;  %v197_v29 = vld [vmem:[#allocation2 + $0x340] sm:$0xff] }
  0x48   :  { %4989 = vmatpush1.bf16.msra.mxu1 %v4988_v47  ;;  %v196_v26 = vld [vmem:[#allocation2 + $0x338] sm:$0xff]  ;;  %v201_v30 = vld [vmem:[#allocation2 + $0x360] sm:$0xff]  ;;  %v206_v31 = vld [vmem:[#allocation2 + $0x388] sm:$0xff]  ;;  %v5004_v32 = vpack.c.bf16 %v187_v24, %v183_v23 }
  0x49   :  { %4991 = vmatprep.subr.bf16.mxu1 %v4990_v49  ;;  %v210_v33 = vld [vmem:[#allocation2 + $0x3a8] sm:$0xff]  ;;  %v5006_v34 = vpack.c.bf16 %v196_v26, %v192_v25  ;;  %v191_v35 = vld [vmem:[#allocation2 + $0x310] sm:$0xff]  ;;  %v200_v37 = vld [vmem:[#allocation2 + $0x358] sm:$0xff]  ;;  %v4948_v39 = vpack.c.bf16 %v201_v30, %v197_v29 }
  0x4a   :  { %4929 = vmatpush1.bf16.msra.mxu0 %v4928_v42  ;;  %v195_v36 = vld [vmem:[#allocation2 + $0x330] sm:$0xff]  ;;  %v204_v38 = vld [vmem:[#allocation2 + $0x378] sm:$0xff]  ;;  %v4950_v40 = vpack.c.bf16 %v210_v33, %v206_v31  ;;  %v205_v41 = vld [vmem:[#allocation2 + $0x380] sm:$0xff] }
  0x4b   :  { %4931 = vmatprep.subr.bf16.mxu0 %v4930_v43  ;;  %v209_v42 = vld [vmem:[#allocation2 + $0x3a0] sm:$0xff]  ;;  %v214_v43 = vld [vmem:[#allocation2 + $0x3c8] sm:$0xff]  ;;  %v5008_v44 = vpack.c.bf16 %v195_v36, %v191_v35  ;;  %v5010_v46 = vpack.c.bf16 %v204_v38, %v200_v37  ;;  %v199_v47 = vld [vmem:[#allocation2 + $0x350] sm:$0xff] }
  0x4c   :  { %4993 = vmatpush1.bf16.msra.mxu1 %v4992_v59  ;;  %v218_v45 = vld [vmem:[#allocation2 + $0x3e8] sm:$0xff]  ;;  %v203_v48 = vld [vmem:[#allocation2 + $0x370] sm:$0xff]  ;;  %v208_v49 = vld [vmem:[#allocation2 + $0x398] sm:$0xff]  ;;  %v4952_v51 = vpack.c.bf16 %v209_v42, %v205_v41 }
  0x4d   :  { %4995 = vmatprep.subr.bf16.mxu1 %v4994_v61  ;;  %v212_v50 = vld [vmem:[#allocation2 + $0x3b8] sm:$0xff]  ;;  %v4954_v52 = vpack.c.bf16 %v218_v45, %v214_v43  ;;  %v213_v53 = vld [vmem:[#allocation2 + $0x3c0] sm:$0xff]  ;;  %v207_v56 = vld [vmem:[#allocation2 + $0x390] sm:$0xff] }
  0x4e   :  { %4933 = vmatpush1.bf16.msra.mxu0 %v4932_v54  ;;  %v217_v54 = vld [vmem:[#allocation2 + $0x3e0] sm:$0xff]  ;;  %v5014_v57 = vpack.c.bf16 %v212_v50, %v208_v49  ;;  %v211_v58 = vld [vmem:[#allocation2 + $0x3b0] sm:$0xff]  ;;  %v388_v59 = vld [vmem:[#allocation4 + $0x8] sm:$0xff] }
  0x4f   :  { %4935 = vmatprep.subr.bf16.mxu0 %v4934_v55  ;;  %v5012_v55 = vpack.c.bf16 %v203_v48, %v199_v47  ;;  %v392_v60 = vld [vmem:[#allocation4 + $0x28] sm:$0xff]  ;;  %v216_v61 = vld [vmem:[#allocation2 + $0x3d8] sm:$0xff]  ;;  %v4956_v63 = vpack.c.bf16 %v217_v54, %v213_v53  ;;  %v5016_v1 = vpack.c.bf16 %v211_v58, %v207_v56  ;;  %v215_v2 = vld [vmem:[#allocation2 + $0x3d0] sm:$0xff] }
  0x50   :  { %4997 = vmatpush1.bf16.msra.mxu1 %v4996_v8  ;;  %v220_v62 = vld [vmem:[#allocation2 + $0x3f8] sm:$0xff]  ;;  %v391_v5 = vld [vmem:[#allocation4 + $0x20] sm:$0xff]  ;;  %v219_v7 = vld [vmem:[#allocation2 + $0x3f0] sm:$0xff] }
  0x51   :  { %4999 = vmatprep.subr.bf16.mxu1 %v4998_v10  ;;  %v5018_v6 = vpack.c.bf16 %v220_v62, %v216_v61  ;;  %v396_v8 = vld [vmem:[#allocation4 + $0x48] sm:$0xff]  ;;  %v390_v10 = vld [vmem:[#allocation4 + $0x18] sm:$0xff]  ;;  %v92_v12 = vld [vmem:[%s7526_s0] sm:$0xff]  ;;  %v5020_v14 = vpack.c.bf16 %v219_v7, %v215_v2 }
  0x52   :  { %4937 = vmatpush1.bf16.msra.mxu0 %v4936_v3  ;;  %v5022_v3 = vpack.c.bf16 %v392_v60, %v388_v59  ;;  %v400_v9 = vld [vmem:[#allocation4 + $0x68] sm:$0xff]  ;;  %v394_v11 = vld [vmem:[#allocation4 + $0x38] sm:$0xff]  ;;  %v395_v17 = vld [vmem:[#allocation4 + $0x40] sm:$0xff] }
  0x53   :  { %4939 = vmatprep.subr.bf16.mxu0 %v4938_v4  ;;  %v387_v4 = vld [vmem:[#allocation4] sm:$0xff]  ;;  %v5086_v19 = vpack.c.bf16 %v394_v11, %v390_v10  ;;  %v404_v21 = vld [vmem:[#allocation4 + $0x88] sm:$0xff]  ;;  %v398_v23 = vld [vmem:[#allocation4 + $0x58] sm:$0xff] }
  0x54   :  { %5001 = vmatpush1.bf16.msra.mxu1 %v5000_v20  ;;  %v5024_v13 = vpack.c.bf16 %v391_v5, %v387_v4  ;;  %v399_v18 = vld [vmem:[#allocation4 + $0x60] sm:$0xff]  ;;  %v393_v20 = vld [vmem:[#allocation4 + $0x30] sm:$0xff]  ;;  %v402_v24 = vld [vmem:[#allocation4 + $0x78] sm:$0xff] }
  0x55   :  { %5003 = vmatprep.subr.bf16.mxu1 %v5002_v22  ;;  %v408_v22 = vld [vmem:[#allocation4 + $0xa8] sm:$0xff]  ;;  %v5028_v25 = vpack.c.bf16 %v399_v18, %v395_v17  ;;  %v403_v29 = vld [vmem:[#allocation4 + $0x80] sm:$0xff]  ;;  %v5090_v31 = vpack.c.bf16 %v402_v24, %v398_v23  ;;  %v406_v35 = vld [vmem:[#allocation4 + $0x98] sm:$0xff] }
  0x56   :  { %4941 = vmatpush1.bf16.msra.mxu0 %v4940_v15  ;;  %v389_v15 = vld [vmem:[#allocation4 + $0x10] sm:$0xff]  ;;  %v407_v30 = vld [vmem:[#allocation4 + $0xa0] sm:$0xff]  ;;  %v412_v33 = vld [vmem:[#allocation4 + $0xc8] sm:$0xff] }
  0x57   :  { %4943 = vmatprep.subr.bf16.mxu0 %v4942_v16  ;;  %v5026_v16 = vpack.c.bf16 %v400_v9, %v396_v8  ;;  %v5088_v26 = vpack.c.bf16 %v393_v20, %v389_v15  ;;  %v410_v36 = vld [vmem:[#allocation4 + $0xb8] sm:$0xff]  ;;  %v5032_v37 = vpack.c.bf16 %v407_v30, %v403_v29  ;;  %v411_v41 = vld [vmem:[#allocation4 + $0xc0] sm:$0xff]  ;;  %v420_v45 = vld [vmem:[#allocation4 + $0x108] sm:$0xff] }
  0x58   :  { %5005 = vmatpush1.bf16.msra.mxu1 %v5004_v32  ;;  %v401_v32 = vld [vmem:[#allocation4 + $0x70] sm:$0xff]  ;;  %v415_v42 = vld [vmem:[#allocation4 + $0xe0] sm:$0xff]  ;;  %v5094_v43 = vpack.c.bf16 %v410_v36, %v406_v35  ;;  %v414_v47 = vld [vmem:[#allocation4 + $0xd8] sm:$0xff] }
  0x59   :  { %5007 = vmatprep.subr.bf16.mxu1 %v5006_v34  ;;  %v416_v34 = vld [vmem:[#allocation4 + $0xe8] sm:$0xff]  ;;  %v418_v48 = vld [vmem:[#allocation4 + $0xf8] sm:$0xff]  ;;  %v5036_v49 = vpack.c.bf16 %v415_v42, %v411_v41  ;;  %v423_v53 = vld [vmem:[#allocation4 + $0x120] sm:$0xff] }
  0x5a   :  { %4945 = vmatpush1.bf16.msra.mxu0 %v4944_v27  ;;  %v397_v27 = vld [vmem:[#allocation4 + $0x50] sm:$0xff]  ;;  %v5098_v54 = vpack.c.bf16 %v418_v48, %v414_v47  ;;  %v426_v58 = vld [vmem:[#allocation4 + $0x138] sm:$0xff]  ;;  %v432_v2 = vld [vmem:[#allocation4 + $0x168] sm:$0xff] }
  0x5b   :  { %4947 = vmatprep.subr.bf16.mxu0 %v4946_v28  ;;  %v5030_v28 = vpack.c.bf16 %v408_v22, %v404_v21  ;;  %v5092_v38 = vpack.c.bf16 %v401_v32, %v397_v27  ;;  %v417_v56 = vld [vmem:[#allocation4 + $0xf0] sm:$0xff]  ;;  %v427_v4 = vld [vmem:[#allocation4 + $0x140] sm:$0xff]  ;;  %v434_v8 = vld [vmem:[#allocation4 + $0x178] sm:$0xff] }
  0x5c   :  { %5009 = vmatpush1.bf16.msra.mxu1 %v5008_v44  ;;  %v409_v44 = vld [vmem:[#allocation4 + $0xb0] sm:$0xff]  ;;  %v431_v5 = vld [vmem:[#allocation4 + $0x160] sm:$0xff]  ;;  %v438_v18 = vld [vmem:[#allocation4 + $0x198] sm:$0xff] }
  0x5d   :  { %5011 = vmatprep.subr.bf16.mxu1 %v5010_v46  ;;  %v424_v46 = vld [vmem:[#allocation4 + $0x128] sm:$0xff]  ;;  %v421_v61 = vld [vmem:[#allocation4 + $0x110] sm:$0xff]  ;;  %v5044_v7 = vpack.c.bf16 %v431_v5, %v427_v4  ;;  %v439_v17 = vld [vmem:[#allocation4 + $0x1a0] sm:$0xff] }
  0x5e   :  { %4949 = vmatpush1.bf16.msra.mxu0 %v4948_v39  ;;  %v405_v39 = vld [vmem:[#allocation4 + $0x90] sm:$0xff]  ;;  %v442_v20 = vld [vmem:[#allocation4 + $0x1b8] sm:$0xff]  ;;  %v447_v29 = vld [vmem:[#allocation4 + $0x1e0] sm:$0xff] }
  0x5f   :  { %4951 = vmatprep.subr.bf16.mxu0 %v4950_v40  ;;  %v5034_v40 = vpack.c.bf16 %v416_v34, %v412_v33  ;;  %v5096_v50 = vpack.c.bf16 %v409_v44, %v405_v39  ;;  %v425_v62 = vld [vmem:[#allocation4 + $0x130] sm:$0xff]  ;;  %v5110_v23 = vpack.c.bf16 %v442_v20, %v438_v18  ;;  %v446_v30 = vld [vmem:[#allocation4 + $0x1d8] sm:$0xff]  ;;  %v455_v41 = vld [vmem:[#allocation4 + $0x220] sm:$0xff] }
  0x60   :  { %5013 = vmatpush1.bf16.msra.mxu1 %v5012_v55  ;;  %v413_v55 = vld [vmem:[#allocation4 + $0xd0] sm:$0xff]  ;;  %v450_v32 = vld [vmem:[#allocation4 + $0x1f8] sm:$0xff] }
  0x61   :  { %5015 = vmatprep.subr.bf16.mxu1 %v5014_v57  ;;  %v422_v57 = vld [vmem:[#allocation4 + $0x118] sm:$0xff]  ;;  %v429_v9 = vld [vmem:[#allocation4 + $0x150] sm:$0xff]  ;;  %v5114_v35 = vpack.c.bf16 %v450_v32, %v446_v30 }
  0x62   :  { %4953 = vmatpush1.bf16.msra.mxu0 %v4952_v51  ;;  %v5038_v51 = vpack.c.bf16 %v424_v46, %v420_v45  ;;  %v5102_v60 = vpack.c.bf16 %v426_v58, %v422_v57  ;;  %v433_v10 = vld [vmem:[#allocation4 + $0x170] sm:$0xff]  ;;  %v454_v42 = vld [vmem:[#allocation4 + $0x218] sm:$0xff] }
  0x63   :  { %4955 = vmatprep.subr.bf16.mxu0 %v4954_v52  ;;  %v419_v52 = vld [vmem:[#allocation4 + $0x100] sm:$0xff]  ;;  %v437_v21 = vld [vmem:[#allocation4 + $0x190] sm:$0xff]  ;;  %v458_v44 = vld [vmem:[#allocation4 + $0x238] sm:$0xff] }
  0x64   :  { %5017 = vmatpush1.bf16.msra.mxu1 %v5016_v1  ;;  %v5040_v59 = vpack.c.bf16 %v423_v53, %v419_v52  ;;  %v428_v1 = vld [vmem:[#allocation4 + $0x148] sm:$0xff]  ;;  %v441_v22 = vld [vmem:[#allocation4 + $0x1b0] sm:$0xff]  ;;  %v5118_v47 = vpack.c.bf16 %v458_v44, %v454_v42  ;;  %v459_v52 = vld [vmem:[#allocation4 + $0x240] sm:$0xff] }
  0x65   :  { %5019 = vmatprep.subr.bf16.mxu1 %v5018_v6  ;;  %v430_v6 = vld [vmem:[#allocation4 + $0x158] sm:$0xff]  ;;  %v5112_v24 = vpack.c.bf16 %v441_v22, %v437_v21  ;;  %v445_v33 = vld [vmem:[#allocation4 + $0x1d0] sm:$0xff]  ;;  %v463_v53 = vld [vmem:[#allocation4 + $0x260] sm:$0xff] }
  0x66   :  { %4957 = vmatpush1.bf16.msra.mxu0 %v4956_v63  ;;  %v5104_v63 = vpack.c.bf16 %v425_v62, %v421_v61  ;;  %v5106_v11 = vpack.c.bf16 %v434_v8, %v430_v6  ;;  %v449_v34 = vld [vmem:[#allocation4 + $0x1f0] sm:$0xff]  ;;  %v472_v61 = vld [vmem:[#allocation4 + $0x2a8] sm:$0xff]  ;;  %v474_v4 = vld [vmem:[#allocation4 + $0x2b8] sm:$0xff] }
  0x67   :  { %5023 = vmatprep.subr.bf16.mxu0 %v5022_v3  ;;  %v5042_v3 = vpack.c.bf16 %v432_v2, %v428_v1  ;;  %v5116_v36 = vpack.c.bf16 %v449_v34, %v445_v33  ;;  %v453_v45 = vld [vmem:[#allocation4 + $0x210] sm:$0xff]  ;;  %v471_v1 = vld [vmem:[#allocation4 + $0x2a0] sm:$0xff]  ;;  %v470_v2 = vld [vmem:[#allocation4 + $0x298] sm:$0xff] }
  0x68   :  { %5021 = vmatpush1.bf16.msra.mxu1 %v5020_v14  ;;  %v440_v14 = vld [vmem:[#allocation4 + $0x1a8] sm:$0xff]  ;;  %v457_v46 = vld [vmem:[#allocation4 + $0x230] sm:$0xff] }
  0x69   :  { %286 = vmatmul.mubr.f32.vlgmr.msra.gmra.mrb[0].mxu0 %v92_v12  ;;  %5087 = vmatprep.subr.bf16.mxu1 %v5086_v19  ;;  %v5120_v48 = vpack.c.bf16 %v457_v46, %v453_v45  ;;  %v461_v57 = vld [vmem:[#allocation4 + $0x250] sm:$0xff]  ;;  %v484_v21 = vld [vmem:[#allocation4 + $0x308] sm:$0xff] }
  0x6a   :  { %5025 = vmatpush1.bf16.msra.mxu0 %v5024_v13  ;;  %579 = vmatprep.mubr.f32.mxu0 %v7255_v0  ;;  %v436_v13 = vld [vmem:[#allocation4 + $0x188] sm:$0xff]  ;;  %v465_v58 = vld [vmem:[#allocation4 + $0x270] sm:$0xff] }
  0x6b   :  { %5027 = vmatprep.subr.bf16.mxu0 %v5026_v16  ;;  %357 = vmatmul.mubr.f32.vlgmr.msra.gmra.mrb[0].mxu1 %v92_v12  ;;  %v5108_v12 = vpack.c.bf16 %v433_v10, %v429_v9  ;;  %v5046_v15 = vpack.c.bf16 %v440_v14, %v436_v13  ;;  %v435_v16 = vld [vmem:[#allocation4 + $0x180] sm:$0xff]  ;;  %v469_v5 = vld [vmem:[#allocation4 + $0x290] sm:$0xff]  ;;  %v476_v9 = vld [vmem:[#allocation4 + $0x2c8] sm:$0xff] }
  0x6c   :  { %5089 = vmatpush1.bf16.msra.mxu1 %v5088_v26  ;;  %650 = vmatprep.mubr.f32.mxu1 %v7255_v0  ;;  %v5100_v0 = vpack.c.bf16 %v417_v56, %v413_v55  ;;  %v5048_v19 = vpack.c.bf16 %v439_v17, %v435_v16  ;;  %v448_v26 = vld [vmem:[#allocation4 + $0x1e8] sm:$0xff]  ;;  %v5060_v55 = vpack.c.bf16 %v463_v53, %v459_v52  ;;  %v466_v56 = vld [vmem:[#allocation4 + $0x278] sm:$0xff]  ;;  %v473_v6 = vld [vmem:[#allocation4 + $0x2b0] sm:$0xff] }
  0x6d   :  { %5091 = vmatprep.subr.bf16.mxu1 %v5090_v31  ;;  %v5128_v8 = vpack.c.bf16 %v473_v6, %v469_v5  ;;  %v480_v10 = vld [vmem:[#allocation4 + $0x2e8] sm:$0xff]  ;;  %v479_v13 = vld [vmem:[#allocation4 + $0x2e0] sm:$0xff]  ;;  %v478_v14 = vld [vmem:[#allocation4 + $0x2d8] sm:$0xff] }
  0x6e   :  { %5029 = vmatpush1.bf16.msra.mxu0 %v5028_v25  ;;  %v444_v25 = vld [vmem:[#allocation4 + $0x1c8] sm:$0xff]  ;;  %v482_v16 = vld [vmem:[#allocation4 + $0x2f8] sm:$0xff]  ;;  %v477_v17 = vld [vmem:[#allocation4 + $0x2d0] sm:$0xff] }
  0x6f   :  { %5031 = vmatprep.subr.bf16.mxu0 %v5030_v28  ;;  %v5050_v27 = vpack.c.bf16 %v448_v26, %v444_v25  ;;  %v443_v28 = vld [vmem:[#allocation4 + $0x1c0] sm:$0xff]  ;;  %v481_v18 = vld [vmem:[#allocation4 + $0x2f0] sm:$0xff]  ;;  %v488_v22 = vld [vmem:[#allocation4 + $0x328] sm:$0xff] }
  0x70   :  { %5093 = vmatpush1.bf16.msra.mxu1 %v5092_v38  ;;  %v5052_v31 = vpack.c.bf16 %v447_v29, %v443_v28  ;;  %v456_v38 = vld [vmem:[#allocation4 + $0x228] sm:$0xff]  ;;  %v5132_v20 = vpack.c.bf16 %v481_v18, %v477_v17  ;;  %v487_v25 = vld [vmem:[#allocation4 + $0x320] sm:$0xff]  ;;  %v486_v26 = vld [vmem:[#allocation4 + $0x318] sm:$0xff] }
  0x71   :  { %5095 = vmatprep.subr.bf16.mxu1 %v5094_v43  ;;  %v490_v28 = vld [vmem:[#allocation4 + $0x338] sm:$0xff]  ;;  %v485_v29 = vld [vmem:[#allocation4 + $0x310] sm:$0xff]  ;;  %v492_v33 = vld [vmem:[#allocation4 + $0x348] sm:$0xff] }
  0x72   :  { %5033 = vmatpush1.bf16.msra.mxu0 %v5032_v37  ;;  %v452_v37 = vld [vmem:[#allocation4 + $0x208] sm:$0xff]  ;;  %v489_v30 = vld [vmem:[#allocation4 + $0x330] sm:$0xff] }
  0x73   :  { %5035 = vmatprep.subr.bf16.mxu0 %v5034_v40  ;;  %v5054_v39 = vpack.c.bf16 %v456_v38, %v452_v37  ;;  %v451_v40 = vld [vmem:[#allocation4 + $0x200] sm:$0xff]  ;;  %v5136_v32 = vpack.c.bf16 %v489_v30, %v485_v29  ;;  %v496_v34 = vld [vmem:[#allocation4 + $0x368] sm:$0xff]  ;;  %v494_v38 = vld [vmem:[#allocation4 + $0x358] sm:$0xff] }
  0x74   :  { %5097 = vmatpush1.bf16.msra.mxu1 %v5096_v50  ;;  %v5056_v43 = vpack.c.bf16 %v455_v41, %v451_v40  ;;  %v464_v50 = vld [vmem:[#allocation4 + $0x268] sm:$0xff]  ;;  %v495_v37 = vld [vmem:[#allocation4 + $0x360] sm:$0xff]  ;;  %v498_v40 = vld [vmem:[#allocation4 + $0x378] sm:$0xff] }
  0x75   :  { %5099 = vmatprep.subr.bf16.mxu1 %v5098_v54  ;;  %v462_v54 = vld [vmem:[#allocation4 + $0x258] sm:$0xff]  ;;  %v493_v41 = vld [vmem:[#allocation4 + $0x350] sm:$0xff]  ;;  %v500_v45 = vld [vmem:[#allocation4 + $0x388] sm:$0xff] }
  0x76   :  { %5037 = vmatpush1.bf16.msra.mxu0 %v5036_v49  ;;  %v460_v49 = vld [vmem:[#allocation4 + $0x248] sm:$0xff]  ;;  %v497_v42 = vld [vmem:[#allocation4 + $0x370] sm:$0xff] }
  0x77   :  { %5039 = vmatprep.subr.bf16.mxu0 %v5038_v51  ;;  %v5058_v51 = vpack.c.bf16 %v464_v50, %v460_v49  ;;  %v5140_v44 = vpack.c.bf16 %v497_v42, %v493_v41  ;;  %v504_v46 = vld [vmem:[#allocation4 + $0x3a8] sm:$0xff]  ;;  %v503_v49 = vld [vmem:[#allocation4 + $0x3a0] sm:$0xff]  ;;  %v502_v50 = vld [vmem:[#allocation4 + $0x398] sm:$0xff] }
  0x78   :  { %5101 = vmatpush1.bf16.msra.mxu1 %v5100_v0  ;;  %v5124_v0 = vpack.c.bf16 %v465_v58, %v461_v57  ;;  %v512_v58 = vld [vmem:[#allocation4 + $0x3e8] sm:$0xff] }
  0x79   :  { %5103 = vmatprep.subr.bf16.mxu1 %v5102_v60  ;;  %v468_v60 = vld [vmem:[#allocation4 + $0x288] sm:$0xff] }
  0x7a   :  { %5041 = vmatpush1.bf16.msra.mxu0 %v5040_v59  ;;  %v5122_v59 = vpack.c.bf16 %v466_v56, %v462_v54  ;;  %v5062_v62 = vpack.c.bf16 %v472_v61, %v468_v60  ;;  %v501_v54 = vld [vmem:[#allocation4 + $0x390] sm:$0xff]  ;;  %v508_v56 = vld [vmem:[#allocation4 + $0x3c8] sm:$0xff]  ;;  %v510_v61 = vld [vmem:[#allocation4 + $0x3d8] sm:$0xff] }
  0x7b   :  { %5043 = vmatprep.subr.bf16.mxu0 %v5042_v3  ;;  %v5082_v60 = vpack.c.bf16 %v512_v58, %v508_v56  ;;  %v689_v5 = vld [vmem:[#allocation2 + $0x28] sm:$0xff]  ;;  %v692_v58 = vld [vmem:[#allocation2 + $0x40] sm:$0xff] }
  0x7c   :  { %5105 = vmatpush1.bf16.msra.mxu1 %v5104_v63  ;;  %v467_v63 = vld [vmem:[#allocation4 + $0x280] sm:$0xff] }
  0x7d   :  { %5107 = vmatprep.subr.bf16.mxu1 %v5106_v11  ;;  %v5064_v3 = vpack.c.bf16 %v471_v1, %v467_v63  ;;  %v5066_v11 = vpack.c.bf16 %v480_v10, %v476_v9  ;;  %v509_v63 = vld [vmem:[#allocation4 + $0x3d0] sm:$0xff]  ;;  %v691_v9 = vld [vmem:[#allocation2 + $0x38] sm:$0xff] }
  0x7e   :  { %5045 = vmatpush1.bf16.msra.mxu0 %v5044_v7  ;;  %v5126_v7 = vpack.c.bf16 %v474_v4, %v470_v2  ;;  %v685_v4 = vld [vmem:[#allocation2 + $0x8] sm:$0xff] }
  0x7f   :  { %5047 = vmatprep.subr.bf16.mxu0 %v5046_v15  ;;  %v5150_v6 = vpack.c.bf16 %v689_v5, %v685_v4  ;;  %v707_v4 = vld [vmem:[#allocation2 + $0xb8] sm:$0xff] }
  0x80   :  { %5109 = vmatpush1.bf16.msra.mxu1 %v5108_v12  ;;  %v475_v12 = vld [vmem:[#allocation4 + $0x2c0] sm:$0xff] }
  0x81   :  { %5111 = vmatprep.subr.bf16.mxu1 %v5110_v23  ;;  %v5068_v15 = vpack.c.bf16 %v479_v13, %v475_v12  ;;  %v5070_v23 = vpack.c.bf16 %v488_v22, %v484_v21 }
  0x82   :  { %5049 = vmatpush1.bf16.msra.mxu0 %v5048_v19  ;;  %v5130_v19 = vpack.c.bf16 %v482_v16, %v478_v14  ;;  %v48_v14 = vld [vmem:[%s7528_s2] sm:$0xf] }
  0x83   :  { %5051 = vmatprep.subr.bf16.mxu0 %v5050_v27 }
  0x84   :  { %5113 = vmatpush1.bf16.msra.mxu1 %v5112_v24  ;;  %v483_v24 = vld [vmem:[#allocation4 + $0x300] sm:$0xff] }
  0x85   :  { %5115 = vmatprep.subr.bf16.mxu1 %v5114_v35  ;;  %v5072_v27 = vpack.c.bf16 %v487_v25, %v483_v24  ;;  %v5074_v35 = vpack.c.bf16 %v496_v34, %v492_v33 }
  0x86   :  { %5053 = vmatpush1.bf16.msra.mxu0 %v5052_v31  ;;  %v5134_v31 = vpack.c.bf16 %v490_v28, %v486_v26 }
  0x87   :  { %5055 = vmatprep.subr.bf16.mxu0 %v5054_v39 }
  0x88   :  { %5117 = vmatpush1.bf16.msra.mxu1 %v5116_v36  ;;  %v491_v36 = vld [vmem:[#allocation4 + $0x340] sm:$0xff] }
  0x89   :  { %5119 = vmatprep.subr.bf16.mxu1 %v5118_v47  ;;  %v5076_v39 = vpack.c.bf16 %v495_v37, %v491_v36  ;;  %v499_v47 = vld [vmem:[#allocation4 + $0x380] sm:$0xff] }
  0x8a   :  { %5057 = vmatpush1.bf16.msra.mxu0 %v5056_v43  ;;  %v5138_v43 = vpack.c.bf16 %v498_v40, %v494_v38  ;;  %v5080_v52 = vpack.c.bf16 %v503_v49, %v499_v47  ;;  %v697_v49 = vld [vmem:[#allocation2 + $0x68] sm:$0xff] }
  0x8b   :  { %5059 = vmatprep.subr.bf16.mxu0 %v5058_v51  ;;  %v506_v51 = vld [vmem:[#allocation4 + $0x3b8] sm:$0xff] }
  0x8c   :  { %5121 = vmatpush1.bf16.msra.mxu1 %v5120_v48  ;;  %v5078_v48 = vpack.c.bf16 %v504_v46, %v500_v45  ;;  %v5142_v53 = vpack.c.bf16 %v506_v51, %v502_v50  ;;  %v684_v45 = vld [vmem:[#allocation2] sm:$0xff]  ;;  %v686_v50 = vld [vmem:[#allocation2 + $0x10] sm:$0xff] }
  0x8d   :  { %5123 = vmatprep.subr.bf16.mxu1 %v5122_v59  ;;  %v507_v59 = vld [vmem:[#allocation4 + $0x3c0] sm:$0xff]  ;;  %v690_v51 = vld [vmem:[#allocation2 + $0x30] sm:$0xff] }
  0x8e   :  { %5061 = vmatpush1.bf16.msra.mxu0 %v5060_v55  ;;  %v505_v55 = vld [vmem:[#allocation4 + $0x3b0] sm:$0xff]  ;;  %v688_v46 = vld [vmem:[#allocation2 + $0x20] sm:$0xff] }
  0x8f   :  { %5063 = vmatprep.subr.bf16.mxu0 %v5062_v62  ;;  %v5144_v57 = vpack.c.bf16 %v505_v55, %v501_v54  ;;  %v514_v62 = vld [vmem:[#allocation4 + $0x3f8] sm:$0xff] }
  0x90   :  { %5125 = vmatpush1.bf16.msra.mxu1 %v5124_v0  ;;  %v511_v0 = vld [vmem:[#allocation4 + $0x3e0] sm:$0xff]  ;;  %v5146_v2 = vpack.c.bf16 %v514_v62, %v510_v61  ;;  %v695_v54 = vld [vmem:[#allocation2 + $0x58] sm:$0xff]  ;;  %v5216_v61 = vpack.c.bf16 %v690_v51, %v686_v50 }
  0x91   :  { %5127 = vmatprep.subr.bf16.mxu1 %v5126_v7  ;;  %v5084_v1 = vpack.c.bf16 %v511_v0, %v507_v59  ;;  %v699_v55 = vld [vmem:[#allocation2 + $0x78] sm:$0xff]  ;;  %v696_v59 = vld [vmem:[#allocation2 + $0x60] sm:$0xff]  ;;  %v701_v0 = vld [vmem:[#allocation2 + $0x88] sm:$0xff] }
  0x92   :  { %5065 = vmatpush1.bf16.msra.mxu0 %v5064_v3  ;;  %v513_v3 = vld [vmem:[#allocation4 + $0x3f0] sm:$0xff]  ;;  %v5218_v62 = vpack.c.bf16 %v699_v55, %v695_v54  ;;  %v731_v50 = vld [vmem:[#allocation2 + $0x178] sm:$0xff]  ;;  %v733_v54 = vld [vmem:[#allocation2 + $0x188] sm:$0xff] }
  0x93   :  { %5067 = vmatprep.subr.bf16.mxu0 %v5066_v11  ;;  %v5148_v7 = vpack.c.bf16 %v513_v3, %v509_v63  ;;  %v50_v11 = vlaneseq  ;;  %v694_v63 = vld [vmem:[#allocation2 + $0x50] sm:$0xff]  ;;  %v703_v3 = vld [vmem:[#allocation2 + $0x98] sm:$0xff]  ;;  %v737_v55 = vld [vmem:[#allocation2 + $0x1a8] sm:$0xff] }
  0x94   :  { %5129 = vmatpush1.bf16.msra.mxu1 %v5128_v8  ;;  %v687_v8 = vld [vmem:[#allocation2 + $0x18] sm:$0xff] }
  0x95   :  { %5131 = vmatprep.subr.bf16.mxu1 %v5130_v19  ;;  %v5214_v10 = vpack.c.bf16 %v691_v9, %v687_v8  ;;  %v7317_v12 = vshrl.u32 %v50_v11, 7  ;;  %v709_v8 = vld [vmem:[#allocation2 + $0xc8] sm:$0xff]  ;;  %v5222_v11 = vpack.c.bf16 %v707_v4, %v703_v3 }
  0x96   :  { %5069 = vmatpush1.bf16.msra.mxu0 %v5068_v15  ;;  %v713_v9 = vld [vmem:[#allocation2 + $0xe8] sm:$0xff] }
  0x97   :  { %5071 = vmatprep.subr.bf16.mxu0 %v5070_v23  ;;  %v52_v13 = vsub.s32 0, %v7317_v12  ;;  %v56_v15 = vsub.s32 1, %v7317_v12  ;;  %v64_v18 = vsub.s32 3, %v7317_v12  ;;  %v60_v26 = vsub.s32 2, %v7317_v12  ;;  %v745_v3 = vld [vmem:[#allocation2 + $0x1e8] sm:$0xff] }
  0x98   :  { %5133 = vmatpush1.bf16.msra.mxu1 %v5132_v20 }
  0x99   :  { %5135 = vmatprep.subr.bf16.mxu1 %v5134_v31  ;;  %v7326_v16 = vrot.slane %v48_v14, %v52_v13  ;;  %v7330_v17 = vrot.slane %v48_v14, %v56_v15  ;;  %v7337_v24 = vrot.slane %v48_v14, %v64_v18  ;;  %v7343_v30 = vrot.slane %v48_v14, %v60_v26  ;;  %v702_v14 = vld [vmem:[#allocation2 + $0x90] sm:$0xff] }
  0x9a   :  { %5073 = vmatpush1.bf16.msra.mxu0 %v5072_v27 }
  0x9b   :  { %5075 = vmatprep.subr.bf16.mxu0 %v5074_v35 }
  0x9c   :  { %5137 = vmatpush1.bf16.msra.mxu1 %v5136_v32 }
  0x9d   :  { %5139 = vmatprep.subr.bf16.mxu1 %v5138_v43 }
  0x9e   :  { %5077 = vmatpush1.bf16.msra.mxu0 %v5076_v39 }
  0x9f   :  { %5079 = vmatprep.subr.bf16.mxu0 %v5078_v48  ;;  %v693_v48 = vld [vmem:[#allocation2 + $0x48] sm:$0xff] }
  0xa0   :  { %5141 = vmatpush1.bf16.msra.mxu1 %v5140_v44 }
  0xa1   :  { %5143 = vmatprep.subr.bf16.mxu1 %v5142_v53  ;;  %v5152_v53 = vpack.c.bf16 %v688_v46, %v684_v45  ;;  %v718_v46 = vld [vmem:[#allocation2 + $0x110] sm:$0xff] }
  0xa2   :  { %5081 = vmatpush1.bf16.msra.mxu0 %v5080_v52 }
  0xa3   :  { %5083 = vmatprep.subr.bf16.mxu0 %v5082_v60  ;;  %v705_v60 = vld [vmem:[#allocation2 + $0xa8] sm:$0xff] }
  0xa4   :  { %5145 = vmatpush1.bf16.msra.mxu1 %v5144_v57  ;;  %v5154_v57 = vpack.c.bf16 %v697_v49, %v693_v48  ;;  %v5158_v5 = vpack.c.bf16 %v705_v60, %v701_v0  ;;  %v727_v49 = vld [vmem:[#allocation2 + $0x158] sm:$0xff] }
  0xa5   :  { %5147 = vmatprep.subr.bf16.mxu1 %v5146_v2  ;;  %v5156_v2 = vpack.c.bf16 %v696_v59, %v692_v58  ;;  %v726_v58 = vld [vmem:[#allocation2 + $0x150] sm:$0xff]  ;;  %v735_v60 = vld [vmem:[#allocation2 + $0x198] sm:$0xff] }
  0xa6   :  { %5085 = vmatpush1.bf16.msra.mxu0 %v5084_v1  ;;  %v698_v1 = vld [vmem:[#allocation2 + $0x70] sm:$0xff] }
  0xa7   :  { %5151 = vmatprep.subr.bf16.mxu0 %v5150_v6  ;;  %v700_v6 = vld [vmem:[#allocation2 + $0x80] sm:$0xff]  ;;  %v730_v59 = vld [vmem:[#allocation2 + $0x170] sm:$0xff] }
  0xa8   :  { %5149 = vmatpush1.bf16.msra.mxu1 %v5148_v7  ;;  %v704_v7 = vld [vmem:[#allocation2 + $0xa0] sm:$0xff]  ;;  %v5236_v4 = vpack.c.bf16 %v730_v59, %v726_v58 }
  0xa9   :  { %5215 = vmatprep.subr.bf16.mxu1 %v5214_v10  ;;  %v5220_v10 = vpack.c.bf16 %v698_v1, %v694_v63  ;;  %v732_v63 = vld [vmem:[#allocation2 + $0x180] sm:$0xff] }
  0xaa   :  { %v736_v1 = vld [vmem:[#allocation2 + $0x1a0] sm:$0xff] }
  0xab   :  { %v764_v58 = vld [vmem:[#allocation2 + $0x280] sm:$0xff] }
  0xac   :  { %v768_v59 = vld [vmem:[#allocation2 + $0x2a0] sm:$0xff] }
 0x13c   :  { %v287_v19 = vpop.f32.mrb[0].mxu0 }
 0x13d   :  { %v288_v20 = vadd.f32 %v287_v19, %v7326_v16  ;;  %v289_v21 = vpop.f32.mrb[1].mxu0  ;;  %v706_v19 = vld [vmem:[#allocation2 + $0xb0] sm:$0xff] }
 0x13e   :  { %v290_v22 = vadd.f32 %v289_v21, %v7330_v17  ;;  %v358_v27 = vpop.f32.mrb[0].mxu1  ;;  %v711_v21 = vld [vmem:[#allocation2 + $0xd8] sm:$0xff] }
 0x13f   :  { %v4832_v23 = vmul.f32 -1.442695, %v288_v20  ;;  %v360_v28 = vpop.f32.mrb[1].mxu1  ;;  %v359_v32 = vadd.f32 %v358_v27, %v7343_v30  ;;  %v5160_v20 = vpack.c.bf16 %v704_v7, %v700_v6  ;;  %v712_v27 = vld [vmem:[#allocation2 + $0xe0] sm:$0xff]  ;;  %v734_v6 = vld [vmem:[#allocation2 + $0x190] sm:$0xff] }
 0x140   :  { %v4833_v25 = vmul.f32 -1.442695, %v290_v22  ;;  %v361_v29 = vadd.f32 %v360_v28, %v7337_v24  ;;  %v715_v22 = vld [vmem:[#allocation2 + $0xf8] sm:$0xff]  ;;  %v717_v28 = vld [vmem:[#allocation2 + $0x108] sm:$0xff]  ;;  %v738_v7 = vld [vmem:[#allocation2 + $0x1b0] sm:$0xff] }
 0x141   :  { %6947 = vpow2.f32 %v4832_v23  ;;  %v5162_v23 = vpack.c.bf16 %v713_v9, %v709_v8  ;;  %v5176_v8 = vpack.c.bf16 %v736_v1, %v732_v63  ;;  %v743_v9 = vld [vmem:[#allocation2 + $0x1d8] sm:$0xff]  ;;  %v766_v63 = vld [vmem:[#allocation2 + $0x290] sm:$0xff] }
 0x142   :  { %6949 = vpow2.f32 %v4833_v25  ;;  %v4834_v31 = vmul.f32 -1.442695, %v361_v29  ;;  %v708_v25 = vld [vmem:[#allocation2 + $0xc0] sm:$0xff]  ;;  %v721_v29 = vld [vmem:[#allocation2 + $0x128] sm:$0xff]  ;;  %v770_v1 = vld [vmem:[#allocation2 + $0x2b0] sm:$0xff] }
 0x144   :  { %6951 = vpow2.f32 %v4834_v31  ;;  %v5224_v31 = vpack.c.bf16 %v706_v19, %v702_v14  ;;  %v740_v14 = vld [vmem:[#allocation2 + $0x1c0] sm:$0xff] }
 0x145   :  { %6953 = vtanh.f32 %v359_v32  ;;  %v5226_v32 = vpack.c.bf16 %v715_v22, %v711_v21  ;;  %v744_v19 = vld [vmem:[#allocation2 + $0x1e0] sm:$0xff]  ;;  %v753_v21 = vld [vmem:[#allocation2 + $0x228] sm:$0xff]  ;;  %v5240_v22 = vpack.c.bf16 %v738_v7, %v734_v6 }
 0x146   :  { %v772_v6 = vld [vmem:[#allocation2 + $0x2c0] sm:$0xff] }
 0x147   :  { %v776_v7 = vld [vmem:[#allocation2 + $0x2e0] sm:$0xff] }
 0x14b   :  { %v6948_v33 = vpop.eup %6947 }
 0x14c   :  { %v6950_v34 = vpop.eup %6949  ;;  %v366_v35 = vadd.f32 1.0, %v6948_v33  ;;  %v710_v33 = vld [vmem:[#allocation2 + $0xd0] sm:$0xff] }
 0x14d   :  { %v372_v36 = vadd.f32 1.0, %v6950_v34  ;;  %v714_v34 = vld [vmem:[#allocation2 + $0xf0] sm:$0xff] }
 0x14e   :  { %6955 = vrcp.f32 %v366_v35  ;;  %v6952_v37 = vpop.eup %6951  ;;  %v5164_v35 = vpack.c.bf16 %v712_v27, %v708_v25  ;;  %v742_v25 = vld [vmem:[#allocation2 + $0x1d0] sm:$0xff] }
 0x14f   :  { %6957 = vrcp.f32 %v372_v36  ;;  %v6954_v38 = vpop.eup %6953  ;;  %v379_v40 = vadd.f32 1.0, %v6952_v37  ;;  %v719_v36 = vld [vmem:[#allocation2 + $0x118] sm:$0xff]  ;;  %v746_v27 = vld [vmem:[#allocation2 + $0x1f0] sm:$0xff] }
 0x150   :  { %v723_v37 = vld [vmem:[#allocation2 + $0x138] sm:$0xff] }
 0x151   :  { %6959 = vrcp.f32 %v379_v40  ;;  %v720_v40 = vld [vmem:[#allocation2 + $0x120] sm:$0xff]  ;;  %v5230_v45 = vpack.c.bf16 %v723_v37, %v719_v36  ;;  %v761_v36 = vld [vmem:[#allocation2 + $0x268] sm:$0xff]  ;;  %v5244_v37 = vpack.c.bf16 %v746_v27, %v742_v25 }
 0x152   :  { %v780_v25 = vld [vmem:[#allocation2 + $0x300] sm:$0xff] }
 0x153   :  { %v784_v27 = vld [vmem:[#allocation2 + $0x320] sm:$0xff] }
 0x158   :  { %v6956_v39 = vpop.eup %6955 }
 0x159   :  { %v6958_v41 = vpop.eup %6957  ;;  %v383_v42 = vmul.f32 %v6956_v39, %v6954_v38  ;;  %v5166_v38 = vpack.c.bf16 %v721_v29, %v717_v28  ;;  %v716_v39 = vld [vmem:[#allocation2 + $0x100] sm:$0xff]  ;;  %v5180_v28 = vpack.c.bf16 %v744_v19, %v740_v14  ;;  %v751_v29 = vld [vmem:[#allocation2 + $0x218] sm:$0xff]  ;;  %v774_v14 = vld [vmem:[#allocation2 + $0x2d0] sm:$0xff] }
 0x15a   :  { %v382_v43 = vmul.f32 0.0, %v6958_v41  ;;  %v725_v41 = vld [vmem:[#allocation2 + $0x148] sm:$0xff]  ;;  %v5168_v48 = vpack.c.bf16 %v720_v40, %v716_v39  ;;  %v750_v39 = vld [vmem:[#allocation2 + $0x210] sm:$0xff] }
 0x15b   :  { %v6960_v47 = vpop.eup %6959  ;;  %v754_v40 = vld [vmem:[#allocation2 + $0x230] sm:$0xff] }
 0x15c   :  { %v7346_v44 = vadd.f32 %v383_v42, %v382_v43  ;;  %v729_v42 = vld [vmem:[#allocation2 + $0x168] sm:$0xff]  ;;  %v5228_v43 = vpack.c.bf16 %v714_v34, %v710_v33  ;;  %v748_v33 = vld [vmem:[#allocation2 + $0x200] sm:$0xff]  ;;  %v778_v19 = vld [vmem:[#allocation2 + $0x2f0] sm:$0xff] }
 0x15d   :  { %v5170_v51 = vpack.c.bf16 %v729_v42, %v725_v41  ;;  %v752_v34 = vld [vmem:[#allocation2 + $0x220] sm:$0xff]  ;;  %v759_v42 = vld [vmem:[#allocation2 + $0x258] sm:$0xff] }
 0x15e   :  { %6961 = vtanh.f32 %v7346_v44  ;;  %v5184_v41 = vpack.c.bf16 %v752_v34, %v748_v33  ;;  %v782_v33 = vld [vmem:[#allocation2 + $0x310] sm:$0xff] }
 0x15f   :  { %v786_v34 = vld [vmem:[#allocation2 + $0x330] sm:$0xff] }
 0x168   :  { %v6962_v52 = vpop.eup %6961 }
 0x169   :  { %v386_v56 = vmul.f32 %v6962_v52, %v6960_v47  ;;  %v722_v47 = vld [vmem:[#allocation2 + $0x130] sm:$0xff]  ;;  %v724_v52 = vld [vmem:[#allocation2 + $0x140] sm:$0xff] }
 0x16b   :  { %580 = vmatmul.mubr.f32.vlgmr.msra.gmra.mrb[2].mxu0 %v386_v56  ;;  %651 = vmatmul.mubr.f32.vlgmr.msra.gmra.mrb[2].mxu1 %v386_v56 }
 0x16c   :  { %5153 = vmatpush1.bf16.msra.mxu0 %v5152_v53  ;;  %876 = vmatprep.mubr.f32.mxu0 %v386_v56  ;;  %v728_v53 = vld [vmem:[#allocation2 + $0x160] sm:$0xff] }
 0x16d   :  { %947 = vmatprep.mubr.f32.mxu1 %v386_v56  ;;  %5155 = vmatprep.subr.bf16.mxu0 %v5154_v57  ;;  %v5232_v56 = vpack.c.bf16 %v722_v47, %v718_v46  ;;  %v5234_v57 = vpack.c.bf16 %v731_v50, %v727_v49  ;;  %v5172_v0 = vpack.c.bf16 %v728_v53, %v724_v52  ;;  %v756_v46 = vld [vmem:[#allocation2 + $0x240] sm:$0xff]  ;;  %v769_v49 = vld [vmem:[#allocation2 + $0x2a8] sm:$0xff]  ;;  %v758_v52 = vld [vmem:[#allocation2 + $0x250] sm:$0xff] }
 0x16e   :  { %5217 = vmatpush1.bf16.msra.mxu1 %v5216_v61  ;;  %v739_v61 = vld [vmem:[#allocation2 + $0x1b8] sm:$0xff]  ;;  %v760_v47 = vld [vmem:[#allocation2 + $0x260] sm:$0xff]  ;;  %v5248_v50 = vpack.c.bf16 %v754_v40, %v750_v39  ;;  %v762_v53 = vld [vmem:[#allocation2 + $0x270] sm:$0xff] }
 0x16f   :  { %5219 = vmatprep.subr.bf16.mxu1 %v5218_v62  ;;  %v5174_v62 = vpack.c.bf16 %v737_v55, %v733_v54  ;;  %v5188_v54 = vpack.c.bf16 %v760_v47, %v756_v46  ;;  %v767_v55 = vld [vmem:[#allocation2 + $0x298] sm:$0xff]  ;;  %v788_v39 = vld [vmem:[#allocation2 + $0x340] sm:$0xff]  ;;  %v790_v46 = vld [vmem:[#allocation2 + $0x350] sm:$0xff] }
 0x170   :  { %5157 = vmatpush1.bf16.msra.mxu0 %v5156_v2  ;;  %v741_v2 = vld [vmem:[#allocation2 + $0x1c8] sm:$0xff]  ;;  %v792_v40 = vld [vmem:[#allocation2 + $0x360] sm:$0xff]  ;;  %v794_v47 = vld [vmem:[#allocation2 + $0x370] sm:$0xff] }
 0x171   :  { %5159 = vmatprep.subr.bf16.mxu0 %v5158_v5  ;;  %v5238_v5 = vpack.c.bf16 %v739_v61, %v735_v60  ;;  %v777_v60 = vld [vmem:[#allocation2 + $0x2e8] sm:$0xff]  ;;  %v5252_v61 = vpack.c.bf16 %v762_v53, %v758_v52  ;;  %v796_v52 = vld [vmem:[#allocation2 + $0x380] sm:$0xff] }
 0x172   :  { %5221 = vmatpush1.bf16.msra.mxu1 %v5220_v10  ;;  %v747_v10 = vld [vmem:[#allocation2 + $0x1f8] sm:$0xff]  ;;  %v800_v53 = vld [vmem:[#allocation2 + $0x3a0] sm:$0xff] }
 0x173   :  { %5223 = vmatprep.subr.bf16.mxu1 %v5222_v11  ;;  %v5178_v11 = vpack.c.bf16 %v745_v3, %v741_v2  ;;  %v5192_v2 = vpack.c.bf16 %v768_v59, %v764_v58  ;;  %v775_v3 = vld [vmem:[#allocation2 + $0x2d8] sm:$0xff]  ;;  %v798_v58 = vld [vmem:[#allocation2 + $0x390] sm:$0xff] }
 0x174   :  { %5161 = vmatpush1.bf16.msra.mxu0 %v5160_v20  ;;  %v749_v20 = vld [vmem:[#allocation2 + $0x208] sm:$0xff]  ;;  %v802_v59 = vld [vmem:[#allocation2 + $0x3b0] sm:$0xff] }
 0x175   :  { %5163 = vmatprep.subr.bf16.mxu0 %v5162_v23  ;;  %v5242_v23 = vpack.c.bf16 %v747_v10, %v743_v9  ;;  %v785_v9 = vld [vmem:[#allocation2 + $0x328] sm:$0xff]  ;;  %v5256_v10 = vpack.c.bf16 %v770_v1, %v766_v63  ;;  %v804_v63 = vld [vmem:[#allocation2 + $0x3c0] sm:$0xff] }
 0x176   :  { %5225 = vmatpush1.bf16.msra.mxu1 %v5224_v31  ;;  %v755_v31 = vld [vmem:[#allocation2 + $0x238] sm:$0xff]  ;;  %v808_v1 = vld [vmem:[#allocation2 + $0x3e0] sm:$0xff] }
 0x177   :  { %5227 = vmatprep.subr.bf16.mxu1 %v5226_v32  ;;  %v5182_v32 = vpack.c.bf16 %v753_v21, %v749_v20  ;;  %v5196_v20 = vpack.c.bf16 %v776_v7, %v772_v6  ;;  %v783_v21 = vld [vmem:[#allocation2 + $0x318] sm:$0xff]  ;;  %v5212_v6 = vpack.c.bf16 %v808_v1, %v804_v63 }
 0x178   :  { %5165 = vmatpush1.bf16.msra.mxu0 %v5164_v35  ;;  %v757_v35 = vld [vmem:[#allocation2 + $0x248] sm:$0xff] }
 0x179   :  { %5167 = vmatprep.subr.bf16.mxu0 %v5166_v38  ;;  %v5246_v38 = vpack.c.bf16 %v755_v31, %v751_v29  ;;  %v793_v29 = vld [vmem:[#allocation2 + $0x368] sm:$0xff]  ;;  %v5260_v31 = vpack.c.bf16 %v778_v19, %v774_v14  ;;  %v982_v19 = vld [vmem:[#allocation4 + $0x20] sm:$0xff] }
 0x17a   :  { %5229 = vmatpush1.bf16.msra.mxu1 %v5228_v43  ;;  %v763_v43 = vld [vmem:[#allocation2 + $0x278] sm:$0xff] }
 0x17b   :  { %5231 = vmatprep.subr.bf16.mxu1 %v5230_v45  ;;  %v5186_v45 = vpack.c.bf16 %v761_v36, %v757_v35  ;;  %v5200_v35 = vpack.c.bf16 %v784_v27, %v780_v25  ;;  %v791_v36 = vld [vmem:[#allocation2 + $0x358] sm:$0xff]  ;;  %v980_v25 = vld [vmem:[#allocation4 + $0x10] sm:$0xff] }
 0x17c   :  { %5169 = vmatpush1.bf16.msra.mxu0 %v5168_v48  ;;  %v765_v48 = vld [vmem:[#allocation2 + $0x288] sm:$0xff]  ;;  %v984_v27 = vld [vmem:[#allocation4 + $0x30] sm:$0xff] }
 0x17d   :  { %5171 = vmatprep.subr.bf16.mxu0 %v5170_v51  ;;  %v5250_v51 = vpack.c.bf16 %v763_v43, %v759_v42  ;;  %v801_v42 = vld [vmem:[#allocation2 + $0x3a8] sm:$0xff]  ;;  %v5264_v43 = vpack.c.bf16 %v786_v34, %v782_v33  ;;  %v990_v34 = vld [vmem:[#allocation4 + $0x60] sm:$0xff] }
 0x17e   :  { %5233 = vmatpush1.bf16.msra.mxu1 %v5232_v56  ;;  %v771_v56 = vld [vmem:[#allocation2 + $0x2b8] sm:$0xff] }
 0x17f   :  { %5235 = vmatprep.subr.bf16.mxu1 %v5234_v57  ;;  %v5190_v57 = vpack.c.bf16 %v769_v49, %v765_v48  ;;  %v5204_v48 = vpack.c.bf16 %v792_v40, %v788_v39  ;;  %v799_v49 = vld [vmem:[#allocation2 + $0x398] sm:$0xff]  ;;  %v988_v39 = vld [vmem:[#allocation4 + $0x50] sm:$0xff] }
 0x180   :  { %5173 = vmatpush1.bf16.msra.mxu0 %v5172_v0  ;;  %v773_v0 = vld [vmem:[#allocation2 + $0x2c8] sm:$0xff]  ;;  %v992_v40 = vld [vmem:[#allocation4 + $0x70] sm:$0xff] }
 0x181   :  { %5175 = vmatprep.subr.bf16.mxu0 %v5174_v62  ;;  %v5254_v62 = vpack.c.bf16 %v771_v56, %v767_v55  ;;  %v809_v55 = vld [vmem:[#allocation2 + $0x3e8] sm:$0xff]  ;;  %v5268_v56 = vpack.c.bf16 %v794_v47, %v790_v46  ;;  %v998_v46 = vld [vmem:[#allocation4 + $0xa0] sm:$0xff] }
 0x182   :  { %5237 = vmatpush1.bf16.msra.mxu1 %v5236_v4  ;;  %v779_v4 = vld [vmem:[#allocation2 + $0x2f8] sm:$0xff] }
 0x183   :  { %5239 = vmatprep.subr.bf16.mxu1 %v5238_v5  ;;  %v5194_v5 = vpack.c.bf16 %v777_v60, %v773_v0  ;;  %v5208_v0 = vpack.c.bf16 %v800_v53, %v796_v52  ;;  %v807_v60 = vld [vmem:[#allocation2 + $0x3d8] sm:$0xff]  ;;  %v1000_v53 = vld [vmem:[#allocation4 + $0xb0] sm:$0xff] }
 0x184   :  { %5177 = vmatpush1.bf16.msra.mxu0 %v5176_v8  ;;  %v781_v8 = vld [vmem:[#allocation2 + $0x308] sm:$0xff] }
 0x185   :  { %5179 = vmatprep.subr.bf16.mxu0 %v5178_v11  ;;  %v5258_v11 = vpack.c.bf16 %v779_v4, %v775_v3  ;;  %v806_v4 = vld [vmem:[#allocation2 + $0x3d0] sm:$0xff] }
 0x186   :  { %5241 = vmatpush1.bf16.msra.mxu1 %v5240_v22  ;;  %v787_v22 = vld [vmem:[#allocation2 + $0x338] sm:$0xff] }
 0x187   :  { %5243 = vmatprep.subr.bf16.mxu1 %v5242_v23  ;;  %v5198_v23 = vpack.c.bf16 %v785_v9, %v781_v8  ;;  %v4838_v8 = vld [vmem:[%s7526_s0 + $0x8] sm:$0xff] }
 0x188   :  { %5181 = vmatpush1.bf16.msra.mxu0 %v5180_v28  ;;  %v789_v28 = vld [vmem:[#allocation2 + $0x348] sm:$0xff] }
 0x189   :  { %5183 = vmatprep.subr.bf16.mxu0 %v5182_v32  ;;  %v5262_v32 = vpack.c.bf16 %v787_v22, %v783_v21  ;;  %v979_v9 = vld [vmem:[#allocation4 + $0x8] sm:$0xff]  ;;  %v985_v21 = vld [vmem:[#allocation4 + $0x38] sm:$0xff] }
 0x18a   :  { %5245 = vmatpush1.bf16.msra.mxu1 %v5244_v37  ;;  %v795_v37 = vld [vmem:[#allocation2 + $0x378] sm:$0xff] }
 0x18b   :  { %5247 = vmatprep.subr.bf16.mxu1 %v5246_v38  ;;  %v5202_v38 = vpack.c.bf16 %v793_v29, %v789_v28  ;;  %v5344_v28 = vpack.c.bf16 %v984_v27, %v980_v25  ;;  %v987_v29 = vld [vmem:[#allocation4 + $0x48] sm:$0xff]  ;;  %v1018_v25 = vld [vmem:[#allocation4 + $0x140] sm:$0xff] }
 0x18c   :  { %5185 = vmatpush1.bf16.msra.mxu0 %v5184_v41  ;;  %v797_v41 = vld [vmem:[#allocation2 + $0x388] sm:$0xff]  ;;  %v1022_v27 = vld [vmem:[#allocation4 + $0x160] sm:$0xff] }
 0x18d   :  { %5187 = vmatprep.subr.bf16.mxu0 %v5186_v45  ;;  %v5266_v45 = vpack.c.bf16 %v795_v37, %v791_v36  ;;  %v993_v36 = vld [vmem:[#allocation4 + $0x78] sm:$0xff] }
 0x18e   :  { %5249 = vmatpush1.bf16.msra.mxu1 %v5248_v50  ;;  %v803_v50 = vld [vmem:[#allocation2 + $0x3b8] sm:$0xff] }
 0x18f   :  { %5251 = vmatprep.subr.bf16.mxu1 %v5250_v51  ;;  %v5206_v51 = vpack.c.bf16 %v801_v42, %v797_v41  ;;  %v995_v41 = vld [vmem:[#allocation4 + $0x88] sm:$0xff]  ;;  %v5348_v42 = vpack.c.bf16 %v992_v40, %v988_v39  ;;  %v1026_v39 = vld [vmem:[#allocation4 + $0x180] sm:$0xff] }
 0x190   :  { %5189 = vmatpush1.bf16.msra.mxu0 %v5188_v54  ;;  %v805_v54 = vld [vmem:[#allocation2 + $0x3c8] sm:$0xff]  ;;  %v1030_v40 = vld [vmem:[#allocation4 + $0x1a0] sm:$0xff] }
 0x191   :  { %5191 = vmatprep.subr.bf16.mxu0 %v5190_v57  ;;  %v5270_v57 = vpack.c.bf16 %v803_v50, %v799_v49  ;;  %v997_v49 = vld [vmem:[#allocation4 + $0x98] sm:$0xff] }
 0x192   :  { %5253 = vmatpush1.bf16.msra.mxu1 %v5252_v61  ;;  %v811_v61 = vld [vmem:[#allocation2 + $0x3f8] sm:$0xff] }
 0x193   :  { %5255 = vmatprep.subr.bf16.mxu1 %v5254_v62  ;;  %v5210_v62 = vpack.c.bf16 %v809_v55, %v805_v54  ;;  %v5274_v3 = vpack.c.bf16 %v811_v61, %v807_v60  ;;  %v1001_v50 = vld [vmem:[#allocation4 + $0xb8] sm:$0xff]  ;;  %v1003_v54 = vld [vmem:[#allocation4 + $0xc8] sm:$0xff]  ;;  %v1004_v61 = vld [vmem:[#allocation4 + $0xd0] sm:$0xff] }
 0x194   :  { %5193 = vmatpush1.bf16.msra.mxu0 %v5192_v2  ;;  %v5272_v2 = vpack.c.bf16 %v802_v59, %v798_v58  ;;  %v5350_v52 = vpack.c.bf16 %v1001_v50, %v997_v49  ;;  %v1007_v55 = vld [vmem:[#allocation4 + $0xe8] sm:$0xff]  ;;  %v1002_v58 = vld [vmem:[#allocation4 + $0xc0] sm:$0xff]  ;;  %v1009_v60 = vld [vmem:[#allocation4 + $0xf8] sm:$0xff] }
 0x195   :  { %5195 = vmatprep.subr.bf16.mxu0 %v5194_v5  ;;  %v810_v5 = vld [vmem:[#allocation2 + $0x3f0] sm:$0xff]  ;;  %v1006_v59 = vld [vmem:[#allocation4 + $0xe0] sm:$0xff]  ;;  %v1035_v49 = vld [vmem:[#allocation4 + $0x1c8] sm:$0xff] }
 0x196   :  { %5257 = vmatpush1.bf16.msra.mxu1 %v5256_v10  ;;  %v5276_v7 = vpack.c.bf16 %v810_v5, %v806_v4  ;;  %v983_v10 = vld [vmem:[#allocation4 + $0x28] sm:$0xff]  ;;  %v5292_v63 = vpack.c.bf16 %v1006_v59, %v1002_v58  ;;  %v1010_v4 = vld [vmem:[#allocation4 + $0x100] sm:$0xff]  ;;  %v1040_v58 = vld [vmem:[#allocation4 + $0x1f0] sm:$0xff] }
 0x197   :  { %5259 = vmatprep.subr.bf16.mxu1 %v5258_v11  ;;  %v978_v11 = vld [vmem:[#allocation4] sm:$0xff]  ;;  %v5278_v14 = vpack.c.bf16 %v983_v10, %v979_v9  ;;  %v1017_v9 = vld [vmem:[#allocation4 + $0x138] sm:$0xff]  ;;  %v1039_v50 = vld [vmem:[#allocation4 + $0x1e8] sm:$0xff] }
 0x198   :  { %5197 = vmatpush1.bf16.msra.mxu0 %v5196_v20  ;;  %v981_v20 = vld [vmem:[#allocation4 + $0x18] sm:$0xff]  ;;  %v5280_v22 = vpack.c.bf16 %v982_v19, %v978_v11  ;;  %v1016_v19 = vld [vmem:[#allocation4 + $0x130] sm:$0xff] }
 0x199   :  { %5199 = vmatprep.subr.bf16.mxu0 %v5198_v23  ;;  %v5342_v23 = vpack.c.bf16 %v985_v21, %v981_v20  ;;  %v1019_v21 = vld [vmem:[#allocation4 + $0x148] sm:$0xff] }
 0x19a   :  { %5261 = vmatpush1.bf16.msra.mxu1 %v5260_v31  ;;  %v991_v31 = vld [vmem:[#allocation4 + $0x68] sm:$0xff] }
 0x19b   :  { %5263 = vmatprep.subr.bf16.mxu1 %v5262_v32  ;;  %v986_v32 = vld [vmem:[#allocation4 + $0x40] sm:$0xff]  ;;  %v5282_v33 = vpack.c.bf16 %v991_v31, %v987_v29  ;;  %v5300_v29 = vpack.c.bf16 %v1022_v27, %v1018_v25  ;;  %v1025_v31 = vld [vmem:[#allocation4 + $0x178] sm:$0xff]  ;;  %v1056_v25 = vld [vmem:[#allocation4 + $0x270] sm:$0xff] }
 0x19c   :  { %5201 = vmatpush1.bf16.msra.mxu0 %v5200_v35  ;;  %v989_v35 = vld [vmem:[#allocation4 + $0x58] sm:$0xff]  ;;  %v5284_v37 = vpack.c.bf16 %v990_v34, %v986_v32  ;;  %v1020_v32 = vld [vmem:[#allocation4 + $0x150] sm:$0xff] }
 0x19d   :  { %5203 = vmatprep.subr.bf16.mxu0 %v5202_v38  ;;  %v5346_v38 = vpack.c.bf16 %v993_v36, %v989_v35  ;;  %v1027_v36 = vld [vmem:[#allocation4 + $0x188] sm:$0xff] }
 0x19e   :  { %5265 = vmatpush1.bf16.msra.mxu1 %v5264_v43  ;;  %v999_v43 = vld [vmem:[#allocation4 + $0xa8] sm:$0xff] }
 0x19f   :  { %5267 = vmatprep.subr.bf16.mxu1 %v5266_v45  ;;  %v994_v45 = vld [vmem:[#allocation4 + $0x80] sm:$0xff]  ;;  %v5286_v47 = vpack.c.bf16 %v999_v43, %v995_v41  ;;  %v1029_v41 = vld [vmem:[#allocation4 + $0x198] sm:$0xff] }
 0x1a0   :  { %5205 = vmatpush1.bf16.msra.mxu0 %v5204_v48  ;;  %v5288_v48 = vpack.c.bf16 %v998_v46, %v994_v45  ;;  %v1033_v43 = vld [vmem:[#allocation4 + $0x1b8] sm:$0xff]  ;;  %v1028_v45 = vld [vmem:[#allocation4 + $0x190] sm:$0xff] }
 0x1a1   :  { %5207 = vmatprep.subr.bf16.mxu0 %v5206_v51  ;;  %v996_v51 = vld [vmem:[#allocation4 + $0x90] sm:$0xff] }
 0x1a2   :  { %5269 = vmatpush1.bf16.msra.mxu1 %v5268_v56  ;;  %v5352_v56 = vpack.c.bf16 %v1000_v53, %v996_v51  ;;  %v1032_v46 = vld [vmem:[#allocation4 + $0x1b0] sm:$0xff]  ;;  %v5306_v51 = vpack.c.bf16 %v1039_v50, %v1035_v49  ;;  %v1038_v53 = vld [vmem:[#allocation4 + $0x1e0] sm:$0xff]  ;;  %v1073_v50 = vld [vmem:[#allocation4 + $0x2f8] sm:$0xff] }
 0x1a3   :  { %5271 = vmatprep.subr.bf16.mxu1 %v5270_v57  ;;  %v5290_v57 = vpack.c.bf16 %v1007_v55, %v1003_v54  ;;  %v1037_v54 = vld [vmem:[#allocation4 + $0x1d8] sm:$0xff] }
 0x1a4   :  { %5209 = vmatpush1.bf16.msra.mxu0 %v5208_v0  ;;  %v1005_v0 = vld [vmem:[#allocation4 + $0xd8] sm:$0xff] }
 0x1a5   :  { %5211 = vmatprep.subr.bf16.mxu0 %v5210_v62  ;;  %v1008_v62 = vld [vmem:[#allocation4 + $0xf0] sm:$0xff]  ;;  %v5354_v1 = vpack.c.bf16 %v1009_v60, %v1005_v0  ;;  %v1043_v60 = vld [vmem:[#allocation4 + $0x208] sm:$0xff] }
 0x1a6   :  { %5273 = vmatpush1.bf16.msra.mxu1 %v5272_v2  ;;  %v1011_v2 = vld [vmem:[#allocation4 + $0x108] sm:$0xff]  ;;  %v5356_v5 = vpack.c.bf16 %v1008_v62, %v1004_v61 }
 0x1a7   :  { %5275 = vmatprep.subr.bf16.mxu1 %v5274_v3  ;;  %v1015_v3 = vld [vmem:[#allocation4 + $0x128] sm:$0xff] }
 0x1a8   :  { %5213 = vmatpush1.bf16.msra.mxu0 %v5212_v6  ;;  %v5294_v6 = vpack.c.bf16 %v1015_v3, %v1011_v2  ;;  %v1047_v61 = vld [vmem:[#allocation4 + $0x228] sm:$0xff]  ;;  %v1045_v2 = vld [vmem:[#allocation4 + $0x218] sm:$0xff] }
 0x1a9   :  { %5279 = vmatprep.subr.bf16.mxu0 %v5278_v14  ;;  %v1012_v14 = vld [vmem:[#allocation4 + $0x110] sm:$0xff]  ;;  %v5310_v62 = vpack.c.bf16 %v1047_v61, %v1043_v60  ;;  %v1081_v61 = vld [vmem:[#allocation4 + $0x338] sm:$0xff] }
 0x1aa   :  { %5277 = vmatpush1.bf16.msra.mxu1 %v5276_v7  ;;  %v1014_v7 = vld [vmem:[#allocation4 + $0x120] sm:$0xff]  ;;  %v5360_v20 = vpack.c.bf16 %v1016_v19, %v1012_v14 }
 0x1ab   :  { %877 = vmatmul.mubr.f32.vlgmr.msra.gmra.mrb[4].mxu0 %v4838_v8  ;;  %5343 = vmatprep.subr.bf16.mxu1 %v5342_v23  ;;  %v5296_v11 = vpack.c.bf16 %v1014_v7, %v1010_v4  ;;  %v1049_v4 = vld [vmem:[#allocation4 + $0x238] sm:$0xff]  ;;  %v1050_v14 = vld [vmem:[#allocation4 + $0x240] sm:$0xff] }
 0x1ac   :  { %5281 = vmatpush1.bf16.msra.mxu0 %v5280_v22  ;;  %v1023_v22 = vld [vmem:[#allocation4 + $0x168] sm:$0xff]  ;;  %v5374_v7 = vpack.c.bf16 %v1049_v4, %v1045_v2  ;;  %v1054_v19 = vld [vmem:[#allocation4 + $0x260] sm:$0xff] }
 0x1ad   :  { %948 = vmatmul.mubr.f32.vlgmr.msra.gmra.mrb[4].mxu1 %v4838_v8  ;;  %5283 = vmatprep.subr.bf16.mxu0 %v5282_v33  ;;  %v1013_v8 = vld [vmem:[#allocation4 + $0x118] sm:$0xff]  ;;  %v5298_v23 = vpack.c.bf16 %v1023_v22, %v1019_v21  ;;  %v1024_v33 = vld [vmem:[#allocation4 + $0x170] sm:$0xff]  ;;  %v5316_v21 = vpack.c.bf16 %v1054_v19, %v1050_v14  ;;  %v1087_v4 = vld [vmem:[#allocation4 + $0x368] sm:$0xff] }
 0x1ae   :  { %5345 = vmatpush1.bf16.msra.mxu1 %v5344_v28  ;;  %v5358_v10 = vpack.c.bf16 %v1017_v9, %v1013_v8  ;;  %v1021_v28 = vld [vmem:[#allocation4 + $0x158] sm:$0xff]  ;;  %v5364_v35 = vpack.c.bf16 %v1024_v33, %v1020_v32  ;;  %v1051_v9 = vld [vmem:[#allocation4 + $0x248] sm:$0xff]  ;;  %v1058_v33 = vld [vmem:[#allocation4 + $0x280] sm:$0xff] }
 0x1af   :  { %5347 = vmatprep.subr.bf16.mxu1 %v5346_v38  ;;  %v5362_v34 = vpack.c.bf16 %v1025_v31, %v1021_v28  ;;  %v1057_v22 = vld [vmem:[#allocation4 + $0x278] sm:$0xff]  ;;  %v1063_v31 = vld [vmem:[#allocation4 + $0x2a8] sm:$0xff]  ;;  %v1088_v14 = vld [vmem:[#allocation4 + $0x370] sm:$0xff] }
 0x1b0   :  { %5285 = vmatpush1.bf16.msra.mxu0 %v5284_v37  ;;  %v1031_v37 = vld [vmem:[#allocation4 + $0x1a8] sm:$0xff] }
 0x1b1   :  { %5287 = vmatprep.subr.bf16.mxu0 %v5286_v47  ;;  %v5302_v38 = vpack.c.bf16 %v1031_v37, %v1027_v36  ;;  %v5366_v47 = vpack.c.bf16 %v1033_v43, %v1029_v41  ;;  %v1065_v37 = vld [vmem:[#allocation4 + $0x2b8] sm:$0xff]  ;;  %v1071_v43 = vld [vmem:[#allocation4 + $0x2e8] sm:$0xff] }
 0x1b2   :  { %5349 = vmatpush1.bf16.msra.mxu1 %v5348_v42  ;;  %v5304_v42 = vpack.c.bf16 %v1030_v40, %v1026_v39  ;;  %v1064_v39 = vld [vmem:[#allocation4 + $0x2b0] sm:$0xff] }
 0x1b3   :  { %5351 = vmatprep.subr.bf16.mxu1 %v5350_v52  ;;  %v1034_v52 = vld [vmem:[#allocation4 + $0x1c0] sm:$0xff] }
 0x1b4   :  { %5289 = vmatpush1.bf16.msra.mxu0 %v5288_v48  ;;  %v5368_v48 = vpack.c.bf16 %v1032_v46, %v1028_v45  ;;  %v5308_v55 = vpack.c.bf16 %v1038_v53, %v1034_v52  ;;  %v1066_v46 = vld [vmem:[#allocation4 + $0x2c0] sm:$0xff]  ;;  %v1072_v52 = vld [vmem:[#allocation4 + $0x2f0] sm:$0xff] }
 0x1b5   :  { %5291 = vmatprep.subr.bf16.mxu0 %v5290_v57  ;;  %v1036_v57 = vld [vmem:[#allocation4 + $0x1d0] sm:$0xff] }
 0x1b6   :  { %5353 = vmatpush1.bf16.msra.mxu1 %v5352_v56  ;;  %v1041_v56 = vld [vmem:[#allocation4 + $0x1f8] sm:$0xff]  ;;  %v5372_v0 = vpack.c.bf16 %v1040_v58, %v1036_v57  ;;  %v1074_v58 = vld [vmem:[#allocation4 + $0x300] sm:$0xff] }
 0x1b7   :  { %5355 = vmatprep.subr.bf16.mxu1 %v5354_v1  ;;  %v5370_v59 = vpack.c.bf16 %v1041_v56, %v1037_v54  ;;  %v1046_v1 = vld [vmem:[#allocation4 + $0x220] sm:$0xff]  ;;  %v1079_v56 = vld [vmem:[#allocation4 + $0x328] sm:$0xff] }
 0x1b8   :  { %5293 = vmatpush1.bf16.msra.mxu0 %v5292_v63  ;;  %v1042_v63 = vld [vmem:[#allocation4 + $0x200] sm:$0xff] }
 0x1b9   :  { %5295 = vmatprep.subr.bf16.mxu0 %v5294_v6  ;;  %v5312_v3 = vpack.c.bf16 %v1046_v1, %v1042_v63  ;;  %v1048_v6 = vld [vmem:[#allocation4 + $0x230] sm:$0xff] }
 0x1ba   :  { %5357 = vmatpush1.bf16.msra.mxu1 %v5356_v5  ;;  %v1044_v5 = vld [vmem:[#allocation4 + $0x210] sm:$0xff] }
 0x1bb   :  { %5359 = vmatprep.subr.bf16.mxu1 %v5358_v10  ;;  %v5376_v8 = vpack.c.bf16 %v1048_v6, %v1044_v5  ;;  %v1055_v10 = vld [vmem:[#allocation4 + $0x268] sm:$0xff]  ;;  %v1080_v63 = vld [vmem:[#allocation4 + $0x330] sm:$0xff]  ;;  %v1082_v6 = vld [vmem:[#allocation4 + $0x340] sm:$0xff] }
 0x1bc   :  { %5297 = vmatpush1.bf16.msra.mxu0 %v5296_v11  ;;  %v5314_v11 = vpack.c.bf16 %v1055_v10, %v1051_v9  ;;  %v1089_v10 = vld [vmem:[#allocation4 + $0x378] sm:$0xff] }
 0x1bd   :  { %5299 = vmatprep.subr.bf16.mxu0 %v5298_v23  ;;  %v1052_v23 = vld [vmem:[#allocation4 + $0x250] sm:$0xff] }
 0x1be   :  { %5361 = vmatpush1.bf16.msra.mxu1 %v5360_v20  ;;  %v1053_v20 = vld [vmem:[#allocation4 + $0x258] sm:$0xff]  ;;  %v5380_v28 = vpack.c.bf16 %v1056_v25, %v1052_v23  ;;  %v1090_v23 = vld [vmem:[#allocation4 + $0x380] sm:$0xff] }
 0x1bf   :  { %5363 = vmatprep.subr.bf16.mxu1 %v5362_v34  ;;  %v5378_v27 = vpack.c.bf16 %v1057_v22, %v1053_v20  ;;  %v1062_v34 = vld [vmem:[#allocation4 + $0x2a0] sm:$0xff]  ;;  %v1095_v22 = vld [vmem:[#allocation4 + $0x3a8] sm:$0xff] }
 0x1c0   :  { %5301 = vmatpush1.bf16.msra.mxu0 %v5300_v29  ;;  %v1059_v29 = vld [vmem:[#allocation4 + $0x288] sm:$0xff]  ;;  %v5320_v36 = vpack.c.bf16 %v1062_v34, %v1058_v33  ;;  %v1092_v33 = vld [vmem:[#allocation4 + $0x390] sm:$0xff] }
 0x1c1   :  { %5303 = vmatprep.subr.bf16.mxu0 %v5302_v38  ;;  %v5318_v32 = vpack.c.bf16 %v1063_v31, %v1059_v29  ;;  %v1060_v38 = vld [vmem:[#allocation4 + $0x290] sm:$0xff]  ;;  %v1097_v29 = vld [vmem:[#allocation4 + $0x3b8] sm:$0xff] }
 0x1c2   :  { %5365 = vmatpush1.bf16.msra.mxu1 %v5364_v35  ;;  %v1061_v35 = vld [vmem:[#allocation4 + $0x298] sm:$0xff]  ;;  %v5384_v41 = vpack.c.bf16 %v1064_v39, %v1060_v38  ;;  %v1096_v34 = vld [vmem:[#allocation4 + $0x3b0] sm:$0xff]  ;;  %v1098_v38 = vld [vmem:[#allocation4 + $0x3c0] sm:$0xff] }
 0x1c3   :  { %5367 = vmatprep.subr.bf16.mxu1 %v5366_v47  ;;  %v5382_v40 = vpack.c.bf16 %v1065_v37, %v1061_v35  ;;  %v1070_v47 = vld [vmem:[#allocation4 + $0x2e0] sm:$0xff]  ;;  %v1099_v35 = vld [vmem:[#allocation4 + $0x3c8] sm:$0xff] }
 0x1c4   :  { %5305 = vmatpush1.bf16.msra.mxu0 %v5304_v42  ;;  %v1067_v42 = vld [vmem:[#allocation4 + $0x2c8] sm:$0xff]  ;;  %v5324_v49 = vpack.c.bf16 %v1070_v47, %v1066_v46  ;;  %v1102_v39 = vld [vmem:[#allocation4 + $0x3e0] sm:$0xff]  ;;  %v1104_v47 = vld [vmem:[#allocation4 + $0x3f0] sm:$0xff] }
 0x1c5   :  { %5307 = vmatprep.subr.bf16.mxu0 %v5306_v51  ;;  %v5322_v45 = vpack.c.bf16 %v1071_v43, %v1067_v42  ;;  %v1068_v51 = vld [vmem:[#allocation4 + $0x2d0] sm:$0xff]  ;;  %v1103_v37 = vld [vmem:[#allocation4 + $0x3e8] sm:$0xff]  ;;  %v1105_v42 = vld [vmem:[#allocation4 + $0x3f8] sm:$0xff] }
 0x1c6   :  { %5369 = vmatpush1.bf16.msra.mxu1 %v5368_v48  ;;  %v1069_v48 = vld [vmem:[#allocation4 + $0x2d8] sm:$0xff]  ;;  %v5388_v54 = vpack.c.bf16 %v1072_v52, %v1068_v51  ;;  %v1100_v43 = vld [vmem:[#allocation4 + $0x3d0] sm:$0xff]  ;;  %v70_v52 = vld [vmem:[%s7530_s4] sm:$0xf] }
 0x1c7   :  { %5371 = vmatprep.subr.bf16.mxu1 %v5370_v59  ;;  %v5386_v53 = vpack.c.bf16 %v1073_v50, %v1069_v48  ;;  %v1078_v59 = vld [vmem:[#allocation4 + $0x320] sm:$0xff]  ;;  %v1277_v48 = vld [vmem:[#allocation2 + $0x8] sm:$0xff]  ;;  %v5404_v51 = vpack.c.bf16 %v1104_v47, %v1100_v43 }
 0x1c8   :  { %5309 = vmatpush1.bf16.msra.mxu0 %v5308_v55  ;;  %v1075_v55 = vld [vmem:[#allocation4 + $0x308] sm:$0xff]  ;;  %v5328_v60 = vpack.c.bf16 %v1078_v59, %v1074_v58 }
 0x1c9   :  { %5311 = vmatprep.subr.bf16.mxu0 %v5310_v62  ;;  %v5326_v57 = vpack.c.bf16 %v1079_v56, %v1075_v55  ;;  %v1076_v62 = vld [vmem:[#allocation4 + $0x310] sm:$0xff]  ;;  %v7357_v56 = vrot.slane %v70_v52, %v52_v13 }
 0x1ca   :  { %5373 = vmatpush1.bf16.msra.mxu1 %v5372_v0  ;;  %v1077_v0 = vld [vmem:[#allocation4 + $0x318] sm:$0xff]  ;;  %v5392_v2 = vpack.c.bf16 %v1080_v63, %v1076_v62 }
 0x1cb   :  { %5375 = vmatprep.subr.bf16.mxu1 %v5374_v7  ;;  %v5390_v1 = vpack.c.bf16 %v1081_v61, %v1077_v0  ;;  %v1086_v7 = vld [vmem:[#allocation4 + $0x360] sm:$0xff] }
 0x1cc   :  { %5313 = vmatpush1.bf16.msra.mxu0 %v5312_v3  ;;  %v1083_v3 = vld [vmem:[#allocation4 + $0x348] sm:$0xff]  ;;  %v5332_v9 = vpack.c.bf16 %v1086_v7, %v1082_v6 }
 0x1cd   :  { %5315 = vmatprep.subr.bf16.mxu0 %v5314_v11  ;;  %v5330_v5 = vpack.c.bf16 %v1087_v4, %v1083_v3  ;;  %v1084_v11 = vld [vmem:[#allocation4 + $0x350] sm:$0xff] }
 0x1ce   :  { %5377 = vmatpush1.bf16.msra.mxu1 %v5376_v8  ;;  %v1085_v8 = vld [vmem:[#allocation4 + $0x358] sm:$0xff]  ;;  %v5396_v20 = vpack.c.bf16 %v1088_v14, %v1084_v11 }
 0x1cf   :  { %5379 = vmatprep.subr.bf16.mxu1 %v5378_v27  ;;  %v5394_v19 = vpack.c.bf16 %v1089_v10, %v1085_v8  ;;  %v1094_v27 = vld [vmem:[#allocation4 + $0x3a0] sm:$0xff] }
 0x1d0   :  { %5317 = vmatpush1.bf16.msra.mxu0 %v5316_v21  ;;  %v1091_v21 = vld [vmem:[#allocation4 + $0x388] sm:$0xff]  ;;  %v5336_v31 = vpack.c.bf16 %v1094_v27, %v1090_v23 }
 0x1d1   :  { %5319 = vmatprep.subr.bf16.mxu0 %v5318_v32  ;;  %v5334_v25 = vpack.c.bf16 %v1095_v22, %v1091_v21 }
 0x1d2   :  { %5381 = vmatpush1.bf16.msra.mxu1 %v5380_v28  ;;  %v1093_v28 = vld [vmem:[#allocation4 + $0x398] sm:$0xff] }
 0x1d3   :  { %5383 = vmatprep.subr.bf16.mxu1 %v5382_v40  ;;  %v5398_v32 = vpack.c.bf16 %v1097_v29, %v1093_v28  ;;  %v5338_v40 = vpack.c.bf16 %v1103_v37, %v1099_v35 }
 0x1d4   :  { %5321 = vmatpush1.bf16.msra.mxu0 %v5320_v36  ;;  %v5400_v36 = vpack.c.bf16 %v1096_v34, %v1092_v33 }
 0x1d5   :  { %5323 = vmatprep.subr.bf16.mxu0 %v5322_v45  ;;  %v5340_v45 = vpack.c.bf16 %v1102_v39, %v1098_v38 }
 0x1d6   :  { %5385 = vmatpush1.bf16.msra.mxu1 %v5384_v41  ;;  %v1101_v41 = vld [vmem:[#allocation4 + $0x3d8] sm:$0xff] }
 0x1d7   :  { %5387 = vmatprep.subr.bf16.mxu1 %v5386_v53  ;;  %v5402_v46 = vpack.c.bf16 %v1105_v42, %v1101_v41  ;;  %v1279_v53 = vld [vmem:[#allocation2 + $0x18] sm:$0xff] }
 0x1d8   :  { %5325 = vmatpush1.bf16.msra.mxu0 %v5324_v49  ;;  %v1281_v49 = vld [vmem:[#allocation2 + $0x28] sm:$0xff] }
 0x1d9   :  { %5327 = vmatprep.subr.bf16.mxu0 %v5326_v57  ;;  %v5406_v50 = vpack.c.bf16 %v1281_v49, %v1277_v48  ;;  %v7361_v57 = vrot.slane %v70_v52, %v56_v15  ;;  %v7372_v15 = vrot.slane %v70_v52, %v60_v26 }
 0x1da   :  { %5389 = vmatpush1.bf16.msra.mxu1 %v5388_v54  ;;  %v1283_v54 = vld [vmem:[#allocation2 + $0x38] sm:$0xff] }
 0x1db   :  { %5391 = vmatprep.subr.bf16.mxu1 %v5390_v1  ;;  %v5470_v55 = vpack.c.bf16 %v1283_v54, %v1279_v53  ;;  %v1285_v53 = vld [vmem:[#allocation2 + $0x48] sm:$0xff] }
 0x1dc   :  { %5329 = vmatpush1.bf16.msra.mxu0 %v5328_v60  ;;  %v1289_v54 = vld [vmem:[#allocation2 + $0x68] sm:$0xff] }
 0x1dd   :  { %5331 = vmatprep.subr.bf16.mxu0 %v5330_v5 }
 0x1de   :  { %5393 = vmatpush1.bf16.msra.mxu1 %v5392_v2  ;;  %v7367_v2 = vrot.slane %v70_v52, %v64_v18 }
 0x1df   :  { %5395 = vmatprep.subr.bf16.mxu1 %v5394_v19 }
 0x1e0   :  { %5333 = vmatpush1.bf16.msra.mxu0 %v5332_v9 }
 0x1e1   :  { %5335 = vmatprep.subr.bf16.mxu0 %v5334_v25 }
 0x1e2   :  { %5397 = vmatpush1.bf16.msra.mxu1 %v5396_v20 }
 0x1e3   :  { %5399 = vmatprep.subr.bf16.mxu1 %v5398_v32 }
 0x1e4   :  { %5337 = vmatpush1.bf16.msra.mxu0 %v5336_v31 }
 0x1e5   :  { %5339 = vmatprep.subr.bf16.mxu0 %v5338_v40 }
 0x1e6   :  { %5401 = vmatpush1.bf16.msra.mxu1 %v5400_v36 }
 0x1e7   :  { %5403 = vmatprep.subr.bf16.mxu1 %v5402_v46 }
 0x1e8   :  { %5341 = vmatpush1.bf16.msra.mxu0 %v5340_v45 }
 0x1e9   :  { %5407 = vmatprep.subr.bf16.mxu0 %v5406_v50  ;;  %v1276_v50 = vld [vmem:[#allocation2] sm:$0xff] }
 0x1ea   :  { %5405 = vmatpush1.bf16.msra.mxu1 %v5404_v51  ;;  %v1280_v51 = vld [vmem:[#allocation2 + $0x20] sm:$0xff] }
 0x1eb   :  { %5471 = vmatprep.subr.bf16.mxu1 %v5470_v55  ;;  %v1278_v55 = vld [vmem:[#allocation2 + $0x10] sm:$0xff] }
 0x23e   :  { %v581_v58 = vpop.f32.mrb[2].mxu0  ;;  %v652_v59 = vpop.f32.mrb[2].mxu1 }
 0x23f   :  { %v582_v0 = vadd.f32 %v581_v58, %v7357_v56  ;;  %v583_v60 = vpop.f32.mrb[3].mxu0  ;;  %v654_v61 = vpop.f32.mrb[3].mxu1  ;;  %v653_v4 = vadd.f32 %v652_v59, %v7372_v15  ;;  %v1282_v58 = vld [vmem:[#allocation2 + $0x30] sm:$0xff] }
 0x240   :  { %v584_v62 = vadd.f32 %v583_v60, %v7361_v57  ;;  %v655_v13 = vadd.f32 %v654_v61, %v7367_v2  ;;  %v1287_v60 = vld [vmem:[#allocation2 + $0x58] sm:$0xff] }
 0x241   :  { %v4835_v63 = vmul.f32 -1.442695, %v582_v0  ;;  %v5408_v0 = vpack.c.bf16 %v1280_v51, %v1276_v50  ;;  %v1291_v61 = vld [vmem:[#allocation2 + $0x78] sm:$0xff]  ;;  %v1310_v51 = vld [vmem:[#allocation2 + $0x110] sm:$0xff] }
 0x242   :  { %v4836_v1 = vmul.f32 -1.442695, %v584_v62  ;;  %v4837_v3 = vmul.f32 -1.442695, %v655_v13  ;;  %v1293_v13 = vld [vmem:[#allocation2 + $0x88] sm:$0xff] }
 0x243   :  { %6963 = vpow2.f32 %v4835_v63  ;;  %v5410_v63 = vpack.c.bf16 %v1289_v54, %v1285_v53  ;;  %v1319_v54 = vld [vmem:[#allocation2 + $0x158] sm:$0xff] }
 0x244   :  { %6965 = vpow2.f32 %v4836_v1  ;;  %v1284_v1 = vld [vmem:[#allocation2 + $0x40] sm:$0xff] }
 0x245   :  { %6967 = vpow2.f32 %v4837_v3  ;;  %v1297_v3 = vld [vmem:[#allocation2 + $0xa8] sm:$0xff] }
 0x246   :  { %6969 = vtanh.f32 %v653_v4  ;;  %v5472_v4 = vpack.c.bf16 %v1282_v58, %v1278_v55  ;;  %v1323_v55 = vld [vmem:[#allocation2 + $0x178] sm:$0xff] }
 0x24d   :  { %v6964_v5 = vpop.eup %6963 }
 0x24e   :  { %v6966_v6 = vpop.eup %6965  ;;  %v660_v7 = vadd.f32 1.0, %v6964_v5  ;;  %v5474_v5 = vpack.c.bf16 %v1291_v61, %v1287_v60  ;;  %v1325_v60 = vld [vmem:[#allocation2 + $0x188] sm:$0xff] }
 0x24f   :  { %v666_v8 = vadd.f32 1.0, %v6966_v6  ;;  %v6968_v18 = vpop.eup %6967  ;;  %v1286_v6 = vld [vmem:[#allocation2 + $0x50] sm:$0xff]  ;;  %v1329_v61 = vld [vmem:[#allocation2 + $0x1a8] sm:$0xff] }
 0x250   :  { %6971 = vrcp.f32 %v660_v7  ;;  %v6970_v9 = vpop.eup %6969  ;;  %v673_v19 = vadd.f32 1.0, %v6968_v18  ;;  %v1290_v7 = vld [vmem:[#allocation2 + $0x70] sm:$0xff]  ;;  %v1295_v18 = vld [vmem:[#allocation2 + $0x98] sm:$0xff] }
 0x251   :  { %6973 = vrcp.f32 %v666_v8 }
 0x252   :  { %6975 = vrcp.f32 %v673_v19  ;;  %v1301_v19 = vld [vmem:[#allocation2 + $0xc8] sm:$0xff] }
 0x25a   :  { %v6972_v10 = vpop.eup %6971 }
 0x25b   :  { %v6974_v11 = vpop.eup %6973  ;;  %v677_v14 = vmul.f32 %v6972_v10, %v6970_v9  ;;  %v1299_v9 = vld [vmem:[#allocation2 + $0xb8] sm:$0xff]  ;;  %v5414_v10 = vpack.c.bf16 %v1297_v3, %v1293_v13 }
 0x25c   :  { %v676_v12 = vmul.f32 0.0, %v6974_v11  ;;  %v6976_v20 = vpop.eup %6975  ;;  %v1292_v11 = vld [vmem:[#allocation2 + $0x80] sm:$0xff]  ;;  %v1327_v3 = vld [vmem:[#allocation2 + $0x198] sm:$0xff] }
 0x25e   :  { %v7375_v26 = vadd.f32 %v677_v14, %v676_v12  ;;  %v1296_v14 = vld [vmem:[#allocation2 + $0xa0] sm:$0xff]  ;;  %v1305_v12 = vld [vmem:[#allocation2 + $0xe8] sm:$0xff] }
 0x260   :  { %6977 = vtanh.f32 %v7375_v26 }
 0x26a   :  { %v6978_v21 = vpop.eup %6977 }
 0x26b   :  { %v680_v22 = vmul.f32 %v6978_v21, %v6976_v20  ;;  %v5476_v20 = vpack.c.bf16 %v1290_v7, %v1286_v6  ;;  %v5478_v21 = vpack.c.bf16 %v1299_v9, %v1295_v18  ;;  %v1324_v6 = vld [vmem:[#allocation2 + $0x180] sm:$0xff]  ;;  %v1337_v18 = vld [vmem:[#allocation2 + $0x1e8] sm:$0xff] }
 0x26c   :  { %v1328_v7 = vld [vmem:[#allocation2 + $0x1a0] sm:$0xff] }
 0x26d   :  { %681 = vst [vmem:[%s7531_s5] sm:$0xff] %v680_v22  ;;  %1170 = vmatprep.mubr.f32.mxu0 %v680_v22  ;;  %1241 = vmatprep.mubr.f32.mxu1 %v680_v22  ;;  %v1294_v22 = vld [vmem:[#allocation2 + $0x90] sm:$0xff] }
 0x27e   :  { %v878_v23 = vpop.f32.mrb[4].mxu0 }
 0x27f   :  { %v879_v25 = vadd.f32 %v878_v23, %v7326_v16  ;;  %v880_v27 = vpop.f32.mrb[5].mxu0  ;;  %v1298_v23 = vld [vmem:[#allocation2 + $0xb0] sm:$0xff] }
 0x280   :  { %v881_v28 = vadd.f32 %v880_v27, %v7330_v17  ;;  %v949_v29 = vpop.f32.mrb[4].mxu1  ;;  %v1303_v27 = vld [vmem:[#allocation2 + $0xd8] sm:$0xff] }
 0x281   :  { %v4839_v31 = vmul.f32 -1.442695, %v879_v25  ;;  %v951_v32 = vpop.f32.mrb[5].mxu1  ;;  %v950_v36 = vadd.f32 %v949_v29, %v7343_v30  ;;  %v5416_v25 = vpack.c.bf16 %v1296_v14, %v1292_v11  ;;  %v5418_v29 = vpack.c.bf16 %v1305_v12, %v1301_v19  ;;  %v1326_v11 = vld [vmem:[#allocation2 + $0x190] sm:$0xff]  ;;  %v1335_v12 = vld [vmem:[#allocation2 + $0x1d8] sm:$0xff] }
 0x282   :  { %v4840_v33 = vmul.f32 -1.442695, %v881_v28  ;;  %v952_v34 = vadd.f32 %v951_v32, %v7337_v24  ;;  %v1307_v28 = vld [vmem:[#allocation2 + $0xf8] sm:$0xff]  ;;  %v1304_v32 = vld [vmem:[#allocation2 + $0xe0] sm:$0xff]  ;;  %v1330_v14 = vld [vmem:[#allocation2 + $0x1b0] sm:$0xff]  ;;  %v5432_v19 = vpack.c.bf16 %v1328_v7, %v1324_v6 }
 0x283   :  { %6979 = vpow2.f32 %v4839_v31  ;;  %v1300_v31 = vld [vmem:[#allocation2 + $0xc0] sm:$0xff]  ;;  %v1358_v6 = vld [vmem:[#allocation2 + $0x290] sm:$0xff] }
 0x284   :  { %6981 = vpow2.f32 %v4840_v33  ;;  %v4841_v35 = vmul.f32 -1.442695, %v952_v34  ;;  %v1309_v33 = vld [vmem:[#allocation2 + $0x108] sm:$0xff]  ;;  %v1362_v7 = vld [vmem:[#allocation2 + $0x2b0] sm:$0xff] }
 0x285   :  { %v1313_v34 = vld [vmem:[#allocation2 + $0x128] sm:$0xff] }
 0x286   :  { %6983 = vpow2.f32 %v4841_v35  ;;  %v5480_v35 = vpack.c.bf16 %v1298_v23, %v1294_v22  ;;  %v1332_v22 = vld [vmem:[#allocation2 + $0x1c0] sm:$0xff] }
 0x287   :  { %6985 = vtanh.f32 %v950_v36  ;;  %v5482_v36 = vpack.c.bf16 %v1307_v28, %v1303_v27  ;;  %v1336_v23 = vld [vmem:[#allocation2 + $0x1e0] sm:$0xff]  ;;  %v1345_v27 = vld [vmem:[#allocation2 + $0x228] sm:$0xff]  ;;  %v5496_v28 = vpack.c.bf16 %v1330_v14, %v1326_v11 }
 0x288   :  { %v1364_v11 = vld [vmem:[#allocation2 + $0x2c0] sm:$0xff] }
 0x289   :  { %v1368_v14 = vld [vmem:[#allocation2 + $0x2e0] sm:$0xff] }
 0x28d   :  { %v6980_v37 = vpop.eup %6979 }
 0x28e   :  { %v6982_v38 = vpop.eup %6981  ;;  %v957_v39 = vadd.f32 1.0, %v6980_v37  ;;  %v1302_v37 = vld [vmem:[#allocation2 + $0xd0] sm:$0xff] }
 0x28f   :  { %v963_v40 = vadd.f32 1.0, %v6982_v38  ;;  %v1306_v38 = vld [vmem:[#allocation2 + $0xf0] sm:$0xff] }
 0x290   :  { %6987 = vrcp.f32 %v957_v39  ;;  %v6984_v41 = vpop.eup %6983  ;;  %v5420_v39 = vpack.c.bf16 %v1304_v32, %v1300_v31  ;;  %v1334_v31 = vld [vmem:[#allocation2 + $0x1d0] sm:$0xff] }
 0x291   :  { %6989 = vrcp.f32 %v963_v40  ;;  %v6986_v42 = vpop.eup %6985  ;;  %v970_v45 = vadd.f32 1.0, %v6984_v41  ;;  %v1311_v40 = vld [vmem:[#allocation2 + $0x118] sm:$0xff]  ;;  %v1338_v32 = vld [vmem:[#allocation2 + $0x1f0] sm:$0xff] }
 0x292   :  { %v1315_v41 = vld [vmem:[#allocation2 + $0x138] sm:$0xff] }
 0x293   :  { %6991 = vrcp.f32 %v970_v45  ;;  %v1312_v45 = vld [vmem:[#allocation2 + $0x120] sm:$0xff]  ;;  %v5486_v50 = vpack.c.bf16 %v1315_v41, %v1311_v40  ;;  %v1353_v40 = vld [vmem:[#allocation2 + $0x268] sm:$0xff]  ;;  %v5500_v41 = vpack.c.bf16 %v1338_v32, %v1334_v31 }
 0x294   :  { %v1372_v31 = vld [vmem:[#allocation2 + $0x300] sm:$0xff] }
 0x295   :  { %v1376_v32 = vld [vmem:[#allocation2 + $0x320] sm:$0xff] }
 0x29a   :  { %v6988_v43 = vpop.eup %6987 }
 0x29b   :  { %v6990_v46 = vpop.eup %6989  ;;  %v974_v47 = vmul.f32 %v6988_v43, %v6986_v42  ;;  %v5422_v42 = vpack.c.bf16 %v1313_v34, %v1309_v33  ;;  %v1308_v43 = vld [vmem:[#allocation2 + $0x100] sm:$0xff]  ;;  %v5436_v33 = vpack.c.bf16 %v1336_v23, %v1332_v22  ;;  %v1343_v34 = vld [vmem:[#allocation2 + $0x218] sm:$0xff]  ;;  %v1366_v22 = vld [vmem:[#allocation2 + $0x2d0] sm:$0xff] }
 0x29c   :  { %v973_v48 = vmul.f32 %v6990_v46, %v7346_v44  ;;  %v1288_v44 = vld [vmem:[#allocation2 + $0x60] sm:$0xff]  ;;  %v1317_v46 = vld [vmem:[#allocation2 + $0x148] sm:$0xff]  ;;  %v5424_v53 = vpack.c.bf16 %v1312_v45, %v1308_v43  ;;  %v1342_v43 = vld [vmem:[#allocation2 + $0x210] sm:$0xff] }
 0x29d   :  { %v6992_v52 = vpop.eup %6991  ;;  %v5412_v8 = vpack.c.bf16 %v1288_v44, %v1284_v1  ;;  %v1318_v1 = vld [vmem:[#allocation2 + $0x150] sm:$0xff] }
 0x29e   :  { %v7386_v49 = vadd.f32 %v974_v47, %v973_v48  ;;  %v1321_v47 = vld [vmem:[#allocation2 + $0x168] sm:$0xff]  ;;  %v5484_v48 = vpack.c.bf16 %v1306_v38, %v1302_v37  ;;  %v1322_v44 = vld [vmem:[#allocation2 + $0x170] sm:$0xff]  ;;  %v1340_v37 = vld [vmem:[#allocation2 + $0x200] sm:$0xff] }
 0x29f   :  { %v5426_v58 = vpack.c.bf16 %v1321_v47, %v1317_v46  ;;  %v5492_v9 = vpack.c.bf16 %v1322_v44, %v1318_v1  ;;  %v1344_v38 = vld [vmem:[#allocation2 + $0x220] sm:$0xff]  ;;  %v1346_v45 = vld [vmem:[#allocation2 + $0x230] sm:$0xff]  ;;  %v1351_v47 = vld [vmem:[#allocation2 + $0x258] sm:$0xff] }
 0x2a0   :  { %6993 = vtanh.f32 %v7386_v49  ;;  %v5440_v46 = vpack.c.bf16 %v1344_v38, %v1340_v37  ;;  %v1356_v1 = vld [vmem:[#allocation2 + $0x280] sm:$0xff]  ;;  %v1370_v23 = vld [vmem:[#allocation2 + $0x2f0] sm:$0xff] }
 0x2a1   :  { %v1360_v44 = vld [vmem:[#allocation2 + $0x2a0] sm:$0xff]  ;;  %v1374_v37 = vld [vmem:[#allocation2 + $0x310] sm:$0xff] }
 0x2a2   :  { %v1378_v38 = vld [vmem:[#allocation2 + $0x330] sm:$0xff] }
 0x2aa   :  { %v6994_v59 = vpop.eup %6993 }
 0x2ab   :  { %v977_v62 = vmul.f32 %v6994_v59, %v6992_v52  ;;  %v1314_v52 = vld [vmem:[#allocation2 + $0x130] sm:$0xff]  ;;  %v1316_v59 = vld [vmem:[#allocation2 + $0x140] sm:$0xff] }
 0x2ad   :  { %1171 = vmatmul.mubr.f32.vlgmr.msra.gmra.mrb[6].mxu0 %v977_v62  ;;  %1242 = vmatmul.mubr.f32.vlgmr.msra.gmra.mrb[6].mxu1 %v977_v62 }
 0x2ae   :  { %5409 = vmatpush1.bf16.msra.mxu0 %v5408_v0  ;;  %1468 = vmatprep.mubr.f32.mxu0 %v977_v62  ;;  %v1320_v0 = vld [vmem:[#allocation2 + $0x160] sm:$0xff] }
 0x2af   :  { %1539 = vmatprep.mubr.f32.mxu1 %v977_v62  ;;  %5411 = vmatprep.subr.bf16.mxu0 %v5410_v63  ;;  %v5488_v62 = vpack.c.bf16 %v1314_v52, %v1310_v51  ;;  %v5490_v63 = vpack.c.bf16 %v1323_v55, %v1319_v54  ;;  %v5428_v13 = vpack.c.bf16 %v1320_v0, %v1316_v59  ;;  %v1348_v51 = vld [vmem:[#allocation2 + $0x240] sm:$0xff]  ;;  %v1361_v54 = vld [vmem:[#allocation2 + $0x2a8] sm:$0xff]  ;;  %v1350_v59 = vld [vmem:[#allocation2 + $0x250] sm:$0xff] }
 0x2b0   :  { %5473 = vmatpush1.bf16.msra.mxu1 %v5472_v4  ;;  %v1331_v4 = vld [vmem:[#allocation2 + $0x1b8] sm:$0xff]  ;;  %v1352_v52 = vld [vmem:[#allocation2 + $0x260] sm:$0xff]  ;;  %v5504_v55 = vpack.c.bf16 %v1346_v45, %v1342_v43  ;;  %v1354_v0 = vld [vmem:[#allocation2 + $0x270] sm:$0xff] }
 0x2b1   :  { %5475 = vmatprep.subr.bf16.mxu1 %v5474_v5  ;;  %v5430_v5 = vpack.c.bf16 %v1329_v61, %v1325_v60  ;;  %v5444_v60 = vpack.c.bf16 %v1352_v52, %v1348_v51  ;;  %v1359_v61 = vld [vmem:[#allocation2 + $0x298] sm:$0xff]  ;;  %v1380_v43 = vld [vmem:[#allocation2 + $0x340] sm:$0xff]  ;;  %v1382_v51 = vld [vmem:[#allocation2 + $0x350] sm:$0xff] }
 0x2b2   :  { %5413 = vmatpush1.bf16.msra.mxu0 %v5412_v8  ;;  %v1333_v8 = vld [vmem:[#allocation2 + $0x1c8] sm:$0xff]  ;;  %v1384_v45 = vld [vmem:[#allocation2 + $0x360] sm:$0xff]  ;;  %v1386_v52 = vld [vmem:[#allocation2 + $0x370] sm:$0xff] }
 0x2b3   :  { %5415 = vmatprep.subr.bf16.mxu0 %v5414_v10  ;;  %v5494_v10 = vpack.c.bf16 %v1331_v4, %v1327_v3  ;;  %v1369_v3 = vld [vmem:[#allocation2 + $0x2e8] sm:$0xff]  ;;  %v5508_v4 = vpack.c.bf16 %v1354_v0, %v1350_v59  ;;  %v1388_v59 = vld [vmem:[#allocation2 + $0x380] sm:$0xff] }
 0x2b4   :  { %5477 = vmatpush1.bf16.msra.mxu1 %v5476_v20  ;;  %v1339_v20 = vld [vmem:[#allocation2 + $0x1f8] sm:$0xff]  ;;  %v1392_v0 = vld [vmem:[#allocation2 + $0x3a0] sm:$0xff] }
 0x2b5   :  { %5479 = vmatprep.subr.bf16.mxu1 %v5478_v21  ;;  %v5434_v21 = vpack.c.bf16 %v1337_v18, %v1333_v8  ;;  %v5448_v8 = vpack.c.bf16 %v1360_v44, %v1356_v1  ;;  %v1367_v18 = vld [vmem:[#allocation2 + $0x2d8] sm:$0xff]  ;;  %v1390_v1 = vld [vmem:[#allocation2 + $0x390] sm:$0xff] }
 0x2b6   :  { %5417 = vmatpush1.bf16.msra.mxu0 %v5416_v25  ;;  %v1341_v25 = vld [vmem:[#allocation2 + $0x208] sm:$0xff]  ;;  %v1394_v44 = vld [vmem:[#allocation2 + $0x3b0] sm:$0xff] }
 0x2b7   :  { %5419 = vmatprep.subr.bf16.mxu0 %v5418_v29  ;;  %v5498_v29 = vpack.c.bf16 %v1339_v20, %v1335_v12  ;;  %v1377_v12 = vld [vmem:[#allocation2 + $0x328] sm:$0xff]  ;;  %v5512_v20 = vpack.c.bf16 %v1362_v7, %v1358_v6  ;;  %v1396_v6 = vld [vmem:[#allocation2 + $0x3c0] sm:$0xff] }
 0x2b8   :  { %5481 = vmatpush1.bf16.msra.mxu1 %v5480_v35  ;;  %v1347_v35 = vld [vmem:[#allocation2 + $0x238] sm:$0xff]  ;;  %v1400_v7 = vld [vmem:[#allocation2 + $0x3e0] sm:$0xff] }
 0x2b9   :  { %5483 = vmatprep.subr.bf16.mxu1 %v5482_v36  ;;  %v5438_v36 = vpack.c.bf16 %v1345_v27, %v1341_v25  ;;  %v5452_v25 = vpack.c.bf16 %v1368_v14, %v1364_v11  ;;  %v1375_v27 = vld [vmem:[#allocation2 + $0x318] sm:$0xff]  ;;  %v5468_v11 = vpack.c.bf16 %v1400_v7, %v1396_v6 }
 0x2ba   :  { %5421 = vmatpush1.bf16.msra.mxu0 %v5420_v39  ;;  %v1349_v39 = vld [vmem:[#allocation2 + $0x248] sm:$0xff] }
 0x2bb   :  { %5423 = vmatprep.subr.bf16.mxu0 %v5422_v42  ;;  %v5502_v42 = vpack.c.bf16 %v1347_v35, %v1343_v34  ;;  %v1385_v34 = vld [vmem:[#allocation2 + $0x368] sm:$0xff]  ;;  %v5516_v35 = vpack.c.bf16 %v1370_v23, %v1366_v22  ;;  %v1574_v23 = vld [vmem:[#allocation4 + $0x20] sm:$0xff] }
 0x2bc   :  { %5485 = vmatpush1.bf16.msra.mxu1 %v5484_v48  ;;  %v1355_v48 = vld [vmem:[#allocation2 + $0x278] sm:$0xff] }
 0x2bd   :  { %5487 = vmatprep.subr.bf16.mxu1 %v5486_v50  ;;  %v5442_v50 = vpack.c.bf16 %v1353_v40, %v1349_v39  ;;  %v5456_v39 = vpack.c.bf16 %v1376_v32, %v1372_v31  ;;  %v1383_v40 = vld [vmem:[#allocation2 + $0x358] sm:$0xff]  ;;  %v1572_v31 = vld [vmem:[#allocation4 + $0x10] sm:$0xff] }
 0x2be   :  { %5425 = vmatpush1.bf16.msra.mxu0 %v5424_v53  ;;  %v1357_v53 = vld [vmem:[#allocation2 + $0x288] sm:$0xff]  ;;  %v1576_v32 = vld [vmem:[#allocation4 + $0x30] sm:$0xff] }
 0x2bf   :  { %5427 = vmatprep.subr.bf16.mxu0 %v5426_v58  ;;  %v5506_v58 = vpack.c.bf16 %v1355_v48, %v1351_v47  ;;  %v1393_v47 = vld [vmem:[#allocation2 + $0x3a8] sm:$0xff]  ;;  %v5520_v48 = vpack.c.bf16 %v1378_v38, %v1374_v37  ;;  %v1582_v38 = vld [vmem:[#allocation4 + $0x60] sm:$0xff] }
 0x2c0   :  { %5489 = vmatpush1.bf16.msra.mxu1 %v5488_v62  ;;  %v1363_v62 = vld [vmem:[#allocation2 + $0x2b8] sm:$0xff] }
 0x2c1   :  { %5491 = vmatprep.subr.bf16.mxu1 %v5490_v63  ;;  %v5446_v63 = vpack.c.bf16 %v1361_v54, %v1357_v53  ;;  %v5460_v53 = vpack.c.bf16 %v1384_v45, %v1380_v43  ;;  %v1391_v54 = vld [vmem:[#allocation2 + $0x398] sm:$0xff]  ;;  %v1580_v43 = vld [vmem:[#allocation4 + $0x50] sm:$0xff] }
 0x2c2   :  { %5429 = vmatpush1.bf16.msra.mxu0 %v5428_v13  ;;  %v1365_v13 = vld [vmem:[#allocation2 + $0x2c8] sm:$0xff]  ;;  %v1584_v45 = vld [vmem:[#allocation4 + $0x70] sm:$0xff] }
 0x2c3   :  { %5431 = vmatprep.subr.bf16.mxu0 %v5430_v5  ;;  %v5510_v5 = vpack.c.bf16 %v1363_v62, %v1359_v61  ;;  %v1401_v61 = vld [vmem:[#allocation2 + $0x3e8] sm:$0xff]  ;;  %v5524_v62 = vpack.c.bf16 %v1386_v52, %v1382_v51  ;;  %v1590_v51 = vld [vmem:[#allocation4 + $0xa0] sm:$0xff] }
 0x2c4   :  { %5493 = vmatpush1.bf16.msra.mxu1 %v5492_v9  ;;  %v1371_v9 = vld [vmem:[#allocation2 + $0x2f8] sm:$0xff] }
 0x2c5   :  { %5495 = vmatprep.subr.bf16.mxu1 %v5494_v10  ;;  %v5450_v10 = vpack.c.bf16 %v1369_v3, %v1365_v13  ;;  %v5464_v13 = vpack.c.bf16 %v1392_v0, %v1388_v59  ;;  %v1399_v3 = vld [vmem:[#allocation2 + $0x3d8] sm:$0xff]  ;;  %v1592_v0 = vld [vmem:[#allocation4 + $0xb0] sm:$0xff] }
 0x2c6   :  { %5433 = vmatpush1.bf16.msra.mxu0 %v5432_v19  ;;  %v1373_v19 = vld [vmem:[#allocation2 + $0x308] sm:$0xff] }
 0x2c7   :  { %5435 = vmatprep.subr.bf16.mxu0 %v5434_v21  ;;  %v5514_v21 = vpack.c.bf16 %v1371_v9, %v1367_v18  ;;  %v1398_v9 = vld [vmem:[#allocation2 + $0x3d0] sm:$0xff] }
 0x2c8   :  { %5497 = vmatpush1.bf16.msra.mxu1 %v5496_v28  ;;  %v1379_v28 = vld [vmem:[#allocation2 + $0x338] sm:$0xff] }
 0x2c9   :  { %5499 = vmatprep.subr.bf16.mxu1 %v5498_v29  ;;  %v5454_v29 = vpack.c.bf16 %v1377_v12, %v1373_v19  ;;  %v4846_v19 = vld [vmem:[%s7526_s0 + $0x10] sm:$0xff]  ;;  %v1571_v12 = vld [vmem:[#allocation4 + $0x8] sm:$0xff] }
 0x2ca   :  { %5437 = vmatpush1.bf16.msra.mxu0 %v5436_v33  ;;  %v1381_v33 = vld [vmem:[#allocation2 + $0x348] sm:$0xff] }
 0x2cb   :  { %5439 = vmatprep.subr.bf16.mxu0 %v5438_v36  ;;  %v5518_v36 = vpack.c.bf16 %v1379_v28, %v1375_v27  ;;  %v1577_v27 = vld [vmem:[#allocation4 + $0x38] sm:$0xff] }
 0x2cc   :  { %5501 = vmatpush1.bf16.msra.mxu1 %v5500_v41  ;;  %v1387_v41 = vld [vmem:[#allocation2 + $0x378] sm:$0xff] }
 0x2cd   :  { %5503 = vmatprep.subr.bf16.mxu1 %v5502_v42  ;;  %v5458_v42 = vpack.c.bf16 %v1385_v34, %v1381_v33  ;;  %v5600_v33 = vpack.c.bf16 %v1576_v32, %v1572_v31  ;;  %v1579_v34 = vld [vmem:[#allocation4 + $0x48] sm:$0xff]  ;;  %v1610_v31 = vld [vmem:[#allocation4 + $0x140] sm:$0xff] }
 0x2ce   :  { %5441 = vmatpush1.bf16.msra.mxu0 %v5440_v46  ;;  %v1389_v46 = vld [vmem:[#allocation2 + $0x388] sm:$0xff]  ;;  %v1614_v32 = vld [vmem:[#allocation4 + $0x160] sm:$0xff] }
 0x2cf   :  { %5443 = vmatprep.subr.bf16.mxu0 %v5442_v50  ;;  %v5522_v50 = vpack.c.bf16 %v1387_v41, %v1383_v40  ;;  %v1585_v40 = vld [vmem:[#allocation4 + $0x78] sm:$0xff] }
 0x2d0   :  { %5505 = vmatpush1.bf16.msra.mxu1 %v5504_v55  ;;  %v1395_v55 = vld [vmem:[#allocation2 + $0x3b8] sm:$0xff] }
 0x2d1   :  { %5507 = vmatprep.subr.bf16.mxu1 %v5506_v58  ;;  %v5462_v58 = vpack.c.bf16 %v1393_v47, %v1389_v46  ;;  %v1587_v46 = vld [vmem:[#allocation4 + $0x88] sm:$0xff]  ;;  %v5604_v47 = vpack.c.bf16 %v1584_v45, %v1580_v43  ;;  %v1618_v43 = vld [vmem:[#allocation4 + $0x180] sm:$0xff] }
 0x2d2   :  { %5445 = vmatpush1.bf16.msra.mxu0 %v5444_v60  ;;  %v1397_v60 = vld [vmem:[#allocation2 + $0x3c8] sm:$0xff]  ;;  %v1622_v45 = vld [vmem:[#allocation4 + $0x1a0] sm:$0xff] }
 0x2d3   :  { %5447 = vmatprep.subr.bf16.mxu0 %v5446_v63  ;;  %v5526_v63 = vpack.c.bf16 %v1395_v55, %v1391_v54  ;;  %v1589_v54 = vld [vmem:[#allocation4 + $0x98] sm:$0xff] }
 0x2d4   :  { %5509 = vmatpush1.bf16.msra.mxu1 %v5508_v4  ;;  %v1403_v4 = vld [vmem:[#allocation2 + $0x3f8] sm:$0xff] }
 0x2d5   :  { %5511 = vmatprep.subr.bf16.mxu1 %v5510_v5  ;;  %v5466_v5 = vpack.c.bf16 %v1401_v61, %v1397_v60  ;;  %v5530_v18 = vpack.c.bf16 %v1403_v4, %v1399_v3  ;;  %v1593_v55 = vld [vmem:[#allocation4 + $0xb8] sm:$0xff]  ;;  %v1595_v60 = vld [vmem:[#allocation4 + $0xc8] sm:$0xff]  ;;  %v1596_v4 = vld [vmem:[#allocation4 + $0xd0] sm:$0xff] }
 0x2d6   :  { %5449 = vmatpush1.bf16.msra.mxu0 %v5448_v8  ;;  %v5528_v8 = vpack.c.bf16 %v1394_v44, %v1390_v1  ;;  %v5606_v59 = vpack.c.bf16 %v1593_v55, %v1589_v54  ;;  %v1599_v61 = vld [vmem:[#allocation4 + $0xe8] sm:$0xff]  ;;  %v1594_v1 = vld [vmem:[#allocation4 + $0xc0] sm:$0xff]  ;;  %v1601_v3 = vld [vmem:[#allocation4 + $0xf8] sm:$0xff] }
 0x2d7   :  { %5451 = vmatprep.subr.bf16.mxu0 %v5450_v10  ;;  %v1402_v10 = vld [vmem:[#allocation2 + $0x3f0] sm:$0xff]  ;;  %v1598_v44 = vld [vmem:[#allocation4 + $0xe0] sm:$0xff]  ;;  %v1627_v54 = vld [vmem:[#allocation4 + $0x1c8] sm:$0xff] }
 0x2d8   :  { %5513 = vmatpush1.bf16.msra.mxu1 %v5512_v20  ;;  %v5532_v14 = vpack.c.bf16 %v1402_v10, %v1398_v9  ;;  %v1575_v20 = vld [vmem:[#allocation4 + $0x28] sm:$0xff]  ;;  %v5548_v6 = vpack.c.bf16 %v1598_v44, %v1594_v1  ;;  %v1602_v9 = vld [vmem:[#allocation4 + $0x100] sm:$0xff]  ;;  %v1632_v1 = vld [vmem:[#allocation4 + $0x1f0] sm:$0xff] }
 0x2d9   :  { %5515 = vmatprep.subr.bf16.mxu1 %v5514_v21  ;;  %v1570_v21 = vld [vmem:[#allocation4] sm:$0xff]  ;;  %v5534_v22 = vpack.c.bf16 %v1575_v20, %v1571_v12  ;;  %v1609_v12 = vld [vmem:[#allocation4 + $0x138] sm:$0xff]  ;;  %v1631_v55 = vld [vmem:[#allocation4 + $0x1e8] sm:$0xff] }
 0x2da   :  { %5453 = vmatpush1.bf16.msra.mxu0 %v5452_v25  ;;  %v1573_v25 = vld [vmem:[#allocation4 + $0x18] sm:$0xff]  ;;  %v5536_v28 = vpack.c.bf16 %v1574_v23, %v1570_v21  ;;  %v1608_v23 = vld [vmem:[#allocation4 + $0x130] sm:$0xff] }
 0x2db   :  { %5455 = vmatprep.subr.bf16.mxu0 %v5454_v29  ;;  %v5598_v29 = vpack.c.bf16 %v1577_v27, %v1573_v25  ;;  %v1611_v27 = vld [vmem:[#allocation4 + $0x148] sm:$0xff] }
 0x2dc   :  { %5517 = vmatpush1.bf16.msra.mxu1 %v5516_v35  ;;  %v1583_v35 = vld [vmem:[#allocation4 + $0x68] sm:$0xff] }
 0x2dd   :  { %5519 = vmatprep.subr.bf16.mxu1 %v5518_v36  ;;  %v1578_v36 = vld [vmem:[#allocation4 + $0x40] sm:$0xff]  ;;  %v5538_v37 = vpack.c.bf16 %v1583_v35, %v1579_v34  ;;  %v5556_v34 = vpack.c.bf16 %v1614_v32, %v1610_v31  ;;  %v1617_v35 = vld [vmem:[#allocation4 + $0x178] sm:$0xff]  ;;  %v1648_v31 = vld [vmem:[#allocation4 + $0x270] sm:$0xff] }
 0x2de   :  { %5457 = vmatpush1.bf16.msra.mxu0 %v5456_v39  ;;  %v1581_v39 = vld [vmem:[#allocation4 + $0x58] sm:$0xff]  ;;  %v5540_v41 = vpack.c.bf16 %v1582_v38, %v1578_v36  ;;  %v1612_v36 = vld [vmem:[#allocation4 + $0x150] sm:$0xff] }
 0x2df   :  { %5459 = vmatprep.subr.bf16.mxu0 %v5458_v42  ;;  %v5602_v42 = vpack.c.bf16 %v1585_v40, %v1581_v39  ;;  %v1619_v40 = vld [vmem:[#allocation4 + $0x188] sm:$0xff] }
 0x2e0   :  { %5521 = vmatpush1.bf16.msra.mxu1 %v5520_v48  ;;  %v1591_v48 = vld [vmem:[#allocation4 + $0xa8] sm:$0xff] }
 0x2e1   :  { %5523 = vmatprep.subr.bf16.mxu1 %v5522_v50  ;;  %v1586_v50 = vld [vmem:[#allocation4 + $0x80] sm:$0xff]  ;;  %v5542_v52 = vpack.c.bf16 %v1591_v48, %v1587_v46  ;;  %v1621_v46 = vld [vmem:[#allocation4 + $0x198] sm:$0xff] }
 0x2e2   :  { %5461 = vmatpush1.bf16.msra.mxu0 %v5460_v53  ;;  %v5544_v53 = vpack.c.bf16 %v1590_v51, %v1586_v50  ;;  %v1625_v48 = vld [vmem:[#allocation4 + $0x1b8] sm:$0xff]  ;;  %v1620_v50 = vld [vmem:[#allocation4 + $0x190] sm:$0xff] }
 0x2e3   :  { %5463 = vmatprep.subr.bf16.mxu0 %v5462_v58  ;;  %v1588_v58 = vld [vmem:[#allocation4 + $0x90] sm:$0xff] }
 0x2e4   :  { %5525 = vmatpush1.bf16.msra.mxu1 %v5524_v62  ;;  %v5608_v62 = vpack.c.bf16 %v1592_v0, %v1588_v58  ;;  %v1624_v51 = vld [vmem:[#allocation4 + $0x1b0] sm:$0xff]  ;;  %v5562_v58 = vpack.c.bf16 %v1631_v55, %v1627_v54  ;;  %v1630_v0 = vld [vmem:[#allocation4 + $0x1e0] sm:$0xff]  ;;  %v1665_v55 = vld [vmem:[#allocation4 + $0x2f8] sm:$0xff] }
 0x2e5   :  { %5527 = vmatprep.subr.bf16.mxu1 %v5526_v63  ;;  %v5546_v63 = vpack.c.bf16 %v1599_v61, %v1595_v60  ;;  %v1629_v60 = vld [vmem:[#allocation4 + $0x1d8] sm:$0xff] }
 0x2e6   :  { %5465 = vmatpush1.bf16.msra.mxu0 %v5464_v13  ;;  %v1597_v13 = vld [vmem:[#allocation4 + $0xd8] sm:$0xff] }
 0x2e7   :  { %5467 = vmatprep.subr.bf16.mxu0 %v5466_v5  ;;  %v1600_v5 = vld [vmem:[#allocation4 + $0xf0] sm:$0xff]  ;;  %v5610_v7 = vpack.c.bf16 %v1601_v3, %v1597_v13  ;;  %v1635_v3 = vld [vmem:[#allocation4 + $0x208] sm:$0xff] }
 0x2e8   :  { %5529 = vmatpush1.bf16.msra.mxu1 %v5528_v8  ;;  %v1603_v8 = vld [vmem:[#allocation4 + $0x108] sm:$0xff]  ;;  %v5612_v10 = vpack.c.bf16 %v1600_v5, %v1596_v4 }
 0x2e9   :  { %5531 = vmatprep.subr.bf16.mxu1 %v5530_v18  ;;  %v1607_v18 = vld [vmem:[#allocation4 + $0x128] sm:$0xff] }
 0x2ea   :  { %5469 = vmatpush1.bf16.msra.mxu0 %v5468_v11  ;;  %v5550_v11 = vpack.c.bf16 %v1607_v18, %v1603_v8  ;;  %v1639_v4 = vld [vmem:[#allocation4 + $0x228] sm:$0xff]  ;;  %v1637_v8 = vld [vmem:[#allocation4 + $0x218] sm:$0xff] }
 0x2eb   :  { %5535 = vmatprep.subr.bf16.mxu0 %v5534_v22  ;;  %v1604_v22 = vld [vmem:[#allocation4 + $0x110] sm:$0xff]  ;;  %v5566_v5 = vpack.c.bf16 %v1639_v4, %v1635_v3  ;;  %v1673_v4 = vld [vmem:[#allocation4 + $0x338] sm:$0xff] }
 0x2ec   :  { %5533 = vmatpush1.bf16.msra.mxu1 %v5532_v14  ;;  %v1606_v14 = vld [vmem:[#allocation4 + $0x120] sm:$0xff]  ;;  %v5616_v25 = vpack.c.bf16 %v1608_v23, %v1604_v22 }
 0x2ed   :  { %1469 = vmatmul.mubr.f32.vlgmr.msra.gmra.mrb[8].mxu0 %v4846_v19  ;;  %5599 = vmatprep.subr.bf16.mxu1 %v5598_v29  ;;  %v5552_v21 = vpack.c.bf16 %v1606_v14, %v1602_v9  ;;  %v1641_v9 = vld [vmem:[#allocation4 + $0x238] sm:$0xff]  ;;  %v1642_v22 = vld [vmem:[#allocation4 + $0x240] sm:$0xff] }
 0x2ee   :  { %5537 = vmatpush1.bf16.msra.mxu0 %v5536_v28  ;;  %v1615_v28 = vld [vmem:[#allocation4 + $0x168] sm:$0xff]  ;;  %v5630_v14 = vpack.c.bf16 %v1641_v9, %v1637_v8  ;;  %v1646_v23 = vld [vmem:[#allocation4 + $0x260] sm:$0xff] }
 0x2ef   :  { %1540 = vmatmul.mubr.f32.vlgmr.msra.gmra.mrb[8].mxu1 %v4846_v19  ;;  %5539 = vmatprep.subr.bf16.mxu0 %v5538_v37  ;;  %v1605_v19 = vld [vmem:[#allocation4 + $0x118] sm:$0xff]  ;;  %v5554_v29 = vpack.c.bf16 %v1615_v28, %v1611_v27  ;;  %v1616_v37 = vld [vmem:[#allocation4 + $0x170] sm:$0xff]  ;;  %v5572_v27 = vpack.c.bf16 %v1646_v23, %v1642_v22  ;;  %v1679_v9 = vld [vmem:[#allocation4 + $0x368] sm:$0xff] }
 0x2f0   :  { %5601 = vmatpush1.bf16.msra.mxu1 %v5600_v33  ;;  %v5614_v20 = vpack.c.bf16 %v1609_v12, %v1605_v19  ;;  %v1613_v33 = vld [vmem:[#allocation4 + $0x158] sm:$0xff]  ;;  %v5620_v39 = vpack.c.bf16 %v1616_v37, %v1612_v36  ;;  %v1643_v12 = vld [vmem:[#allocation4 + $0x248] sm:$0xff]  ;;  %v1650_v37 = vld [vmem:[#allocation4 + $0x280] sm:$0xff] }
 0x2f1   :  { %5603 = vmatprep.subr.bf16.mxu1 %v5602_v42  ;;  %v5618_v38 = vpack.c.bf16 %v1617_v35, %v1613_v33  ;;  %v1649_v28 = vld [vmem:[#allocation4 + $0x278] sm:$0xff]  ;;  %v1655_v35 = vld [vmem:[#allocation4 + $0x2a8] sm:$0xff]  ;;  %v1680_v22 = vld [vmem:[#allocation4 + $0x370] sm:$0xff] }
 0x2f2   :  { %5541 = vmatpush1.bf16.msra.mxu0 %v5540_v41  ;;  %v1623_v41 = vld [vmem:[#allocation4 + $0x1a8] sm:$0xff] }
 0x2f3   :  { %5543 = vmatprep.subr.bf16.mxu0 %v5542_v52  ;;  %v5558_v42 = vpack.c.bf16 %v1623_v41, %v1619_v40  ;;  %v5622_v52 = vpack.c.bf16 %v1625_v48, %v1621_v46  ;;  %v1657_v41 = vld [vmem:[#allocation4 + $0x2b8] sm:$0xff]  ;;  %v1663_v48 = vld [vmem:[#allocation4 + $0x2e8] sm:$0xff] }
 0x2f4   :  { %5605 = vmatpush1.bf16.msra.mxu1 %v5604_v47  ;;  %v5560_v47 = vpack.c.bf16 %v1622_v45, %v1618_v43  ;;  %v1656_v43 = vld [vmem:[#allocation4 + $0x2b0] sm:$0xff] }
 0x2f5   :  { %5607 = vmatprep.subr.bf16.mxu1 %v5606_v59  ;;  %v1626_v59 = vld [vmem:[#allocation4 + $0x1c0] sm:$0xff] }
 0x2f6   :  { %5545 = vmatpush1.bf16.msra.mxu0 %v5544_v53  ;;  %v5624_v53 = vpack.c.bf16 %v1624_v51, %v1620_v50  ;;  %v5564_v61 = vpack.c.bf16 %v1630_v0, %v1626_v59  ;;  %v1658_v51 = vld [vmem:[#allocation4 + $0x2c0] sm:$0xff]  ;;  %v1664_v59 = vld [vmem:[#allocation4 + $0x2f0] sm:$0xff] }
 0x2f7   :  { %5547 = vmatprep.subr.bf16.mxu0 %v5546_v63  ;;  %v1628_v63 = vld [vmem:[#allocation4 + $0x1d0] sm:$0xff] }
 0x2f8   :  { %5609 = vmatpush1.bf16.msra.mxu1 %v5608_v62  ;;  %v1633_v62 = vld [vmem:[#allocation4 + $0x1f8] sm:$0xff]  ;;  %v5628_v13 = vpack.c.bf16 %v1632_v1, %v1628_v63  ;;  %v1666_v1 = vld [vmem:[#allocation4 + $0x300] sm:$0xff] }
 0x2f9   :  { %5611 = vmatprep.subr.bf16.mxu1 %v5610_v7  ;;  %v5626_v44 = vpack.c.bf16 %v1633_v62, %v1629_v60  ;;  %v1638_v7 = vld [vmem:[#allocation4 + $0x220] sm:$0xff]  ;;  %v1671_v62 = vld [vmem:[#allocation4 + $0x328] sm:$0xff] }
 0x2fa   :  { %5549 = vmatpush1.bf16.msra.mxu0 %v5548_v6  ;;  %v1634_v6 = vld [vmem:[#allocation4 + $0x200] sm:$0xff] }
 0x2fb   :  { %5551 = vmatprep.subr.bf16.mxu0 %v5550_v11  ;;  %v5568_v18 = vpack.c.bf16 %v1638_v7, %v1634_v6  ;;  %v1640_v11 = vld [vmem:[#allocation4 + $0x230] sm:$0xff] }
 0x2fc   :  { %5613 = vmatpush1.bf16.msra.mxu1 %v5612_v10  ;;  %v1636_v10 = vld [vmem:[#allocation4 + $0x210] sm:$0xff] }
 0x2fd   :  { %5615 = vmatprep.subr.bf16.mxu1 %v5614_v20  ;;  %v5632_v19 = vpack.c.bf16 %v1640_v11, %v1636_v10  ;;  %v1647_v20 = vld [vmem:[#allocation4 + $0x268] sm:$0xff]  ;;  %v1672_v6 = vld [vmem:[#allocation4 + $0x330] sm:$0xff]  ;;  %v1674_v11 = vld [vmem:[#allocation4 + $0x340] sm:$0xff] }
 0x2fe   :  { %5553 = vmatpush1.bf16.msra.mxu0 %v5552_v21  ;;  %v5570_v21 = vpack.c.bf16 %v1647_v20, %v1643_v12  ;;  %v1681_v20 = vld [vmem:[#allocation4 + $0x378] sm:$0xff] }
 0x2ff   :  { %5555 = vmatprep.subr.bf16.mxu0 %v5554_v29  ;;  %v1644_v29 = vld [vmem:[#allocation4 + $0x250] sm:$0xff] }
 0x300   :  { %5617 = vmatpush1.bf16.msra.mxu1 %v5616_v25  ;;  %v1645_v25 = vld [vmem:[#allocation4 + $0x258] sm:$0xff]  ;;  %v5636_v33 = vpack.c.bf16 %v1648_v31, %v1644_v29  ;;  %v1682_v29 = vld [vmem:[#allocation4 + $0x380] sm:$0xff] }
 0x301   :  { %5619 = vmatprep.subr.bf16.mxu1 %v5618_v38  ;;  %v5634_v32 = vpack.c.bf16 %v1649_v28, %v1645_v25  ;;  %v1654_v38 = vld [vmem:[#allocation4 + $0x2a0] sm:$0xff]  ;;  %v1687_v28 = vld [vmem:[#allocation4 + $0x3a8] sm:$0xff] }
 0x302   :  { %5557 = vmatpush1.bf16.msra.mxu0 %v5556_v34  ;;  %v1651_v34 = vld [vmem:[#allocation4 + $0x288] sm:$0xff]  ;;  %v5576_v40 = vpack.c.bf16 %v1654_v38, %v1650_v37  ;;  %v1684_v37 = vld [vmem:[#allocation4 + $0x390] sm:$0xff] }
 0x303   :  { %5559 = vmatprep.subr.bf16.mxu0 %v5558_v42  ;;  %v5574_v36 = vpack.c.bf16 %v1655_v35, %v1651_v34  ;;  %v1652_v42 = vld [vmem:[#allocation4 + $0x290] sm:$0xff]  ;;  %v1689_v34 = vld [vmem:[#allocation4 + $0x3b8] sm:$0xff] }
 0x304   :  { %5621 = vmatpush1.bf16.msra.mxu1 %v5620_v39  ;;  %v1653_v39 = vld [vmem:[#allocation4 + $0x298] sm:$0xff]  ;;  %v5640_v46 = vpack.c.bf16 %v1656_v43, %v1652_v42  ;;  %v1688_v38 = vld [vmem:[#allocation4 + $0x3b0] sm:$0xff]  ;;  %v1690_v42 = vld [vmem:[#allocation4 + $0x3c0] sm:$0xff] }
 0x305   :  { %5623 = vmatprep.subr.bf16.mxu1 %v5622_v52  ;;  %v5638_v45 = vpack.c.bf16 %v1657_v41, %v1653_v39  ;;  %v1662_v52 = vld [vmem:[#allocation4 + $0x2e0] sm:$0xff]  ;;  %v1691_v39 = vld [vmem:[#allocation4 + $0x3c8] sm:$0xff] }
 0x306   :  { %5561 = vmatpush1.bf16.msra.mxu0 %v5560_v47  ;;  %v1659_v47 = vld [vmem:[#allocation4 + $0x2c8] sm:$0xff]  ;;  %v5580_v54 = vpack.c.bf16 %v1662_v52, %v1658_v51  ;;  %v1694_v43 = vld [vmem:[#allocation4 + $0x3e0] sm:$0xff]  ;;  %v1696_v52 = vld [vmem:[#allocation4 + $0x3f0] sm:$0xff] }
 0x307   :  { %5563 = vmatprep.subr.bf16.mxu0 %v5562_v58  ;;  %v5578_v50 = vpack.c.bf16 %v1663_v48, %v1659_v47  ;;  %v1660_v58 = vld [vmem:[#allocation4 + $0x2d0] sm:$0xff]  ;;  %v1695_v41 = vld [vmem:[#allocation4 + $0x3e8] sm:$0xff]  ;;  %v1697_v47 = vld [vmem:[#allocation4 + $0x3f8] sm:$0xff] }
 0x308   :  { %5625 = vmatpush1.bf16.msra.mxu1 %v5624_v53  ;;  %v1661_v53 = vld [vmem:[#allocation4 + $0x2d8] sm:$0xff]  ;;  %v5644_v60 = vpack.c.bf16 %v1664_v59, %v1660_v58  ;;  %v1692_v48 = vld [vmem:[#allocation4 + $0x3d0] sm:$0xff] }
 0x309   :  { %5627 = vmatprep.subr.bf16.mxu1 %v5626_v44  ;;  %v5642_v0 = vpack.c.bf16 %v1665_v55, %v1661_v53  ;;  %v1670_v44 = vld [vmem:[#allocation4 + $0x320] sm:$0xff]  ;;  %v1869_v53 = vld [vmem:[#allocation2 + $0x8] sm:$0xff]  ;;  %v5660_v58 = vpack.c.bf16 %v1696_v52, %v1692_v48  ;;  %v1871_v59 = vld [vmem:[#allocation2 + $0x18] sm:$0xff] }
 0x30a   :  { %5565 = vmatpush1.bf16.msra.mxu0 %v5564_v61  ;;  %v1667_v61 = vld [vmem:[#allocation4 + $0x308] sm:$0xff]  ;;  %v5584_v3 = vpack.c.bf16 %v1670_v44, %v1666_v1 }
 0x30b   :  { %5567 = vmatprep.subr.bf16.mxu0 %v5566_v5  ;;  %v5582_v63 = vpack.c.bf16 %v1671_v62, %v1667_v61  ;;  %v1668_v5 = vld [vmem:[#allocation4 + $0x310] sm:$0xff] }
 0x30c   :  { %5629 = vmatpush1.bf16.msra.mxu1 %v5628_v13  ;;  %v1669_v13 = vld [vmem:[#allocation4 + $0x318] sm:$0xff]  ;;  %v5648_v8 = vpack.c.bf16 %v1672_v6, %v1668_v5 }
 0x30d   :  { %5631 = vmatprep.subr.bf16.mxu1 %v5630_v14  ;;  %v5646_v7 = vpack.c.bf16 %v1673_v4, %v1669_v13  ;;  %v1678_v14 = vld [vmem:[#allocation4 + $0x360] sm:$0xff] }
 0x30e   :  { %5569 = vmatpush1.bf16.msra.mxu0 %v5568_v18  ;;  %v1675_v18 = vld [vmem:[#allocation4 + $0x348] sm:$0xff]  ;;  %v5588_v12 = vpack.c.bf16 %v1678_v14, %v1674_v11 }
 0x30f   :  { %5571 = vmatprep.subr.bf16.mxu0 %v5570_v21  ;;  %v5586_v10 = vpack.c.bf16 %v1679_v9, %v1675_v18  ;;  %v1676_v21 = vld [vmem:[#allocation4 + $0x350] sm:$0xff] }
 0x310   :  { %5633 = vmatpush1.bf16.msra.mxu1 %v5632_v19  ;;  %v1677_v19 = vld [vmem:[#allocation4 + $0x358] sm:$0xff]  ;;  %v5652_v25 = vpack.c.bf16 %v1680_v22, %v1676_v21 }
 0x311   :  { %5635 = vmatprep.subr.bf16.mxu1 %v5634_v32  ;;  %v5650_v23 = vpack.c.bf16 %v1681_v20, %v1677_v19  ;;  %v1686_v32 = vld [vmem:[#allocation4 + $0x3a0] sm:$0xff] }
 0x312   :  { %5573 = vmatpush1.bf16.msra.mxu0 %v5572_v27  ;;  %v1683_v27 = vld [vmem:[#allocation4 + $0x388] sm:$0xff]  ;;  %v5592_v35 = vpack.c.bf16 %v1686_v32, %v1682_v29 }
 0x313   :  { %5575 = vmatprep.subr.bf16.mxu0 %v5574_v36  ;;  %v5590_v31 = vpack.c.bf16 %v1687_v28, %v1683_v27 }
 0x314   :  { %5637 = vmatpush1.bf16.msra.mxu1 %v5636_v33  ;;  %v1685_v33 = vld [vmem:[#allocation4 + $0x398] sm:$0xff] }
 0x315   :  { %5639 = vmatprep.subr.bf16.mxu1 %v5638_v45  ;;  %v5654_v36 = vpack.c.bf16 %v1689_v34, %v1685_v33  ;;  %v5594_v45 = vpack.c.bf16 %v1695_v41, %v1691_v39 }
 0x316   :  { %5577 = vmatpush1.bf16.msra.mxu0 %v5576_v40  ;;  %v5656_v40 = vpack.c.bf16 %v1688_v38, %v1684_v37 }
 0x317   :  { %5579 = vmatprep.subr.bf16.mxu0 %v5578_v50  ;;  %v5596_v50 = vpack.c.bf16 %v1694_v43, %v1690_v42 }
 0x318   :  { %5641 = vmatpush1.bf16.msra.mxu1 %v5640_v46  ;;  %v1693_v46 = vld [vmem:[#allocation4 + $0x3d8] sm:$0xff] }
 0x319   :  { %5643 = vmatprep.subr.bf16.mxu1 %v5642_v0  ;;  %v5658_v51 = vpack.c.bf16 %v1697_v47, %v1693_v46  ;;  %v1875_v0 = vld [vmem:[#allocation2 + $0x38] sm:$0xff] }
 0x31a   :  { %5581 = vmatpush1.bf16.msra.mxu0 %v5580_v54  ;;  %v1873_v54 = vld [vmem:[#allocation2 + $0x28] sm:$0xff] }
 0x31b   :  { %5583 = vmatprep.subr.bf16.mxu0 %v5582_v63  ;;  %v5662_v55 = vpack.c.bf16 %v1873_v54, %v1869_v53  ;;  %v1868_v54 = vld [vmem:[#allocation2] sm:$0xff] }
 0x31c   :  { %5645 = vmatpush1.bf16.msra.mxu1 %v5644_v60  ;;  %v5726_v60 = vpack.c.bf16 %v1875_v0, %v1871_v59  ;;  %v1877_v59 = vld [vmem:[#allocation2 + $0x48] sm:$0xff] }
 0x31d   :  { %5647 = vmatprep.subr.bf16.mxu1 %v5646_v7  ;;  %v1881_v0 = vld [vmem:[#allocation2 + $0x68] sm:$0xff] }
 0x31e   :  { %5585 = vmatpush1.bf16.msra.mxu0 %v5584_v3 }
 0x31f   :  { %5587 = vmatprep.subr.bf16.mxu0 %v5586_v10 }
 0x320   :  { %5649 = vmatpush1.bf16.msra.mxu1 %v5648_v8 }
 0x321   :  { %5651 = vmatprep.subr.bf16.mxu1 %v5650_v23 }
 0x322   :  { %5589 = vmatpush1.bf16.msra.mxu0 %v5588_v12 }
 0x323   :  { %5591 = vmatprep.subr.bf16.mxu0 %v5590_v31 }
 0x324   :  { %5653 = vmatpush1.bf16.msra.mxu1 %v5652_v25 }
 0x325   :  { %5655 = vmatprep.subr.bf16.mxu1 %v5654_v36 }
 0x326   :  { %5593 = vmatpush1.bf16.msra.mxu0 %v5592_v35 }
 0x327   :  { %5595 = vmatprep.subr.bf16.mxu0 %v5594_v45 }
 0x328   :  { %5657 = vmatpush1.bf16.msra.mxu1 %v5656_v40 }
 0x329   :  { %5659 = vmatprep.subr.bf16.mxu1 %v5658_v51 }
 0x32a   :  { %5597 = vmatpush1.bf16.msra.mxu0 %v5596_v50 }
 0x32b   :  { %5663 = vmatprep.subr.bf16.mxu0 %v5662_v55  ;;  %v1872_v55 = vld [vmem:[#allocation2 + $0x20] sm:$0xff] }
 0x32c   :  { %5661 = vmatpush1.bf16.msra.mxu1 %v5660_v58 }
 0x32d   :  { %5727 = vmatprep.subr.bf16.mxu1 %v5726_v60  ;;  %v1870_v60 = vld [vmem:[#allocation2 + $0x10] sm:$0xff] }
 0x380   :  { %v1172_v61 = vpop.f32.mrb[6].mxu0  ;;  %v1243_v62 = vpop.f32.mrb[6].mxu1 }
 0x381   :  { %v1173_v63 = vadd.f32 %v1172_v61, %v7357_v56  ;;  %v1174_v1 = vpop.f32.mrb[7].mxu0  ;;  %v1245_v44 = vpop.f32.mrb[7].mxu1  ;;  %v1244_v7 = vadd.f32 %v1243_v62, %v7372_v15  ;;  %v1874_v61 = vld [vmem:[#allocation2 + $0x30] sm:$0xff] }
 0x382   :  { %v1175_v13 = vadd.f32 %v1174_v1, %v7361_v57  ;;  %v1246_v5 = vadd.f32 %v1245_v44, %v7367_v2  ;;  %v1879_v1 = vld [vmem:[#allocation2 + $0x58] sm:$0xff] }
 0x383   :  { %v4842_v3 = vmul.f32 -1.442695, %v1173_v63  ;;  %v5664_v63 = vpack.c.bf16 %v1872_v55, %v1868_v54  ;;  %v1883_v44 = vld [vmem:[#allocation2 + $0x78] sm:$0xff]  ;;  %v1902_v55 = vld [vmem:[#allocation2 + $0x110] sm:$0xff] }
 0x384   :  { %v4843_v4 = vmul.f32 -1.442695, %v1175_v13  ;;  %v4844_v6 = vmul.f32 -1.442695, %v1246_v5  ;;  %v1885_v5 = vld [vmem:[#allocation2 + $0x88] sm:$0xff] }
 0x385   :  { %6995 = vpow2.f32 %v4842_v3  ;;  %v5666_v3 = vpack.c.bf16 %v1881_v0, %v1877_v59  ;;  %v1911_v0 = vld [vmem:[#allocation2 + $0x158] sm:$0xff] }
 0x386   :  { %6997 = vpow2.f32 %v4843_v4  ;;  %v1876_v4 = vld [vmem:[#allocation2 + $0x40] sm:$0xff] }
 0x387   :  { %6999 = vpow2.f32 %v4844_v6  ;;  %v1889_v6 = vld [vmem:[#allocation2 + $0xa8] sm:$0xff] }
 0x388   :  { %7001 = vtanh.f32 %v1244_v7  ;;  %v5728_v7 = vpack.c.bf16 %v1874_v61, %v1870_v60  ;;  %v1915_v60 = vld [vmem:[#allocation2 + $0x178] sm:$0xff] }
 0x38f   :  { %v6996_v8 = vpop.eup %6995 }
 0x390   :  { %v6998_v18 = vpop.eup %6997  ;;  %v1251_v9 = vadd.f32 1.0, %v6996_v8  ;;  %v5730_v8 = vpack.c.bf16 %v1883_v44, %v1879_v1  ;;  %v1917_v1 = vld [vmem:[#allocation2 + $0x188] sm:$0xff] }
 0x391   :  { %v1257_v10 = vadd.f32 1.0, %v6998_v18  ;;  %v7000_v11 = vpop.eup %6999  ;;  %v1878_v18 = vld [vmem:[#allocation2 + $0x50] sm:$0xff]  ;;  %v1921_v44 = vld [vmem:[#allocation2 + $0x1a8] sm:$0xff] }
 0x392   :  { %7003 = vrcp.f32 %v1251_v9  ;;  %v7002_v14 = vpop.eup %7001  ;;  %v1264_v21 = vadd.f32 1.0, %v7000_v11  ;;  %v1882_v9 = vld [vmem:[#allocation2 + $0x70] sm:$0xff]  ;;  %v1887_v11 = vld [vmem:[#allocation2 + $0x98] sm:$0xff] }
 0x393   :  { %7005 = vrcp.f32 %v1257_v10 }
 0x394   :  { %7007 = vrcp.f32 %v1264_v21  ;;  %v1893_v21 = vld [vmem:[#allocation2 + $0xc8] sm:$0xff] }
 0x39c   :  { %v7004_v19 = vpop.eup %7003 }
 0x39d   :  { %v7006_v12 = vpop.eup %7005  ;;  %v1268_v20 = vmul.f32 %v7004_v19, %v7002_v14  ;;  %v1891_v14 = vld [vmem:[#allocation2 + $0xb8] sm:$0xff]  ;;  %v5670_v19 = vpack.c.bf16 %v1889_v6, %v1885_v5 }
 0x39e   :  { %v1267_v22 = vmul.f32 %v7006_v12, %v7375_v26  ;;  %v7008_v25 = vpop.eup %7007  ;;  %v1884_v12 = vld [vmem:[#allocation2 + $0x80] sm:$0xff]  ;;  %v1919_v6 = vld [vmem:[#allocation2 + $0x198] sm:$0xff] }
 0x3a0   :  { %v7397_v23 = vadd.f32 %v1268_v20, %v1267_v22  ;;  %v1888_v20 = vld [vmem:[#allocation2 + $0xa0] sm:$0xff]  ;;  %v1897_v22 = vld [vmem:[#allocation2 + $0xe8] sm:$0xff] }
 0x3a2   :  { %7009 = vtanh.f32 %v7397_v23 }
 0x3ac   :  { %v7010_v27 = vpop.eup %7009 }
 0x3ad   :  { %v1271_v28 = vmul.f32 %v7010_v27, %v7008_v25  ;;  %v5732_v25 = vpack.c.bf16 %v1882_v9, %v1878_v18  ;;  %v5734_v27 = vpack.c.bf16 %v1891_v14, %v1887_v11  ;;  %v1916_v18 = vld [vmem:[#allocation2 + $0x180] sm:$0xff]  ;;  %v1929_v11 = vld [vmem:[#allocation2 + $0x1e8] sm:$0xff] }
 0x3ae   :  { %v1920_v9 = vld [vmem:[#allocation2 + $0x1a0] sm:$0xff] }
 0x3af   :  { %4845 = vst [vmem:[%s7531_s5 + $0x8] sm:$0xff] %v1271_v28  ;;  %1762 = vmatprep.mubr.f32.mxu0 %v1271_v28  ;;  %1833 = vmatprep.mubr.f32.mxu1 %v1271_v28  ;;  %v1886_v28 = vld [vmem:[#allocation2 + $0x90] sm:$0xff] }
 0x3c0   :  { %v1470_v29 = vpop.f32.mrb[8].mxu0 }
 0x3c1   :  { %v1471_v31 = vadd.f32 %v1470_v29, %v7326_v16  ;;  %v1472_v32 = vpop.f32.mrb[9].mxu0  ;;  %v1890_v29 = vld [vmem:[#allocation2 + $0xb0] sm:$0xff] }
 0x3c2   :  { %v1473_v26 = vadd.f32 %v1472_v32, %v7330_v17  ;;  %v1541_v33 = vpop.f32.mrb[8].mxu1  ;;  %v1895_v32 = vld [vmem:[#allocation2 + $0xd8] sm:$0xff] }
 0x3c3   :  { %v4847_v34 = vmul.f32 -1.442695, %v1471_v31  ;;  %v1543_v35 = vpop.f32.mrb[9].mxu1  ;;  %v1542_v39 = vadd.f32 %v1541_v33, %v7343_v30  ;;  %v5672_v31 = vpack.c.bf16 %v1888_v20, %v1884_v12  ;;  %v5674_v33 = vpack.c.bf16 %v1897_v22, %v1893_v21  ;;  %v1918_v12 = vld [vmem:[#allocation2 + $0x190] sm:$0xff]  ;;  %v1927_v22 = vld [vmem:[#allocation2 + $0x1d8] sm:$0xff] }
 0x3c4   :  { %v4848_v36 = vmul.f32 -1.442695, %v1473_v26  ;;  %v1544_v37 = vadd.f32 %v1543_v35, %v7337_v24  ;;  %v1899_v26 = vld [vmem:[#allocation2 + $0xf8] sm:$0xff]  ;;  %v1896_v35 = vld [vmem:[#allocation2 + $0xe0] sm:$0xff]  ;;  %v1922_v20 = vld [vmem:[#allocation2 + $0x1b0] sm:$0xff]  ;;  %v5688_v21 = vpack.c.bf16 %v1920_v9, %v1916_v18 }
 0x3c5   :  { %7011 = vpow2.f32 %v4847_v34  ;;  %v1892_v34 = vld [vmem:[#allocation2 + $0xc0] sm:$0xff]  ;;  %v1950_v18 = vld [vmem:[#allocation2 + $0x290] sm:$0xff] }
 0x3c6   :  { %7013 = vpow2.f32 %v4848_v36  ;;  %v4849_v38 = vmul.f32 -1.442695, %v1544_v37  ;;  %v1901_v36 = vld [vmem:[#allocation2 + $0x108] sm:$0xff]  ;;  %v1954_v9 = vld [vmem:[#allocation2 + $0x2b0] sm:$0xff] }
 0x3c7   :  { %v1905_v37 = vld [vmem:[#allocation2 + $0x128] sm:$0xff] }
 0x3c8   :  { %7015 = vpow2.f32 %v4849_v38  ;;  %v5736_v38 = vpack.c.bf16 %v1890_v29, %v1886_v28  ;;  %v1924_v28 = vld [vmem:[#allocation2 + $0x1c0] sm:$0xff] }
 0x3c9   :  { %7017 = vtanh.f32 %v1542_v39  ;;  %v5738_v39 = vpack.c.bf16 %v1899_v26, %v1895_v32  ;;  %v1928_v29 = vld [vmem:[#allocation2 + $0x1e0] sm:$0xff]  ;;  %v1937_v32 = vld [vmem:[#allocation2 + $0x228] sm:$0xff]  ;;  %v5752_v26 = vpack.c.bf16 %v1922_v20, %v1918_v12 }
 0x3ca   :  { %v1956_v12 = vld [vmem:[#allocation2 + $0x2c0] sm:$0xff] }
 0x3cb   :  { %v1960_v20 = vld [vmem:[#allocation2 + $0x2e0] sm:$0xff] }
 0x3cf   :  { %v7012_v40 = vpop.eup %7011 }
 0x3d0   :  { %v7014_v41 = vpop.eup %7013  ;;  %v1549_v42 = vadd.f32 1.0, %v7012_v40  ;;  %v1894_v40 = vld [vmem:[#allocation2 + $0xd0] sm:$0xff] }
 0x3d1   :  { %v1555_v43 = vadd.f32 1.0, %v7014_v41  ;;  %v1898_v41 = vld [vmem:[#allocation2 + $0xf0] sm:$0xff] }
 0x3d2   :  { %7019 = vrcp.f32 %v1549_v42  ;;  %v7016_v45 = vpop.eup %7015  ;;  %v5676_v42 = vpack.c.bf16 %v1896_v35, %v1892_v34  ;;  %v1926_v34 = vld [vmem:[#allocation2 + $0x1d0] sm:$0xff] }
 0x3d3   :  { %7021 = vrcp.f32 %v1555_v43  ;;  %v7018_v46 = vpop.eup %7017  ;;  %v1562_v48 = vadd.f32 1.0, %v7016_v45  ;;  %v1903_v43 = vld [vmem:[#allocation2 + $0x118] sm:$0xff]  ;;  %v1930_v35 = vld [vmem:[#allocation2 + $0x1f0] sm:$0xff] }
 0x3d4   :  { %v1907_v45 = vld [vmem:[#allocation2 + $0x138] sm:$0xff] }
 0x3d5   :  { %7023 = vrcp.f32 %v1562_v48  ;;  %v1904_v48 = vld [vmem:[#allocation2 + $0x120] sm:$0xff]  ;;  %v5742_v54 = vpack.c.bf16 %v1907_v45, %v1903_v43  ;;  %v1945_v43 = vld [vmem:[#allocation2 + $0x268] sm:$0xff]  ;;  %v5756_v45 = vpack.c.bf16 %v1930_v35, %v1926_v34 }
 0x3d6   :  { %v1964_v34 = vld [vmem:[#allocation2 + $0x300] sm:$0xff] }
 0x3d7   :  { %v1968_v35 = vld [vmem:[#allocation2 + $0x320] sm:$0xff] }
 0x3dc   :  { %v7020_v47 = vpop.eup %7019 }
 0x3dd   :  { %v7022_v50 = vpop.eup %7021  ;;  %v1566_v51 = vmul.f32 %v7020_v47, %v7018_v46  ;;  %v5678_v46 = vpack.c.bf16 %v1905_v37, %v1901_v36  ;;  %v1900_v47 = vld [vmem:[#allocation2 + $0x100] sm:$0xff]  ;;  %v5692_v36 = vpack.c.bf16 %v1928_v29, %v1924_v28  ;;  %v1935_v37 = vld [vmem:[#allocation2 + $0x218] sm:$0xff]  ;;  %v1958_v28 = vld [vmem:[#allocation2 + $0x2d0] sm:$0xff] }
 0x3de   :  { %v1565_v52 = vmul.f32 %v7022_v50, %v7386_v49  ;;  %v1880_v49 = vld [vmem:[#allocation2 + $0x60] sm:$0xff]  ;;  %v1909_v50 = vld [vmem:[#allocation2 + $0x148] sm:$0xff]  ;;  %v5680_v59 = vpack.c.bf16 %v1904_v48, %v1900_v47  ;;  %v1934_v47 = vld [vmem:[#allocation2 + $0x210] sm:$0xff] }
 0x3df   :  { %v7024_v58 = vpop.eup %7023  ;;  %v5668_v10 = vpack.c.bf16 %v1880_v49, %v1876_v4  ;;  %v1910_v4 = vld [vmem:[#allocation2 + $0x150] sm:$0xff] }
 0x3e0   :  { %v7408_v53 = vadd.f32 %v1566_v51, %v1565_v52  ;;  %v1913_v51 = vld [vmem:[#allocation2 + $0x168] sm:$0xff]  ;;  %v5740_v52 = vpack.c.bf16 %v1898_v41, %v1894_v40  ;;  %v1914_v49 = vld [vmem:[#allocation2 + $0x170] sm:$0xff]  ;;  %v1932_v40 = vld [vmem:[#allocation2 + $0x200] sm:$0xff] }
 0x3e1   :  { %v5682_v61 = vpack.c.bf16 %v1913_v51, %v1909_v50  ;;  %v5748_v14 = vpack.c.bf16 %v1914_v49, %v1910_v4  ;;  %v1936_v41 = vld [vmem:[#allocation2 + $0x220] sm:$0xff]  ;;  %v1938_v48 = vld [vmem:[#allocation2 + $0x230] sm:$0xff]  ;;  %v1943_v51 = vld [vmem:[#allocation2 + $0x258] sm:$0xff] }
 0x3e2   :  { %7025 = vtanh.f32 %v7408_v53  ;;  %v5696_v50 = vpack.c.bf16 %v1936_v41, %v1932_v40  ;;  %v1948_v4 = vld [vmem:[#allocation2 + $0x280] sm:$0xff]  ;;  %v1962_v29 = vld [vmem:[#allocation2 + $0x2f0] sm:$0xff] }
 0x3e3   :  { %v1952_v49 = vld [vmem:[#allocation2 + $0x2a0] sm:$0xff]  ;;  %v1966_v40 = vld [vmem:[#allocation2 + $0x310] sm:$0xff] }
 0x3e4   :  { %v1970_v41 = vld [vmem:[#allocation2 + $0x330] sm:$0xff] }
 0x3ec   :  { %v7026_v62 = vpop.eup %7025 }
 0x3ed   :  { %v1569_v13 = vmul.f32 %v7026_v62, %v7024_v58  ;;  %v1906_v58 = vld [vmem:[#allocation2 + $0x130] sm:$0xff]  ;;  %v1908_v62 = vld [vmem:[#allocation2 + $0x140] sm:$0xff] }
 0x3ef   :  { %1763 = vmatmul.mubr.f32.vlgmr.msra.gmra.mrb[10].mxu0 %v1569_v13  ;;  %1834 = vmatmul.mubr.f32.vlgmr.msra.gmra.mrb[10].mxu1 %v1569_v13 }
 0x3f0   :  { %5665 = vmatpush1.bf16.msra.mxu0 %v5664_v63  ;;  %2060 = vmatprep.mubr.f32.mxu0 %v1569_v13  ;;  %v1912_v63 = vld [vmem:[#allocation2 + $0x160] sm:$0xff] }
 0x3f1   :  { %2131 = vmatprep.mubr.f32.mxu1 %v1569_v13  ;;  %5667 = vmatprep.subr.bf16.mxu0 %v5666_v3  ;;  %v5744_v13 = vpack.c.bf16 %v1906_v58, %v1902_v55  ;;  %v5746_v3 = vpack.c.bf16 %v1915_v60, %v1911_v0  ;;  %v5684_v5 = vpack.c.bf16 %v1912_v63, %v1908_v62  ;;  %v1940_v55 = vld [vmem:[#allocation2 + $0x240] sm:$0xff]  ;;  %v1953_v0 = vld [vmem:[#allocation2 + $0x2a8] sm:$0xff]  ;;  %v1942_v62 = vld [vmem:[#allocation2 + $0x250] sm:$0xff] }
 0x3f2   :  { %5729 = vmatpush1.bf16.msra.mxu1 %v5728_v7  ;;  %v1923_v7 = vld [vmem:[#allocation2 + $0x1b8] sm:$0xff]  ;;  %v1944_v58 = vld [vmem:[#allocation2 + $0x260] sm:$0xff]  ;;  %v5760_v60 = vpack.c.bf16 %v1938_v48, %v1934_v47  ;;  %v1946_v63 = vld [vmem:[#allocation2 + $0x270] sm:$0xff] }
 0x3f3   :  { %5731 = vmatprep.subr.bf16.mxu1 %v5730_v8  ;;  %v5686_v8 = vpack.c.bf16 %v1921_v44, %v1917_v1  ;;  %v5700_v1 = vpack.c.bf16 %v1944_v58, %v1940_v55  ;;  %v1951_v44 = vld [vmem:[#allocation2 + $0x298] sm:$0xff]  ;;  %v1972_v47 = vld [vmem:[#allocation2 + $0x340] sm:$0xff]  ;;  %v1974_v55 = vld [vmem:[#allocation2 + $0x350] sm:$0xff] }
 0x3f4   :  { %5669 = vmatpush1.bf16.msra.mxu0 %v5668_v10  ;;  %v1925_v10 = vld [vmem:[#allocation2 + $0x1c8] sm:$0xff]  ;;  %v1976_v48 = vld [vmem:[#allocation2 + $0x360] sm:$0xff]  ;;  %v1978_v58 = vld [vmem:[#allocation2 + $0x370] sm:$0xff] }
 0x3f5   :  { %5671 = vmatprep.subr.bf16.mxu0 %v5670_v19  ;;  %v5750_v19 = vpack.c.bf16 %v1923_v7, %v1919_v6  ;;  %v1961_v6 = vld [vmem:[#allocation2 + $0x2e8] sm:$0xff]  ;;  %v5764_v7 = vpack.c.bf16 %v1946_v63, %v1942_v62  ;;  %v1980_v62 = vld [vmem:[#allocation2 + $0x380] sm:$0xff] }
 0x3f6   :  { %5733 = vmatpush1.bf16.msra.mxu1 %v5732_v25  ;;  %v1931_v25 = vld [vmem:[#allocation2 + $0x1f8] sm:$0xff]  ;;  %v1984_v63 = vld [vmem:[#allocation2 + $0x3a0] sm:$0xff] }
 0x3f7   :  { %5735 = vmatprep.subr.bf16.mxu1 %v5734_v27  ;;  %v5690_v27 = vpack.c.bf16 %v1929_v11, %v1925_v10  ;;  %v5704_v10 = vpack.c.bf16 %v1952_v49, %v1948_v4  ;;  %v1959_v11 = vld [vmem:[#allocation2 + $0x2d8] sm:$0xff]  ;;  %v1982_v4 = vld [vmem:[#allocation2 + $0x390] sm:$0xff] }
 0x3f8   :  { %5673 = vmatpush1.bf16.msra.mxu0 %v5672_v31  ;;  %v1933_v31 = vld [vmem:[#allocation2 + $0x208] sm:$0xff]  ;;  %v1986_v49 = vld [vmem:[#allocation2 + $0x3b0] sm:$0xff] }
 0x3f9   :  { %5675 = vmatprep.subr.bf16.mxu0 %v5674_v33  ;;  %v5754_v33 = vpack.c.bf16 %v1931_v25, %v1927_v22  ;;  %v1969_v22 = vld [vmem:[#allocation2 + $0x328] sm:$0xff]  ;;  %v5768_v25 = vpack.c.bf16 %v1954_v9, %v1950_v18  ;;  %v1988_v18 = vld [vmem:[#allocation2 + $0x3c0] sm:$0xff] }
 0x3fa   :  { %5737 = vmatpush1.bf16.msra.mxu1 %v5736_v38  ;;  %v1939_v38 = vld [vmem:[#allocation2 + $0x238] sm:$0xff]  ;;  %v1992_v9 = vld [vmem:[#allocation2 + $0x3e0] sm:$0xff] }
 0x3fb   :  { %5739 = vmatprep.subr.bf16.mxu1 %v5738_v39  ;;  %v5694_v39 = vpack.c.bf16 %v1937_v32, %v1933_v31  ;;  %v5708_v31 = vpack.c.bf16 %v1960_v20, %v1956_v12  ;;  %v1967_v32 = vld [vmem:[#allocation2 + $0x318] sm:$0xff]  ;;  %v5724_v12 = vpack.c.bf16 %v1992_v9, %v1988_v18 }
 0x3fc   :  { %5677 = vmatpush1.bf16.msra.mxu0 %v5676_v42  ;;  %v1941_v42 = vld [vmem:[#allocation2 + $0x248] sm:$0xff] }
 0x3fd   :  { %5679 = vmatprep.subr.bf16.mxu0 %v5678_v46  ;;  %v5758_v46 = vpack.c.bf16 %v1939_v38, %v1935_v37  ;;  %v1977_v37 = vld [vmem:[#allocation2 + $0x368] sm:$0xff]  ;;  %v5772_v38 = vpack.c.bf16 %v1962_v29, %v1958_v28  ;;  %v2166_v29 = vld [vmem:[#allocation4 + $0x20] sm:$0xff] }
 0x3fe   :  { %5741 = vmatpush1.bf16.msra.mxu1 %v5740_v52  ;;  %v1947_v52 = vld [vmem:[#allocation2 + $0x278] sm:$0xff] }
 0x3ff   :  { %5743 = vmatprep.subr.bf16.mxu1 %v5742_v54  ;;  %v5698_v54 = vpack.c.bf16 %v1945_v43, %v1941_v42  ;;  %v5712_v42 = vpack.c.bf16 %v1968_v35, %v1964_v34  ;;  %v1975_v43 = vld [vmem:[#allocation2 + $0x358] sm:$0xff]  ;;  %v2164_v34 = vld [vmem:[#allocation4 + $0x10] sm:$0xff] }
 0x400   :  { %5681 = vmatpush1.bf16.msra.mxu0 %v5680_v59  ;;  %v1949_v59 = vld [vmem:[#allocation2 + $0x288] sm:$0xff]  ;;  %v2168_v35 = vld [vmem:[#allocation4 + $0x30] sm:$0xff] }
 0x401   :  { %5683 = vmatprep.subr.bf16.mxu0 %v5682_v61  ;;  %v5762_v61 = vpack.c.bf16 %v1947_v52, %v1943_v51  ;;  %v1985_v51 = vld [vmem:[#allocation2 + $0x3a8] sm:$0xff]  ;;  %v5776_v52 = vpack.c.bf16 %v1970_v41, %v1966_v40  ;;  %v2174_v41 = vld [vmem:[#allocation4 + $0x60] sm:$0xff] }
 0x402   :  { %5745 = vmatpush1.bf16.msra.mxu1 %v5744_v13  ;;  %v1955_v13 = vld [vmem:[#allocation2 + $0x2b8] sm:$0xff] }
 0x403   :  { %5747 = vmatprep.subr.bf16.mxu1 %v5746_v3  ;;  %v5702_v3 = vpack.c.bf16 %v1953_v0, %v1949_v59  ;;  %v5716_v59 = vpack.c.bf16 %v1976_v48, %v1972_v47  ;;  %v1983_v0 = vld [vmem:[#allocation2 + $0x398] sm:$0xff]  ;;  %v2172_v47 = vld [vmem:[#allocation4 + $0x50] sm:$0xff] }
 0x404   :  { %5685 = vmatpush1.bf16.msra.mxu0 %v5684_v5  ;;  %v1957_v5 = vld [vmem:[#allocation2 + $0x2c8] sm:$0xff]  ;;  %v2176_v48 = vld [vmem:[#allocation4 + $0x70] sm:$0xff] }
 0x405   :  { %5687 = vmatprep.subr.bf16.mxu0 %v5686_v8  ;;  %v5766_v8 = vpack.c.bf16 %v1955_v13, %v1951_v44  ;;  %v1993_v44 = vld [vmem:[#allocation2 + $0x3e8] sm:$0xff]  ;;  %v5780_v13 = vpack.c.bf16 %v1978_v58, %v1974_v55  ;;  %v2182_v55 = vld [vmem:[#allocation4 + $0xa0] sm:$0xff] }
 0x406   :  { %5749 = vmatpush1.bf16.msra.mxu1 %v5748_v14  ;;  %v1963_v14 = vld [vmem:[#allocation2 + $0x2f8] sm:$0xff] }
 0x407   :  { %5751 = vmatprep.subr.bf16.mxu1 %v5750_v19  ;;  %v5706_v19 = vpack.c.bf16 %v1961_v6, %v1957_v5  ;;  %v5720_v5 = vpack.c.bf16 %v1984_v63, %v1980_v62  ;;  %v1991_v6 = vld [vmem:[#allocation2 + $0x3d8] sm:$0xff]  ;;  %v2184_v63 = vld [vmem:[#allocation4 + $0xb0] sm:$0xff] }
 0x408   :  { %5689 = vmatpush1.bf16.msra.mxu0 %v5688_v21  ;;  %v1965_v21 = vld [vmem:[#allocation2 + $0x308] sm:$0xff] }
 0x409   :  { %5691 = vmatprep.subr.bf16.mxu0 %v5690_v27  ;;  %v5770_v27 = vpack.c.bf16 %v1963_v14, %v1959_v11  ;;  %v1990_v14 = vld [vmem:[#allocation2 + $0x3d0] sm:$0xff] }
 0x40a   :  { %5753 = vmatpush1.bf16.msra.mxu1 %v5752_v26  ;;  %v1971_v26 = vld [vmem:[#allocation2 + $0x338] sm:$0xff] }
 0x40b   :  { %5755 = vmatprep.subr.bf16.mxu1 %v5754_v33  ;;  %v5710_v33 = vpack.c.bf16 %v1969_v22, %v1965_v21  ;;  %v4854_v21 = vld [vmem:[%s7526_s0 + $0x18] sm:$0xff]  ;;  %v2163_v22 = vld [vmem:[#allocation4 + $0x8] sm:$0xff] }
 0x40c   :  { %5693 = vmatpush1.bf16.msra.mxu0 %v5692_v36  ;;  %v1973_v36 = vld [vmem:[#allocation2 + $0x348] sm:$0xff] }
 0x40d   :  { %5695 = vmatprep.subr.bf16.mxu0 %v5694_v39  ;;  %v5774_v39 = vpack.c.bf16 %v1971_v26, %v1967_v32  ;;  %v2169_v32 = vld [vmem:[#allocation4 + $0x38] sm:$0xff] }
 0x40e   :  { %5757 = vmatpush1.bf16.msra.mxu1 %v5756_v45  ;;  %v1979_v45 = vld [vmem:[#allocation2 + $0x378] sm:$0xff] }
 0x40f   :  { %5759 = vmatprep.subr.bf16.mxu1 %v5758_v46  ;;  %v5714_v46 = vpack.c.bf16 %v1977_v37, %v1973_v36  ;;  %v5856_v36 = vpack.c.bf16 %v2168_v35, %v2164_v34  ;;  %v2171_v37 = vld [vmem:[#allocation4 + $0x48] sm:$0xff]  ;;  %v2202_v34 = vld [vmem:[#allocation4 + $0x140] sm:$0xff] }
 0x410   :  { %5697 = vmatpush1.bf16.msra.mxu0 %v5696_v50  ;;  %v1981_v50 = vld [vmem:[#allocation2 + $0x388] sm:$0xff]  ;;  %v2206_v35 = vld [vmem:[#allocation4 + $0x160] sm:$0xff] }
 0x411   :  { %5699 = vmatprep.subr.bf16.mxu0 %v5698_v54  ;;  %v5778_v54 = vpack.c.bf16 %v1979_v45, %v1975_v43  ;;  %v2177_v43 = vld [vmem:[#allocation4 + $0x78] sm:$0xff] }
 0x412   :  { %5761 = vmatpush1.bf16.msra.mxu1 %v5760_v60  ;;  %v1987_v60 = vld [vmem:[#allocation2 + $0x3b8] sm:$0xff] }
 0x413   :  { %5763 = vmatprep.subr.bf16.mxu1 %v5762_v61  ;;  %v5718_v61 = vpack.c.bf16 %v1985_v51, %v1981_v50  ;;  %v2179_v50 = vld [vmem:[#allocation4 + $0x88] sm:$0xff]  ;;  %v5860_v51 = vpack.c.bf16 %v2176_v48, %v2172_v47  ;;  %v2210_v47 = vld [vmem:[#allocation4 + $0x180] sm:$0xff] }
 0x414   :  { %5701 = vmatpush1.bf16.msra.mxu0 %v5700_v1  ;;  %v1989_v1 = vld [vmem:[#allocation2 + $0x3c8] sm:$0xff]  ;;  %v2214_v48 = vld [vmem:[#allocation4 + $0x1a0] sm:$0xff] }
 0x415   :  { %5703 = vmatprep.subr.bf16.mxu0 %v5702_v3  ;;  %v5782_v3 = vpack.c.bf16 %v1987_v60, %v1983_v0  ;;  %v2181_v0 = vld [vmem:[#allocation4 + $0x98] sm:$0xff] }
 0x416   :  { %5765 = vmatpush1.bf16.msra.mxu1 %v5764_v7  ;;  %v1995_v7 = vld [vmem:[#allocation2 + $0x3f8] sm:$0xff] }
 0x417   :  { %5767 = vmatprep.subr.bf16.mxu1 %v5766_v8  ;;  %v5722_v8 = vpack.c.bf16 %v1993_v44, %v1989_v1  ;;  %v5786_v11 = vpack.c.bf16 %v1995_v7, %v1991_v6  ;;  %v2185_v60 = vld [vmem:[#allocation4 + $0xb8] sm:$0xff]  ;;  %v2187_v1 = vld [vmem:[#allocation4 + $0xc8] sm:$0xff]  ;;  %v2188_v7 = vld [vmem:[#allocation4 + $0xd0] sm:$0xff] }
 0x418   :  { %5705 = vmatpush1.bf16.msra.mxu0 %v5704_v10  ;;  %v5784_v10 = vpack.c.bf16 %v1986_v49, %v1982_v4  ;;  %v5862_v62 = vpack.c.bf16 %v2185_v60, %v2181_v0  ;;  %v2191_v44 = vld [vmem:[#allocation4 + $0xe8] sm:$0xff]  ;;  %v2186_v4 = vld [vmem:[#allocation4 + $0xc0] sm:$0xff]  ;;  %v2193_v6 = vld [vmem:[#allocation4 + $0xf8] sm:$0xff] }
 0x419   :  { %5707 = vmatprep.subr.bf16.mxu0 %v5706_v19  ;;  %v1994_v19 = vld [vmem:[#allocation2 + $0x3f0] sm:$0xff]  ;;  %v2190_v49 = vld [vmem:[#allocation4 + $0xe0] sm:$0xff]  ;;  %v2219_v0 = vld [vmem:[#allocation4 + $0x1c8] sm:$0xff] }
 0x41a   :  { %5769 = vmatpush1.bf16.msra.mxu1 %v5768_v25  ;;  %v5788_v20 = vpack.c.bf16 %v1994_v19, %v1990_v14  ;;  %v2167_v25 = vld [vmem:[#allocation4 + $0x28] sm:$0xff]  ;;  %v5804_v18 = vpack.c.bf16 %v2190_v49, %v2186_v4  ;;  %v2194_v14 = vld [vmem:[#allocation4 + $0x100] sm:$0xff]  ;;  %v2224_v4 = vld [vmem:[#allocation4 + $0x1f0] sm:$0xff] }
 0x41b   :  { %5771 = vmatprep.subr.bf16.mxu1 %v5770_v27  ;;  %v2162_v27 = vld [vmem:[#allocation4] sm:$0xff]  ;;  %v5790_v28 = vpack.c.bf16 %v2167_v25, %v2163_v22  ;;  %v2201_v22 = vld [vmem:[#allocation4 + $0x138] sm:$0xff]  ;;  %v2223_v60 = vld [vmem:[#allocation4 + $0x1e8] sm:$0xff] }
 0x41c   :  { %5709 = vmatpush1.bf16.msra.mxu0 %v5708_v31  ;;  %v2165_v31 = vld [vmem:[#allocation4 + $0x18] sm:$0xff]  ;;  %v5792_v26 = vpack.c.bf16 %v2166_v29, %v2162_v27  ;;  %v2200_v29 = vld [vmem:[#allocation4 + $0x130] sm:$0xff] }
 0x41d   :  { %5711 = vmatprep.subr.bf16.mxu0 %v5710_v33  ;;  %v5854_v33 = vpack.c.bf16 %v2169_v32, %v2165_v31  ;;  %v2203_v32 = vld [vmem:[#allocation4 + $0x148] sm:$0xff] }
 0x41e   :  { %5773 = vmatpush1.bf16.msra.mxu1 %v5772_v38  ;;  %v2175_v38 = vld [vmem:[#allocation4 + $0x68] sm:$0xff] }
 0x41f   :  { %5775 = vmatprep.subr.bf16.mxu1 %v5774_v39  ;;  %v2170_v39 = vld [vmem:[#allocation4 + $0x40] sm:$0xff]  ;;  %v5794_v40 = vpack.c.bf16 %v2175_v38, %v2171_v37  ;;  %v5812_v37 = vpack.c.bf16 %v2206_v35, %v2202_v34  ;;  %v2209_v38 = vld [vmem:[#allocation4 + $0x178] sm:$0xff]  ;;  %v2240_v34 = vld [vmem:[#allocation4 + $0x270] sm:$0xff] }
 0x420   :  { %5713 = vmatpush1.bf16.msra.mxu0 %v5712_v42  ;;  %v2173_v42 = vld [vmem:[#allocation4 + $0x58] sm:$0xff]  ;;  %v5796_v45 = vpack.c.bf16 %v2174_v41, %v2170_v39  ;;  %v2204_v39 = vld [vmem:[#allocation4 + $0x150] sm:$0xff] }
 0x421   :  { %5715 = vmatprep.subr.bf16.mxu0 %v5714_v46  ;;  %v5858_v46 = vpack.c.bf16 %v2177_v43, %v2173_v42  ;;  %v2211_v43 = vld [vmem:[#allocation4 + $0x188] sm:$0xff] }
 0x422   :  { %5777 = vmatpush1.bf16.msra.mxu1 %v5776_v52  ;;  %v2183_v52 = vld [vmem:[#allocation4 + $0xa8] sm:$0xff] }
 0x423   :  { %5779 = vmatprep.subr.bf16.mxu1 %v5778_v54  ;;  %v2178_v54 = vld [vmem:[#allocation4 + $0x80] sm:$0xff]  ;;  %v5798_v58 = vpack.c.bf16 %v2183_v52, %v2179_v50  ;;  %v2213_v50 = vld [vmem:[#allocation4 + $0x198] sm:$0xff] }
 0x424   :  { %5717 = vmatpush1.bf16.msra.mxu0 %v5716_v59  ;;  %v5800_v59 = vpack.c.bf16 %v2182_v55, %v2178_v54  ;;  %v2217_v52 = vld [vmem:[#allocation4 + $0x1b8] sm:$0xff]  ;;  %v2212_v54 = vld [vmem:[#allocation4 + $0x190] sm:$0xff] }
 0x425   :  { %5719 = vmatprep.subr.bf16.mxu0 %v5718_v61  ;;  %v2180_v61 = vld [vmem:[#allocation4 + $0x90] sm:$0xff] }
 0x426   :  { %5781 = vmatpush1.bf16.msra.mxu1 %v5780_v13  ;;  %v5864_v13 = vpack.c.bf16 %v2184_v63, %v2180_v61  ;;  %v2216_v55 = vld [vmem:[#allocation4 + $0x1b0] sm:$0xff]  ;;  %v5818_v61 = vpack.c.bf16 %v2223_v60, %v2219_v0  ;;  %v2222_v63 = vld [vmem:[#allocation4 + $0x1e0] sm:$0xff]  ;;  %v2257_v60 = vld [vmem:[#allocation4 + $0x2f8] sm:$0xff] }
 0x427   :  { %5783 = vmatprep.subr.bf16.mxu1 %v5782_v3  ;;  %v5802_v3 = vpack.c.bf16 %v2191_v44, %v2187_v1  ;;  %v2221_v1 = vld [vmem:[#allocation4 + $0x1d8] sm:$0xff] }
 0x428   :  { %5721 = vmatpush1.bf16.msra.mxu0 %v5720_v5  ;;  %v2189_v5 = vld [vmem:[#allocation4 + $0xd8] sm:$0xff] }
 0x429   :  { %5723 = vmatprep.subr.bf16.mxu0 %v5722_v8  ;;  %v2192_v8 = vld [vmem:[#allocation4 + $0xf0] sm:$0xff]  ;;  %v5866_v9 = vpack.c.bf16 %v2193_v6, %v2189_v5  ;;  %v2227_v6 = vld [vmem:[#allocation4 + $0x208] sm:$0xff] }
 0x42a   :  { %5785 = vmatpush1.bf16.msra.mxu1 %v5784_v10  ;;  %v2195_v10 = vld [vmem:[#allocation4 + $0x108] sm:$0xff]  ;;  %v5868_v19 = vpack.c.bf16 %v2192_v8, %v2188_v7 }
 0x42b   :  { %5787 = vmatprep.subr.bf16.mxu1 %v5786_v11  ;;  %v2199_v11 = vld [vmem:[#allocation4 + $0x128] sm:$0xff] }
 0x42c   :  { %5725 = vmatpush1.bf16.msra.mxu0 %v5724_v12  ;;  %v5806_v12 = vpack.c.bf16 %v2199_v11, %v2195_v10  ;;  %v2231_v7 = vld [vmem:[#allocation4 + $0x228] sm:$0xff]  ;;  %v2229_v10 = vld [vmem:[#allocation4 + $0x218] sm:$0xff] }
 0x42d   :  { %5791 = vmatprep.subr.bf16.mxu0 %v5790_v28  ;;  %v2196_v28 = vld [vmem:[#allocation4 + $0x110] sm:$0xff]  ;;  %v5822_v8 = vpack.c.bf16 %v2231_v7, %v2227_v6  ;;  %v2265_v7 = vld [vmem:[#allocation4 + $0x338] sm:$0xff] }
 0x42e   :  { %5789 = vmatpush1.bf16.msra.mxu1 %v5788_v20  ;;  %v2198_v20 = vld [vmem:[#allocation4 + $0x120] sm:$0xff]  ;;  %v5872_v31 = vpack.c.bf16 %v2200_v29, %v2196_v28 }
 0x42f   :  { %2061 = vmatmul.mubr.f32.vlgmr.msra.gmra.mrb[12].mxu0 %v4854_v21  ;;  %5855 = vmatprep.subr.bf16.mxu1 %v5854_v33  ;;  %v5808_v27 = vpack.c.bf16 %v2198_v20, %v2194_v14  ;;  %v2233_v14 = vld [vmem:[#allocation4 + $0x238] sm:$0xff]  ;;  %v2234_v28 = vld [vmem:[#allocation4 + $0x240] sm:$0xff] }
 0x430   :  { %5793 = vmatpush1.bf16.msra.mxu0 %v5792_v26  ;;  %v2207_v26 = vld [vmem:[#allocation4 + $0x168] sm:$0xff]  ;;  %v5886_v20 = vpack.c.bf16 %v2233_v14, %v2229_v10  ;;  %v2238_v29 = vld [vmem:[#allocation4 + $0x260] sm:$0xff] }
 0x431   :  { %2132 = vmatmul.mubr.f32.vlgmr.msra.gmra.mrb[12].mxu1 %v4854_v21  ;;  %5795 = vmatprep.subr.bf16.mxu0 %v5794_v40  ;;  %v2197_v21 = vld [vmem:[#allocation4 + $0x118] sm:$0xff]  ;;  %v5810_v33 = vpack.c.bf16 %v2207_v26, %v2203_v32  ;;  %v2208_v40 = vld [vmem:[#allocation4 + $0x170] sm:$0xff]  ;;  %v5828_v32 = vpack.c.bf16 %v2238_v29, %v2234_v28  ;;  %v2271_v14 = vld [vmem:[#allocation4 + $0x368] sm:$0xff] }
 0x432   :  { %5857 = vmatpush1.bf16.msra.mxu1 %v5856_v36  ;;  %v5870_v25 = vpack.c.bf16 %v2201_v22, %v2197_v21  ;;  %v2205_v36 = vld [vmem:[#allocation4 + $0x158] sm:$0xff]  ;;  %v5876_v42 = vpack.c.bf16 %v2208_v40, %v2204_v39  ;;  %v2235_v22 = vld [vmem:[#allocation4 + $0x248] sm:$0xff]  ;;  %v2242_v40 = vld [vmem:[#allocation4 + $0x280] sm:$0xff] }
 0x433   :  { %5859 = vmatprep.subr.bf16.mxu1 %v5858_v46  ;;  %v5874_v41 = vpack.c.bf16 %v2209_v38, %v2205_v36  ;;  %v2241_v26 = vld [vmem:[#allocation4 + $0x278] sm:$0xff]  ;;  %v2247_v38 = vld [vmem:[#allocation4 + $0x2a8] sm:$0xff]  ;;  %v2272_v28 = vld [vmem:[#allocation4 + $0x370] sm:$0xff] }
 0x434   :  { %5797 = vmatpush1.bf16.msra.mxu0 %v5796_v45  ;;  %v2215_v45 = vld [vmem:[#allocation4 + $0x1a8] sm:$0xff] }
 0x435   :  { %5799 = vmatprep.subr.bf16.mxu0 %v5798_v58  ;;  %v5814_v46 = vpack.c.bf16 %v2215_v45, %v2211_v43  ;;  %v5878_v58 = vpack.c.bf16 %v2217_v52, %v2213_v50  ;;  %v2249_v45 = vld [vmem:[#allocation4 + $0x2b8] sm:$0xff]  ;;  %v2255_v52 = vld [vmem:[#allocation4 + $0x2e8] sm:$0xff] }
 0x436   :  { %5861 = vmatpush1.bf16.msra.mxu1 %v5860_v51  ;;  %v5816_v51 = vpack.c.bf16 %v2214_v48, %v2210_v47  ;;  %v2248_v47 = vld [vmem:[#allocation4 + $0x2b0] sm:$0xff] }
 0x437   :  { %5863 = vmatprep.subr.bf16.mxu1 %v5862_v62  ;;  %v2218_v62 = vld [vmem:[#allocation4 + $0x1c0] sm:$0xff] }
 0x438   :  { %5801 = vmatpush1.bf16.msra.mxu0 %v5800_v59  ;;  %v5880_v59 = vpack.c.bf16 %v2216_v55, %v2212_v54  ;;  %v5820_v44 = vpack.c.bf16 %v2222_v63, %v2218_v62  ;;  %v2250_v55 = vld [vmem:[#allocation4 + $0x2c0] sm:$0xff]  ;;  %v2256_v62 = vld [vmem:[#allocation4 + $0x2f0] sm:$0xff] }
 0x439   :  { %5803 = vmatprep.subr.bf16.mxu0 %v5802_v3  ;;  %v2220_v3 = vld [vmem:[#allocation4 + $0x1d0] sm:$0xff] }
 0x43a   :  { %5865 = vmatpush1.bf16.msra.mxu1 %v5864_v13  ;;  %v2225_v13 = vld [vmem:[#allocation4 + $0x1f8] sm:$0xff]  ;;  %v5884_v5 = vpack.c.bf16 %v2224_v4, %v2220_v3  ;;  %v2258_v4 = vld [vmem:[#allocation4 + $0x300] sm:$0xff] }
 0x43b   :  { %5867 = vmatprep.subr.bf16.mxu1 %v5866_v9  ;;  %v5882_v49 = vpack.c.bf16 %v2225_v13, %v2221_v1  ;;  %v2230_v9 = vld [vmem:[#allocation4 + $0x220] sm:$0xff]  ;;  %v2263_v13 = vld [vmem:[#allocation4 + $0x328] sm:$0xff] }
 0x43c   :  { %5805 = vmatpush1.bf16.msra.mxu0 %v5804_v18  ;;  %v2226_v18 = vld [vmem:[#allocation4 + $0x200] sm:$0xff] }
 0x43d   :  { %5807 = vmatprep.subr.bf16.mxu0 %v5806_v12  ;;  %v5824_v11 = vpack.c.bf16 %v2230_v9, %v2226_v18  ;;  %v2232_v12 = vld [vmem:[#allocation4 + $0x230] sm:$0xff] }
 0x43e   :  { %5869 = vmatpush1.bf16.msra.mxu1 %v5868_v19  ;;  %v2228_v19 = vld [vmem:[#allocation4 + $0x210] sm:$0xff] }
 0x43f   :  { %5871 = vmatprep.subr.bf16.mxu1 %v5870_v25  ;;  %v5888_v21 = vpack.c.bf16 %v2232_v12, %v2228_v19  ;;  %v2239_v25 = vld [vmem:[#allocation4 + $0x268] sm:$0xff]  ;;  %v2264_v18 = vld [vmem:[#allocation4 + $0x330] sm:$0xff]  ;;  %v2266_v12 = vld [vmem:[#allocation4 + $0x340] sm:$0xff] }
 0x440   :  { %5809 = vmatpush1.bf16.msra.mxu0 %v5808_v27  ;;  %v5826_v27 = vpack.c.bf16 %v2239_v25, %v2235_v22  ;;  %v2273_v25 = vld [vmem:[#allocation4 + $0x378] sm:$0xff] }
 0x441   :  { %5811 = vmatprep.subr.bf16.mxu0 %v5810_v33  ;;  %v2236_v33 = vld [vmem:[#allocation4 + $0x250] sm:$0xff] }
 0x442   :  { %5873 = vmatpush1.bf16.msra.mxu1 %v5872_v31  ;;  %v2237_v31 = vld [vmem:[#allocation4 + $0x258] sm:$0xff]  ;;  %v5892_v36 = vpack.c.bf16 %v2240_v34, %v2236_v33  ;;  %v2274_v33 = vld [vmem:[#allocation4 + $0x380] sm:$0xff] }
 0x443   :  { %5875 = vmatprep.subr.bf16.mxu1 %v5874_v41  ;;  %v5890_v35 = vpack.c.bf16 %v2241_v26, %v2237_v31  ;;  %v2246_v41 = vld [vmem:[#allocation4 + $0x2a0] sm:$0xff]  ;;  %v2279_v26 = vld [vmem:[#allocation4 + $0x3a8] sm:$0xff] }
 0x444   :  { %5813 = vmatpush1.bf16.msra.mxu0 %v5812_v37  ;;  %v2243_v37 = vld [vmem:[#allocation4 + $0x288] sm:$0xff]  ;;  %v5832_v43 = vpack.c.bf16 %v2246_v41, %v2242_v40  ;;  %v2276_v40 = vld [vmem:[#allocation4 + $0x390] sm:$0xff] }
 0x445   :  { %5815 = vmatprep.subr.bf16.mxu0 %v5814_v46  ;;  %v5830_v39 = vpack.c.bf16 %v2247_v38, %v2243_v37  ;;  %v2244_v46 = vld [vmem:[#allocation4 + $0x290] sm:$0xff]  ;;  %v2281_v37 = vld [vmem:[#allocation4 + $0x3b8] sm:$0xff] }
 0x446   :  { %5877 = vmatpush1.bf16.msra.mxu1 %v5876_v42  ;;  %v2245_v42 = vld [vmem:[#allocation4 + $0x298] sm:$0xff]  ;;  %v5896_v50 = vpack.c.bf16 %v2248_v47, %v2244_v46  ;;  %v2280_v41 = vld [vmem:[#allocation4 + $0x3b0] sm:$0xff]  ;;  %v2282_v46 = vld [vmem:[#allocation4 + $0x3c0] sm:$0xff] }
 0x447   :  { %5879 = vmatprep.subr.bf16.mxu1 %v5878_v58  ;;  %v5894_v48 = vpack.c.bf16 %v2249_v45, %v2245_v42  ;;  %v2254_v58 = vld [vmem:[#allocation4 + $0x2e0] sm:$0xff]  ;;  %v2283_v42 = vld [vmem:[#allocation4 + $0x3c8] sm:$0xff] }
 0x448   :  { %5817 = vmatpush1.bf16.msra.mxu0 %v5816_v51  ;;  %v2251_v51 = vld [vmem:[#allocation4 + $0x2c8] sm:$0xff]  ;;  %v5836_v0 = vpack.c.bf16 %v2254_v58, %v2250_v55  ;;  %v2286_v47 = vld [vmem:[#allocation4 + $0x3e0] sm:$0xff]  ;;  %v2288_v58 = vld [vmem:[#allocation4 + $0x3f0] sm:$0xff] }
 0x449   :  { %5819 = vmatprep.subr.bf16.mxu0 %v5818_v61  ;;  %v5834_v54 = vpack.c.bf16 %v2255_v52, %v2251_v51  ;;  %v2252_v61 = vld [vmem:[#allocation4 + $0x2d0] sm:$0xff]  ;;  %v2287_v45 = vld [vmem:[#allocation4 + $0x3e8] sm:$0xff]  ;;  %v2289_v51 = vld [vmem:[#allocation4 + $0x3f8] sm:$0xff] }
 0x44a   :  { %5881 = vmatpush1.bf16.msra.mxu1 %v5880_v59  ;;  %v2253_v59 = vld [vmem:[#allocation4 + $0x2d8] sm:$0xff]  ;;  %v5900_v1 = vpack.c.bf16 %v2256_v62, %v2252_v61  ;;  %v2284_v52 = vld [vmem:[#allocation4 + $0x3d0] sm:$0xff] }
 0x44b   :  { %5883 = vmatprep.subr.bf16.mxu1 %v5882_v49  ;;  %v5898_v63 = vpack.c.bf16 %v2257_v60, %v2253_v59  ;;  %v2262_v49 = vld [vmem:[#allocation4 + $0x320] sm:$0xff]  ;;  %v2461_v59 = vld [vmem:[#allocation2 + $0x8] sm:$0xff]  ;;  %v5916_v61 = vpack.c.bf16 %v2288_v58, %v2284_v52  ;;  %v2463_v62 = vld [vmem:[#allocation2 + $0x18] sm:$0xff] }
 0x44c   :  { %5821 = vmatpush1.bf16.msra.mxu0 %v5820_v44  ;;  %v2259_v44 = vld [vmem:[#allocation4 + $0x308] sm:$0xff]  ;;  %v5840_v6 = vpack.c.bf16 %v2262_v49, %v2258_v4 }
 0x44d   :  { %5823 = vmatprep.subr.bf16.mxu0 %v5822_v8  ;;  %v5838_v3 = vpack.c.bf16 %v2263_v13, %v2259_v44  ;;  %v2260_v8 = vld [vmem:[#allocation4 + $0x310] sm:$0xff] }
 0x44e   :  { %5885 = vmatpush1.bf16.msra.mxu1 %v5884_v5  ;;  %v2261_v5 = vld [vmem:[#allocation4 + $0x318] sm:$0xff]  ;;  %v5904_v10 = vpack.c.bf16 %v2264_v18, %v2260_v8 }
 0x44f   :  { %5887 = vmatprep.subr.bf16.mxu1 %v5886_v20  ;;  %v5902_v9 = vpack.c.bf16 %v2265_v7, %v2261_v5  ;;  %v2270_v20 = vld [vmem:[#allocation4 + $0x360] sm:$0xff] }
 0x450   :  { %5825 = vmatpush1.bf16.msra.mxu0 %v5824_v11  ;;  %v2267_v11 = vld [vmem:[#allocation4 + $0x348] sm:$0xff]  ;;  %v5844_v22 = vpack.c.bf16 %v2270_v20, %v2266_v12 }
 0x451   :  { %5827 = vmatprep.subr.bf16.mxu0 %v5826_v27  ;;  %v5842_v19 = vpack.c.bf16 %v2271_v14, %v2267_v11  ;;  %v2268_v27 = vld [vmem:[#allocation4 + $0x350] sm:$0xff] }
 0x452   :  { %5889 = vmatpush1.bf16.msra.mxu1 %v5888_v21  ;;  %v2269_v21 = vld [vmem:[#allocation4 + $0x358] sm:$0xff]  ;;  %v5908_v31 = vpack.c.bf16 %v2272_v28, %v2268_v27 }
 0x453   :  { %5891 = vmatprep.subr.bf16.mxu1 %v5890_v35  ;;  %v5906_v29 = vpack.c.bf16 %v2273_v25, %v2269_v21  ;;  %v2278_v35 = vld [vmem:[#allocation4 + $0x3a0] sm:$0xff] }
 0x454   :  { %5829 = vmatpush1.bf16.msra.mxu0 %v5828_v32  ;;  %v2275_v32 = vld [vmem:[#allocation4 + $0x388] sm:$0xff]  ;;  %v5848_v38 = vpack.c.bf16 %v2278_v35, %v2274_v33 }
 0x455   :  { %5831 = vmatprep.subr.bf16.mxu0 %v5830_v39  ;;  %v5846_v34 = vpack.c.bf16 %v2279_v26, %v2275_v32 }
 0x456   :  { %5893 = vmatpush1.bf16.msra.mxu1 %v5892_v36  ;;  %v2277_v36 = vld [vmem:[#allocation4 + $0x398] sm:$0xff] }
 0x457   :  { %5895 = vmatprep.subr.bf16.mxu1 %v5894_v48  ;;  %v5910_v39 = vpack.c.bf16 %v2281_v37, %v2277_v36  ;;  %v5850_v48 = vpack.c.bf16 %v2287_v45, %v2283_v42 }
 0x458   :  { %5833 = vmatpush1.bf16.msra.mxu0 %v5832_v43  ;;  %v5912_v43 = vpack.c.bf16 %v2280_v41, %v2276_v40 }
 0x459   :  { %5835 = vmatprep.subr.bf16.mxu0 %v5834_v54  ;;  %v5852_v54 = vpack.c.bf16 %v2286_v47, %v2282_v46 }
 0x45a   :  { %5897 = vmatpush1.bf16.msra.mxu1 %v5896_v50  ;;  %v2285_v50 = vld [vmem:[#allocation4 + $0x3d8] sm:$0xff] }
 0x45b   :  { %5899 = vmatprep.subr.bf16.mxu1 %v5898_v63  ;;  %v5914_v55 = vpack.c.bf16 %v2289_v51, %v2285_v50  ;;  %v2467_v63 = vld [vmem:[#allocation2 + $0x38] sm:$0xff] }
 0x45c   :  { %5837 = vmatpush1.bf16.msra.mxu0 %v5836_v0  ;;  %v2465_v0 = vld [vmem:[#allocation2 + $0x28] sm:$0xff] }
 0x45d   :  { %5839 = vmatprep.subr.bf16.mxu0 %v5838_v3  ;;  %v5918_v60 = vpack.c.bf16 %v2465_v0, %v2461_v59  ;;  %v2460_v0 = vld [vmem:[#allocation2] sm:$0xff] }
 0x45e   :  { %5901 = vmatpush1.bf16.msra.mxu1 %v5900_v1  ;;  %v5982_v1 = vpack.c.bf16 %v2467_v63, %v2463_v62  ;;  %v2469_v62 = vld [vmem:[#allocation2 + $0x48] sm:$0xff] }
 0x45f   :  { %5903 = vmatprep.subr.bf16.mxu1 %v5902_v9  ;;  %v2473_v63 = vld [vmem:[#allocation2 + $0x68] sm:$0xff] }
 0x460   :  { %5841 = vmatpush1.bf16.msra.mxu0 %v5840_v6 }
 0x461   :  { %5843 = vmatprep.subr.bf16.mxu0 %v5842_v19 }
 0x462   :  { %5905 = vmatpush1.bf16.msra.mxu1 %v5904_v10 }
 0x463   :  { %5907 = vmatprep.subr.bf16.mxu1 %v5906_v29 }
 0x464   :  { %5845 = vmatpush1.bf16.msra.mxu0 %v5844_v22 }
 0x465   :  { %5847 = vmatprep.subr.bf16.mxu0 %v5846_v34 }
 0x466   :  { %5909 = vmatpush1.bf16.msra.mxu1 %v5908_v31 }
 0x467   :  { %5911 = vmatprep.subr.bf16.mxu1 %v5910_v39 }
 0x468   :  { %5849 = vmatpush1.bf16.msra.mxu0 %v5848_v38 }
 0x469   :  { %5851 = vmatprep.subr.bf16.mxu0 %v5850_v48 }
 0x46a   :  { %5913 = vmatpush1.bf16.msra.mxu1 %v5912_v43 }
 0x46b   :  { %5915 = vmatprep.subr.bf16.mxu1 %v5914_v55 }
 0x46c   :  { %5853 = vmatpush1.bf16.msra.mxu0 %v5852_v54 }
 0x46d   :  { %5919 = vmatprep.subr.bf16.mxu0 %v5918_v60  ;;  %v2464_v60 = vld [vmem:[#allocation2 + $0x20] sm:$0xff] }
 0x46e   :  { %5917 = vmatpush1.bf16.msra.mxu1 %v5916_v61 }
 0x46f   :  { %5983 = vmatprep.subr.bf16.mxu1 %v5982_v1  ;;  %v2462_v1 = vld [vmem:[#allocation2 + $0x10] sm:$0xff] }
 0x4c2   :  { %v1764_v44 = vpop.f32.mrb[10].mxu0  ;;  %v1835_v13 = vpop.f32.mrb[10].mxu1 }
 0x4c3   :  { %v1765_v3 = vadd.f32 %v1764_v44, %v7357_v56  ;;  %v1766_v4 = vpop.f32.mrb[11].mxu0  ;;  %v1837_v49 = vpop.f32.mrb[11].mxu1  ;;  %v1836_v9 = vadd.f32 %v1835_v13, %v7372_v15  ;;  %v2466_v44 = vld [vmem:[#allocation2 + $0x30] sm:$0xff] }
 0x4c4   :  { %v1767_v5 = vadd.f32 %v1766_v4, %v7361_v57  ;;  %v1838_v8 = vadd.f32 %v1837_v49, %v7367_v2  ;;  %v2471_v4 = vld [vmem:[#allocation2 + $0x58] sm:$0xff] }
 0x4c5   :  { %v4850_v6 = vmul.f32 -1.442695, %v1765_v3  ;;  %v5920_v3 = vpack.c.bf16 %v2464_v60, %v2460_v0  ;;  %v2475_v49 = vld [vmem:[#allocation2 + $0x78] sm:$0xff]  ;;  %v2494_v60 = vld [vmem:[#allocation2 + $0x110] sm:$0xff] }
 0x4c6   :  { %v4851_v7 = vmul.f32 -1.442695, %v1767_v5  ;;  %v4852_v18 = vmul.f32 -1.442695, %v1838_v8  ;;  %v2477_v8 = vld [vmem:[#allocation2 + $0x88] sm:$0xff] }
 0x4c7   :  { %7027 = vpow2.f32 %v4850_v6  ;;  %v5922_v6 = vpack.c.bf16 %v2473_v63, %v2469_v62  ;;  %v2503_v63 = vld [vmem:[#allocation2 + $0x158] sm:$0xff] }
 0x4c8   :  { %7029 = vpow2.f32 %v4851_v7  ;;  %v2468_v7 = vld [vmem:[#allocation2 + $0x40] sm:$0xff] }
 0x4c9   :  { %7031 = vpow2.f32 %v4852_v18  ;;  %v2481_v18 = vld [vmem:[#allocation2 + $0xa8] sm:$0xff] }
 0x4ca   :  { %7033 = vtanh.f32 %v1836_v9  ;;  %v5984_v9 = vpack.c.bf16 %v2466_v44, %v2462_v1  ;;  %v2507_v1 = vld [vmem:[#allocation2 + $0x178] sm:$0xff] }
 0x4d1   :  { %v7028_v10 = vpop.eup %7027 }
 0x4d2   :  { %v7030_v11 = vpop.eup %7029  ;;  %v1843_v14 = vadd.f32 1.0, %v7028_v10  ;;  %v5986_v10 = vpack.c.bf16 %v2475_v49, %v2471_v4  ;;  %v2509_v4 = vld [vmem:[#allocation2 + $0x188] sm:$0xff] }
 0x4d3   :  { %v1849_v19 = vadd.f32 1.0, %v7030_v11  ;;  %v7032_v12 = vpop.eup %7031  ;;  %v2470_v11 = vld [vmem:[#allocation2 + $0x50] sm:$0xff]  ;;  %v2513_v49 = vld [vmem:[#allocation2 + $0x1a8] sm:$0xff] }
 0x4d4   :  { %7035 = vrcp.f32 %v1843_v14  ;;  %v7034_v20 = vpop.eup %7033  ;;  %v1856_v27 = vadd.f32 1.0, %v7032_v12  ;;  %v2474_v14 = vld [vmem:[#allocation2 + $0x70] sm:$0xff]  ;;  %v2479_v12 = vld [vmem:[#allocation2 + $0x98] sm:$0xff] }
 0x4d5   :  { %7037 = vrcp.f32 %v1849_v19 }
 0x4d6   :  { %7039 = vrcp.f32 %v1856_v27  ;;  %v2485_v27 = vld [vmem:[#allocation2 + $0xc8] sm:$0xff] }
 0x4de   :  { %v7036_v21 = vpop.eup %7035 }
 0x4df   :  { %v7038_v22 = vpop.eup %7037  ;;  %v1860_v25 = vmul.f32 %v7036_v21, %v7034_v20  ;;  %v2483_v20 = vld [vmem:[#allocation2 + $0xb8] sm:$0xff]  ;;  %v5926_v21 = vpack.c.bf16 %v2481_v18, %v2477_v8 }
 0x4e0   :  { %v1859_v28 = vmul.f32 %v7038_v22, %v7397_v23  ;;  %v7040_v31 = vpop.eup %7039  ;;  %v2476_v22 = vld [vmem:[#allocation2 + $0x80] sm:$0xff]  ;;  %v2511_v18 = vld [vmem:[#allocation2 + $0x198] sm:$0xff] }
 0x4e2   :  { %v7419_v29 = vadd.f32 %v1860_v25, %v1859_v28  ;;  %v2480_v25 = vld [vmem:[#allocation2 + $0xa0] sm:$0xff]  ;;  %v2489_v28 = vld [vmem:[#allocation2 + $0xe8] sm:$0xff] }
 0x4e4   :  { %7041 = vtanh.f32 %v7419_v29 }
 0x4ee   :  { %v7042_v32 = vpop.eup %7041 }
 0x4ef   :  { %v1863_v26 = vmul.f32 %v7042_v32, %v7040_v31  ;;  %v5988_v31 = vpack.c.bf16 %v2474_v14, %v2470_v11  ;;  %v5990_v32 = vpack.c.bf16 %v2483_v20, %v2479_v12  ;;  %v2508_v11 = vld [vmem:[#allocation2 + $0x180] sm:$0xff]  ;;  %v2521_v12 = vld [vmem:[#allocation2 + $0x1e8] sm:$0xff] }
 0x4f0   :  { %v2512_v14 = vld [vmem:[#allocation2 + $0x1a0] sm:$0xff] }
 0x4f1   :  { %4853 = vst [vmem:[%s7531_s5 + $0x10] sm:$0xff] %v1863_v26  ;;  %2354 = vmatprep.mubr.f32.mxu0 %v1863_v26  ;;  %2425 = vmatprep.mubr.f32.mxu1 %v1863_v26  ;;  %v2478_v26 = vld [vmem:[#allocation2 + $0x90] sm:$0xff] }
 0x502   :  { %v2062_v33 = vpop.f32.mrb[12].mxu0 }
 0x503   :  { %v2063_v34 = vadd.f32 %v2062_v33, %v7326_v16  ;;  %v2064_v35 = vpop.f32.mrb[13].mxu0  ;;  %v2482_v33 = vld [vmem:[#allocation2 + $0xb0] sm:$0xff] }
 0x504   :  { %v2065_v23 = vadd.f32 %v2064_v35, %v7330_v17  ;;  %v2133_v36 = vpop.f32.mrb[12].mxu1  ;;  %v2487_v35 = vld [vmem:[#allocation2 + $0xd8] sm:$0xff] }
 0x505   :  { %v4855_v37 = vmul.f32 -1.442695, %v2063_v34  ;;  %v2135_v38 = vpop.f32.mrb[13].mxu1  ;;  %v2134_v42 = vadd.f32 %v2133_v36, %v7343_v30  ;;  %v5928_v34 = vpack.c.bf16 %v2480_v25, %v2476_v22  ;;  %v5930_v36 = vpack.c.bf16 %v2489_v28, %v2485_v27  ;;  %v2510_v22 = vld [vmem:[#allocation2 + $0x190] sm:$0xff]  ;;  %v2519_v28 = vld [vmem:[#allocation2 + $0x1d8] sm:$0xff] }
 0x506   :  { %v4856_v39 = vmul.f32 -1.442695, %v2065_v23  ;;  %v2136_v40 = vadd.f32 %v2135_v38, %v7337_v24  ;;  %v2491_v23 = vld [vmem:[#allocation2 + $0xf8] sm:$0xff]  ;;  %v2488_v38 = vld [vmem:[#allocation2 + $0xe0] sm:$0xff]  ;;  %v2514_v25 = vld [vmem:[#allocation2 + $0x1b0] sm:$0xff]  ;;  %v5944_v27 = vpack.c.bf16 %v2512_v14, %v2508_v11 }
 0x507   :  { %7043 = vpow2.f32 %v4855_v37  ;;  %v2484_v37 = vld [vmem:[#allocation2 + $0xc0] sm:$0xff]  ;;  %v2542_v11 = vld [vmem:[#allocation2 + $0x290] sm:$0xff] }
 0x508   :  { %7045 = vpow2.f32 %v4856_v39  ;;  %v4857_v41 = vmul.f32 -1.442695, %v2136_v40  ;;  %v2493_v39 = vld [vmem:[#allocation2 + $0x108] sm:$0xff]  ;;  %v2546_v14 = vld [vmem:[#allocation2 + $0x2b0] sm:$0xff] }
 0x509   :  { %v2497_v40 = vld [vmem:[#allocation2 + $0x128] sm:$0xff] }
 0x50a   :  { %7047 = vpow2.f32 %v4857_v41  ;;  %v5992_v41 = vpack.c.bf16 %v2482_v33, %v2478_v26  ;;  %v2516_v26 = vld [vmem:[#allocation2 + $0x1c0] sm:$0xff] }
 0x50b   :  { %7049 = vtanh.f32 %v2134_v42  ;;  %v5994_v42 = vpack.c.bf16 %v2491_v23, %v2487_v35  ;;  %v2520_v33 = vld [vmem:[#allocation2 + $0x1e0] sm:$0xff]  ;;  %v2529_v35 = vld [vmem:[#allocation2 + $0x228] sm:$0xff]  ;;  %v6008_v23 = vpack.c.bf16 %v2514_v25, %v2510_v22 }
 0x50c   :  { %v2548_v22 = vld [vmem:[#allocation2 + $0x2c0] sm:$0xff] }
 0x50d   :  { %v2552_v25 = vld [vmem:[#allocation2 + $0x2e0] sm:$0xff] }
 0x511   :  { %v7044_v43 = vpop.eup %7043 }
 0x512   :  { %v7046_v45 = vpop.eup %7045  ;;  %v2141_v46 = vadd.f32 1.0, %v7044_v43  ;;  %v2486_v43 = vld [vmem:[#allocation2 + $0xd0] sm:$0xff] }
 0x513   :  { %v2147_v47 = vadd.f32 1.0, %v7046_v45  ;;  %v2490_v45 = vld [vmem:[#allocation2 + $0xf0] sm:$0xff] }
 0x514   :  { %7051 = vrcp.f32 %v2141_v46  ;;  %v7048_v48 = vpop.eup %7047  ;;  %v5932_v46 = vpack.c.bf16 %v2488_v38, %v2484_v37  ;;  %v2518_v37 = vld [vmem:[#allocation2 + $0x1d0] sm:$0xff] }
 0x515   :  { %7053 = vrcp.f32 %v2147_v47  ;;  %v7050_v50 = vpop.eup %7049  ;;  %v2154_v52 = vadd.f32 1.0, %v7048_v48  ;;  %v2495_v47 = vld [vmem:[#allocation2 + $0x118] sm:$0xff]  ;;  %v2522_v38 = vld [vmem:[#allocation2 + $0x1f0] sm:$0xff] }
 0x516   :  { %v2499_v48 = vld [vmem:[#allocation2 + $0x138] sm:$0xff] }
 0x517   :  { %7055 = vrcp.f32 %v2154_v52  ;;  %v2496_v52 = vld [vmem:[#allocation2 + $0x120] sm:$0xff]  ;;  %v5998_v0 = vpack.c.bf16 %v2499_v48, %v2495_v47  ;;  %v2537_v47 = vld [vmem:[#allocation2 + $0x268] sm:$0xff]  ;;  %v6012_v48 = vpack.c.bf16 %v2522_v38, %v2518_v37 }
 0x518   :  { %v2556_v37 = vld [vmem:[#allocation2 + $0x300] sm:$0xff] }
 0x519   :  { %v2560_v38 = vld [vmem:[#allocation2 + $0x320] sm:$0xff] }
 0x51e   :  { %v7052_v51 = vpop.eup %7051 }
 0x51f   :  { %v7054_v54 = vpop.eup %7053  ;;  %v2158_v55 = vmul.f32 %v7052_v51, %v7050_v50  ;;  %v5934_v50 = vpack.c.bf16 %v2497_v40, %v2493_v39  ;;  %v2492_v51 = vld [vmem:[#allocation2 + $0x100] sm:$0xff]  ;;  %v5948_v39 = vpack.c.bf16 %v2520_v33, %v2516_v26  ;;  %v2527_v40 = vld [vmem:[#allocation2 + $0x218] sm:$0xff]  ;;  %v2550_v26 = vld [vmem:[#allocation2 + $0x2d0] sm:$0xff] }
 0x520   :  { %v2157_v58 = vmul.f32 %v7054_v54, %v7408_v53  ;;  %v2472_v53 = vld [vmem:[#allocation2 + $0x60] sm:$0xff]  ;;  %v2501_v54 = vld [vmem:[#allocation2 + $0x148] sm:$0xff]  ;;  %v5936_v62 = vpack.c.bf16 %v2496_v52, %v2492_v51  ;;  %v2526_v51 = vld [vmem:[#allocation2 + $0x210] sm:$0xff] }
 0x521   :  { %v7056_v61 = vpop.eup %7055  ;;  %v5924_v19 = vpack.c.bf16 %v2472_v53, %v2468_v7  ;;  %v2502_v7 = vld [vmem:[#allocation2 + $0x150] sm:$0xff] }
 0x522   :  { %v7430_v59 = vadd.f32 %v2158_v55, %v2157_v58  ;;  %v2505_v55 = vld [vmem:[#allocation2 + $0x168] sm:$0xff]  ;;  %v5996_v58 = vpack.c.bf16 %v2490_v45, %v2486_v43  ;;  %v2506_v53 = vld [vmem:[#allocation2 + $0x170] sm:$0xff]  ;;  %v2524_v43 = vld [vmem:[#allocation2 + $0x200] sm:$0xff] }
 0x523   :  { %v5938_v44 = vpack.c.bf16 %v2505_v55, %v2501_v54  ;;  %v6004_v20 = vpack.c.bf16 %v2506_v53, %v2502_v7  ;;  %v2528_v45 = vld [vmem:[#allocation2 + $0x220] sm:$0xff]  ;;  %v2530_v52 = vld [vmem:[#allocation2 + $0x230] sm:$0xff]  ;;  %v2535_v55 = vld [vmem:[#allocation2 + $0x258] sm:$0xff] }
 0x524   :  { %7057 = vtanh.f32 %v7430_v59  ;;  %v5952_v54 = vpack.c.bf16 %v2528_v45, %v2524_v43  ;;  %v2540_v7 = vld [vmem:[#allocation2 + $0x280] sm:$0xff]  ;;  %v2554_v33 = vld [vmem:[#allocation2 + $0x2f0] sm:$0xff] }
 0x525   :  { %v2544_v53 = vld [vmem:[#allocation2 + $0x2a0] sm:$0xff]  ;;  %v2558_v43 = vld [vmem:[#allocation2 + $0x310] sm:$0xff] }
 0x526   :  { %v2562_v45 = vld [vmem:[#allocation2 + $0x330] sm:$0xff] }
 0x52e   :  { %v7058_v13 = vpop.eup %7057 }
 0x52f   :  { %v2161_v5 = vmul.f32 %v7058_v13, %v7056_v61  ;;  %v2498_v61 = vld [vmem:[#allocation2 + $0x130] sm:$0xff]  ;;  %v2500_v13 = vld [vmem:[#allocation2 + $0x140] sm:$0xff] }
 0x531   :  { %2355 = vmatmul.mubr.f32.vlgmr.msra.gmra.mrb[14].mxu0 %v2161_v5  ;;  %2426 = vmatmul.mubr.f32.vlgmr.msra.gmra.mrb[14].mxu1 %v2161_v5 }
 0x532   :  { %5921 = vmatpush1.bf16.msra.mxu0 %v5920_v3  ;;  %2652 = vmatprep.mubr.f32.mxu0 %v2161_v5  ;;  %v2504_v3 = vld [vmem:[#allocation2 + $0x160] sm:$0xff] }
 0x533   :  { %2723 = vmatprep.mubr.f32.mxu1 %v2161_v5  ;;  %5923 = vmatprep.subr.bf16.mxu0 %v5922_v6  ;;  %v6000_v5 = vpack.c.bf16 %v2498_v61, %v2494_v60  ;;  %v6002_v6 = vpack.c.bf16 %v2507_v1, %v2503_v63  ;;  %v5940_v8 = vpack.c.bf16 %v2504_v3, %v2500_v13  ;;  %v2532_v60 = vld [vmem:[#allocation2 + $0x240] sm:$0xff]  ;;  %v2545_v63 = vld [vmem:[#allocation2 + $0x2a8] sm:$0xff]  ;;  %v2534_v13 = vld [vmem:[#allocation2 + $0x250] sm:$0xff] }
 0x534   :  { %5985 = vmatpush1.bf16.msra.mxu1 %v5984_v9  ;;  %v2515_v9 = vld [vmem:[#allocation2 + $0x1b8] sm:$0xff]  ;;  %v2536_v61 = vld [vmem:[#allocation2 + $0x260] sm:$0xff]  ;;  %v6016_v1 = vpack.c.bf16 %v2530_v52, %v2526_v51  ;;  %v2538_v3 = vld [vmem:[#allocation2 + $0x270] sm:$0xff] }
 0x535   :  { %5987 = vmatprep.subr.bf16.mxu1 %v5986_v10  ;;  %v5942_v10 = vpack.c.bf16 %v2513_v49, %v2509_v4  ;;  %v5956_v4 = vpack.c.bf16 %v2536_v61, %v2532_v60  ;;  %v2543_v49 = vld [vmem:[#allocation2 + $0x298] sm:$0xff]  ;;  %v2564_v51 = vld [vmem:[#allocation2 + $0x340] sm:$0xff]  ;;  %v2566_v60 = vld [vmem:[#allocation2 + $0x350] sm:$0xff] }
 0x536   :  { %5925 = vmatpush1.bf16.msra.mxu0 %v5924_v19  ;;  %v2517_v19 = vld [vmem:[#allocation2 + $0x1c8] sm:$0xff]  ;;  %v2568_v52 = vld [vmem:[#allocation2 + $0x360] sm:$0xff]  ;;  %v2570_v61 = vld [vmem:[#allocation2 + $0x370] sm:$0xff] }
 0x537   :  { %5927 = vmatprep.subr.bf16.mxu0 %v5926_v21  ;;  %v6006_v21 = vpack.c.bf16 %v2515_v9, %v2511_v18  ;;  %v2553_v18 = vld [vmem:[#allocation2 + $0x2e8] sm:$0xff]  ;;  %v6020_v9 = vpack.c.bf16 %v2538_v3, %v2534_v13  ;;  %v2572_v13 = vld [vmem:[#allocation2 + $0x380] sm:$0xff] }
 0x538   :  { %5989 = vmatpush1.bf16.msra.mxu1 %v5988_v31  ;;  %v2523_v31 = vld [vmem:[#allocation2 + $0x1f8] sm:$0xff]  ;;  %v2576_v3 = vld [vmem:[#allocation2 + $0x3a0] sm:$0xff] }
 0x539   :  { %5991 = vmatprep.subr.bf16.mxu1 %v5990_v32  ;;  %v5946_v32 = vpack.c.bf16 %v2521_v12, %v2517_v19  ;;  %v5960_v19 = vpack.c.bf16 %v2544_v53, %v2540_v7  ;;  %v2551_v12 = vld [vmem:[#allocation2 + $0x2d8] sm:$0xff]  ;;  %v2574_v7 = vld [vmem:[#allocation2 + $0x390] sm:$0xff] }
 0x53a   :  { %5929 = vmatpush1.bf16.msra.mxu0 %v5928_v34  ;;  %v2525_v34 = vld [vmem:[#allocation2 + $0x208] sm:$0xff]  ;;  %v2578_v53 = vld [vmem:[#allocation2 + $0x3b0] sm:$0xff] }
 0x53b   :  { %5931 = vmatprep.subr.bf16.mxu0 %v5930_v36  ;;  %v6010_v36 = vpack.c.bf16 %v2523_v31, %v2519_v28  ;;  %v2561_v28 = vld [vmem:[#allocation2 + $0x328] sm:$0xff]  ;;  %v6024_v31 = vpack.c.bf16 %v2546_v14, %v2542_v11  ;;  %v2580_v11 = vld [vmem:[#allocation2 + $0x3c0] sm:$0xff] }
 0x53c   :  { %5993 = vmatpush1.bf16.msra.mxu1 %v5992_v41  ;;  %v2531_v41 = vld [vmem:[#allocation2 + $0x238] sm:$0xff]  ;;  %v2584_v14 = vld [vmem:[#allocation2 + $0x3e0] sm:$0xff] }
 0x53d   :  { %5995 = vmatprep.subr.bf16.mxu1 %v5994_v42  ;;  %v5950_v42 = vpack.c.bf16 %v2529_v35, %v2525_v34  ;;  %v5964_v34 = vpack.c.bf16 %v2552_v25, %v2548_v22  ;;  %v2559_v35 = vld [vmem:[#allocation2 + $0x318] sm:$0xff]  ;;  %v5980_v22 = vpack.c.bf16 %v2584_v14, %v2580_v11 }
 0x53e   :  { %5933 = vmatpush1.bf16.msra.mxu0 %v5932_v46  ;;  %v2533_v46 = vld [vmem:[#allocation2 + $0x248] sm:$0xff] }
 0x53f   :  { %5935 = vmatprep.subr.bf16.mxu0 %v5934_v50  ;;  %v6014_v50 = vpack.c.bf16 %v2531_v41, %v2527_v40  ;;  %v2569_v40 = vld [vmem:[#allocation2 + $0x368] sm:$0xff]  ;;  %v6028_v41 = vpack.c.bf16 %v2554_v33, %v2550_v26  ;;  %v2758_v33 = vld [vmem:[#allocation4 + $0x20] sm:$0xff] }
 0x540   :  { %5997 = vmatpush1.bf16.msra.mxu1 %v5996_v58  ;;  %v2539_v58 = vld [vmem:[#allocation2 + $0x278] sm:$0xff] }
 0x541   :  { %5999 = vmatprep.subr.bf16.mxu1 %v5998_v0  ;;  %v5954_v0 = vpack.c.bf16 %v2537_v47, %v2533_v46  ;;  %v5968_v46 = vpack.c.bf16 %v2560_v38, %v2556_v37  ;;  %v2567_v47 = vld [vmem:[#allocation2 + $0x358] sm:$0xff]  ;;  %v2756_v37 = vld [vmem:[#allocation4 + $0x10] sm:$0xff] }
 0x542   :  { %5937 = vmatpush1.bf16.msra.mxu0 %v5936_v62  ;;  %v2541_v62 = vld [vmem:[#allocation2 + $0x288] sm:$0xff]  ;;  %v2760_v38 = vld [vmem:[#allocation4 + $0x30] sm:$0xff] }
 0x543   :  { %5939 = vmatprep.subr.bf16.mxu0 %v5938_v44  ;;  %v6018_v44 = vpack.c.bf16 %v2539_v58, %v2535_v55  ;;  %v2577_v55 = vld [vmem:[#allocation2 + $0x3a8] sm:$0xff]  ;;  %v6032_v58 = vpack.c.bf16 %v2562_v45, %v2558_v43  ;;  %v2766_v45 = vld [vmem:[#allocation4 + $0x60] sm:$0xff] }
 0x544   :  { %6001 = vmatpush1.bf16.msra.mxu1 %v6000_v5  ;;  %v2547_v5 = vld [vmem:[#allocation2 + $0x2b8] sm:$0xff] }
 0x545   :  { %6003 = vmatprep.subr.bf16.mxu1 %v6002_v6  ;;  %v5958_v6 = vpack.c.bf16 %v2545_v63, %v2541_v62  ;;  %v5972_v62 = vpack.c.bf16 %v2568_v52, %v2564_v51  ;;  %v2575_v63 = vld [vmem:[#allocation2 + $0x398] sm:$0xff]  ;;  %v2764_v51 = vld [vmem:[#allocation4 + $0x50] sm:$0xff] }
 0x546   :  { %5941 = vmatpush1.bf16.msra.mxu0 %v5940_v8  ;;  %v2549_v8 = vld [vmem:[#allocation2 + $0x2c8] sm:$0xff]  ;;  %v2768_v52 = vld [vmem:[#allocation4 + $0x70] sm:$0xff] }
 0x547   :  { %5943 = vmatprep.subr.bf16.mxu0 %v5942_v10  ;;  %v6022_v10 = vpack.c.bf16 %v2547_v5, %v2543_v49  ;;  %v2585_v49 = vld [vmem:[#allocation2 + $0x3e8] sm:$0xff]  ;;  %v6036_v5 = vpack.c.bf16 %v2570_v61, %v2566_v60  ;;  %v2774_v60 = vld [vmem:[#allocation4 + $0xa0] sm:$0xff] }
 0x548   :  { %6005 = vmatpush1.bf16.msra.mxu1 %v6004_v20  ;;  %v2555_v20 = vld [vmem:[#allocation2 + $0x2f8] sm:$0xff] }
 0x549   :  { %6007 = vmatprep.subr.bf16.mxu1 %v6006_v21  ;;  %v5962_v21 = vpack.c.bf16 %v2553_v18, %v2549_v8  ;;  %v5976_v8 = vpack.c.bf16 %v2576_v3, %v2572_v13  ;;  %v2583_v18 = vld [vmem:[#allocation2 + $0x3d8] sm:$0xff]  ;;  %v2776_v3 = vld [vmem:[#allocation4 + $0xb0] sm:$0xff] }
 0x54a   :  { %5945 = vmatpush1.bf16.msra.mxu0 %v5944_v27  ;;  %v2557_v27 = vld [vmem:[#allocation2 + $0x308] sm:$0xff] }
 0x54b   :  { %5947 = vmatprep.subr.bf16.mxu0 %v5946_v32  ;;  %v6026_v32 = vpack.c.bf16 %v2555_v20, %v2551_v12  ;;  %v2582_v20 = vld [vmem:[#allocation2 + $0x3d0] sm:$0xff] }
 0x54c   :  { %6009 = vmatpush1.bf16.msra.mxu1 %v6008_v23  ;;  %v2563_v23 = vld [vmem:[#allocation2 + $0x338] sm:$0xff] }
 0x54d   :  { %6011 = vmatprep.subr.bf16.mxu1 %v6010_v36  ;;  %v5966_v36 = vpack.c.bf16 %v2561_v28, %v2557_v27  ;;  %v4862_v27 = vld [vmem:[%s7526_s0 + $0x20] sm:$0xff]  ;;  %v2755_v28 = vld [vmem:[#allocation4 + $0x8] sm:$0xff] }
 0x54e   :  { %5949 = vmatpush1.bf16.msra.mxu0 %v5948_v39  ;;  %v2565_v39 = vld [vmem:[#allocation2 + $0x348] sm:$0xff] }
 0x54f   :  { %5951 = vmatprep.subr.bf16.mxu0 %v5950_v42  ;;  %v6030_v42 = vpack.c.bf16 %v2563_v23, %v2559_v35  ;;  %v2761_v35 = vld [vmem:[#allocation4 + $0x38] sm:$0xff] }
 0x550   :  { %6013 = vmatpush1.bf16.msra.mxu1 %v6012_v48  ;;  %v2571_v48 = vld [vmem:[#allocation2 + $0x378] sm:$0xff] }
 0x551   :  { %6015 = vmatprep.subr.bf16.mxu1 %v6014_v50  ;;  %v5970_v50 = vpack.c.bf16 %v2569_v40, %v2565_v39  ;;  %v6112_v39 = vpack.c.bf16 %v2760_v38, %v2756_v37  ;;  %v2763_v40 = vld [vmem:[#allocation4 + $0x48] sm:$0xff]  ;;  %v2794_v37 = vld [vmem:[#allocation4 + $0x140] sm:$0xff] }
 0x552   :  { %5953 = vmatpush1.bf16.msra.mxu0 %v5952_v54  ;;  %v2573_v54 = vld [vmem:[#allocation2 + $0x388] sm:$0xff]  ;;  %v2798_v38 = vld [vmem:[#allocation4 + $0x160] sm:$0xff] }
 0x553   :  { %5955 = vmatprep.subr.bf16.mxu0 %v5954_v0  ;;  %v6034_v0 = vpack.c.bf16 %v2571_v48, %v2567_v47  ;;  %v2769_v47 = vld [vmem:[#allocation4 + $0x78] sm:$0xff] }
 0x554   :  { %6017 = vmatpush1.bf16.msra.mxu1 %v6016_v1  ;;  %v2579_v1 = vld [vmem:[#allocation2 + $0x3b8] sm:$0xff] }
 0x555   :  { %6019 = vmatprep.subr.bf16.mxu1 %v6018_v44  ;;  %v5974_v44 = vpack.c.bf16 %v2577_v55, %v2573_v54  ;;  %v2771_v54 = vld [vmem:[#allocation4 + $0x88] sm:$0xff]  ;;  %v6116_v55 = vpack.c.bf16 %v2768_v52, %v2764_v51  ;;  %v2802_v51 = vld [vmem:[#allocation4 + $0x180] sm:$0xff] }
 0x556   :  { %5957 = vmatpush1.bf16.msra.mxu0 %v5956_v4  ;;  %v2581_v4 = vld [vmem:[#allocation2 + $0x3c8] sm:$0xff]  ;;  %v2806_v52 = vld [vmem:[#allocation4 + $0x1a0] sm:$0xff] }
 0x557   :  { %5959 = vmatprep.subr.bf16.mxu0 %v5958_v6  ;;  %v6038_v6 = vpack.c.bf16 %v2579_v1, %v2575_v63  ;;  %v2773_v63 = vld [vmem:[#allocation4 + $0x98] sm:$0xff] }
 0x558   :  { %6021 = vmatpush1.bf16.msra.mxu1 %v6020_v9  ;;  %v2587_v9 = vld [vmem:[#allocation2 + $0x3f8] sm:$0xff] }
 0x559   :  { %6023 = vmatprep.subr.bf16.mxu1 %v6022_v10  ;;  %v5978_v10 = vpack.c.bf16 %v2585_v49, %v2581_v4  ;;  %v6042_v12 = vpack.c.bf16 %v2587_v9, %v2583_v18  ;;  %v2777_v1 = vld [vmem:[#allocation4 + $0xb8] sm:$0xff]  ;;  %v2779_v4 = vld [vmem:[#allocation4 + $0xc8] sm:$0xff]  ;;  %v2780_v9 = vld [vmem:[#allocation4 + $0xd0] sm:$0xff] }
 0x55a   :  { %5961 = vmatpush1.bf16.msra.mxu0 %v5960_v19  ;;  %v6040_v19 = vpack.c.bf16 %v2578_v53, %v2574_v7  ;;  %v6118_v13 = vpack.c.bf16 %v2777_v1, %v2773_v63  ;;  %v2783_v49 = vld [vmem:[#allocation4 + $0xe8] sm:$0xff]  ;;  %v2778_v7 = vld [vmem:[#allocation4 + $0xc0] sm:$0xff]  ;;  %v2785_v18 = vld [vmem:[#allocation4 + $0xf8] sm:$0xff] }
 0x55b   :  { %5963 = vmatprep.subr.bf16.mxu0 %v5962_v21  ;;  %v2586_v21 = vld [vmem:[#allocation2 + $0x3f0] sm:$0xff]  ;;  %v2782_v53 = vld [vmem:[#allocation4 + $0xe0] sm:$0xff]  ;;  %v2811_v63 = vld [vmem:[#allocation4 + $0x1c8] sm:$0xff] }
 0x55c   :  { %6025 = vmatpush1.bf16.msra.mxu1 %v6024_v31  ;;  %v6044_v25 = vpack.c.bf16 %v2586_v21, %v2582_v20  ;;  %v2759_v31 = vld [vmem:[#allocation4 + $0x28] sm:$0xff]  ;;  %v6060_v11 = vpack.c.bf16 %v2782_v53, %v2778_v7  ;;  %v2786_v20 = vld [vmem:[#allocation4 + $0x100] sm:$0xff]  ;;  %v2816_v7 = vld [vmem:[#allocation4 + $0x1f0] sm:$0xff] }
 0x55d   :  { %6027 = vmatprep.subr.bf16.mxu1 %v6026_v32  ;;  %v2754_v32 = vld [vmem:[#allocation4] sm:$0xff]  ;;  %v6046_v26 = vpack.c.bf16 %v2759_v31, %v2755_v28  ;;  %v2793_v28 = vld [vmem:[#allocation4 + $0x138] sm:$0xff]  ;;  %v2815_v1 = vld [vmem:[#allocation4 + $0x1e8] sm:$0xff] }
 0x55e   :  { %5965 = vmatpush1.bf16.msra.mxu0 %v5964_v34  ;;  %v2757_v34 = vld [vmem:[#allocation4 + $0x18] sm:$0xff]  ;;  %v6048_v23 = vpack.c.bf16 %v2758_v33, %v2754_v32  ;;  %v2792_v33 = vld [vmem:[#allocation4 + $0x130] sm:$0xff] }
 0x55f   :  { %5967 = vmatprep.subr.bf16.mxu0 %v5966_v36  ;;  %v6110_v36 = vpack.c.bf16 %v2761_v35, %v2757_v34  ;;  %v2795_v35 = vld [vmem:[#allocation4 + $0x148] sm:$0xff] }
 0x560   :  { %6029 = vmatpush1.bf16.msra.mxu1 %v6028_v41  ;;  %v2767_v41 = vld [vmem:[#allocation4 + $0x68] sm:$0xff] }
 0x561   :  { %6031 = vmatprep.subr.bf16.mxu1 %v6030_v42  ;;  %v2762_v42 = vld [vmem:[#allocation4 + $0x40] sm:$0xff]  ;;  %v6050_v43 = vpack.c.bf16 %v2767_v41, %v2763_v40  ;;  %v6068_v40 = vpack.c.bf16 %v2798_v38, %v2794_v37  ;;  %v2801_v41 = vld [vmem:[#allocation4 + $0x178] sm:$0xff]  ;;  %v2832_v37 = vld [vmem:[#allocation4 + $0x270] sm:$0xff] }
 0x562   :  { %5969 = vmatpush1.bf16.msra.mxu0 %v5968_v46  ;;  %v2765_v46 = vld [vmem:[#allocation4 + $0x58] sm:$0xff]  ;;  %v6052_v48 = vpack.c.bf16 %v2766_v45, %v2762_v42  ;;  %v2796_v42 = vld [vmem:[#allocation4 + $0x150] sm:$0xff] }
 0x563   :  { %5971 = vmatprep.subr.bf16.mxu0 %v5970_v50  ;;  %v6114_v50 = vpack.c.bf16 %v2769_v47, %v2765_v46  ;;  %v2803_v47 = vld [vmem:[#allocation4 + $0x188] sm:$0xff] }
 0x564   :  { %6033 = vmatpush1.bf16.msra.mxu1 %v6032_v58  ;;  %v2775_v58 = vld [vmem:[#allocation4 + $0xa8] sm:$0xff] }
 0x565   :  { %6035 = vmatprep.subr.bf16.mxu1 %v6034_v0  ;;  %v2770_v0 = vld [vmem:[#allocation4 + $0x80] sm:$0xff]  ;;  %v6054_v61 = vpack.c.bf16 %v2775_v58, %v2771_v54  ;;  %v2805_v54 = vld [vmem:[#allocation4 + $0x198] sm:$0xff] }
 0x566   :  { %5973 = vmatpush1.bf16.msra.mxu0 %v5972_v62  ;;  %v6056_v62 = vpack.c.bf16 %v2774_v60, %v2770_v0  ;;  %v2809_v58 = vld [vmem:[#allocation4 + $0x1b8] sm:$0xff]  ;;  %v2804_v0 = vld [vmem:[#allocation4 + $0x190] sm:$0xff] }
 0x567   :  { %5975 = vmatprep.subr.bf16.mxu0 %v5974_v44  ;;  %v2772_v44 = vld [vmem:[#allocation4 + $0x90] sm:$0xff] }
 0x568   :  { %6037 = vmatpush1.bf16.msra.mxu1 %v6036_v5  ;;  %v6120_v5 = vpack.c.bf16 %v2776_v3, %v2772_v44  ;;  %v2808_v60 = vld [vmem:[#allocation4 + $0x1b0] sm:$0xff]  ;;  %v6074_v44 = vpack.c.bf16 %v2815_v1, %v2811_v63  ;;  %v2814_v3 = vld [vmem:[#allocation4 + $0x1e0] sm:$0xff]  ;;  %v2849_v1 = vld [vmem:[#allocation4 + $0x2f8] sm:$0xff] }
 0x569   :  { %6039 = vmatprep.subr.bf16.mxu1 %v6038_v6  ;;  %v6058_v6 = vpack.c.bf16 %v2783_v49, %v2779_v4  ;;  %v2813_v4 = vld [vmem:[#allocation4 + $0x1d8] sm:$0xff] }
 0x56a   :  { %5977 = vmatpush1.bf16.msra.mxu0 %v5976_v8  ;;  %v2781_v8 = vld [vmem:[#allocation4 + $0xd8] sm:$0xff] }
 0x56b   :  { %5979 = vmatprep.subr.bf16.mxu0 %v5978_v10  ;;  %v2784_v10 = vld [vmem:[#allocation4 + $0xf0] sm:$0xff]  ;;  %v6122_v14 = vpack.c.bf16 %v2785_v18, %v2781_v8  ;;  %v2819_v18 = vld [vmem:[#allocation4 + $0x208] sm:$0xff] }
 0x56c   :  { %6041 = vmatpush1.bf16.msra.mxu1 %v6040_v19  ;;  %v2787_v19 = vld [vmem:[#allocation4 + $0x108] sm:$0xff]  ;;  %v6124_v21 = vpack.c.bf16 %v2784_v10, %v2780_v9 }
 0x56d   :  { %6043 = vmatprep.subr.bf16.mxu1 %v6042_v12  ;;  %v2791_v12 = vld [vmem:[#allocation4 + $0x128] sm:$0xff] }
 0x56e   :  { %5981 = vmatpush1.bf16.msra.mxu0 %v5980_v22  ;;  %v6062_v22 = vpack.c.bf16 %v2791_v12, %v2787_v19  ;;  %v2823_v9 = vld [vmem:[#allocation4 + $0x228] sm:$0xff]  ;;  %v2821_v19 = vld [vmem:[#allocation4 + $0x218] sm:$0xff] }
 0x56f   :  { %6047 = vmatprep.subr.bf16.mxu0 %v6046_v26  ;;  %v2788_v26 = vld [vmem:[#allocation4 + $0x110] sm:$0xff]  ;;  %v6078_v10 = vpack.c.bf16 %v2823_v9, %v2819_v18  ;;  %v2857_v9 = vld [vmem:[#allocation4 + $0x338] sm:$0xff] }
 0x570   :  { %6045 = vmatpush1.bf16.msra.mxu1 %v6044_v25  ;;  %v2790_v25 = vld [vmem:[#allocation4 + $0x120] sm:$0xff]  ;;  %v6128_v34 = vpack.c.bf16 %v2792_v33, %v2788_v26 }
 0x571   :  { %2653 = vmatmul.mubr.f32.vlgmr.msra.gmra.mrb[16].mxu0 %v4862_v27  ;;  %6111 = vmatprep.subr.bf16.mxu1 %v6110_v36  ;;  %v6064_v32 = vpack.c.bf16 %v2790_v25, %v2786_v20  ;;  %v2825_v20 = vld [vmem:[#allocation4 + $0x238] sm:$0xff]  ;;  %v2826_v26 = vld [vmem:[#allocation4 + $0x240] sm:$0xff] }
 0x572   :  { %6049 = vmatpush1.bf16.msra.mxu0 %v6048_v23  ;;  %v2799_v23 = vld [vmem:[#allocation4 + $0x168] sm:$0xff]  ;;  %v6142_v25 = vpack.c.bf16 %v2825_v20, %v2821_v19  ;;  %v2830_v33 = vld [vmem:[#allocation4 + $0x260] sm:$0xff] }
 0x573   :  { %2724 = vmatmul.mubr.f32.vlgmr.msra.gmra.mrb[16].mxu1 %v4862_v27  ;;  %6051 = vmatprep.subr.bf16.mxu0 %v6050_v43  ;;  %v2789_v27 = vld [vmem:[#allocation4 + $0x118] sm:$0xff]  ;;  %v6066_v36 = vpack.c.bf16 %v2799_v23, %v2795_v35  ;;  %v2800_v43 = vld [vmem:[#allocation4 + $0x170] sm:$0xff]  ;;  %v6084_v35 = vpack.c.bf16 %v2830_v33, %v2826_v26  ;;  %v2863_v20 = vld [vmem:[#allocation4 + $0x368] sm:$0xff] }
 0x574   :  { %6113 = vmatpush1.bf16.msra.mxu1 %v6112_v39  ;;  %v6126_v31 = vpack.c.bf16 %v2793_v28, %v2789_v27  ;;  %v2797_v39 = vld [vmem:[#allocation4 + $0x158] sm:$0xff]  ;;  %v6132_v46 = vpack.c.bf16 %v2800_v43, %v2796_v42  ;;  %v2827_v28 = vld [vmem:[#allocation4 + $0x248] sm:$0xff]  ;;  %v2834_v43 = vld [vmem:[#allocation4 + $0x280] sm:$0xff] }
 0x575   :  { %6115 = vmatprep.subr.bf16.mxu1 %v6114_v50  ;;  %v6130_v45 = vpack.c.bf16 %v2801_v41, %v2797_v39  ;;  %v2833_v23 = vld [vmem:[#allocation4 + $0x278] sm:$0xff]  ;;  %v2839_v41 = vld [vmem:[#allocation4 + $0x2a8] sm:$0xff]  ;;  %v2864_v26 = vld [vmem:[#allocation4 + $0x370] sm:$0xff] }
 0x576   :  { %6053 = vmatpush1.bf16.msra.mxu0 %v6052_v48  ;;  %v2807_v48 = vld [vmem:[#allocation4 + $0x1a8] sm:$0xff] }
 0x577   :  { %6055 = vmatprep.subr.bf16.mxu0 %v6054_v61  ;;  %v6070_v50 = vpack.c.bf16 %v2807_v48, %v2803_v47  ;;  %v6134_v61 = vpack.c.bf16 %v2809_v58, %v2805_v54  ;;  %v2841_v48 = vld [vmem:[#allocation4 + $0x2b8] sm:$0xff]  ;;  %v2847_v58 = vld [vmem:[#allocation4 + $0x2e8] sm:$0xff] }
 0x578   :  { %6117 = vmatpush1.bf16.msra.mxu1 %v6116_v55  ;;  %v6072_v55 = vpack.c.bf16 %v2806_v52, %v2802_v51  ;;  %v2840_v51 = vld [vmem:[#allocation4 + $0x2b0] sm:$0xff] }
 0x579   :  { %6119 = vmatprep.subr.bf16.mxu1 %v6118_v13  ;;  %v2810_v13 = vld [vmem:[#allocation4 + $0x1c0] sm:$0xff] }
 0x57a   :  { %6057 = vmatpush1.bf16.msra.mxu0 %v6056_v62  ;;  %v6136_v62 = vpack.c.bf16 %v2808_v60, %v2804_v0  ;;  %v6076_v49 = vpack.c.bf16 %v2814_v3, %v2810_v13  ;;  %v2842_v60 = vld [vmem:[#allocation4 + $0x2c0] sm:$0xff]  ;;  %v2848_v13 = vld [vmem:[#allocation4 + $0x2f0] sm:$0xff] }
 0x57b   :  { %6059 = vmatprep.subr.bf16.mxu0 %v6058_v6  ;;  %v2812_v6 = vld [vmem:[#allocation4 + $0x1d0] sm:$0xff] }
 0x57c   :  { %6121 = vmatpush1.bf16.msra.mxu1 %v6120_v5  ;;  %v2817_v5 = vld [vmem:[#allocation4 + $0x1f8] sm:$0xff]  ;;  %v6140_v8 = vpack.c.bf16 %v2816_v7, %v2812_v6  ;;  %v2850_v7 = vld [vmem:[#allocation4 + $0x300] sm:$0xff] }
 0x57d   :  { %6123 = vmatprep.subr.bf16.mxu1 %v6122_v14  ;;  %v6138_v53 = vpack.c.bf16 %v2817_v5, %v2813_v4  ;;  %v2822_v14 = vld [vmem:[#allocation4 + $0x220] sm:$0xff]  ;;  %v2855_v5 = vld [vmem:[#allocation4 + $0x328] sm:$0xff] }
 0x57e   :  { %6061 = vmatpush1.bf16.msra.mxu0 %v6060_v11  ;;  %v2818_v11 = vld [vmem:[#allocation4 + $0x200] sm:$0xff] }
 0x57f   :  { %6063 = vmatprep.subr.bf16.mxu0 %v6062_v22  ;;  %v6080_v12 = vpack.c.bf16 %v2822_v14, %v2818_v11  ;;  %v2824_v22 = vld [vmem:[#allocation4 + $0x230] sm:$0xff] }
 0x580   :  { %6125 = vmatpush1.bf16.msra.mxu1 %v6124_v21  ;;  %v2820_v21 = vld [vmem:[#allocation4 + $0x210] sm:$0xff] }
 0x581   :  { %6127 = vmatprep.subr.bf16.mxu1 %v6126_v31  ;;  %v6144_v27 = vpack.c.bf16 %v2824_v22, %v2820_v21  ;;  %v2831_v31 = vld [vmem:[#allocation4 + $0x268] sm:$0xff]  ;;  %v2856_v11 = vld [vmem:[#allocation4 + $0x330] sm:$0xff]  ;;  %v2858_v22 = vld [vmem:[#allocation4 + $0x340] sm:$0xff] }
 0x582   :  { %6065 = vmatpush1.bf16.msra.mxu0 %v6064_v32  ;;  %v6082_v32 = vpack.c.bf16 %v2831_v31, %v2827_v28  ;;  %v2865_v31 = vld [vmem:[#allocation4 + $0x378] sm:$0xff] }
 0x583   :  { %6067 = vmatprep.subr.bf16.mxu0 %v6066_v36  ;;  %v2828_v36 = vld [vmem:[#allocation4 + $0x250] sm:$0xff] }
 0x584   :  { %6129 = vmatpush1.bf16.msra.mxu1 %v6128_v34  ;;  %v2829_v34 = vld [vmem:[#allocation4 + $0x258] sm:$0xff]  ;;  %v6148_v39 = vpack.c.bf16 %v2832_v37, %v2828_v36  ;;  %v2866_v36 = vld [vmem:[#allocation4 + $0x380] sm:$0xff] }
 0x585   :  { %6131 = vmatprep.subr.bf16.mxu1 %v6130_v45  ;;  %v6146_v38 = vpack.c.bf16 %v2833_v23, %v2829_v34  ;;  %v2838_v45 = vld [vmem:[#allocation4 + $0x2a0] sm:$0xff]  ;;  %v2871_v23 = vld [vmem:[#allocation4 + $0x3a8] sm:$0xff] }
 0x586   :  { %6069 = vmatpush1.bf16.msra.mxu0 %v6068_v40  ;;  %v2835_v40 = vld [vmem:[#allocation4 + $0x288] sm:$0xff]  ;;  %v6088_v47 = vpack.c.bf16 %v2838_v45, %v2834_v43  ;;  %v2868_v43 = vld [vmem:[#allocation4 + $0x390] sm:$0xff] }
 0x587   :  { %6071 = vmatprep.subr.bf16.mxu0 %v6070_v50  ;;  %v6086_v42 = vpack.c.bf16 %v2839_v41, %v2835_v40  ;;  %v2836_v50 = vld [vmem:[#allocation4 + $0x290] sm:$0xff]  ;;  %v2873_v40 = vld [vmem:[#allocation4 + $0x3b8] sm:$0xff] }
 0x588   :  { %6133 = vmatpush1.bf16.msra.mxu1 %v6132_v46  ;;  %v2837_v46 = vld [vmem:[#allocation4 + $0x298] sm:$0xff]  ;;  %v6152_v54 = vpack.c.bf16 %v2840_v51, %v2836_v50  ;;  %v2872_v45 = vld [vmem:[#allocation4 + $0x3b0] sm:$0xff]  ;;  %v2874_v50 = vld [vmem:[#allocation4 + $0x3c0] sm:$0xff] }
 0x589   :  { %6135 = vmatprep.subr.bf16.mxu1 %v6134_v61  ;;  %v6150_v52 = vpack.c.bf16 %v2841_v48, %v2837_v46  ;;  %v2846_v61 = vld [vmem:[#allocation4 + $0x2e0] sm:$0xff]  ;;  %v2875_v46 = vld [vmem:[#allocation4 + $0x3c8] sm:$0xff] }
 0x58a   :  { %6073 = vmatpush1.bf16.msra.mxu0 %v6072_v55  ;;  %v2843_v55 = vld [vmem:[#allocation4 + $0x2c8] sm:$0xff]  ;;  %v6092_v63 = vpack.c.bf16 %v2846_v61, %v2842_v60  ;;  %v2878_v51 = vld [vmem:[#allocation4 + $0x3e0] sm:$0xff]  ;;  %v2880_v61 = vld [vmem:[#allocation4 + $0x3f0] sm:$0xff] }
 0x58b   :  { %6075 = vmatprep.subr.bf16.mxu0 %v6074_v44  ;;  %v6090_v0 = vpack.c.bf16 %v2847_v58, %v2843_v55  ;;  %v2844_v44 = vld [vmem:[#allocation4 + $0x2d0] sm:$0xff]  ;;  %v2879_v48 = vld [vmem:[#allocation4 + $0x3e8] sm:$0xff]  ;;  %v2881_v55 = vld [vmem:[#allocation4 + $0x3f8] sm:$0xff] }
 0x58c   :  { %6137 = vmatpush1.bf16.msra.mxu1 %v6136_v62  ;;  %v2845_v62 = vld [vmem:[#allocation4 + $0x2d8] sm:$0xff]  ;;  %v6156_v4 = vpack.c.bf16 %v2848_v13, %v2844_v44  ;;  %v2876_v58 = vld [vmem:[#allocation4 + $0x3d0] sm:$0xff] }
 0x58d   :  { %6139 = vmatprep.subr.bf16.mxu1 %v6138_v53  ;;  %v6154_v3 = vpack.c.bf16 %v2849_v1, %v2845_v62  ;;  %v2854_v53 = vld [vmem:[#allocation4 + $0x320] sm:$0xff]  ;;  %v3053_v62 = vld [vmem:[#allocation2 + $0x8] sm:$0xff]  ;;  %v6172_v44 = vpack.c.bf16 %v2880_v61, %v2876_v58  ;;  %v3055_v13 = vld [vmem:[#allocation2 + $0x18] sm:$0xff] }
 0x58e   :  { %6077 = vmatpush1.bf16.msra.mxu0 %v6076_v49  ;;  %v2851_v49 = vld [vmem:[#allocation4 + $0x308] sm:$0xff]  ;;  %v6096_v18 = vpack.c.bf16 %v2854_v53, %v2850_v7 }
 0x58f   :  { %6079 = vmatprep.subr.bf16.mxu0 %v6078_v10  ;;  %v6094_v6 = vpack.c.bf16 %v2855_v5, %v2851_v49  ;;  %v2852_v10 = vld [vmem:[#allocation4 + $0x310] sm:$0xff] }
 0x590   :  { %6141 = vmatpush1.bf16.msra.mxu1 %v6140_v8  ;;  %v2853_v8 = vld [vmem:[#allocation4 + $0x318] sm:$0xff]  ;;  %v6160_v19 = vpack.c.bf16 %v2856_v11, %v2852_v10 }
 0x591   :  { %6143 = vmatprep.subr.bf16.mxu1 %v6142_v25  ;;  %v6158_v14 = vpack.c.bf16 %v2857_v9, %v2853_v8  ;;  %v2862_v25 = vld [vmem:[#allocation4 + $0x360] sm:$0xff] }
 0x592   :  { %6081 = vmatpush1.bf16.msra.mxu0 %v6080_v12  ;;  %v2859_v12 = vld [vmem:[#allocation4 + $0x348] sm:$0xff]  ;;  %v6100_v28 = vpack.c.bf16 %v2862_v25, %v2858_v22 }
 0x593   :  { %6083 = vmatprep.subr.bf16.mxu0 %v6082_v32  ;;  %v6098_v21 = vpack.c.bf16 %v2863_v20, %v2859_v12  ;;  %v2860_v32 = vld [vmem:[#allocation4 + $0x350] sm:$0xff] }
 0x594   :  { %6145 = vmatpush1.bf16.msra.mxu1 %v6144_v27  ;;  %v2861_v27 = vld [vmem:[#allocation4 + $0x358] sm:$0xff]  ;;  %v6164_v34 = vpack.c.bf16 %v2864_v26, %v2860_v32 }
 0x595   :  { %6147 = vmatprep.subr.bf16.mxu1 %v6146_v38  ;;  %v6162_v33 = vpack.c.bf16 %v2865_v31, %v2861_v27  ;;  %v2870_v38 = vld [vmem:[#allocation4 + $0x3a0] sm:$0xff] }
 0x596   :  { %6085 = vmatpush1.bf16.msra.mxu0 %v6084_v35  ;;  %v2867_v35 = vld [vmem:[#allocation4 + $0x388] sm:$0xff]  ;;  %v6104_v41 = vpack.c.bf16 %v2870_v38, %v2866_v36 }
 0x597   :  { %6087 = vmatprep.subr.bf16.mxu0 %v6086_v42  ;;  %v6102_v37 = vpack.c.bf16 %v2871_v23, %v2867_v35 }
 0x598   :  { %6149 = vmatpush1.bf16.msra.mxu1 %v6148_v39  ;;  %v2869_v39 = vld [vmem:[#allocation4 + $0x398] sm:$0xff] }
 0x599   :  { %6151 = vmatprep.subr.bf16.mxu1 %v6150_v52  ;;  %v6166_v42 = vpack.c.bf16 %v2873_v40, %v2869_v39  ;;  %v6106_v52 = vpack.c.bf16 %v2879_v48, %v2875_v46 }
 0x59a   :  { %6089 = vmatpush1.bf16.msra.mxu0 %v6088_v47  ;;  %v6168_v47 = vpack.c.bf16 %v2872_v45, %v2868_v43 }
 0x59b   :  { %6091 = vmatprep.subr.bf16.mxu0 %v6090_v0  ;;  %v6108_v0 = vpack.c.bf16 %v2878_v51, %v2874_v50 }
 0x59c   :  { %6153 = vmatpush1.bf16.msra.mxu1 %v6152_v54  ;;  %v2877_v54 = vld [vmem:[#allocation4 + $0x3d8] sm:$0xff] }
 0x59d   :  { %6155 = vmatprep.subr.bf16.mxu1 %v6154_v3  ;;  %v6170_v60 = vpack.c.bf16 %v2881_v55, %v2877_v54  ;;  %v3059_v3 = vld [vmem:[#allocation2 + $0x38] sm:$0xff] }
 0x59e   :  { %6093 = vmatpush1.bf16.msra.mxu0 %v6092_v63  ;;  %v3057_v63 = vld [vmem:[#allocation2 + $0x28] sm:$0xff] }
 0x59f   :  { %6095 = vmatprep.subr.bf16.mxu0 %v6094_v6  ;;  %v6174_v1 = vpack.c.bf16 %v3057_v63, %v3053_v62  ;;  %v3052_v63 = vld [vmem:[#allocation2] sm:$0xff] }
 0x5a0   :  { %6157 = vmatpush1.bf16.msra.mxu1 %v6156_v4  ;;  %v6238_v4 = vpack.c.bf16 %v3059_v3, %v3055_v13  ;;  %v3061_v13 = vld [vmem:[#allocation2 + $0x48] sm:$0xff] }
 0x5a1   :  { %6159 = vmatprep.subr.bf16.mxu1 %v6158_v14  ;;  %v3065_v3 = vld [vmem:[#allocation2 + $0x68] sm:$0xff] }
 0x5a2   :  { %6097 = vmatpush1.bf16.msra.mxu0 %v6096_v18 }
 0x5a3   :  { %6099 = vmatprep.subr.bf16.mxu0 %v6098_v21 }
 0x5a4   :  { %6161 = vmatpush1.bf16.msra.mxu1 %v6160_v19 }
 0x5a5   :  { %6163 = vmatprep.subr.bf16.mxu1 %v6162_v33 }
 0x5a6   :  { %6101 = vmatpush1.bf16.msra.mxu0 %v6100_v28 }
 0x5a7   :  { %6103 = vmatprep.subr.bf16.mxu0 %v6102_v37 }
 0x5a8   :  { %6165 = vmatpush1.bf16.msra.mxu1 %v6164_v34 }
 0x5a9   :  { %6167 = vmatprep.subr.bf16.mxu1 %v6166_v42 }
 0x5aa   :  { %6105 = vmatpush1.bf16.msra.mxu0 %v6104_v41 }
 0x5ab   :  { %6107 = vmatprep.subr.bf16.mxu0 %v6106_v52 }
 0x5ac   :  { %6169 = vmatpush1.bf16.msra.mxu1 %v6168_v47 }
 0x5ad   :  { %6171 = vmatprep.subr.bf16.mxu1 %v6170_v60 }
 0x5ae   :  { %6109 = vmatpush1.bf16.msra.mxu0 %v6108_v0 }
 0x5af   :  { %6175 = vmatprep.subr.bf16.mxu0 %v6174_v1  ;;  %v3056_v1 = vld [vmem:[#allocation2 + $0x20] sm:$0xff] }
 0x5b0   :  { %6173 = vmatpush1.bf16.msra.mxu1 %v6172_v44 }
 0x5b1   :  { %6239 = vmatprep.subr.bf16.mxu1 %v6238_v4  ;;  %v3054_v4 = vld [vmem:[#allocation2 + $0x10] sm:$0xff] }
 0x604   :  { %v2356_v49 = vpop.f32.mrb[14].mxu0  ;;  %v2427_v5 = vpop.f32.mrb[14].mxu1 }
 0x605   :  { %v2357_v6 = vadd.f32 %v2356_v49, %v7357_v56  ;;  %v2358_v7 = vpop.f32.mrb[15].mxu0  ;;  %v2429_v53 = vpop.f32.mrb[15].mxu1  ;;  %v2428_v14 = vadd.f32 %v2427_v5, %v7372_v15  ;;  %v3058_v49 = vld [vmem:[#allocation2 + $0x30] sm:$0xff] }
 0x606   :  { %v2359_v8 = vadd.f32 %v2358_v7, %v7361_v57  ;;  %v2430_v10 = vadd.f32 %v2429_v53, %v7367_v2  ;;  %v3063_v7 = vld [vmem:[#allocation2 + $0x58] sm:$0xff] }
 0x607   :  { %v4858_v18 = vmul.f32 -1.442695, %v2357_v6  ;;  %v6176_v6 = vpack.c.bf16 %v3056_v1, %v3052_v63  ;;  %v3067_v53 = vld [vmem:[#allocation2 + $0x78] sm:$0xff]  ;;  %v3086_v1 = vld [vmem:[#allocation2 + $0x110] sm:$0xff] }
 0x608   :  { %v4859_v9 = vmul.f32 -1.442695, %v2359_v8  ;;  %v4860_v11 = vmul.f32 -1.442695, %v2430_v10  ;;  %v3069_v10 = vld [vmem:[#allocation2 + $0x88] sm:$0xff] }
 0x609   :  { %7059 = vpow2.f32 %v4858_v18  ;;  %v6178_v18 = vpack.c.bf16 %v3065_v3, %v3061_v13  ;;  %v3095_v3 = vld [vmem:[#allocation2 + $0x158] sm:$0xff] }
 0x60a   :  { %7061 = vpow2.f32 %v4859_v9  ;;  %v3060_v9 = vld [vmem:[#allocation2 + $0x40] sm:$0xff] }
 0x60b   :  { %7063 = vpow2.f32 %v4860_v11  ;;  %v3073_v11 = vld [vmem:[#allocation2 + $0xa8] sm:$0xff] }
 0x60c   :  { %7065 = vtanh.f32 %v2428_v14  ;;  %v6240_v14 = vpack.c.bf16 %v3058_v49, %v3054_v4  ;;  %v3099_v4 = vld [vmem:[#allocation2 + $0x178] sm:$0xff] }
 0x613   :  { %v7060_v19 = vpop.eup %7059 }
 0x614   :  { %v7062_v12 = vpop.eup %7061  ;;  %v2435_v20 = vadd.f32 1.0, %v7060_v19  ;;  %v6242_v19 = vpack.c.bf16 %v3067_v53, %v3063_v7  ;;  %v3101_v7 = vld [vmem:[#allocation2 + $0x188] sm:$0xff] }
 0x615   :  { %v2441_v21 = vadd.f32 1.0, %v7062_v12  ;;  %v7064_v22 = vpop.eup %7063  ;;  %v3062_v12 = vld [vmem:[#allocation2 + $0x50] sm:$0xff]  ;;  %v3105_v53 = vld [vmem:[#allocation2 + $0x1a8] sm:$0xff] }
 0x616   :  { %7067 = vrcp.f32 %v2435_v20  ;;  %v7066_v25 = vpop.eup %7065  ;;  %v2448_v32 = vadd.f32 1.0, %v7064_v22  ;;  %v3066_v20 = vld [vmem:[#allocation2 + $0x70] sm:$0xff]  ;;  %v3071_v22 = vld [vmem:[#allocation2 + $0x98] sm:$0xff] }
 0x617   :  { %7069 = vrcp.f32 %v2441_v21 }
 0x618   :  { %7071 = vrcp.f32 %v2448_v32  ;;  %v3077_v32 = vld [vmem:[#allocation2 + $0xc8] sm:$0xff] }
 0x620   :  { %v7068_v27 = vpop.eup %7067 }
 0x621   :  { %v7070_v28 = vpop.eup %7069  ;;  %v2452_v31 = vmul.f32 %v7068_v27, %v7066_v25  ;;  %v3075_v25 = vld [vmem:[#allocation2 + $0xb8] sm:$0xff]  ;;  %v6182_v27 = vpack.c.bf16 %v3073_v11, %v3069_v10 }
 0x622   :  { %v2451_v26 = vmul.f32 %v7070_v28, %v7419_v29  ;;  %v7072_v34 = vpop.eup %7071  ;;  %v3068_v28 = vld [vmem:[#allocation2 + $0x80] sm:$0xff]  ;;  %v3103_v11 = vld [vmem:[#allocation2 + $0x198] sm:$0xff] }
 0x624   :  { %v7441_v33 = vadd.f32 %v2452_v31, %v2451_v26  ;;  %v3072_v31 = vld [vmem:[#allocation2 + $0xa0] sm:$0xff]  ;;  %v3081_v26 = vld [vmem:[#allocation2 + $0xe8] sm:$0xff] }
 0x626   :  { %7073 = vtanh.f32 %v7441_v33 }
 0x630   :  { %v7074_v35 = vpop.eup %7073 }
 0x631   :  { %v2455_v23 = vmul.f32 %v7074_v35, %v7072_v34  ;;  %v6244_v34 = vpack.c.bf16 %v3066_v20, %v3062_v12  ;;  %v6246_v35 = vpack.c.bf16 %v3075_v25, %v3071_v22  ;;  %v3100_v12 = vld [vmem:[#allocation2 + $0x180] sm:$0xff]  ;;  %v3113_v22 = vld [vmem:[#allocation2 + $0x1e8] sm:$0xff] }
 0x632   :  { %v3104_v20 = vld [vmem:[#allocation2 + $0x1a0] sm:$0xff] }
 0x633   :  { %4861 = vst [vmem:[%s7531_s5 + $0x18] sm:$0xff] %v2455_v23  ;;  %2946 = vmatprep.mubr.f32.mxu0 %v2455_v23  ;;  %3017 = vmatprep.mubr.f32.mxu1 %v2455_v23  ;;  %v3070_v23 = vld [vmem:[#allocation2 + $0x90] sm:$0xff] }
 0x644   :  { %v2654_v36 = vpop.f32.mrb[16].mxu0 }
 0x645   :  { %v2655_v37 = vadd.f32 %v2654_v36, %v7326_v16  ;;  %v2656_v38 = vpop.f32.mrb[17].mxu0  ;;  %v3074_v36 = vld [vmem:[#allocation2 + $0xb0] sm:$0xff] }
 0x646   :  { %v2657_v29 = vadd.f32 %v2656_v38, %v7330_v17  ;;  %v2725_v39 = vpop.f32.mrb[16].mxu1  ;;  %v3079_v38 = vld [vmem:[#allocation2 + $0xd8] sm:$0xff] }
 0x647   :  { %v4863_v40 = vmul.f32 -1.442695, %v2655_v37  ;;  %v2727_v41 = vpop.f32.mrb[17].mxu1  ;;  %v2726_v46 = vadd.f32 %v2725_v39, %v7343_v30  ;;  %v6184_v37 = vpack.c.bf16 %v3072_v31, %v3068_v28  ;;  %v6186_v39 = vpack.c.bf16 %v3081_v26, %v3077_v32  ;;  %v3102_v28 = vld [vmem:[#allocation2 + $0x190] sm:$0xff]  ;;  %v3111_v26 = vld [vmem:[#allocation2 + $0x1d8] sm:$0xff] }
 0x648   :  { %v4864_v42 = vmul.f32 -1.442695, %v2657_v29  ;;  %v2728_v43 = vadd.f32 %v2727_v41, %v7337_v24  ;;  %v3083_v29 = vld [vmem:[#allocation2 + $0xf8] sm:$0xff]  ;;  %v3080_v41 = vld [vmem:[#allocation2 + $0xe0] sm:$0xff]  ;;  %v3106_v31 = vld [vmem:[#allocation2 + $0x1b0] sm:$0xff]  ;;  %v6200_v32 = vpack.c.bf16 %v3104_v20, %v3100_v12 }
 0x649   :  { %7075 = vpow2.f32 %v4863_v40  ;;  %v3076_v40 = vld [vmem:[#allocation2 + $0xc0] sm:$0xff]  ;;  %v3134_v12 = vld [vmem:[#allocation2 + $0x290] sm:$0xff] }
 0x64a   :  { %7077 = vpow2.f32 %v4864_v42  ;;  %v4865_v45 = vmul.f32 -1.442695, %v2728_v43  ;;  %v3085_v42 = vld [vmem:[#allocation2 + $0x108] sm:$0xff]  ;;  %v3138_v20 = vld [vmem:[#allocation2 + $0x2b0] sm:$0xff] }
 0x64b   :  { %v3089_v43 = vld [vmem:[#allocation2 + $0x128] sm:$0xff] }
 0x64c   :  { %7079 = vpow2.f32 %v4865_v45  ;;  %v6248_v45 = vpack.c.bf16 %v3074_v36, %v3070_v23  ;;  %v3108_v23 = vld [vmem:[#allocation2 + $0x1c0] sm:$0xff] }
 0x64d   :  { %7081 = vtanh.f32 %v2726_v46  ;;  %v6250_v46 = vpack.c.bf16 %v3083_v29, %v3079_v38  ;;  %v3112_v36 = vld [vmem:[#allocation2 + $0x1e0] sm:$0xff]  ;;  %v3121_v38 = vld [vmem:[#allocation2 + $0x228] sm:$0xff]  ;;  %v6264_v29 = vpack.c.bf16 %v3106_v31, %v3102_v28 }
 0x64e   :  { %v3140_v28 = vld [vmem:[#allocation2 + $0x2c0] sm:$0xff] }
 0x64f   :  { %v3144_v31 = vld [vmem:[#allocation2 + $0x2e0] sm:$0xff] }
 0x653   :  { %v7076_v47 = vpop.eup %7075 }
 0x654   :  { %v7078_v48 = vpop.eup %7077  ;;  %v2733_v50 = vadd.f32 1.0, %v7076_v47  ;;  %v3078_v47 = vld [vmem:[#allocation2 + $0xd0] sm:$0xff] }
 0x655   :  { %v2739_v51 = vadd.f32 1.0, %v7078_v48  ;;  %v3082_v48 = vld [vmem:[#allocation2 + $0xf0] sm:$0xff] }
 0x656   :  { %7083 = vrcp.f32 %v2733_v50  ;;  %v7080_v52 = vpop.eup %7079  ;;  %v6188_v50 = vpack.c.bf16 %v3080_v41, %v3076_v40  ;;  %v3110_v40 = vld [vmem:[#allocation2 + $0x1d0] sm:$0xff] }
 0x657   :  { %7085 = vrcp.f32 %v2739_v51  ;;  %v7082_v54 = vpop.eup %7081  ;;  %v2746_v58 = vadd.f32 1.0, %v7080_v52  ;;  %v3087_v51 = vld [vmem:[#allocation2 + $0x118] sm:$0xff]  ;;  %v3114_v41 = vld [vmem:[#allocation2 + $0x1f0] sm:$0xff] }
 0x658   :  { %v3091_v52 = vld [vmem:[#allocation2 + $0x138] sm:$0xff] }
 0x659   :  { %7087 = vrcp.f32 %v2746_v58  ;;  %v3088_v58 = vld [vmem:[#allocation2 + $0x120] sm:$0xff]  ;;  %v6254_v63 = vpack.c.bf16 %v3091_v52, %v3087_v51  ;;  %v3129_v51 = vld [vmem:[#allocation2 + $0x268] sm:$0xff]  ;;  %v6268_v52 = vpack.c.bf16 %v3114_v41, %v3110_v40 }
 0x65a   :  { %v3148_v40 = vld [vmem:[#allocation2 + $0x300] sm:$0xff] }
 0x65b   :  { %v3152_v41 = vld [vmem:[#allocation2 + $0x320] sm:$0xff] }
 0x660   :  { %v7084_v55 = vpop.eup %7083 }
 0x661   :  { %v7086_v0 = vpop.eup %7085  ;;  %v2750_v60 = vmul.f32 %v7084_v55, %v7082_v54  ;;  %v6190_v54 = vpack.c.bf16 %v3089_v43, %v3085_v42  ;;  %v3084_v55 = vld [vmem:[#allocation2 + $0x100] sm:$0xff]  ;;  %v6204_v42 = vpack.c.bf16 %v3112_v36, %v3108_v23  ;;  %v3119_v43 = vld [vmem:[#allocation2 + $0x218] sm:$0xff]  ;;  %v3142_v23 = vld [vmem:[#allocation2 + $0x2d0] sm:$0xff] }
 0x662   :  { %v2749_v61 = vmul.f32 %v7086_v0, %v7430_v59  ;;  %v3064_v59 = vld [vmem:[#allocation2 + $0x60] sm:$0xff]  ;;  %v3093_v0 = vld [vmem:[#allocation2 + $0x148] sm:$0xff]  ;;  %v6192_v13 = vpack.c.bf16 %v3088_v58, %v3084_v55  ;;  %v3118_v55 = vld [vmem:[#allocation2 + $0x210] sm:$0xff] }
 0x663   :  { %v7088_v44 = vpop.eup %7087  ;;  %v6180_v21 = vpack.c.bf16 %v3064_v59, %v3060_v9  ;;  %v3094_v9 = vld [vmem:[#allocation2 + $0x150] sm:$0xff] }
 0x664   :  { %v7452_v62 = vadd.f32 %v2750_v60, %v2749_v61  ;;  %v3097_v60 = vld [vmem:[#allocation2 + $0x168] sm:$0xff]  ;;  %v6252_v61 = vpack.c.bf16 %v3082_v48, %v3078_v47  ;;  %v3098_v59 = vld [vmem:[#allocation2 + $0x170] sm:$0xff]  ;;  %v3116_v47 = vld [vmem:[#allocation2 + $0x200] sm:$0xff] }
 0x665   :  { %v6194_v49 = vpack.c.bf16 %v3097_v60, %v3093_v0  ;;  %v6260_v25 = vpack.c.bf16 %v3098_v59, %v3094_v9  ;;  %v3120_v48 = vld [vmem:[#allocation2 + $0x220] sm:$0xff]  ;;  %v3122_v58 = vld [vmem:[#allocation2 + $0x230] sm:$0xff]  ;;  %v3127_v60 = vld [vmem:[#allocation2 + $0x258] sm:$0xff] }
 0x666   :  { %7089 = vtanh.f32 %v7452_v62  ;;  %v6208_v0 = vpack.c.bf16 %v3120_v48, %v3116_v47  ;;  %v3132_v9 = vld [vmem:[#allocation2 + $0x280] sm:$0xff]  ;;  %v3146_v36 = vld [vmem:[#allocation2 + $0x2f0] sm:$0xff] }
 0x667   :  { %v3136_v59 = vld [vmem:[#allocation2 + $0x2a0] sm:$0xff]  ;;  %v3150_v47 = vld [vmem:[#allocation2 + $0x310] sm:$0xff] }
 0x668   :  { %v3154_v48 = vld [vmem:[#allocation2 + $0x330] sm:$0xff] }
 0x670   :  { %v7090_v5 = vpop.eup %7089 }
 0x671   :  { %v2753_v8 = vmul.f32 %v7090_v5, %v7088_v44  ;;  %v3090_v44 = vld [vmem:[#allocation2 + $0x130] sm:$0xff]  ;;  %v3092_v5 = vld [vmem:[#allocation2 + $0x140] sm:$0xff] }
 0x673   :  { %2947 = vmatmul.mubr.f32.vlgmr.msra.gmra.mrb[18].mxu0 %v2753_v8  ;;  %3018 = vmatmul.mubr.f32.vlgmr.msra.gmra.mrb[18].mxu1 %v2753_v8 }
 0x674   :  { %6177 = vmatpush1.bf16.msra.mxu0 %v6176_v6  ;;  %3244 = vmatprep.mubr.f32.mxu0 %v2753_v8  ;;  %v3096_v6 = vld [vmem:[#allocation2 + $0x160] sm:$0xff] }
 0x675   :  { %3315 = vmatprep.mubr.f32.mxu1 %v2753_v8  ;;  %6179 = vmatprep.subr.bf16.mxu0 %v6178_v18  ;;  %v6256_v8 = vpack.c.bf16 %v3090_v44, %v3086_v1  ;;  %v6258_v18 = vpack.c.bf16 %v3099_v4, %v3095_v3  ;;  %v6196_v10 = vpack.c.bf16 %v3096_v6, %v3092_v5  ;;  %v3124_v1 = vld [vmem:[#allocation2 + $0x240] sm:$0xff]  ;;  %v3137_v3 = vld [vmem:[#allocation2 + $0x2a8] sm:$0xff]  ;;  %v3126_v5 = vld [vmem:[#allocation2 + $0x250] sm:$0xff] }
 0x676   :  { %6241 = vmatpush1.bf16.msra.mxu1 %v6240_v14  ;;  %v3107_v14 = vld [vmem:[#allocation2 + $0x1b8] sm:$0xff]  ;;  %v3128_v44 = vld [vmem:[#allocation2 + $0x260] sm:$0xff]  ;;  %v6272_v4 = vpack.c.bf16 %v3122_v58, %v3118_v55  ;;  %v3130_v6 = vld [vmem:[#allocation2 + $0x270] sm:$0xff] }
 0x677   :  { %6243 = vmatprep.subr.bf16.mxu1 %v6242_v19  ;;  %v6198_v19 = vpack.c.bf16 %v3105_v53, %v3101_v7  ;;  %v6212_v7 = vpack.c.bf16 %v3128_v44, %v3124_v1  ;;  %v3135_v53 = vld [vmem:[#allocation2 + $0x298] sm:$0xff]  ;;  %v3156_v55 = vld [vmem:[#allocation2 + $0x340] sm:$0xff]  ;;  %v3158_v1 = vld [vmem:[#allocation2 + $0x350] sm:$0xff] }
 0x678   :  { %6181 = vmatpush1.bf16.msra.mxu0 %v6180_v21  ;;  %v3109_v21 = vld [vmem:[#allocation2 + $0x1c8] sm:$0xff]  ;;  %v3160_v58 = vld [vmem:[#allocation2 + $0x360] sm:$0xff]  ;;  %v3162_v44 = vld [vmem:[#allocation2 + $0x370] sm:$0xff] }
 0x679   :  { %6183 = vmatprep.subr.bf16.mxu0 %v6182_v27  ;;  %v6262_v27 = vpack.c.bf16 %v3107_v14, %v3103_v11  ;;  %v3145_v11 = vld [vmem:[#allocation2 + $0x2e8] sm:$0xff]  ;;  %v6276_v14 = vpack.c.bf16 %v3130_v6, %v3126_v5  ;;  %v3164_v5 = vld [vmem:[#allocation2 + $0x380] sm:$0xff] }
 0x67a   :  { %6245 = vmatpush1.bf16.msra.mxu1 %v6244_v34  ;;  %v3115_v34 = vld [vmem:[#allocation2 + $0x1f8] sm:$0xff]  ;;  %v3168_v6 = vld [vmem:[#allocation2 + $0x3a0] sm:$0xff] }
 0x67b   :  { %6247 = vmatprep.subr.bf16.mxu1 %v6246_v35  ;;  %v6202_v35 = vpack.c.bf16 %v3113_v22, %v3109_v21  ;;  %v6216_v21 = vpack.c.bf16 %v3136_v59, %v3132_v9  ;;  %v3143_v22 = vld [vmem:[#allocation2 + $0x2d8] sm:$0xff]  ;;  %v3166_v9 = vld [vmem:[#allocation2 + $0x390] sm:$0xff] }
 0x67c   :  { %6185 = vmatpush1.bf16.msra.mxu0 %v6184_v37  ;;  %v3117_v37 = vld [vmem:[#allocation2 + $0x208] sm:$0xff]  ;;  %v3170_v59 = vld [vmem:[#allocation2 + $0x3b0] sm:$0xff] }
 0x67d   :  { %6187 = vmatprep.subr.bf16.mxu0 %v6186_v39  ;;  %v6266_v39 = vpack.c.bf16 %v3115_v34, %v3111_v26  ;;  %v3153_v26 = vld [vmem:[#allocation2 + $0x328] sm:$0xff]  ;;  %v6280_v34 = vpack.c.bf16 %v3138_v20, %v3134_v12  ;;  %v3172_v12 = vld [vmem:[#allocation2 + $0x3c0] sm:$0xff] }
 0x67e   :  { %6249 = vmatpush1.bf16.msra.mxu1 %v6248_v45  ;;  %v3123_v45 = vld [vmem:[#allocation2 + $0x238] sm:$0xff]  ;;  %v3176_v20 = vld [vmem:[#allocation2 + $0x3e0] sm:$0xff] }
 0x67f   :  { %6251 = vmatprep.subr.bf16.mxu1 %v6250_v46  ;;  %v6206_v46 = vpack.c.bf16 %v3121_v38, %v3117_v37  ;;  %v6220_v37 = vpack.c.bf16 %v3144_v31, %v3140_v28  ;;  %v3151_v38 = vld [vmem:[#allocation2 + $0x318] sm:$0xff]  ;;  %v6236_v28 = vpack.c.bf16 %v3176_v20, %v3172_v12 }
 0x680   :  { %6189 = vmatpush1.bf16.msra.mxu0 %v6188_v50  ;;  %v3125_v50 = vld [vmem:[#allocation2 + $0x248] sm:$0xff] }
 0x681   :  { %6191 = vmatprep.subr.bf16.mxu0 %v6190_v54  ;;  %v6270_v54 = vpack.c.bf16 %v3123_v45, %v3119_v43  ;;  %v3161_v43 = vld [vmem:[#allocation2 + $0x368] sm:$0xff]  ;;  %v6284_v45 = vpack.c.bf16 %v3146_v36, %v3142_v23  ;;  %v3350_v36 = vld [vmem:[#allocation4 + $0x20] sm:$0xff] }
 0x682   :  { %6253 = vmatpush1.bf16.msra.mxu1 %v6252_v61  ;;  %v3131_v61 = vld [vmem:[#allocation2 + $0x278] sm:$0xff] }
 0x683   :  { %6255 = vmatprep.subr.bf16.mxu1 %v6254_v63  ;;  %v6210_v63 = vpack.c.bf16 %v3129_v51, %v3125_v50  ;;  %v6224_v50 = vpack.c.bf16 %v3152_v41, %v3148_v40  ;;  %v3159_v51 = vld [vmem:[#allocation2 + $0x358] sm:$0xff]  ;;  %v3348_v40 = vld [vmem:[#allocation4 + $0x10] sm:$0xff] }
 0x684   :  { %6193 = vmatpush1.bf16.msra.mxu0 %v6192_v13  ;;  %v3133_v13 = vld [vmem:[#allocation2 + $0x288] sm:$0xff]  ;;  %v3352_v41 = vld [vmem:[#allocation4 + $0x30] sm:$0xff] }
 0x685   :  { %6195 = vmatprep.subr.bf16.mxu0 %v6194_v49  ;;  %v6274_v49 = vpack.c.bf16 %v3131_v61, %v3127_v60  ;;  %v3169_v60 = vld [vmem:[#allocation2 + $0x3a8] sm:$0xff]  ;;  %v6288_v61 = vpack.c.bf16 %v3154_v48, %v3150_v47  ;;  %v3358_v48 = vld [vmem:[#allocation4 + $0x60] sm:$0xff] }
 0x686   :  { %6257 = vmatpush1.bf16.msra.mxu1 %v6256_v8  ;;  %v3139_v8 = vld [vmem:[#allocation2 + $0x2b8] sm:$0xff] }
 0x687   :  { %6259 = vmatprep.subr.bf16.mxu1 %v6258_v18  ;;  %v6214_v18 = vpack.c.bf16 %v3137_v3, %v3133_v13  ;;  %v6228_v13 = vpack.c.bf16 %v3160_v58, %v3156_v55  ;;  %v3167_v3 = vld [vmem:[#allocation2 + $0x398] sm:$0xff]  ;;  %v3356_v55 = vld [vmem:[#allocation4 + $0x50] sm:$0xff] }
 0x688   :  { %6197 = vmatpush1.bf16.msra.mxu0 %v6196_v10  ;;  %v3141_v10 = vld [vmem:[#allocation2 + $0x2c8] sm:$0xff]  ;;  %v3360_v58 = vld [vmem:[#allocation4 + $0x70] sm:$0xff] }
 0x689   :  { %6199 = vmatprep.subr.bf16.mxu0 %v6198_v19  ;;  %v6278_v19 = vpack.c.bf16 %v3139_v8, %v3135_v53  ;;  %v3177_v53 = vld [vmem:[#allocation2 + $0x3e8] sm:$0xff]  ;;  %v6292_v8 = vpack.c.bf16 %v3162_v44, %v3158_v1  ;;  %v3366_v1 = vld [vmem:[#allocation4 + $0xa0] sm:$0xff] }
 0x68a   :  { %6261 = vmatpush1.bf16.msra.mxu1 %v6260_v25  ;;  %v3147_v25 = vld [vmem:[#allocation2 + $0x2f8] sm:$0xff] }
 0x68b   :  { %6263 = vmatprep.subr.bf16.mxu1 %v6262_v27  ;;  %v6218_v27 = vpack.c.bf16 %v3145_v11, %v3141_v10  ;;  %v6232_v10 = vpack.c.bf16 %v3168_v6, %v3164_v5  ;;  %v3175_v11 = vld [vmem:[#allocation2 + $0x3d8] sm:$0xff]  ;;  %v3368_v6 = vld [vmem:[#allocation4 + $0xb0] sm:$0xff] }
 0x68c   :  { %6201 = vmatpush1.bf16.msra.mxu0 %v6200_v32  ;;  %v3149_v32 = vld [vmem:[#allocation2 + $0x308] sm:$0xff] }
 0x68d   :  { %6203 = vmatprep.subr.bf16.mxu0 %v6202_v35  ;;  %v6282_v35 = vpack.c.bf16 %v3147_v25, %v3143_v22  ;;  %v3174_v25 = vld [vmem:[#allocation2 + $0x3d0] sm:$0xff] }
 0x68e   :  { %6265 = vmatpush1.bf16.msra.mxu1 %v6264_v29  ;;  %v3155_v29 = vld [vmem:[#allocation2 + $0x338] sm:$0xff] }
 0x68f   :  { %6267 = vmatprep.subr.bf16.mxu1 %v6266_v39  ;;  %v6222_v39 = vpack.c.bf16 %v3153_v26, %v3149_v32  ;;  %v4870_v32 = vld [vmem:[%s7526_s0 + $0x28] sm:$0xff] }
 0x690   :  { %6205 = vmatpush1.bf16.msra.mxu0 %v6204_v42  ;;  %v3157_v42 = vld [vmem:[#allocation2 + $0x348] sm:$0xff] }
 0x691   :  { %6207 = vmatprep.subr.bf16.mxu0 %v6206_v46  ;;  %v6286_v46 = vpack.c.bf16 %v3155_v29, %v3151_v38  ;;  %v3347_v26 = vld [vmem:[#allocation4 + $0x8] sm:$0xff]  ;;  %v3353_v38 = vld [vmem:[#allocation4 + $0x38] sm:$0xff] }
 0x692   :  { %6269 = vmatpush1.bf16.msra.mxu1 %v6268_v52  ;;  %v3163_v52 = vld [vmem:[#allocation2 + $0x378] sm:$0xff] }
 0x693   :  { %6271 = vmatprep.subr.bf16.mxu1 %v6270_v54  ;;  %v6226_v54 = vpack.c.bf16 %v3161_v43, %v3157_v42  ;;  %v6368_v42 = vpack.c.bf16 %v3352_v41, %v3348_v40  ;;  %v3355_v43 = vld [vmem:[#allocation4 + $0x48] sm:$0xff]  ;;  %v3386_v40 = vld [vmem:[#allocation4 + $0x140] sm:$0xff] }
 0x694   :  { %6209 = vmatpush1.bf16.msra.mxu0 %v6208_v0  ;;  %v3165_v0 = vld [vmem:[#allocation2 + $0x388] sm:$0xff]  ;;  %v3390_v41 = vld [vmem:[#allocation4 + $0x160] sm:$0xff] }
 0x695   :  { %6211 = vmatprep.subr.bf16.mxu0 %v6210_v63  ;;  %v6290_v63 = vpack.c.bf16 %v3163_v52, %v3159_v51  ;;  %v3361_v51 = vld [vmem:[#allocation4 + $0x78] sm:$0xff] }
 0x696   :  { %6273 = vmatpush1.bf16.msra.mxu1 %v6272_v4  ;;  %v3171_v4 = vld [vmem:[#allocation2 + $0x3b8] sm:$0xff] }
 0x697   :  { %6275 = vmatprep.subr.bf16.mxu1 %v6274_v49  ;;  %v6230_v49 = vpack.c.bf16 %v3169_v60, %v3165_v0  ;;  %v3363_v0 = vld [vmem:[#allocation4 + $0x88] sm:$0xff]  ;;  %v6372_v60 = vpack.c.bf16 %v3360_v58, %v3356_v55  ;;  %v3394_v55 = vld [vmem:[#allocation4 + $0x180] sm:$0xff] }
 0x698   :  { %6213 = vmatpush1.bf16.msra.mxu0 %v6212_v7  ;;  %v3173_v7 = vld [vmem:[#allocation2 + $0x3c8] sm:$0xff]  ;;  %v3398_v58 = vld [vmem:[#allocation4 + $0x1a0] sm:$0xff] }
 0x699   :  { %6215 = vmatprep.subr.bf16.mxu0 %v6214_v18  ;;  %v6294_v18 = vpack.c.bf16 %v3171_v4, %v3167_v3  ;;  %v3365_v3 = vld [vmem:[#allocation4 + $0x98] sm:$0xff] }
 0x69a   :  { %6277 = vmatpush1.bf16.msra.mxu1 %v6276_v14  ;;  %v3179_v14 = vld [vmem:[#allocation2 + $0x3f8] sm:$0xff] }
 0x69b   :  { %6279 = vmatprep.subr.bf16.mxu1 %v6278_v19  ;;  %v6234_v19 = vpack.c.bf16 %v3177_v53, %v3173_v7  ;;  %v6298_v22 = vpack.c.bf16 %v3179_v14, %v3175_v11  ;;  %v3369_v4 = vld [vmem:[#allocation4 + $0xb8] sm:$0xff]  ;;  %v3371_v7 = vld [vmem:[#allocation4 + $0xc8] sm:$0xff]  ;;  %v3372_v14 = vld [vmem:[#allocation4 + $0xd0] sm:$0xff] }
 0x69c   :  { %6217 = vmatpush1.bf16.msra.mxu0 %v6216_v21  ;;  %v6296_v21 = vpack.c.bf16 %v3170_v59, %v3166_v9  ;;  %v6374_v5 = vpack.c.bf16 %v3369_v4, %v3365_v3  ;;  %v3375_v53 = vld [vmem:[#allocation4 + $0xe8] sm:$0xff]  ;;  %v3370_v9 = vld [vmem:[#allocation4 + $0xc0] sm:$0xff]  ;;  %v3377_v11 = vld [vmem:[#allocation4 + $0xf8] sm:$0xff] }
 0x69d   :  { %6219 = vmatprep.subr.bf16.mxu0 %v6218_v27  ;;  %v3178_v27 = vld [vmem:[#allocation2 + $0x3f0] sm:$0xff]  ;;  %v3374_v59 = vld [vmem:[#allocation4 + $0xe0] sm:$0xff]  ;;  %v3403_v3 = vld [vmem:[#allocation4 + $0x1c8] sm:$0xff] }
 0x69e   :  { %6281 = vmatpush1.bf16.msra.mxu1 %v6280_v34  ;;  %v6300_v31 = vpack.c.bf16 %v3178_v27, %v3174_v25  ;;  %v3351_v34 = vld [vmem:[#allocation4 + $0x28] sm:$0xff]  ;;  %v6316_v12 = vpack.c.bf16 %v3374_v59, %v3370_v9  ;;  %v3378_v25 = vld [vmem:[#allocation4 + $0x100] sm:$0xff]  ;;  %v3408_v9 = vld [vmem:[#allocation4 + $0x1f0] sm:$0xff] }
 0x69f   :  { %6283 = vmatprep.subr.bf16.mxu1 %v6282_v35  ;;  %v3346_v35 = vld [vmem:[#allocation4] sm:$0xff]  ;;  %v6302_v23 = vpack.c.bf16 %v3351_v34, %v3347_v26  ;;  %v3385_v26 = vld [vmem:[#allocation4 + $0x138] sm:$0xff]  ;;  %v3407_v4 = vld [vmem:[#allocation4 + $0x1e8] sm:$0xff] }
 0x6a0   :  { %6221 = vmatpush1.bf16.msra.mxu0 %v6220_v37  ;;  %v3349_v37 = vld [vmem:[#allocation4 + $0x18] sm:$0xff]  ;;  %v6304_v29 = vpack.c.bf16 %v3350_v36, %v3346_v35  ;;  %v3384_v36 = vld [vmem:[#allocation4 + $0x130] sm:$0xff] }
 0x6a1   :  { %6223 = vmatprep.subr.bf16.mxu0 %v6222_v39  ;;  %v6366_v39 = vpack.c.bf16 %v3353_v38, %v3349_v37  ;;  %v3387_v38 = vld [vmem:[#allocation4 + $0x148] sm:$0xff] }
 0x6a2   :  { %6285 = vmatpush1.bf16.msra.mxu1 %v6284_v45  ;;  %v3359_v45 = vld [vmem:[#allocation4 + $0x68] sm:$0xff] }
 0x6a3   :  { %6287 = vmatprep.subr.bf16.mxu1 %v6286_v46  ;;  %v3354_v46 = vld [vmem:[#allocation4 + $0x40] sm:$0xff]  ;;  %v6306_v47 = vpack.c.bf16 %v3359_v45, %v3355_v43  ;;  %v6324_v43 = vpack.c.bf16 %v3390_v41, %v3386_v40  ;;  %v3393_v45 = vld [vmem:[#allocation4 + $0x178] sm:$0xff]  ;;  %v3424_v40 = vld [vmem:[#allocation4 + $0x270] sm:$0xff] }
 0x6a4   :  { %6225 = vmatpush1.bf16.msra.mxu0 %v6224_v50  ;;  %v3357_v50 = vld [vmem:[#allocation4 + $0x58] sm:$0xff]  ;;  %v6308_v52 = vpack.c.bf16 %v3358_v48, %v3354_v46  ;;  %v3388_v46 = vld [vmem:[#allocation4 + $0x150] sm:$0xff] }
 0x6a5   :  { %6227 = vmatprep.subr.bf16.mxu0 %v6226_v54  ;;  %v6370_v54 = vpack.c.bf16 %v3361_v51, %v3357_v50  ;;  %v3395_v51 = vld [vmem:[#allocation4 + $0x188] sm:$0xff] }
 0x6a6   :  { %6289 = vmatpush1.bf16.msra.mxu1 %v6288_v61  ;;  %v3367_v61 = vld [vmem:[#allocation4 + $0xa8] sm:$0xff] }
 0x6a7   :  { %6291 = vmatprep.subr.bf16.mxu1 %v6290_v63  ;;  %v3362_v63 = vld [vmem:[#allocation4 + $0x80] sm:$0xff]  ;;  %v6310_v44 = vpack.c.bf16 %v3367_v61, %v3363_v0  ;;  %v3397_v0 = vld [vmem:[#allocation4 + $0x198] sm:$0xff] }
 0x6a8   :  { %6229 = vmatpush1.bf16.msra.mxu0 %v6228_v13  ;;  %v6312_v13 = vpack.c.bf16 %v3366_v1, %v3362_v63  ;;  %v3401_v61 = vld [vmem:[#allocation4 + $0x1b8] sm:$0xff]  ;;  %v3396_v63 = vld [vmem:[#allocation4 + $0x190] sm:$0xff] }
 0x6a9   :  { %6231 = vmatprep.subr.bf16.mxu0 %v6230_v49  ;;  %v3364_v49 = vld [vmem:[#allocation4 + $0x90] sm:$0xff] }
 0x6aa   :  { %6293 = vmatpush1.bf16.msra.mxu1 %v6292_v8  ;;  %v6376_v8 = vpack.c.bf16 %v3368_v6, %v3364_v49  ;;  %v3400_v1 = vld [vmem:[#allocation4 + $0x1b0] sm:$0xff]  ;;  %v6330_v49 = vpack.c.bf16 %v3407_v4, %v3403_v3  ;;  %v3406_v6 = vld [vmem:[#allocation4 + $0x1e0] sm:$0xff]  ;;  %v3441_v4 = vld [vmem:[#allocation4 + $0x2f8] sm:$0xff] }
 0x6ab   :  { %6295 = vmatprep.subr.bf16.mxu1 %v6294_v18  ;;  %v6314_v18 = vpack.c.bf16 %v3375_v53, %v3371_v7  ;;  %v3405_v7 = vld [vmem:[#allocation4 + $0x1d8] sm:$0xff] }
 0x6ac   :  { %6233 = vmatpush1.bf16.msra.mxu0 %v6232_v10  ;;  %v3373_v10 = vld [vmem:[#allocation4 + $0xd8] sm:$0xff] }
 0x6ad   :  { %6235 = vmatprep.subr.bf16.mxu0 %v6234_v19  ;;  %v3376_v19 = vld [vmem:[#allocation4 + $0xf0] sm:$0xff]  ;;  %v6378_v20 = vpack.c.bf16 %v3377_v11, %v3373_v10  ;;  %v3411_v11 = vld [vmem:[#allocation4 + $0x208] sm:$0xff] }
 0x6ae   :  { %6297 = vmatpush1.bf16.msra.mxu1 %v6296_v21  ;;  %v3379_v21 = vld [vmem:[#allocation4 + $0x108] sm:$0xff]  ;;  %v6380_v27 = vpack.c.bf16 %v3376_v19, %v3372_v14 }
 0x6af   :  { %6299 = vmatprep.subr.bf16.mxu1 %v6298_v22  ;;  %v3383_v22 = vld [vmem:[#allocation4 + $0x128] sm:$0xff] }
 0x6b0   :  { %6237 = vmatpush1.bf16.msra.mxu0 %v6236_v28  ;;  %v6318_v28 = vpack.c.bf16 %v3383_v22, %v3379_v21  ;;  %v3415_v14 = vld [vmem:[#allocation4 + $0x228] sm:$0xff]  ;;  %v3413_v21 = vld [vmem:[#allocation4 + $0x218] sm:$0xff] }
 0x6b1   :  { %6303 = vmatprep.subr.bf16.mxu0 %v6302_v23  ;;  %v3380_v23 = vld [vmem:[#allocation4 + $0x110] sm:$0xff]  ;;  %v6334_v19 = vpack.c.bf16 %v3415_v14, %v3411_v11  ;;  %v3449_v14 = vld [vmem:[#allocation4 + $0x338] sm:$0xff] }
 0x6b2   :  { %6301 = vmatpush1.bf16.msra.mxu1 %v6300_v31  ;;  %v3382_v31 = vld [vmem:[#allocation4 + $0x120] sm:$0xff]  ;;  %v6384_v37 = vpack.c.bf16 %v3384_v36, %v3380_v23 }
 0x6b3   :  { %3245 = vmatmul.mubr.f32.vlgmr.msra.gmra.mrb[20].mxu0 %v4870_v32  ;;  %6367 = vmatprep.subr.bf16.mxu1 %v6366_v39  ;;  %v6320_v35 = vpack.c.bf16 %v3382_v31, %v3378_v25  ;;  %v3417_v25 = vld [vmem:[#allocation4 + $0x238] sm:$0xff]  ;;  %v3418_v23 = vld [vmem:[#allocation4 + $0x240] sm:$0xff] }
 0x6b4   :  { %6305 = vmatpush1.bf16.msra.mxu0 %v6304_v29  ;;  %v3391_v29 = vld [vmem:[#allocation4 + $0x168] sm:$0xff]  ;;  %v6398_v31 = vpack.c.bf16 %v3417_v25, %v3413_v21  ;;  %v3422_v36 = vld [vmem:[#allocation4 + $0x260] sm:$0xff] }
 0x6b5   :  { %3316 = vmatmul.mubr.f32.vlgmr.msra.gmra.mrb[20].mxu1 %v4870_v32  ;;  %6307 = vmatprep.subr.bf16.mxu0 %v6306_v47  ;;  %v3381_v32 = vld [vmem:[#allocation4 + $0x118] sm:$0xff]  ;;  %v6322_v39 = vpack.c.bf16 %v3391_v29, %v3387_v38  ;;  %v3392_v47 = vld [vmem:[#allocation4 + $0x170] sm:$0xff]  ;;  %v6340_v38 = vpack.c.bf16 %v3422_v36, %v3418_v23  ;;  %v3455_v25 = vld [vmem:[#allocation4 + $0x368] sm:$0xff] }
 0x6b6   :  { %6369 = vmatpush1.bf16.msra.mxu1 %v6368_v42  ;;  %v6382_v34 = vpack.c.bf16 %v3385_v26, %v3381_v32  ;;  %v3389_v42 = vld [vmem:[#allocation4 + $0x158] sm:$0xff]  ;;  %v6388_v50 = vpack.c.bf16 %v3392_v47, %v3388_v46  ;;  %v3419_v26 = vld [vmem:[#allocation4 + $0x248] sm:$0xff]  ;;  %v3426_v47 = vld [vmem:[#allocation4 + $0x280] sm:$0xff] }
 0x6b7   :  { %6371 = vmatprep.subr.bf16.mxu1 %v6370_v54  ;;  %v6386_v48 = vpack.c.bf16 %v3393_v45, %v3389_v42  ;;  %v3425_v29 = vld [vmem:[#allocation4 + $0x278] sm:$0xff]  ;;  %v3431_v45 = vld [vmem:[#allocation4 + $0x2a8] sm:$0xff]  ;;  %v3456_v23 = vld [vmem:[#allocation4 + $0x370] sm:$0xff] }
 0x6b8   :  { %6309 = vmatpush1.bf16.msra.mxu0 %v6308_v52  ;;  %v3399_v52 = vld [vmem:[#allocation4 + $0x1a8] sm:$0xff] }
 0x6b9   :  { %6311 = vmatprep.subr.bf16.mxu0 %v6310_v44  ;;  %v6326_v54 = vpack.c.bf16 %v3399_v52, %v3395_v51  ;;  %v6390_v44 = vpack.c.bf16 %v3401_v61, %v3397_v0  ;;  %v3433_v52 = vld [vmem:[#allocation4 + $0x2b8] sm:$0xff]  ;;  %v3439_v61 = vld [vmem:[#allocation4 + $0x2e8] sm:$0xff] }
 0x6ba   :  { %6373 = vmatpush1.bf16.msra.mxu1 %v6372_v60  ;;  %v6328_v60 = vpack.c.bf16 %v3398_v58, %v3394_v55  ;;  %v3432_v55 = vld [vmem:[#allocation4 + $0x2b0] sm:$0xff] }
 0x6bb   :  { %6375 = vmatprep.subr.bf16.mxu1 %v6374_v5  ;;  %v3402_v5 = vld [vmem:[#allocation4 + $0x1c0] sm:$0xff] }
 0x6bc   :  { %6313 = vmatpush1.bf16.msra.mxu0 %v6312_v13  ;;  %v6392_v13 = vpack.c.bf16 %v3400_v1, %v3396_v63  ;;  %v6332_v53 = vpack.c.bf16 %v3406_v6, %v3402_v5  ;;  %v3434_v1 = vld [vmem:[#allocation4 + $0x2c0] sm:$0xff]  ;;  %v3440_v5 = vld [vmem:[#allocation4 + $0x2f0] sm:$0xff] }
 0x6bd   :  { %6315 = vmatprep.subr.bf16.mxu0 %v6314_v18  ;;  %v3404_v18 = vld [vmem:[#allocation4 + $0x1d0] sm:$0xff] }
 0x6be   :  { %6377 = vmatpush1.bf16.msra.mxu1 %v6376_v8  ;;  %v3409_v8 = vld [vmem:[#allocation4 + $0x1f8] sm:$0xff]  ;;  %v6396_v10 = vpack.c.bf16 %v3408_v9, %v3404_v18  ;;  %v3442_v9 = vld [vmem:[#allocation4 + $0x300] sm:$0xff] }
 0x6bf   :  { %6379 = vmatprep.subr.bf16.mxu1 %v6378_v20  ;;  %v6394_v59 = vpack.c.bf16 %v3409_v8, %v3405_v7  ;;  %v3414_v20 = vld [vmem:[#allocation4 + $0x220] sm:$0xff]  ;;  %v3447_v8 = vld [vmem:[#allocation4 + $0x328] sm:$0xff] }
 0x6c0   :  { %6317 = vmatpush1.bf16.msra.mxu0 %v6316_v12  ;;  %v3410_v12 = vld [vmem:[#allocation4 + $0x200] sm:$0xff] }
 0x6c1   :  { %6319 = vmatprep.subr.bf16.mxu0 %v6318_v28  ;;  %v6336_v22 = vpack.c.bf16 %v3414_v20, %v3410_v12  ;;  %v3416_v28 = vld [vmem:[#allocation4 + $0x230] sm:$0xff] }
 0x6c2   :  { %6381 = vmatpush1.bf16.msra.mxu1 %v6380_v27  ;;  %v3412_v27 = vld [vmem:[#allocation4 + $0x210] sm:$0xff] }
 0x6c3   :  { %6383 = vmatprep.subr.bf16.mxu1 %v6382_v34  ;;  %v6400_v32 = vpack.c.bf16 %v3416_v28, %v3412_v27  ;;  %v3423_v34 = vld [vmem:[#allocation4 + $0x268] sm:$0xff]  ;;  %v3448_v12 = vld [vmem:[#allocation4 + $0x330] sm:$0xff]  ;;  %v3450_v28 = vld [vmem:[#allocation4 + $0x340] sm:$0xff] }
 0x6c4   :  { %6321 = vmatpush1.bf16.msra.mxu0 %v6320_v35  ;;  %v6338_v35 = vpack.c.bf16 %v3423_v34, %v3419_v26  ;;  %v3457_v34 = vld [vmem:[#allocation4 + $0x378] sm:$0xff] }
 0x6c5   :  { %6323 = vmatprep.subr.bf16.mxu0 %v6322_v39  ;;  %v3420_v39 = vld [vmem:[#allocation4 + $0x250] sm:$0xff] }
 0x6c6   :  { %6385 = vmatpush1.bf16.msra.mxu1 %v6384_v37  ;;  %v3421_v37 = vld [vmem:[#allocation4 + $0x258] sm:$0xff]  ;;  %v6404_v42 = vpack.c.bf16 %v3424_v40, %v3420_v39  ;;  %v3458_v39 = vld [vmem:[#allocation4 + $0x380] sm:$0xff] }
 0x6c7   :  { %6387 = vmatprep.subr.bf16.mxu1 %v6386_v48  ;;  %v6402_v41 = vpack.c.bf16 %v3425_v29, %v3421_v37  ;;  %v3430_v48 = vld [vmem:[#allocation4 + $0x2a0] sm:$0xff]  ;;  %v3463_v29 = vld [vmem:[#allocation4 + $0x3a8] sm:$0xff] }
 0x6c8   :  { %6325 = vmatpush1.bf16.msra.mxu0 %v6324_v43  ;;  %v3427_v43 = vld [vmem:[#allocation4 + $0x288] sm:$0xff]  ;;  %v6344_v51 = vpack.c.bf16 %v3430_v48, %v3426_v47  ;;  %v3460_v47 = vld [vmem:[#allocation4 + $0x390] sm:$0xff] }
 0x6c9   :  { %6327 = vmatprep.subr.bf16.mxu0 %v6326_v54  ;;  %v6342_v46 = vpack.c.bf16 %v3431_v45, %v3427_v43  ;;  %v3428_v54 = vld [vmem:[#allocation4 + $0x290] sm:$0xff]  ;;  %v3465_v43 = vld [vmem:[#allocation4 + $0x3b8] sm:$0xff] }
 0x6ca   :  { %6389 = vmatpush1.bf16.msra.mxu1 %v6388_v50  ;;  %v3429_v50 = vld [vmem:[#allocation4 + $0x298] sm:$0xff]  ;;  %v6408_v0 = vpack.c.bf16 %v3432_v55, %v3428_v54  ;;  %v3464_v48 = vld [vmem:[#allocation4 + $0x3b0] sm:$0xff]  ;;  %v3466_v54 = vld [vmem:[#allocation4 + $0x3c0] sm:$0xff] }
 0x6cb   :  { %6391 = vmatprep.subr.bf16.mxu1 %v6390_v44  ;;  %v6406_v58 = vpack.c.bf16 %v3433_v52, %v3429_v50  ;;  %v3438_v44 = vld [vmem:[#allocation4 + $0x2e0] sm:$0xff]  ;;  %v3467_v50 = vld [vmem:[#allocation4 + $0x3c8] sm:$0xff] }
 0x6cc   :  { %6329 = vmatpush1.bf16.msra.mxu0 %v6328_v60  ;;  %v3435_v60 = vld [vmem:[#allocation4 + $0x2c8] sm:$0xff]  ;;  %v6348_v3 = vpack.c.bf16 %v3438_v44, %v3434_v1  ;;  %v3470_v55 = vld [vmem:[#allocation4 + $0x3e0] sm:$0xff]  ;;  %v3472_v44 = vld [vmem:[#allocation4 + $0x3f0] sm:$0xff] }
 0x6cd   :  { %6331 = vmatprep.subr.bf16.mxu0 %v6330_v49  ;;  %v6346_v63 = vpack.c.bf16 %v3439_v61, %v3435_v60  ;;  %v3436_v49 = vld [vmem:[#allocation4 + $0x2d0] sm:$0xff]  ;;  %v3471_v52 = vld [vmem:[#allocation4 + $0x3e8] sm:$0xff]  ;;  %v3473_v60 = vld [vmem:[#allocation4 + $0x3f8] sm:$0xff] }
 0x6ce   :  { %6393 = vmatpush1.bf16.msra.mxu1 %v6392_v13  ;;  %v3437_v13 = vld [vmem:[#allocation4 + $0x2d8] sm:$0xff]  ;;  %v6412_v7 = vpack.c.bf16 %v3440_v5, %v3436_v49  ;;  %v3468_v61 = vld [vmem:[#allocation4 + $0x3d0] sm:$0xff] }
 0x6cf   :  { %6395 = vmatprep.subr.bf16.mxu1 %v6394_v59  ;;  %v6410_v6 = vpack.c.bf16 %v3441_v4, %v3437_v13  ;;  %v3446_v59 = vld [vmem:[#allocation4 + $0x320] sm:$0xff]  ;;  %v3645_v13 = vld [vmem:[#allocation2 + $0x8] sm:$0xff]  ;;  %v6428_v49 = vpack.c.bf16 %v3472_v44, %v3468_v61  ;;  %v3647_v5 = vld [vmem:[#allocation2 + $0x18] sm:$0xff] }
 0x6d0   :  { %6333 = vmatpush1.bf16.msra.mxu0 %v6332_v53  ;;  %v3443_v53 = vld [vmem:[#allocation4 + $0x308] sm:$0xff]  ;;  %v6352_v11 = vpack.c.bf16 %v3446_v59, %v3442_v9 }
 0x6d1   :  { %6335 = vmatprep.subr.bf16.mxu0 %v6334_v19  ;;  %v6350_v18 = vpack.c.bf16 %v3447_v8, %v3443_v53  ;;  %v3444_v19 = vld [vmem:[#allocation4 + $0x310] sm:$0xff] }
 0x6d2   :  { %6397 = vmatpush1.bf16.msra.mxu1 %v6396_v10  ;;  %v3445_v10 = vld [vmem:[#allocation4 + $0x318] sm:$0xff]  ;;  %v6416_v21 = vpack.c.bf16 %v3448_v12, %v3444_v19 }
 0x6d3   :  { %6399 = vmatprep.subr.bf16.mxu1 %v6398_v31  ;;  %v6414_v20 = vpack.c.bf16 %v3449_v14, %v3445_v10  ;;  %v3454_v31 = vld [vmem:[#allocation4 + $0x360] sm:$0xff] }
 0x6d4   :  { %6337 = vmatpush1.bf16.msra.mxu0 %v6336_v22  ;;  %v3451_v22 = vld [vmem:[#allocation4 + $0x348] sm:$0xff]  ;;  %v6356_v26 = vpack.c.bf16 %v3454_v31, %v3450_v28 }
 0x6d5   :  { %6339 = vmatprep.subr.bf16.mxu0 %v6338_v35  ;;  %v6354_v27 = vpack.c.bf16 %v3455_v25, %v3451_v22  ;;  %v3452_v35 = vld [vmem:[#allocation4 + $0x350] sm:$0xff] }
 0x6d6   :  { %6401 = vmatpush1.bf16.msra.mxu1 %v6400_v32  ;;  %v3453_v32 = vld [vmem:[#allocation4 + $0x358] sm:$0xff]  ;;  %v6420_v37 = vpack.c.bf16 %v3456_v23, %v3452_v35 }
 0x6d7   :  { %6403 = vmatprep.subr.bf16.mxu1 %v6402_v41  ;;  %v6418_v36 = vpack.c.bf16 %v3457_v34, %v3453_v32  ;;  %v3462_v41 = vld [vmem:[#allocation4 + $0x3a0] sm:$0xff] }
 0x6d8   :  { %6341 = vmatpush1.bf16.msra.mxu0 %v6340_v38  ;;  %v3459_v38 = vld [vmem:[#allocation4 + $0x388] sm:$0xff]  ;;  %v6360_v45 = vpack.c.bf16 %v3462_v41, %v3458_v39 }
 0x6d9   :  { %6343 = vmatprep.subr.bf16.mxu0 %v6342_v46  ;;  %v6358_v40 = vpack.c.bf16 %v3463_v29, %v3459_v38 }
 0x6da   :  { %6405 = vmatpush1.bf16.msra.mxu1 %v6404_v42  ;;  %v3461_v42 = vld [vmem:[#allocation4 + $0x398] sm:$0xff] }
 0x6db   :  { %6407 = vmatprep.subr.bf16.mxu1 %v6406_v58  ;;  %v6422_v46 = vpack.c.bf16 %v3465_v43, %v3461_v42  ;;  %v6362_v58 = vpack.c.bf16 %v3471_v52, %v3467_v50 }
 0x6dc   :  { %6345 = vmatpush1.bf16.msra.mxu0 %v6344_v51  ;;  %v6424_v51 = vpack.c.bf16 %v3464_v48, %v3460_v47 }
 0x6dd   :  { %6347 = vmatprep.subr.bf16.mxu0 %v6346_v63  ;;  %v6364_v63 = vpack.c.bf16 %v3470_v55, %v3466_v54 }
 0x6de   :  { %6409 = vmatpush1.bf16.msra.mxu1 %v6408_v0  ;;  %v3469_v0 = vld [vmem:[#allocation4 + $0x3d8] sm:$0xff] }
 0x6df   :  { %6411 = vmatprep.subr.bf16.mxu1 %v6410_v6  ;;  %v6426_v1 = vpack.c.bf16 %v3473_v60, %v3469_v0  ;;  %v3651_v6 = vld [vmem:[#allocation2 + $0x38] sm:$0xff] }
 0x6e0   :  { %6349 = vmatpush1.bf16.msra.mxu0 %v6348_v3  ;;  %v3649_v3 = vld [vmem:[#allocation2 + $0x28] sm:$0xff] }
 0x6e1   :  { %6351 = vmatprep.subr.bf16.mxu0 %v6350_v18  ;;  %v6430_v4 = vpack.c.bf16 %v3649_v3, %v3645_v13  ;;  %v3644_v3 = vld [vmem:[#allocation2] sm:$0xff] }
 0x6e2   :  { %6413 = vmatpush1.bf16.msra.mxu1 %v6412_v7  ;;  %v6494_v7 = vpack.c.bf16 %v3651_v6, %v3647_v5  ;;  %v3653_v5 = vld [vmem:[#allocation2 + $0x48] sm:$0xff] }
 0x6e3   :  { %6415 = vmatprep.subr.bf16.mxu1 %v6414_v20  ;;  %v3657_v6 = vld [vmem:[#allocation2 + $0x68] sm:$0xff] }
 0x6e4   :  { %6353 = vmatpush1.bf16.msra.mxu0 %v6352_v11 }
 0x6e5   :  { %6355 = vmatprep.subr.bf16.mxu0 %v6354_v27 }
 0x6e6   :  { %6417 = vmatpush1.bf16.msra.mxu1 %v6416_v21 }
 0x6e7   :  { %6419 = vmatprep.subr.bf16.mxu1 %v6418_v36 }
 0x6e8   :  { %6357 = vmatpush1.bf16.msra.mxu0 %v6356_v26 }
 0x6e9   :  { %6359 = vmatprep.subr.bf16.mxu0 %v6358_v40 }
 0x6ea   :  { %6421 = vmatpush1.bf16.msra.mxu1 %v6420_v37 }
 0x6eb   :  { %6423 = vmatprep.subr.bf16.mxu1 %v6422_v46 }
 0x6ec   :  { %6361 = vmatpush1.bf16.msra.mxu0 %v6360_v45 }
 0x6ed   :  { %6363 = vmatprep.subr.bf16.mxu0 %v6362_v58 }
 0x6ee   :  { %6425 = vmatpush1.bf16.msra.mxu1 %v6424_v51 }
 0x6ef   :  { %6427 = vmatprep.subr.bf16.mxu1 %v6426_v1 }
 0x6f0   :  { %6365 = vmatpush1.bf16.msra.mxu0 %v6364_v63 }
 0x6f1   :  { %6431 = vmatprep.subr.bf16.mxu0 %v6430_v4  ;;  %v3648_v4 = vld [vmem:[#allocation2 + $0x20] sm:$0xff] }
 0x6f2   :  { %6429 = vmatpush1.bf16.msra.mxu1 %v6428_v49 }
 0x6f3   :  { %6495 = vmatprep.subr.bf16.mxu1 %v6494_v7  ;;  %v3646_v7 = vld [vmem:[#allocation2 + $0x10] sm:$0xff] }
 0x746   :  { %v2948_v53 = vpop.f32.mrb[18].mxu0  ;;  %v3019_v8 = vpop.f32.mrb[18].mxu1 }
 0x747   :  { %v2949_v18 = vadd.f32 %v2948_v53, %v7357_v56  ;;  %v2950_v9 = vpop.f32.mrb[19].mxu0  ;;  %v3021_v59 = vpop.f32.mrb[19].mxu1  ;;  %v3020_v20 = vadd.f32 %v3019_v8, %v7372_v15  ;;  %v3650_v53 = vld [vmem:[#allocation2 + $0x30] sm:$0xff] }
 0x748   :  { %v2951_v10 = vadd.f32 %v2950_v9, %v7361_v57  ;;  %v3022_v19 = vadd.f32 %v3021_v59, %v7367_v2  ;;  %v3655_v9 = vld [vmem:[#allocation2 + $0x58] sm:$0xff] }
 0x749   :  { %v4866_v11 = vmul.f32 -1.442695, %v2949_v18  ;;  %v6432_v18 = vpack.c.bf16 %v3648_v4, %v3644_v3  ;;  %v3659_v59 = vld [vmem:[#allocation2 + $0x78] sm:$0xff]  ;;  %v3678_v4 = vld [vmem:[#allocation2 + $0x110] sm:$0xff] }
 0x74a   :  { %v4867_v14 = vmul.f32 -1.442695, %v2951_v10  ;;  %v4868_v12 = vmul.f32 -1.442695, %v3022_v19  ;;  %v3661_v19 = vld [vmem:[#allocation2 + $0x88] sm:$0xff] }
 0x74b   :  { %7091 = vpow2.f32 %v4866_v11  ;;  %v6434_v11 = vpack.c.bf16 %v3657_v6, %v3653_v5  ;;  %v3687_v6 = vld [vmem:[#allocation2 + $0x158] sm:$0xff] }
 0x74c   :  { %7093 = vpow2.f32 %v4867_v14  ;;  %v3652_v14 = vld [vmem:[#allocation2 + $0x40] sm:$0xff] }
 0x74d   :  { %7095 = vpow2.f32 %v4868_v12  ;;  %v3665_v12 = vld [vmem:[#allocation2 + $0xa8] sm:$0xff] }
 0x74e   :  { %7097 = vtanh.f32 %v3020_v20  ;;  %v6496_v20 = vpack.c.bf16 %v3650_v53, %v3646_v7  ;;  %v3691_v7 = vld [vmem:[#allocation2 + $0x178] sm:$0xff] }
 0x755   :  { %v7092_v21 = vpop.eup %7091 }
 0x756   :  { %v7094_v22 = vpop.eup %7093  ;;  %v3027_v25 = vadd.f32 1.0, %v7092_v21  ;;  %v6498_v21 = vpack.c.bf16 %v3659_v59, %v3655_v9  ;;  %v3693_v9 = vld [vmem:[#allocation2 + $0x188] sm:$0xff] }
 0x757   :  { %v3033_v27 = vadd.f32 1.0, %v7094_v22  ;;  %v7096_v28 = vpop.eup %7095  ;;  %v3654_v22 = vld [vmem:[#allocation2 + $0x50] sm:$0xff]  ;;  %v3697_v59 = vld [vmem:[#allocation2 + $0x1a8] sm:$0xff] }
 0x758   :  { %7099 = vrcp.f32 %v3027_v25  ;;  %v7098_v31 = vpop.eup %7097  ;;  %v3040_v35 = vadd.f32 1.0, %v7096_v28  ;;  %v3658_v25 = vld [vmem:[#allocation2 + $0x70] sm:$0xff]  ;;  %v3663_v28 = vld [vmem:[#allocation2 + $0x98] sm:$0xff] }
 0x759   :  { %7101 = vrcp.f32 %v3033_v27 }
 0x75a   :  { %7103 = vrcp.f32 %v3040_v35  ;;  %v3669_v35 = vld [vmem:[#allocation2 + $0xc8] sm:$0xff] }
 0x762   :  { %v7100_v32 = vpop.eup %7099 }
 0x763   :  { %v7102_v26 = vpop.eup %7101  ;;  %v3044_v34 = vmul.f32 %v7100_v32, %v7098_v31  ;;  %v3667_v31 = vld [vmem:[#allocation2 + $0xb8] sm:$0xff]  ;;  %v6438_v32 = vpack.c.bf16 %v3665_v12, %v3661_v19 }
 0x764   :  { %v3043_v23 = vmul.f32 %v7102_v26, %v7441_v33  ;;  %v7104_v37 = vpop.eup %7103  ;;  %v3660_v26 = vld [vmem:[#allocation2 + $0x80] sm:$0xff]  ;;  %v3695_v12 = vld [vmem:[#allocation2 + $0x198] sm:$0xff] }
 0x766   :  { %v7463_v36 = vadd.f32 %v3044_v34, %v3043_v23  ;;  %v3664_v34 = vld [vmem:[#allocation2 + $0xa0] sm:$0xff]  ;;  %v3673_v23 = vld [vmem:[#allocation2 + $0xe8] sm:$0xff] }
 0x768   :  { %7105 = vtanh.f32 %v7463_v36 }
 0x772   :  { %v7106_v38 = vpop.eup %7105 }
 0x773   :  { %v3047_v29 = vmul.f32 %v7106_v38, %v7104_v37  ;;  %v6500_v37 = vpack.c.bf16 %v3658_v25, %v3654_v22  ;;  %v6502_v38 = vpack.c.bf16 %v3667_v31, %v3663_v28  ;;  %v3692_v22 = vld [vmem:[#allocation2 + $0x180] sm:$0xff]  ;;  %v3705_v28 = vld [vmem:[#allocation2 + $0x1e8] sm:$0xff] }
 0x774   :  { %v3696_v25 = vld [vmem:[#allocation2 + $0x1a0] sm:$0xff] }
 0x775   :  { %4869 = vst [vmem:[%s7531_s5 + $0x20] sm:$0xff] %v3047_v29  ;;  %3538 = vmatprep.mubr.f32.mxu0 %v3047_v29  ;;  %3609 = vmatprep.mubr.f32.mxu1 %v3047_v29  ;;  %v3662_v29 = vld [vmem:[#allocation2 + $0x90] sm:$0xff] }
 0x786   :  { %v3246_v39 = vpop.f32.mrb[20].mxu0 }
 0x787   :  { %v3247_v40 = vadd.f32 %v3246_v39, %v7326_v16  ;;  %v3248_v41 = vpop.f32.mrb[21].mxu0  ;;  %v3666_v39 = vld [vmem:[#allocation2 + $0xb0] sm:$0xff] }
 0x788   :  { %v3249_v33 = vadd.f32 %v3248_v41, %v7330_v17  ;;  %v3317_v42 = vpop.f32.mrb[20].mxu1  ;;  %v3671_v41 = vld [vmem:[#allocation2 + $0xd8] sm:$0xff] }
 0x789   :  { %v4871_v43 = vmul.f32 -1.442695, %v3247_v40  ;;  %v3319_v45 = vpop.f32.mrb[21].mxu1  ;;  %v3318_v50 = vadd.f32 %v3317_v42, %v7343_v30  ;;  %v6440_v40 = vpack.c.bf16 %v3664_v34, %v3660_v26  ;;  %v6442_v42 = vpack.c.bf16 %v3673_v23, %v3669_v35  ;;  %v3694_v26 = vld [vmem:[#allocation2 + $0x190] sm:$0xff]  ;;  %v3703_v23 = vld [vmem:[#allocation2 + $0x1d8] sm:$0xff] }
 0x78a   :  { %v4872_v46 = vmul.f32 -1.442695, %v3249_v33  ;;  %v3320_v47 = vadd.f32 %v3319_v45, %v7337_v24  ;;  %v3675_v33 = vld [vmem:[#allocation2 + $0xf8] sm:$0xff]  ;;  %v3672_v45 = vld [vmem:[#allocation2 + $0xe0] sm:$0xff]  ;;  %v3698_v34 = vld [vmem:[#allocation2 + $0x1b0] sm:$0xff]  ;;  %v6456_v35 = vpack.c.bf16 %v3696_v25, %v3692_v22 }
 0x78b   :  { %7107 = vpow2.f32 %v4871_v43  ;;  %v3668_v43 = vld [vmem:[#allocation2 + $0xc0] sm:$0xff]  ;;  %v3726_v22 = vld [vmem:[#allocation2 + $0x290] sm:$0xff] }
 0x78c   :  { %7109 = vpow2.f32 %v4872_v46  ;;  %v4873_v48 = vmul.f32 -1.442695, %v3320_v47  ;;  %v3677_v46 = vld [vmem:[#allocation2 + $0x108] sm:$0xff]  ;;  %v3730_v25 = vld [vmem:[#allocation2 + $0x2b0] sm:$0xff] }
 0x78d   :  { %v3681_v47 = vld [vmem:[#allocation2 + $0x128] sm:$0xff] }
 0x78e   :  { %7111 = vpow2.f32 %v4873_v48  ;;  %v6504_v48 = vpack.c.bf16 %v3666_v39, %v3662_v29  ;;  %v3700_v29 = vld [vmem:[#allocation2 + $0x1c0] sm:$0xff] }
 0x78f   :  { %7113 = vtanh.f32 %v3318_v50  ;;  %v6506_v50 = vpack.c.bf16 %v3675_v33, %v3671_v41  ;;  %v3704_v39 = vld [vmem:[#allocation2 + $0x1e0] sm:$0xff]  ;;  %v3713_v41 = vld [vmem:[#allocation2 + $0x228] sm:$0xff]  ;;  %v6520_v33 = vpack.c.bf16 %v3698_v34, %v3694_v26 }
 0x790   :  { %v3732_v26 = vld [vmem:[#allocation2 + $0x2c0] sm:$0xff] }
 0x791   :  { %v3736_v34 = vld [vmem:[#allocation2 + $0x2e0] sm:$0xff] }
 0x795   :  { %v7108_v51 = vpop.eup %7107 }
 0x796   :  { %v7110_v52 = vpop.eup %7109  ;;  %v3325_v54 = vadd.f32 1.0, %v7108_v51  ;;  %v3670_v51 = vld [vmem:[#allocation2 + $0xd0] sm:$0xff] }
 0x797   :  { %v3331_v55 = vadd.f32 1.0, %v7110_v52  ;;  %v3674_v52 = vld [vmem:[#allocation2 + $0xf0] sm:$0xff] }
 0x798   :  { %7115 = vrcp.f32 %v3325_v54  ;;  %v7112_v58 = vpop.eup %7111  ;;  %v6444_v54 = vpack.c.bf16 %v3672_v45, %v3668_v43  ;;  %v3702_v43 = vld [vmem:[#allocation2 + $0x1d0] sm:$0xff] }
 0x799   :  { %7117 = vrcp.f32 %v3331_v55  ;;  %v7114_v0 = vpop.eup %7113  ;;  %v3338_v61 = vadd.f32 1.0, %v7112_v58  ;;  %v3679_v55 = vld [vmem:[#allocation2 + $0x118] sm:$0xff]  ;;  %v3706_v45 = vld [vmem:[#allocation2 + $0x1f0] sm:$0xff] }
 0x79a   :  { %v3683_v58 = vld [vmem:[#allocation2 + $0x138] sm:$0xff] }
 0x79b   :  { %7119 = vrcp.f32 %v3338_v61  ;;  %v3680_v61 = vld [vmem:[#allocation2 + $0x120] sm:$0xff]  ;;  %v6510_v3 = vpack.c.bf16 %v3683_v58, %v3679_v55  ;;  %v3721_v55 = vld [vmem:[#allocation2 + $0x268] sm:$0xff]  ;;  %v6524_v58 = vpack.c.bf16 %v3706_v45, %v3702_v43 }
 0x79c   :  { %v3740_v43 = vld [vmem:[#allocation2 + $0x300] sm:$0xff] }
 0x79d   :  { %v3744_v45 = vld [vmem:[#allocation2 + $0x320] sm:$0xff] }
 0x7a2   :  { %v7116_v60 = vpop.eup %7115 }
 0x7a3   :  { %v7118_v63 = vpop.eup %7117  ;;  %v3342_v1 = vmul.f32 %v7116_v60, %v7114_v0  ;;  %v6446_v0 = vpack.c.bf16 %v3681_v47, %v3677_v46  ;;  %v3676_v60 = vld [vmem:[#allocation2 + $0x100] sm:$0xff]  ;;  %v6460_v46 = vpack.c.bf16 %v3704_v39, %v3700_v29  ;;  %v3711_v47 = vld [vmem:[#allocation2 + $0x218] sm:$0xff]  ;;  %v3734_v29 = vld [vmem:[#allocation2 + $0x2d0] sm:$0xff] }
 0x7a4   :  { %v3341_v44 = vmul.f32 %v7118_v63, %v7452_v62  ;;  %v3656_v62 = vld [vmem:[#allocation2 + $0x60] sm:$0xff]  ;;  %v3685_v63 = vld [vmem:[#allocation2 + $0x148] sm:$0xff]  ;;  %v6448_v5 = vpack.c.bf16 %v3680_v61, %v3676_v60  ;;  %v3710_v60 = vld [vmem:[#allocation2 + $0x210] sm:$0xff] }
 0x7a5   :  { %v7120_v49 = vpop.eup %7119  ;;  %v6436_v27 = vpack.c.bf16 %v3656_v62, %v3652_v14  ;;  %v3686_v14 = vld [vmem:[#allocation2 + $0x150] sm:$0xff] }
 0x7a6   :  { %v7474_v13 = vadd.f32 %v3342_v1, %v3341_v44  ;;  %v3689_v1 = vld [vmem:[#allocation2 + $0x168] sm:$0xff]  ;;  %v6508_v44 = vpack.c.bf16 %v3674_v52, %v3670_v51  ;;  %v3690_v62 = vld [vmem:[#allocation2 + $0x170] sm:$0xff]  ;;  %v3708_v51 = vld [vmem:[#allocation2 + $0x200] sm:$0xff] }
 0x7a7   :  { %v6450_v53 = vpack.c.bf16 %v3689_v1, %v3685_v63  ;;  %v6516_v31 = vpack.c.bf16 %v3690_v62, %v3686_v14  ;;  %v3712_v52 = vld [vmem:[#allocation2 + $0x220] sm:$0xff]  ;;  %v3714_v61 = vld [vmem:[#allocation2 + $0x230] sm:$0xff]  ;;  %v3719_v1 = vld [vmem:[#allocation2 + $0x258] sm:$0xff] }
 0x7a8   :  { %7121 = vtanh.f32 %v7474_v13  ;;  %v6464_v63 = vpack.c.bf16 %v3712_v52, %v3708_v51  ;;  %v3724_v14 = vld [vmem:[#allocation2 + $0x280] sm:$0xff]  ;;  %v3738_v39 = vld [vmem:[#allocation2 + $0x2f0] sm:$0xff] }
 0x7a9   :  { %v3728_v62 = vld [vmem:[#allocation2 + $0x2a0] sm:$0xff]  ;;  %v3742_v51 = vld [vmem:[#allocation2 + $0x310] sm:$0xff] }
 0x7aa   :  { %v3746_v52 = vld [vmem:[#allocation2 + $0x330] sm:$0xff] }
 0x7b2   :  { %v7122_v8 = vpop.eup %7121 }
 0x7b3   :  { %v3345_v10 = vmul.f32 %v7122_v8, %v7120_v49  ;;  %v3682_v49 = vld [vmem:[#allocation2 + $0x130] sm:$0xff]  ;;  %v3684_v8 = vld [vmem:[#allocation2 + $0x140] sm:$0xff] }
 0x7b5   :  { %3539 = vmatmul.mubr.f32.vlgmr.msra.gmra.mrb[22].mxu0 %v3345_v10  ;;  %3610 = vmatmul.mubr.f32.vlgmr.msra.gmra.mrb[22].mxu1 %v3345_v10 }
 0x7b6   :  { %6433 = vmatpush1.bf16.msra.mxu0 %v6432_v18  ;;  %3836 = vmatprep.mubr.f32.mxu0 %v3345_v10  ;;  %v3688_v18 = vld [vmem:[#allocation2 + $0x160] sm:$0xff] }
 0x7b7   :  { %3907 = vmatprep.mubr.f32.mxu1 %v3345_v10  ;;  %6435 = vmatprep.subr.bf16.mxu0 %v6434_v11  ;;  %v6512_v10 = vpack.c.bf16 %v3682_v49, %v3678_v4  ;;  %v6514_v11 = vpack.c.bf16 %v3691_v7, %v3687_v6  ;;  %v6452_v19 = vpack.c.bf16 %v3688_v18, %v3684_v8  ;;  %v3716_v4 = vld [vmem:[#allocation2 + $0x240] sm:$0xff]  ;;  %v3729_v6 = vld [vmem:[#allocation2 + $0x2a8] sm:$0xff]  ;;  %v3718_v8 = vld [vmem:[#allocation2 + $0x250] sm:$0xff] }
 0x7b8   :  { %6497 = vmatpush1.bf16.msra.mxu1 %v6496_v20  ;;  %v3699_v20 = vld [vmem:[#allocation2 + $0x1b8] sm:$0xff]  ;;  %v3720_v49 = vld [vmem:[#allocation2 + $0x260] sm:$0xff]  ;;  %v6528_v7 = vpack.c.bf16 %v3714_v61, %v3710_v60  ;;  %v3722_v18 = vld [vmem:[#allocation2 + $0x270] sm:$0xff] }
 0x7b9   :  { %6499 = vmatprep.subr.bf16.mxu1 %v6498_v21  ;;  %v6454_v21 = vpack.c.bf16 %v3697_v59, %v3693_v9  ;;  %v6468_v9 = vpack.c.bf16 %v3720_v49, %v3716_v4  ;;  %v3727_v59 = vld [vmem:[#allocation2 + $0x298] sm:$0xff]  ;;  %v3748_v60 = vld [vmem:[#allocation2 + $0x340] sm:$0xff]  ;;  %v3750_v4 = vld [vmem:[#allocation2 + $0x350] sm:$0xff] }
 0x7ba   :  { %6437 = vmatpush1.bf16.msra.mxu0 %v6436_v27  ;;  %v3701_v27 = vld [vmem:[#allocation2 + $0x1c8] sm:$0xff]  ;;  %v3752_v61 = vld [vmem:[#allocation2 + $0x360] sm:$0xff]  ;;  %v3754_v49 = vld [vmem:[#allocation2 + $0x370] sm:$0xff] }
 0x7bb   :  { %6439 = vmatprep.subr.bf16.mxu0 %v6438_v32  ;;  %v6518_v32 = vpack.c.bf16 %v3699_v20, %v3695_v12  ;;  %v3737_v12 = vld [vmem:[#allocation2 + $0x2e8] sm:$0xff]  ;;  %v6532_v20 = vpack.c.bf16 %v3722_v18, %v3718_v8  ;;  %v3756_v8 = vld [vmem:[#allocation2 + $0x380] sm:$0xff] }
 0x7bc   :  { %6501 = vmatpush1.bf16.msra.mxu1 %v6500_v37  ;;  %v3707_v37 = vld [vmem:[#allocation2 + $0x1f8] sm:$0xff]  ;;  %v3760_v18 = vld [vmem:[#allocation2 + $0x3a0] sm:$0xff] }
 0x7bd   :  { %6503 = vmatprep.subr.bf16.mxu1 %v6502_v38  ;;  %v6458_v38 = vpack.c.bf16 %v3705_v28, %v3701_v27  ;;  %v6472_v27 = vpack.c.bf16 %v3728_v62, %v3724_v14  ;;  %v3735_v28 = vld [vmem:[#allocation2 + $0x2d8] sm:$0xff]  ;;  %v3758_v14 = vld [vmem:[#allocation2 + $0x390] sm:$0xff] }
 0x7be   :  { %6441 = vmatpush1.bf16.msra.mxu0 %v6440_v40  ;;  %v3709_v40 = vld [vmem:[#allocation2 + $0x208] sm:$0xff]  ;;  %v3762_v62 = vld [vmem:[#allocation2 + $0x3b0] sm:$0xff] }
 0x7bf   :  { %6443 = vmatprep.subr.bf16.mxu0 %v6442_v42  ;;  %v6522_v42 = vpack.c.bf16 %v3707_v37, %v3703_v23  ;;  %v3745_v23 = vld [vmem:[#allocation2 + $0x328] sm:$0xff]  ;;  %v6536_v37 = vpack.c.bf16 %v3730_v25, %v3726_v22  ;;  %v3764_v22 = vld [vmem:[#allocation2 + $0x3c0] sm:$0xff] }
 0x7c0   :  { %6505 = vmatpush1.bf16.msra.mxu1 %v6504_v48  ;;  %v3715_v48 = vld [vmem:[#allocation2 + $0x238] sm:$0xff]  ;;  %v3768_v25 = vld [vmem:[#allocation2 + $0x3e0] sm:$0xff] }
 0x7c1   :  { %6507 = vmatprep.subr.bf16.mxu1 %v6506_v50  ;;  %v6462_v50 = vpack.c.bf16 %v3713_v41, %v3709_v40  ;;  %v6476_v40 = vpack.c.bf16 %v3736_v34, %v3732_v26  ;;  %v3743_v41 = vld [vmem:[#allocation2 + $0x318] sm:$0xff]  ;;  %v6492_v26 = vpack.c.bf16 %v3768_v25, %v3764_v22 }
 0x7c2   :  { %6445 = vmatpush1.bf16.msra.mxu0 %v6444_v54  ;;  %v3717_v54 = vld [vmem:[#allocation2 + $0x248] sm:$0xff] }
 0x7c3   :  { %6447 = vmatprep.subr.bf16.mxu0 %v6446_v0  ;;  %v6526_v0 = vpack.c.bf16 %v3715_v48, %v3711_v47  ;;  %v3753_v47 = vld [vmem:[#allocation2 + $0x368] sm:$0xff]  ;;  %v6540_v48 = vpack.c.bf16 %v3738_v39, %v3734_v29  ;;  %v3942_v39 = vld [vmem:[#allocation4 + $0x20] sm:$0xff] }
 0x7c4   :  { %6509 = vmatpush1.bf16.msra.mxu1 %v6508_v44  ;;  %v3723_v44 = vld [vmem:[#allocation2 + $0x278] sm:$0xff] }
 0x7c5   :  { %6511 = vmatprep.subr.bf16.mxu1 %v6510_v3  ;;  %v6466_v3 = vpack.c.bf16 %v3721_v55, %v3717_v54  ;;  %v6480_v54 = vpack.c.bf16 %v3744_v45, %v3740_v43  ;;  %v3751_v55 = vld [vmem:[#allocation2 + $0x358] sm:$0xff]  ;;  %v3940_v43 = vld [vmem:[#allocation4 + $0x10] sm:$0xff] }
 0x7c6   :  { %6449 = vmatpush1.bf16.msra.mxu0 %v6448_v5  ;;  %v3725_v5 = vld [vmem:[#allocation2 + $0x288] sm:$0xff]  ;;  %v3944_v45 = vld [vmem:[#allocation4 + $0x30] sm:$0xff] }
 0x7c7   :  { %6451 = vmatprep.subr.bf16.mxu0 %v6450_v53  ;;  %v6530_v53 = vpack.c.bf16 %v3723_v44, %v3719_v1  ;;  %v3761_v1 = vld [vmem:[#allocation2 + $0x3a8] sm:$0xff]  ;;  %v6544_v44 = vpack.c.bf16 %v3746_v52, %v3742_v51  ;;  %v3950_v52 = vld [vmem:[#allocation4 + $0x60] sm:$0xff] }
 0x7c8   :  { %6513 = vmatpush1.bf16.msra.mxu1 %v6512_v10  ;;  %v3731_v10 = vld [vmem:[#allocation2 + $0x2b8] sm:$0xff] }
 0x7c9   :  { %6515 = vmatprep.subr.bf16.mxu1 %v6514_v11  ;;  %v6470_v11 = vpack.c.bf16 %v3729_v6, %v3725_v5  ;;  %v6484_v5 = vpack.c.bf16 %v3752_v61, %v3748_v60  ;;  %v3759_v6 = vld [vmem:[#allocation2 + $0x398] sm:$0xff]  ;;  %v3948_v60 = vld [vmem:[#allocation4 + $0x50] sm:$0xff] }
 0x7ca   :  { %6453 = vmatpush1.bf16.msra.mxu0 %v6452_v19  ;;  %v3733_v19 = vld [vmem:[#allocation2 + $0x2c8] sm:$0xff]  ;;  %v3952_v61 = vld [vmem:[#allocation4 + $0x70] sm:$0xff] }
 0x7cb   :  { %6455 = vmatprep.subr.bf16.mxu0 %v6454_v21  ;;  %v6534_v21 = vpack.c.bf16 %v3731_v10, %v3727_v59  ;;  %v3769_v59 = vld [vmem:[#allocation2 + $0x3e8] sm:$0xff]  ;;  %v6548_v10 = vpack.c.bf16 %v3754_v49, %v3750_v4  ;;  %v3958_v4 = vld [vmem:[#allocation4 + $0xa0] sm:$0xff] }
 0x7cc   :  { %6517 = vmatpush1.bf16.msra.mxu1 %v6516_v31  ;;  %v3739_v31 = vld [vmem:[#allocation2 + $0x2f8] sm:$0xff] }
 0x7cd   :  { %6519 = vmatprep.subr.bf16.mxu1 %v6518_v32  ;;  %v6474_v32 = vpack.c.bf16 %v3737_v12, %v3733_v19  ;;  %v6488_v19 = vpack.c.bf16 %v3760_v18, %v3756_v8  ;;  %v3767_v12 = vld [vmem:[#allocation2 + $0x3d8] sm:$0xff]  ;;  %v3960_v18 = vld [vmem:[#allocation4 + $0xb0] sm:$0xff] }
 0x7ce   :  { %6457 = vmatpush1.bf16.msra.mxu0 %v6456_v35  ;;  %v3741_v35 = vld [vmem:[#allocation2 + $0x308] sm:$0xff] }
 0x7cf   :  { %6459 = vmatprep.subr.bf16.mxu0 %v6458_v38  ;;  %v6538_v38 = vpack.c.bf16 %v3739_v31, %v3735_v28  ;;  %v3766_v31 = vld [vmem:[#allocation2 + $0x3d0] sm:$0xff] }
 0x7d0   :  { %6521 = vmatpush1.bf16.msra.mxu1 %v6520_v33  ;;  %v3747_v33 = vld [vmem:[#allocation2 + $0x338] sm:$0xff] }
 0x7d1   :  { %6523 = vmatprep.subr.bf16.mxu1 %v6522_v42  ;;  %v6478_v42 = vpack.c.bf16 %v3745_v23, %v3741_v35  ;;  %v4878_v35 = vld [vmem:[%s7526_s0 + $0x30] sm:$0xff]  ;;  %v3939_v23 = vld [vmem:[#allocation4 + $0x8] sm:$0xff] }
 0x7d2   :  { %6461 = vmatpush1.bf16.msra.mxu0 %v6460_v46  ;;  %v3749_v46 = vld [vmem:[#allocation2 + $0x348] sm:$0xff] }
 0x7d3   :  { %6463 = vmatprep.subr.bf16.mxu0 %v6462_v50  ;;  %v6542_v50 = vpack.c.bf16 %v3747_v33, %v3743_v41  ;;  %v3945_v41 = vld [vmem:[#allocation4 + $0x38] sm:$0xff] }
 0x7d4   :  { %6525 = vmatpush1.bf16.msra.mxu1 %v6524_v58  ;;  %v3755_v58 = vld [vmem:[#allocation2 + $0x378] sm:$0xff] }
 0x7d5   :  { %6527 = vmatprep.subr.bf16.mxu1 %v6526_v0  ;;  %v6482_v0 = vpack.c.bf16 %v3753_v47, %v3749_v46  ;;  %v6624_v46 = vpack.c.bf16 %v3944_v45, %v3940_v43  ;;  %v3947_v47 = vld [vmem:[#allocation4 + $0x48] sm:$0xff]  ;;  %v3978_v43 = vld [vmem:[#allocation4 + $0x140] sm:$0xff] }
 0x7d6   :  { %6465 = vmatpush1.bf16.msra.mxu0 %v6464_v63  ;;  %v3757_v63 = vld [vmem:[#allocation2 + $0x388] sm:$0xff]  ;;  %v3982_v45 = vld [vmem:[#allocation4 + $0x160] sm:$0xff] }
 0x7d7   :  { %6467 = vmatprep.subr.bf16.mxu0 %v6466_v3  ;;  %v6546_v3 = vpack.c.bf16 %v3755_v58, %v3751_v55  ;;  %v3953_v55 = vld [vmem:[#allocation4 + $0x78] sm:$0xff] }
 0x7d8   :  { %6529 = vmatpush1.bf16.msra.mxu1 %v6528_v7  ;;  %v3763_v7 = vld [vmem:[#allocation2 + $0x3b8] sm:$0xff] }
 0x7d9   :  { %6531 = vmatprep.subr.bf16.mxu1 %v6530_v53  ;;  %v6486_v53 = vpack.c.bf16 %v3761_v1, %v3757_v63  ;;  %v3955_v63 = vld [vmem:[#allocation4 + $0x88] sm:$0xff]  ;;  %v6628_v1 = vpack.c.bf16 %v3952_v61, %v3948_v60  ;;  %v3986_v60 = vld [vmem:[#allocation4 + $0x180] sm:$0xff] }
 0x7da   :  { %6469 = vmatpush1.bf16.msra.mxu0 %v6468_v9  ;;  %v3765_v9 = vld [vmem:[#allocation2 + $0x3c8] sm:$0xff]  ;;  %v3990_v61 = vld [vmem:[#allocation4 + $0x1a0] sm:$0xff] }
 0x7db   :  { %6471 = vmatprep.subr.bf16.mxu0 %v6470_v11  ;;  %v6550_v11 = vpack.c.bf16 %v3763_v7, %v3759_v6  ;;  %v3957_v6 = vld [vmem:[#allocation4 + $0x98] sm:$0xff] }
 0x7dc   :  { %6533 = vmatpush1.bf16.msra.mxu1 %v6532_v20  ;;  %v3771_v20 = vld [vmem:[#allocation2 + $0x3f8] sm:$0xff] }
 0x7dd   :  { %6535 = vmatprep.subr.bf16.mxu1 %v6534_v21  ;;  %v6490_v21 = vpack.c.bf16 %v3769_v59, %v3765_v9  ;;  %v6554_v28 = vpack.c.bf16 %v3771_v20, %v3767_v12  ;;  %v3961_v7 = vld [vmem:[#allocation4 + $0xb8] sm:$0xff]  ;;  %v3963_v9 = vld [vmem:[#allocation4 + $0xc8] sm:$0xff]  ;;  %v3964_v20 = vld [vmem:[#allocation4 + $0xd0] sm:$0xff] }
 0x7de   :  { %6473 = vmatpush1.bf16.msra.mxu0 %v6472_v27  ;;  %v6552_v27 = vpack.c.bf16 %v3762_v62, %v3758_v14  ;;  %v6630_v8 = vpack.c.bf16 %v3961_v7, %v3957_v6  ;;  %v3967_v59 = vld [vmem:[#allocation4 + $0xe8] sm:$0xff]  ;;  %v3962_v14 = vld [vmem:[#allocation4 + $0xc0] sm:$0xff]  ;;  %v3969_v12 = vld [vmem:[#allocation4 + $0xf8] sm:$0xff] }
 0x7df   :  { %6475 = vmatprep.subr.bf16.mxu0 %v6474_v32  ;;  %v3770_v32 = vld [vmem:[#allocation2 + $0x3f0] sm:$0xff]  ;;  %v3966_v62 = vld [vmem:[#allocation4 + $0xe0] sm:$0xff]  ;;  %v3995_v6 = vld [vmem:[#allocation4 + $0x1c8] sm:$0xff] }
 0x7e0   :  { %6537 = vmatpush1.bf16.msra.mxu1 %v6536_v37  ;;  %v6556_v34 = vpack.c.bf16 %v3770_v32, %v3766_v31  ;;  %v3943_v37 = vld [vmem:[#allocation4 + $0x28] sm:$0xff]  ;;  %v6572_v22 = vpack.c.bf16 %v3966_v62, %v3962_v14  ;;  %v3970_v31 = vld [vmem:[#allocation4 + $0x100] sm:$0xff]  ;;  %v4000_v14 = vld [vmem:[#allocation4 + $0x1f0] sm:$0xff] }
 0x7e1   :  { %6539 = vmatprep.subr.bf16.mxu1 %v6538_v38  ;;  %v3938_v38 = vld [vmem:[#allocation4] sm:$0xff]  ;;  %v6558_v29 = vpack.c.bf16 %v3943_v37, %v3939_v23  ;;  %v3977_v23 = vld [vmem:[#allocation4 + $0x138] sm:$0xff]  ;;  %v3999_v7 = vld [vmem:[#allocation4 + $0x1e8] sm:$0xff] }
 0x7e2   :  { %6477 = vmatpush1.bf16.msra.mxu0 %v6476_v40  ;;  %v3941_v40 = vld [vmem:[#allocation4 + $0x18] sm:$0xff]  ;;  %v6560_v33 = vpack.c.bf16 %v3942_v39, %v3938_v38  ;;  %v3976_v39 = vld [vmem:[#allocation4 + $0x130] sm:$0xff] }
 0x7e3   :  { %6479 = vmatprep.subr.bf16.mxu0 %v6478_v42  ;;  %v6622_v42 = vpack.c.bf16 %v3945_v41, %v3941_v40  ;;  %v3979_v41 = vld [vmem:[#allocation4 + $0x148] sm:$0xff] }
 0x7e4   :  { %6541 = vmatpush1.bf16.msra.mxu1 %v6540_v48  ;;  %v3951_v48 = vld [vmem:[#allocation4 + $0x68] sm:$0xff] }
 0x7e5   :  { %6543 = vmatprep.subr.bf16.mxu1 %v6542_v50  ;;  %v3946_v50 = vld [vmem:[#allocation4 + $0x40] sm:$0xff]  ;;  %v6562_v51 = vpack.c.bf16 %v3951_v48, %v3947_v47  ;;  %v6580_v47 = vpack.c.bf16 %v3982_v45, %v3978_v43  ;;  %v3985_v48 = vld [vmem:[#allocation4 + $0x178] sm:$0xff]  ;;  %v4016_v43 = vld [vmem:[#allocation4 + $0x270] sm:$0xff] }
 0x7e6   :  { %6481 = vmatpush1.bf16.msra.mxu0 %v6480_v54  ;;  %v3949_v54 = vld [vmem:[#allocation4 + $0x58] sm:$0xff]  ;;  %v6564_v58 = vpack.c.bf16 %v3950_v52, %v3946_v50  ;;  %v3980_v50 = vld [vmem:[#allocation4 + $0x150] sm:$0xff] }
 0x7e7   :  { %6483 = vmatprep.subr.bf16.mxu0 %v6482_v0  ;;  %v6626_v0 = vpack.c.bf16 %v3953_v55, %v3949_v54  ;;  %v3987_v55 = vld [vmem:[#allocation4 + $0x188] sm:$0xff] }
 0x7e8   :  { %6545 = vmatpush1.bf16.msra.mxu1 %v6544_v44  ;;  %v3959_v44 = vld [vmem:[#allocation4 + $0xa8] sm:$0xff] }
 0x7e9   :  { %6547 = vmatprep.subr.bf16.mxu1 %v6546_v3  ;;  %v3954_v3 = vld [vmem:[#allocation4 + $0x80] sm:$0xff]  ;;  %v6566_v49 = vpack.c.bf16 %v3959_v44, %v3955_v63  ;;  %v3989_v63 = vld [vmem:[#allocation4 + $0x198] sm:$0xff] }
 0x7ea   :  { %6485 = vmatpush1.bf16.msra.mxu0 %v6484_v5  ;;  %v6568_v5 = vpack.c.bf16 %v3958_v4, %v3954_v3  ;;  %v3993_v44 = vld [vmem:[#allocation4 + $0x1b8] sm:$0xff]  ;;  %v3988_v3 = vld [vmem:[#allocation4 + $0x190] sm:$0xff] }
 0x7eb   :  { %6487 = vmatprep.subr.bf16.mxu0 %v6486_v53  ;;  %v3956_v53 = vld [vmem:[#allocation4 + $0x90] sm:$0xff] }
 0x7ec   :  { %6549 = vmatpush1.bf16.msra.mxu1 %v6548_v10  ;;  %v6632_v10 = vpack.c.bf16 %v3960_v18, %v3956_v53  ;;  %v3992_v4 = vld [vmem:[#allocation4 + $0x1b0] sm:$0xff]  ;;  %v6586_v53 = vpack.c.bf16 %v3999_v7, %v3995_v6  ;;  %v3998_v18 = vld [vmem:[#allocation4 + $0x1e0] sm:$0xff]  ;;  %v4033_v7 = vld [vmem:[#allocation4 + $0x2f8] sm:$0xff] }
 0x7ed   :  { %6551 = vmatprep.subr.bf16.mxu1 %v6550_v11  ;;  %v6570_v11 = vpack.c.bf16 %v3967_v59, %v3963_v9  ;;  %v3997_v9 = vld [vmem:[#allocation4 + $0x1d8] sm:$0xff] }
 0x7ee   :  { %6489 = vmatpush1.bf16.msra.mxu0 %v6488_v19  ;;  %v3965_v19 = vld [vmem:[#allocation4 + $0xd8] sm:$0xff] }
 0x7ef   :  { %6491 = vmatprep.subr.bf16.mxu0 %v6490_v21  ;;  %v3968_v21 = vld [vmem:[#allocation4 + $0xf0] sm:$0xff]  ;;  %v6634_v25 = vpack.c.bf16 %v3969_v12, %v3965_v19  ;;  %v4003_v12 = vld [vmem:[#allocation4 + $0x208] sm:$0xff] }
 0x7f0   :  { %6553 = vmatpush1.bf16.msra.mxu1 %v6552_v27  ;;  %v3971_v27 = vld [vmem:[#allocation4 + $0x108] sm:$0xff]  ;;  %v6636_v32 = vpack.c.bf16 %v3968_v21, %v3964_v20 }
 0x7f1   :  { %6555 = vmatprep.subr.bf16.mxu1 %v6554_v28  ;;  %v3975_v28 = vld [vmem:[#allocation4 + $0x128] sm:$0xff] }
 0x7f2   :  { %6493 = vmatpush1.bf16.msra.mxu0 %v6492_v26  ;;  %v6574_v26 = vpack.c.bf16 %v3975_v28, %v3971_v27  ;;  %v4007_v20 = vld [vmem:[#allocation4 + $0x228] sm:$0xff]  ;;  %v4005_v27 = vld [vmem:[#allocation4 + $0x218] sm:$0xff] }
 0x7f3   :  { %6559 = vmatprep.subr.bf16.mxu0 %v6558_v29  ;;  %v3972_v29 = vld [vmem:[#allocation4 + $0x110] sm:$0xff]  ;;  %v6590_v21 = vpack.c.bf16 %v4007_v20, %v4003_v12  ;;  %v4041_v20 = vld [vmem:[#allocation4 + $0x338] sm:$0xff] }
 0x7f4   :  { %6557 = vmatpush1.bf16.msra.mxu1 %v6556_v34  ;;  %v3974_v34 = vld [vmem:[#allocation4 + $0x120] sm:$0xff]  ;;  %v6640_v40 = vpack.c.bf16 %v3976_v39, %v3972_v29 }
 0x7f5   :  { %3837 = vmatmul.mubr.f32.vlgmr.msra.gmra.mrb[24].mxu0 %v4878_v35  ;;  %6623 = vmatprep.subr.bf16.mxu1 %v6622_v42  ;;  %v6576_v38 = vpack.c.bf16 %v3974_v34, %v3970_v31  ;;  %v4009_v31 = vld [vmem:[#allocation4 + $0x238] sm:$0xff]  ;;  %v4010_v29 = vld [vmem:[#allocation4 + $0x240] sm:$0xff] }
 0x7f6   :  { %6561 = vmatpush1.bf16.msra.mxu0 %v6560_v33  ;;  %v3983_v33 = vld [vmem:[#allocation4 + $0x168] sm:$0xff]  ;;  %v6654_v34 = vpack.c.bf16 %v4009_v31, %v4005_v27  ;;  %v4014_v39 = vld [vmem:[#allocation4 + $0x260] sm:$0xff] }
 0x7f7   :  { %3908 = vmatmul.mubr.f32.vlgmr.msra.gmra.mrb[24].mxu1 %v4878_v35  ;;  %6563 = vmatprep.subr.bf16.mxu0 %v6562_v51  ;;  %v3973_v35 = vld [vmem:[#allocation4 + $0x118] sm:$0xff]  ;;  %v6578_v42 = vpack.c.bf16 %v3983_v33, %v3979_v41  ;;  %v3984_v51 = vld [vmem:[#allocation4 + $0x170] sm:$0xff]  ;;  %v6596_v41 = vpack.c.bf16 %v4014_v39, %v4010_v29  ;;  %v4047_v31 = vld [vmem:[#allocation4 + $0x368] sm:$0xff] }
 0x7f8   :  { %6625 = vmatpush1.bf16.msra.mxu1 %v6624_v46  ;;  %v6638_v37 = vpack.c.bf16 %v3977_v23, %v3973_v35  ;;  %v3981_v46 = vld [vmem:[#allocation4 + $0x158] sm:$0xff]  ;;  %v6644_v54 = vpack.c.bf16 %v3984_v51, %v3980_v50  ;;  %v4011_v23 = vld [vmem:[#allocation4 + $0x248] sm:$0xff]  ;;  %v4018_v51 = vld [vmem:[#allocation4 + $0x280] sm:$0xff] }
 0x7f9   :  { %6627 = vmatprep.subr.bf16.mxu1 %v6626_v0  ;;  %v6642_v52 = vpack.c.bf16 %v3985_v48, %v3981_v46  ;;  %v4017_v33 = vld [vmem:[#allocation4 + $0x278] sm:$0xff]  ;;  %v4023_v48 = vld [vmem:[#allocation4 + $0x2a8] sm:$0xff]  ;;  %v4048_v29 = vld [vmem:[#allocation4 + $0x370] sm:$0xff] }
 0x7fa   :  { %6565 = vmatpush1.bf16.msra.mxu0 %v6564_v58  ;;  %v3991_v58 = vld [vmem:[#allocation4 + $0x1a8] sm:$0xff] }
 0x7fb   :  { %6567 = vmatprep.subr.bf16.mxu0 %v6566_v49  ;;  %v6582_v0 = vpack.c.bf16 %v3991_v58, %v3987_v55  ;;  %v6646_v49 = vpack.c.bf16 %v3993_v44, %v3989_v63  ;;  %v4025_v58 = vld [vmem:[#allocation4 + $0x2b8] sm:$0xff]  ;;  %v4031_v44 = vld [vmem:[#allocation4 + $0x2e8] sm:$0xff] }
 0x7fc   :  { %6629 = vmatpush1.bf16.msra.mxu1 %v6628_v1  ;;  %v6584_v1 = vpack.c.bf16 %v3990_v61, %v3986_v60  ;;  %v4024_v60 = vld [vmem:[#allocation4 + $0x2b0] sm:$0xff] }
 0x7fd   :  { %6631 = vmatprep.subr.bf16.mxu1 %v6630_v8  ;;  %v3994_v8 = vld [vmem:[#allocation4 + $0x1c0] sm:$0xff] }
 0x7fe   :  { %6569 = vmatpush1.bf16.msra.mxu0 %v6568_v5  ;;  %v6648_v5 = vpack.c.bf16 %v3992_v4, %v3988_v3  ;;  %v6588_v59 = vpack.c.bf16 %v3998_v18, %v3994_v8  ;;  %v4026_v4 = vld [vmem:[#allocation4 + $0x2c0] sm:$0xff]  ;;  %v4032_v8 = vld [vmem:[#allocation4 + $0x2f0] sm:$0xff] }
 0x7ff   :  { %6571 = vmatprep.subr.bf16.mxu0 %v6570_v11  ;;  %v3996_v11 = vld [vmem:[#allocation4 + $0x1d0] sm:$0xff] }
 0x800   :  { %6633 = vmatpush1.bf16.msra.mxu1 %v6632_v10  ;;  %v4001_v10 = vld [vmem:[#allocation4 + $0x1f8] sm:$0xff]  ;;  %v6652_v19 = vpack.c.bf16 %v4000_v14, %v3996_v11  ;;  %v4034_v14 = vld [vmem:[#allocation4 + $0x300] sm:$0xff] }
 0x801   :  { %6635 = vmatprep.subr.bf16.mxu1 %v6634_v25  ;;  %v6650_v62 = vpack.c.bf16 %v4001_v10, %v3997_v9  ;;  %v4006_v25 = vld [vmem:[#allocation4 + $0x220] sm:$0xff]  ;;  %v4039_v10 = vld [vmem:[#allocation4 + $0x328] sm:$0xff] }
 0x802   :  { %6573 = vmatpush1.bf16.msra.mxu0 %v6572_v22  ;;  %v4002_v22 = vld [vmem:[#allocation4 + $0x200] sm:$0xff] }
 0x803   :  { %6575 = vmatprep.subr.bf16.mxu0 %v6574_v26  ;;  %v6592_v28 = vpack.c.bf16 %v4006_v25, %v4002_v22  ;;  %v4008_v26 = vld [vmem:[#allocation4 + $0x230] sm:$0xff] }
 0x804   :  { %6637 = vmatpush1.bf16.msra.mxu1 %v6636_v32  ;;  %v4004_v32 = vld [vmem:[#allocation4 + $0x210] sm:$0xff] }
 0x805   :  { %6639 = vmatprep.subr.bf16.mxu1 %v6638_v37  ;;  %v6656_v35 = vpack.c.bf16 %v4008_v26, %v4004_v32  ;;  %v4015_v37 = vld [vmem:[#allocation4 + $0x268] sm:$0xff]  ;;  %v4040_v22 = vld [vmem:[#allocation4 + $0x330] sm:$0xff]  ;;  %v4042_v26 = vld [vmem:[#allocation4 + $0x340] sm:$0xff] }
 0x806   :  { %6577 = vmatpush1.bf16.msra.mxu0 %v6576_v38  ;;  %v6594_v38 = vpack.c.bf16 %v4015_v37, %v4011_v23  ;;  %v4049_v37 = vld [vmem:[#allocation4 + $0x378] sm:$0xff] }
 0x807   :  { %6579 = vmatprep.subr.bf16.mxu0 %v6578_v42  ;;  %v4012_v42 = vld [vmem:[#allocation4 + $0x250] sm:$0xff] }
 0x808   :  { %6641 = vmatpush1.bf16.msra.mxu1 %v6640_v40  ;;  %v4013_v40 = vld [vmem:[#allocation4 + $0x258] sm:$0xff]  ;;  %v6660_v46 = vpack.c.bf16 %v4016_v43, %v4012_v42  ;;  %v4050_v42 = vld [vmem:[#allocation4 + $0x380] sm:$0xff] }
 0x809   :  { %6643 = vmatprep.subr.bf16.mxu1 %v6642_v52  ;;  %v6658_v45 = vpack.c.bf16 %v4017_v33, %v4013_v40  ;;  %v4022_v52 = vld [vmem:[#allocation4 + $0x2a0] sm:$0xff]  ;;  %v4055_v33 = vld [vmem:[#allocation4 + $0x3a8] sm:$0xff] }
 0x80a   :  { %6581 = vmatpush1.bf16.msra.mxu0 %v6580_v47  ;;  %v4019_v47 = vld [vmem:[#allocation4 + $0x288] sm:$0xff]  ;;  %v6600_v55 = vpack.c.bf16 %v4022_v52, %v4018_v51  ;;  %v4052_v51 = vld [vmem:[#allocation4 + $0x390] sm:$0xff] }
 0x80b   :  { %6583 = vmatprep.subr.bf16.mxu0 %v6582_v0  ;;  %v6598_v50 = vpack.c.bf16 %v4023_v48, %v4019_v47  ;;  %v4020_v0 = vld [vmem:[#allocation4 + $0x290] sm:$0xff]  ;;  %v4057_v47 = vld [vmem:[#allocation4 + $0x3b8] sm:$0xff] }
 0x80c   :  { %6645 = vmatpush1.bf16.msra.mxu1 %v6644_v54  ;;  %v4021_v54 = vld [vmem:[#allocation4 + $0x298] sm:$0xff]  ;;  %v6664_v63 = vpack.c.bf16 %v4024_v60, %v4020_v0  ;;  %v4056_v52 = vld [vmem:[#allocation4 + $0x3b0] sm:$0xff]  ;;  %v4058_v0 = vld [vmem:[#allocation4 + $0x3c0] sm:$0xff] }
 0x80d   :  { %6647 = vmatprep.subr.bf16.mxu1 %v6646_v49  ;;  %v6662_v61 = vpack.c.bf16 %v4025_v58, %v4021_v54  ;;  %v4030_v49 = vld [vmem:[#allocation4 + $0x2e0] sm:$0xff]  ;;  %v4059_v54 = vld [vmem:[#allocation4 + $0x3c8] sm:$0xff] }
 0x80e   :  { %6585 = vmatpush1.bf16.msra.mxu0 %v6584_v1  ;;  %v4027_v1 = vld [vmem:[#allocation4 + $0x2c8] sm:$0xff]  ;;  %v6604_v6 = vpack.c.bf16 %v4030_v49, %v4026_v4  ;;  %v4062_v60 = vld [vmem:[#allocation4 + $0x3e0] sm:$0xff]  ;;  %v4064_v49 = vld [vmem:[#allocation4 + $0x3f0] sm:$0xff] }
 0x80f   :  { %6587 = vmatprep.subr.bf16.mxu0 %v6586_v53  ;;  %v6602_v3 = vpack.c.bf16 %v4031_v44, %v4027_v1  ;;  %v4028_v53 = vld [vmem:[#allocation4 + $0x2d0] sm:$0xff]  ;;  %v4063_v58 = vld [vmem:[#allocation4 + $0x3e8] sm:$0xff]  ;;  %v4065_v1 = vld [vmem:[#allocation4 + $0x3f8] sm:$0xff] }
 0x810   :  { %6649 = vmatpush1.bf16.msra.mxu1 %v6648_v5  ;;  %v4029_v5 = vld [vmem:[#allocation4 + $0x2d8] sm:$0xff]  ;;  %v6668_v9 = vpack.c.bf16 %v4032_v8, %v4028_v53  ;;  %v4060_v44 = vld [vmem:[#allocation4 + $0x3d0] sm:$0xff] }
 0x811   :  { %6651 = vmatprep.subr.bf16.mxu1 %v6650_v62  ;;  %v6666_v18 = vpack.c.bf16 %v4033_v7, %v4029_v5  ;;  %v4038_v62 = vld [vmem:[#allocation4 + $0x320] sm:$0xff]  ;;  %v4237_v5 = vld [vmem:[#allocation2 + $0x8] sm:$0xff]  ;;  %v6684_v53 = vpack.c.bf16 %v4064_v49, %v4060_v44  ;;  %v4239_v8 = vld [vmem:[#allocation2 + $0x18] sm:$0xff] }
 0x812   :  { %6589 = vmatpush1.bf16.msra.mxu0 %v6588_v59  ;;  %v4035_v59 = vld [vmem:[#allocation4 + $0x308] sm:$0xff]  ;;  %v6608_v12 = vpack.c.bf16 %v4038_v62, %v4034_v14 }
 0x813   :  { %6591 = vmatprep.subr.bf16.mxu0 %v6590_v21  ;;  %v6606_v11 = vpack.c.bf16 %v4039_v10, %v4035_v59  ;;  %v4036_v21 = vld [vmem:[#allocation4 + $0x310] sm:$0xff] }
 0x814   :  { %6653 = vmatpush1.bf16.msra.mxu1 %v6652_v19  ;;  %v4037_v19 = vld [vmem:[#allocation4 + $0x318] sm:$0xff]  ;;  %v6672_v27 = vpack.c.bf16 %v4040_v22, %v4036_v21 }
 0x815   :  { %6655 = vmatprep.subr.bf16.mxu1 %v6654_v34  ;;  %v6670_v25 = vpack.c.bf16 %v4041_v20, %v4037_v19  ;;  %v4046_v34 = vld [vmem:[#allocation4 + $0x360] sm:$0xff] }
 0x816   :  { %6593 = vmatpush1.bf16.msra.mxu0 %v6592_v28  ;;  %v4043_v28 = vld [vmem:[#allocation4 + $0x348] sm:$0xff]  ;;  %v6612_v23 = vpack.c.bf16 %v4046_v34, %v4042_v26 }
 0x817   :  { %6595 = vmatprep.subr.bf16.mxu0 %v6594_v38  ;;  %v6610_v32 = vpack.c.bf16 %v4047_v31, %v4043_v28  ;;  %v4044_v38 = vld [vmem:[#allocation4 + $0x350] sm:$0xff] }
 0x818   :  { %6657 = vmatpush1.bf16.msra.mxu1 %v6656_v35  ;;  %v4045_v35 = vld [vmem:[#allocation4 + $0x358] sm:$0xff]  ;;  %v6676_v40 = vpack.c.bf16 %v4048_v29, %v4044_v38 }
 0x819   :  { %6659 = vmatprep.subr.bf16.mxu1 %v6658_v45  ;;  %v6674_v39 = vpack.c.bf16 %v4049_v37, %v4045_v35  ;;  %v4054_v45 = vld [vmem:[#allocation4 + $0x3a0] sm:$0xff] }
 0x81a   :  { %6597 = vmatpush1.bf16.msra.mxu0 %v6596_v41  ;;  %v4051_v41 = vld [vmem:[#allocation4 + $0x388] sm:$0xff]  ;;  %v6616_v48 = vpack.c.bf16 %v4054_v45, %v4050_v42 }
 0x81b   :  { %6599 = vmatprep.subr.bf16.mxu0 %v6598_v50  ;;  %v6614_v43 = vpack.c.bf16 %v4055_v33, %v4051_v41 }
 0x81c   :  { %6661 = vmatpush1.bf16.msra.mxu1 %v6660_v46  ;;  %v4053_v46 = vld [vmem:[#allocation4 + $0x398] sm:$0xff] }
 0x81d   :  { %6663 = vmatprep.subr.bf16.mxu1 %v6662_v61  ;;  %v6678_v50 = vpack.c.bf16 %v4057_v47, %v4053_v46  ;;  %v6618_v61 = vpack.c.bf16 %v4063_v58, %v4059_v54 }
 0x81e   :  { %6601 = vmatpush1.bf16.msra.mxu0 %v6600_v55  ;;  %v6680_v55 = vpack.c.bf16 %v4056_v52, %v4052_v51 }
 0x81f   :  { %6603 = vmatprep.subr.bf16.mxu0 %v6602_v3  ;;  %v6620_v3 = vpack.c.bf16 %v4062_v60, %v4058_v0 }
 0x820   :  { %6665 = vmatpush1.bf16.msra.mxu1 %v6664_v63  ;;  %v4061_v63 = vld [vmem:[#allocation4 + $0x3d8] sm:$0xff] }
 0x821   :  { %6667 = vmatprep.subr.bf16.mxu1 %v6666_v18  ;;  %v6682_v4 = vpack.c.bf16 %v4065_v1, %v4061_v63  ;;  %v4243_v18 = vld [vmem:[#allocation2 + $0x38] sm:$0xff] }
 0x822   :  { %6605 = vmatpush1.bf16.msra.mxu0 %v6604_v6  ;;  %v4241_v6 = vld [vmem:[#allocation2 + $0x28] sm:$0xff] }
 0x823   :  { %6607 = vmatprep.subr.bf16.mxu0 %v6606_v11  ;;  %v6686_v7 = vpack.c.bf16 %v4241_v6, %v4237_v5  ;;  %v4236_v6 = vld [vmem:[#allocation2] sm:$0xff] }
 0x824   :  { %6669 = vmatpush1.bf16.msra.mxu1 %v6668_v9  ;;  %v6750_v9 = vpack.c.bf16 %v4243_v18, %v4239_v8  ;;  %v4245_v8 = vld [vmem:[#allocation2 + $0x48] sm:$0xff] }
 0x825   :  { %6671 = vmatprep.subr.bf16.mxu1 %v6670_v25  ;;  %v4249_v18 = vld [vmem:[#allocation2 + $0x68] sm:$0xff] }
 0x826   :  { %6609 = vmatpush1.bf16.msra.mxu0 %v6608_v12 }
 0x827   :  { %6611 = vmatprep.subr.bf16.mxu0 %v6610_v32 }
 0x828   :  { %6673 = vmatpush1.bf16.msra.mxu1 %v6672_v27 }
 0x829   :  { %6675 = vmatprep.subr.bf16.mxu1 %v6674_v39 }
 0x82a   :  { %6613 = vmatpush1.bf16.msra.mxu0 %v6612_v23 }
 0x82b   :  { %6615 = vmatprep.subr.bf16.mxu0 %v6614_v43 }
 0x82c   :  { %6677 = vmatpush1.bf16.msra.mxu1 %v6676_v40 }
 0x82d   :  { %6679 = vmatprep.subr.bf16.mxu1 %v6678_v50 }
 0x82e   :  { %6617 = vmatpush1.bf16.msra.mxu0 %v6616_v48 }
 0x82f   :  { %6619 = vmatprep.subr.bf16.mxu0 %v6618_v61 }
 0x830   :  { %6681 = vmatpush1.bf16.msra.mxu1 %v6680_v55 }
 0x831   :  { %6683 = vmatprep.subr.bf16.mxu1 %v6682_v4 }
 0x832   :  { %6621 = vmatpush1.bf16.msra.mxu0 %v6620_v3 }
 0x833   :  { %6687 = vmatprep.subr.bf16.mxu0 %v6686_v7  ;;  %v4240_v7 = vld [vmem:[#allocation2 + $0x20] sm:$0xff] }
 0x834   :  { %6685 = vmatpush1.bf16.msra.mxu1 %v6684_v53 }
 0x835   :  { %6751 = vmatprep.subr.bf16.mxu1 %v6750_v9  ;;  %v4238_v9 = vld [vmem:[#allocation2 + $0x10] sm:$0xff] }
 0x888   :  { %v3540_v59 = vpop.f32.mrb[22].mxu0  ;;  %v3611_v10 = vpop.f32.mrb[22].mxu1 }
 0x889   :  { %v3541_v11 = vadd.f32 %v3540_v59, %v7357_v56  ;;  %v3542_v14 = vpop.f32.mrb[23].mxu0  ;;  %v3613_v62 = vpop.f32.mrb[23].mxu1  ;;  %v3612_v25 = vadd.f32 %v3611_v10, %v7372_v15  ;;  %v4242_v59 = vld [vmem:[#allocation2 + $0x30] sm:$0xff] }
 0x88a   :  { %v3543_v19 = vadd.f32 %v3542_v14, %v7361_v57  ;;  %v3614_v21 = vadd.f32 %v3613_v62, %v7367_v2  ;;  %v4247_v14 = vld [vmem:[#allocation2 + $0x58] sm:$0xff] }
 0x88b   :  { %v4874_v12 = vmul.f32 -1.442695, %v3541_v11  ;;  %v6688_v11 = vpack.c.bf16 %v4240_v7, %v4236_v6  ;;  %v4251_v62 = vld [vmem:[#allocation2 + $0x78] sm:$0xff]  ;;  %v4270_v7 = vld [vmem:[#allocation2 + $0x110] sm:$0xff] }
 0x88c   :  { %v4875_v20 = vmul.f32 -1.442695, %v3543_v19  ;;  %v4876_v22 = vmul.f32 -1.442695, %v3614_v21  ;;  %v4253_v21 = vld [vmem:[#allocation2 + $0x88] sm:$0xff] }
 0x88d   :  { %7123 = vpow2.f32 %v4874_v12  ;;  %v6690_v12 = vpack.c.bf16 %v4249_v18, %v4245_v8  ;;  %v4279_v18 = vld [vmem:[#allocation2 + $0x158] sm:$0xff] }
 0x88e   :  { %7125 = vpow2.f32 %v4875_v20  ;;  %v4244_v20 = vld [vmem:[#allocation2 + $0x40] sm:$0xff] }
 0x88f   :  { %7127 = vpow2.f32 %v4876_v22  ;;  %v4257_v22 = vld [vmem:[#allocation2 + $0xa8] sm:$0xff] }
 0x890   :  { %7129 = vtanh.f32 %v3612_v25  ;;  %v6752_v25 = vpack.c.bf16 %v4242_v59, %v4238_v9  ;;  %v4283_v9 = vld [vmem:[#allocation2 + $0x178] sm:$0xff] }
 0x897   :  { %v7124_v27 = vpop.eup %7123 }
 0x898   :  { %v7126_v28 = vpop.eup %7125  ;;  %v3619_v31 = vadd.f32 1.0, %v7124_v27  ;;  %v6754_v27 = vpack.c.bf16 %v4251_v62, %v4247_v14  ;;  %v4285_v14 = vld [vmem:[#allocation2 + $0x188] sm:$0xff] }
 0x899   :  { %v3625_v32 = vadd.f32 1.0, %v7126_v28  ;;  %v7128_v26 = vpop.eup %7127  ;;  %v4246_v28 = vld [vmem:[#allocation2 + $0x50] sm:$0xff]  ;;  %v4289_v62 = vld [vmem:[#allocation2 + $0x1a8] sm:$0xff] }
 0x89a   :  { %7131 = vrcp.f32 %v3619_v31  ;;  %v7130_v34 = vpop.eup %7129  ;;  %v3632_v38 = vadd.f32 1.0, %v7128_v26  ;;  %v4250_v31 = vld [vmem:[#allocation2 + $0x70] sm:$0xff]  ;;  %v4255_v26 = vld [vmem:[#allocation2 + $0x98] sm:$0xff] }
 0x89b   :  { %7133 = vrcp.f32 %v3625_v32 }
 0x89c   :  { %7135 = vrcp.f32 %v3632_v38  ;;  %v4261_v38 = vld [vmem:[#allocation2 + $0xc8] sm:$0xff] }
 0x8a4   :  { %v7132_v35 = vpop.eup %7131 }
 0x8a5   :  { %v7134_v23 = vpop.eup %7133  ;;  %v3636_v37 = vmul.f32 %v7132_v35, %v7130_v34  ;;  %v4259_v34 = vld [vmem:[#allocation2 + $0xb8] sm:$0xff]  ;;  %v6694_v35 = vpack.c.bf16 %v4257_v22, %v4253_v21 }
 0x8a6   :  { %v3635_v29 = vmul.f32 %v7134_v23, %v7463_v36  ;;  %v7136_v40 = vpop.eup %7135  ;;  %v4252_v23 = vld [vmem:[#allocation2 + $0x80] sm:$0xff]  ;;  %v4287_v22 = vld [vmem:[#allocation2 + $0x198] sm:$0xff] }
 0x8a8   :  { %v7485_v39 = vadd.f32 %v3636_v37, %v3635_v29  ;;  %v4256_v37 = vld [vmem:[#allocation2 + $0xa0] sm:$0xff]  ;;  %v4265_v29 = vld [vmem:[#allocation2 + $0xe8] sm:$0xff] }
 0x8aa   :  { %7137 = vtanh.f32 %v7485_v39 }
 0x8b4   :  { %v7138_v41 = vpop.eup %7137 }
 0x8b5   :  { %v3639_v33 = vmul.f32 %v7138_v41, %v7136_v40  ;;  %v6756_v40 = vpack.c.bf16 %v4250_v31, %v4246_v28  ;;  %v6758_v41 = vpack.c.bf16 %v4259_v34, %v4255_v26  ;;  %v4284_v28 = vld [vmem:[#allocation2 + $0x180] sm:$0xff]  ;;  %v4297_v26 = vld [vmem:[#allocation2 + $0x1e8] sm:$0xff] }
 0x8b6   :  { %v4288_v31 = vld [vmem:[#allocation2 + $0x1a0] sm:$0xff] }
 0x8b7   :  { %4877 = vst [vmem:[%s7531_s5 + $0x28] sm:$0xff] %v3639_v33  ;;  %4130 = vmatprep.mubr.f32.mxu0 %v3639_v33  ;;  %4201 = vmatprep.mubr.f32.mxu1 %v3639_v33  ;;  %v4254_v33 = vld [vmem:[#allocation2 + $0x90] sm:$0xff] }
 0x8c8   :  { %v3838_v42 = vpop.f32.mrb[24].mxu0 }
 0x8c9   :  { %v3839_v43 = vadd.f32 %v3838_v42, %v7326_v16  ;;  %v3840_v45 = vpop.f32.mrb[25].mxu0  ;;  %v4258_v42 = vld [vmem:[#allocation2 + $0xb0] sm:$0xff] }
 0x8ca   :  { %v3841_v36 = vadd.f32 %v3840_v45, %v7330_v17  ;;  %v3909_v46 = vpop.f32.mrb[24].mxu1  ;;  %v4263_v45 = vld [vmem:[#allocation2 + $0xd8] sm:$0xff] }
 0x8cb   :  { %v4879_v47 = vmul.f32 -1.442695, %v3839_v43  ;;  %v3911_v48 = vpop.f32.mrb[25].mxu1  ;;  %v3910_v54 = vadd.f32 %v3909_v46, %v7343_v30  ;;  %v6696_v43 = vpack.c.bf16 %v4256_v37, %v4252_v23  ;;  %v6698_v46 = vpack.c.bf16 %v4265_v29, %v4261_v38  ;;  %v4286_v23 = vld [vmem:[#allocation2 + $0x190] sm:$0xff]  ;;  %v4295_v29 = vld [vmem:[#allocation2 + $0x1d8] sm:$0xff] }
 0x8cc   :  { %v4880_v50 = vmul.f32 -1.442695, %v3841_v36  ;;  %v3912_v51 = vadd.f32 %v3911_v48, %v7337_v24  ;;  %v4267_v36 = vld [vmem:[#allocation2 + $0xf8] sm:$0xff]  ;;  %v4264_v48 = vld [vmem:[#allocation2 + $0xe0] sm:$0xff]  ;;  %v4290_v37 = vld [vmem:[#allocation2 + $0x1b0] sm:$0xff]  ;;  %v6712_v38 = vpack.c.bf16 %v4288_v31, %v4284_v28 }
 0x8cd   :  { %7139 = vpow2.f32 %v4879_v47  ;;  %v4260_v47 = vld [vmem:[#allocation2 + $0xc0] sm:$0xff]  ;;  %v4318_v28 = vld [vmem:[#allocation2 + $0x290] sm:$0xff] }
 0x8ce   :  { %7141 = vpow2.f32 %v4880_v50  ;;  %v4881_v52 = vmul.f32 -1.442695, %v3912_v51  ;;  %v4269_v50 = vld [vmem:[#allocation2 + $0x108] sm:$0xff]  ;;  %v4322_v31 = vld [vmem:[#allocation2 + $0x2b0] sm:$0xff] }
 0x8cf   :  { %v4273_v51 = vld [vmem:[#allocation2 + $0x128] sm:$0xff] }
 0x8d0   :  { %7143 = vpow2.f32 %v4881_v52  ;;  %v6760_v52 = vpack.c.bf16 %v4258_v42, %v4254_v33  ;;  %v4292_v33 = vld [vmem:[#allocation2 + $0x1c0] sm:$0xff] }
 0x8d1   :  { %7145 = vtanh.f32 %v3910_v54  ;;  %v6762_v54 = vpack.c.bf16 %v4267_v36, %v4263_v45  ;;  %v4296_v42 = vld [vmem:[#allocation2 + $0x1e0] sm:$0xff]  ;;  %v4305_v45 = vld [vmem:[#allocation2 + $0x228] sm:$0xff]  ;;  %v6776_v36 = vpack.c.bf16 %v4290_v37, %v4286_v23 }
 0x8d2   :  { %v4324_v23 = vld [vmem:[#allocation2 + $0x2c0] sm:$0xff] }
 0x8d3   :  { %v4328_v37 = vld [vmem:[#allocation2 + $0x2e0] sm:$0xff] }
 0x8d7   :  { %v7140_v55 = vpop.eup %7139 }
 0x8d8   :  { %v7142_v58 = vpop.eup %7141  ;;  %v3917_v0 = vadd.f32 1.0, %v7140_v55  ;;  %v4262_v55 = vld [vmem:[#allocation2 + $0xd0] sm:$0xff] }
 0x8d9   :  { %v3923_v60 = vadd.f32 1.0, %v7142_v58  ;;  %v4266_v58 = vld [vmem:[#allocation2 + $0xf0] sm:$0xff] }
 0x8da   :  { %7147 = vrcp.f32 %v3917_v0  ;;  %v7144_v61 = vpop.eup %7143  ;;  %v6700_v0 = vpack.c.bf16 %v4264_v48, %v4260_v47  ;;  %v4294_v47 = vld [vmem:[#allocation2 + $0x1d0] sm:$0xff] }
 0x8db   :  { %7149 = vrcp.f32 %v3923_v60  ;;  %v7146_v63 = vpop.eup %7145  ;;  %v3930_v44 = vadd.f32 1.0, %v7144_v61  ;;  %v4271_v60 = vld [vmem:[#allocation2 + $0x118] sm:$0xff]  ;;  %v4298_v48 = vld [vmem:[#allocation2 + $0x1f0] sm:$0xff] }
 0x8dc   :  { %v4275_v61 = vld [vmem:[#allocation2 + $0x138] sm:$0xff] }
 0x8dd   :  { %7151 = vrcp.f32 %v3930_v44  ;;  %v4272_v44 = vld [vmem:[#allocation2 + $0x120] sm:$0xff]  ;;  %v6766_v6 = vpack.c.bf16 %v4275_v61, %v4271_v60  ;;  %v4313_v60 = vld [vmem:[#allocation2 + $0x268] sm:$0xff]  ;;  %v6780_v61 = vpack.c.bf16 %v4298_v48, %v4294_v47 }
 0x8de   :  { %v4332_v47 = vld [vmem:[#allocation2 + $0x300] sm:$0xff] }
 0x8df   :  { %v4336_v48 = vld [vmem:[#allocation2 + $0x320] sm:$0xff] }
 0x8e4   :  { %v7148_v1 = vpop.eup %7147 }
 0x8e5   :  { %v7150_v3 = vpop.eup %7149  ;;  %v3934_v4 = vmul.f32 %v7148_v1, %v7146_v63  ;;  %v6702_v63 = vpack.c.bf16 %v4273_v51, %v4269_v50  ;;  %v4268_v1 = vld [vmem:[#allocation2 + $0x100] sm:$0xff]  ;;  %v6716_v50 = vpack.c.bf16 %v4296_v42, %v4292_v33  ;;  %v4303_v51 = vld [vmem:[#allocation2 + $0x218] sm:$0xff]  ;;  %v4326_v33 = vld [vmem:[#allocation2 + $0x2d0] sm:$0xff] }
 0x8e6   :  { %v3933_v49 = vmul.f32 %v7150_v3, %v7474_v13  ;;  %v4248_v13 = vld [vmem:[#allocation2 + $0x60] sm:$0xff]  ;;  %v4277_v3 = vld [vmem:[#allocation2 + $0x148] sm:$0xff]  ;;  %v6704_v8 = vpack.c.bf16 %v4272_v44, %v4268_v1  ;;  %v4302_v1 = vld [vmem:[#allocation2 + $0x210] sm:$0xff] }
 0x8e7   :  { %v7152_v53 = vpop.eup %7151  ;;  %v6692_v32 = vpack.c.bf16 %v4248_v13, %v4244_v20  ;;  %v4278_v20 = vld [vmem:[#allocation2 + $0x150] sm:$0xff] }
 0x8e8   :  { %v7496_v5 = vadd.f32 %v3934_v4, %v3933_v49  ;;  %v4281_v4 = vld [vmem:[#allocation2 + $0x168] sm:$0xff]  ;;  %v6764_v49 = vpack.c.bf16 %v4266_v58, %v4262_v55  ;;  %v4282_v13 = vld [vmem:[#allocation2 + $0x170] sm:$0xff]  ;;  %v4300_v55 = vld [vmem:[#allocation2 + $0x200] sm:$0xff] }
 0x8e9   :  { %v6706_v59 = vpack.c.bf16 %v4281_v4, %v4277_v3  ;;  %v6772_v34 = vpack.c.bf16 %v4282_v13, %v4278_v20  ;;  %v4304_v58 = vld [vmem:[#allocation2 + $0x220] sm:$0xff]  ;;  %v4306_v44 = vld [vmem:[#allocation2 + $0x230] sm:$0xff]  ;;  %v4311_v4 = vld [vmem:[#allocation2 + $0x258] sm:$0xff] }
 0x8ea   :  { %7153 = vtanh.f32 %v7496_v5  ;;  %v6720_v3 = vpack.c.bf16 %v4304_v58, %v4300_v55  ;;  %v4316_v20 = vld [vmem:[#allocation2 + $0x280] sm:$0xff]  ;;  %v4330_v42 = vld [vmem:[#allocation2 + $0x2f0] sm:$0xff] }
 0x8eb   :  { %v4320_v13 = vld [vmem:[#allocation2 + $0x2a0] sm:$0xff]  ;;  %v4334_v55 = vld [vmem:[#allocation2 + $0x310] sm:$0xff] }
 0x8ec   :  { %v4338_v58 = vld [vmem:[#allocation2 + $0x330] sm:$0xff] }
 0x8f4   :  { %v7154_v10 = vpop.eup %7153 }
 0x8f5   :  { %v3937_v19 = vmul.f32 %v7154_v10, %v7152_v53  ;;  %v4274_v53 = vld [vmem:[#allocation2 + $0x130] sm:$0xff]  ;;  %v4276_v10 = vld [vmem:[#allocation2 + $0x140] sm:$0xff] }
 0x8f7   :  { %4131 = vmatmul.mubr.f32.vlgmr.msra.gmra.mrb[26].mxu0 %v3937_v19  ;;  %4202 = vmatmul.mubr.f32.vlgmr.msra.gmra.mrb[26].mxu1 %v3937_v19 }
 0x8f8   :  { %6689 = vmatpush1.bf16.msra.mxu0 %v6688_v11  ;;  %4428 = vmatprep.mubr.f32.mxu0 %v3937_v19  ;;  %v4280_v11 = vld [vmem:[#allocation2 + $0x160] sm:$0xff] }
 0x8f9   :  { %4499 = vmatprep.mubr.f32.mxu1 %v3937_v19  ;;  %6691 = vmatprep.subr.bf16.mxu0 %v6690_v12  ;;  %v6768_v19 = vpack.c.bf16 %v4274_v53, %v4270_v7  ;;  %v6770_v12 = vpack.c.bf16 %v4283_v9, %v4279_v18  ;;  %v6708_v21 = vpack.c.bf16 %v4280_v11, %v4276_v10  ;;  %v4308_v7 = vld [vmem:[#allocation2 + $0x240] sm:$0xff]  ;;  %v4321_v18 = vld [vmem:[#allocation2 + $0x2a8] sm:$0xff]  ;;  %v4310_v10 = vld [vmem:[#allocation2 + $0x250] sm:$0xff] }
 0x8fa   :  { %6753 = vmatpush1.bf16.msra.mxu1 %v6752_v25  ;;  %v4291_v25 = vld [vmem:[#allocation2 + $0x1b8] sm:$0xff]  ;;  %v4312_v53 = vld [vmem:[#allocation2 + $0x260] sm:$0xff]  ;;  %v6784_v9 = vpack.c.bf16 %v4306_v44, %v4302_v1  ;;  %v4314_v11 = vld [vmem:[#allocation2 + $0x270] sm:$0xff] }
 0x8fb   :  { %6755 = vmatprep.subr.bf16.mxu1 %v6754_v27  ;;  %v6710_v27 = vpack.c.bf16 %v4289_v62, %v4285_v14  ;;  %v6724_v14 = vpack.c.bf16 %v4312_v53, %v4308_v7  ;;  %v4319_v62 = vld [vmem:[#allocation2 + $0x298] sm:$0xff]  ;;  %v4340_v1 = vld [vmem:[#allocation2 + $0x340] sm:$0xff]  ;;  %v4342_v7 = vld [vmem:[#allocation2 + $0x350] sm:$0xff] }
 0x8fc   :  { %6693 = vmatpush1.bf16.msra.mxu0 %v6692_v32  ;;  %v4293_v32 = vld [vmem:[#allocation2 + $0x1c8] sm:$0xff]  ;;  %v4344_v44 = vld [vmem:[#allocation2 + $0x360] sm:$0xff]  ;;  %v4346_v53 = vld [vmem:[#allocation2 + $0x370] sm:$0xff] }
 0x8fd   :  { %6695 = vmatprep.subr.bf16.mxu0 %v6694_v35  ;;  %v6774_v35 = vpack.c.bf16 %v4291_v25, %v4287_v22  ;;  %v4329_v22 = vld [vmem:[#allocation2 + $0x2e8] sm:$0xff]  ;;  %v6788_v25 = vpack.c.bf16 %v4314_v11, %v4310_v10  ;;  %v4348_v10 = vld [vmem:[#allocation2 + $0x380] sm:$0xff] }
 0x8fe   :  { %6757 = vmatpush1.bf16.msra.mxu1 %v6756_v40  ;;  %v4299_v40 = vld [vmem:[#allocation2 + $0x1f8] sm:$0xff]  ;;  %v4352_v11 = vld [vmem:[#allocation2 + $0x3a0] sm:$0xff] }
 0x8ff   :  { %6759 = vmatprep.subr.bf16.mxu1 %v6758_v41  ;;  %v6714_v41 = vpack.c.bf16 %v4297_v26, %v4293_v32  ;;  %v6728_v32 = vpack.c.bf16 %v4320_v13, %v4316_v20  ;;  %v4327_v26 = vld [vmem:[#allocation2 + $0x2d8] sm:$0xff]  ;;  %v4350_v20 = vld [vmem:[#allocation2 + $0x390] sm:$0xff] }
 0x900   :  { %6697 = vmatpush1.bf16.msra.mxu0 %v6696_v43  ;;  %v4301_v43 = vld [vmem:[#allocation2 + $0x208] sm:$0xff]  ;;  %v4354_v13 = vld [vmem:[#allocation2 + $0x3b0] sm:$0xff] }
 0x901   :  { %6699 = vmatprep.subr.bf16.mxu0 %v6698_v46  ;;  %v6778_v46 = vpack.c.bf16 %v4299_v40, %v4295_v29  ;;  %v4337_v29 = vld [vmem:[#allocation2 + $0x328] sm:$0xff]  ;;  %v6792_v40 = vpack.c.bf16 %v4322_v31, %v4318_v28  ;;  %v4356_v28 = vld [vmem:[#allocation2 + $0x3c0] sm:$0xff] }
 0x902   :  { %6761 = vmatpush1.bf16.msra.mxu1 %v6760_v52  ;;  %v4307_v52 = vld [vmem:[#allocation2 + $0x238] sm:$0xff]  ;;  %v4360_v31 = vld [vmem:[#allocation2 + $0x3e0] sm:$0xff] }
 0x903   :  { %6763 = vmatprep.subr.bf16.mxu1 %v6762_v54  ;;  %v6718_v54 = vpack.c.bf16 %v4305_v45, %v4301_v43  ;;  %v6732_v43 = vpack.c.bf16 %v4328_v37, %v4324_v23  ;;  %v4335_v45 = vld [vmem:[#allocation2 + $0x318] sm:$0xff]  ;;  %v6748_v23 = vpack.c.bf16 %v4360_v31, %v4356_v28  ;;  %v4560_v28 = vld [vmem:[#allocation4 + $0xf0] sm:$0xff] }
 0x904   :  { %6701 = vmatpush1.bf16.msra.mxu0 %v6700_v0  ;;  %v4309_v0 = vld [vmem:[#allocation2 + $0x248] sm:$0xff] }
 0x905   :  { %6703 = vmatprep.subr.bf16.mxu0 %v6702_v63  ;;  %v6782_v63 = vpack.c.bf16 %v4307_v52, %v4303_v51  ;;  %v4345_v51 = vld [vmem:[#allocation2 + $0x368] sm:$0xff]  ;;  %v6796_v52 = vpack.c.bf16 %v4330_v42, %v4326_v33  ;;  %v4537_v42 = vld [vmem:[#allocation4 + $0x38] sm:$0xff] }
 0x906   :  { %6765 = vmatpush1.bf16.msra.mxu1 %v6764_v49  ;;  %v4315_v49 = vld [vmem:[#allocation2 + $0x278] sm:$0xff] }
 0x907   :  { %6767 = vmatprep.subr.bf16.mxu1 %v6766_v6  ;;  %v6722_v6 = vpack.c.bf16 %v4313_v60, %v4309_v0  ;;  %v6736_v0 = vpack.c.bf16 %v4336_v48, %v4332_v47  ;;  %v4343_v60 = vld [vmem:[#allocation2 + $0x358] sm:$0xff]  ;;  %v4532_v47 = vld [vmem:[#allocation4 + $0x10] sm:$0xff] }
 0x908   :  { %6705 = vmatpush1.bf16.msra.mxu0 %v6704_v8  ;;  %v4317_v8 = vld [vmem:[#allocation2 + $0x288] sm:$0xff]  ;;  %v4536_v48 = vld [vmem:[#allocation4 + $0x30] sm:$0xff] }
 0x909   :  { %6707 = vmatprep.subr.bf16.mxu0 %v6706_v59  ;;  %v6786_v59 = vpack.c.bf16 %v4315_v49, %v4311_v4  ;;  %v4353_v4 = vld [vmem:[#allocation2 + $0x3a8] sm:$0xff]  ;;  %v6800_v49 = vpack.c.bf16 %v4338_v58, %v4334_v55  ;;  %v4545_v58 = vld [vmem:[#allocation4 + $0x78] sm:$0xff] }
 0x90a   :  { %6769 = vmatpush1.bf16.msra.mxu1 %v6768_v19  ;;  %v4323_v19 = vld [vmem:[#allocation2 + $0x2b8] sm:$0xff] }
 0x90b   :  { %6771 = vmatprep.subr.bf16.mxu1 %v6770_v12  ;;  %v6726_v12 = vpack.c.bf16 %v4321_v18, %v4317_v8  ;;  %v6740_v8 = vpack.c.bf16 %v4344_v44, %v4340_v1  ;;  %v4351_v18 = vld [vmem:[#allocation2 + $0x398] sm:$0xff]  ;;  %v4540_v1 = vld [vmem:[#allocation4 + $0x50] sm:$0xff] }
 0x90c   :  { %6709 = vmatpush1.bf16.msra.mxu0 %v6708_v21  ;;  %v4325_v21 = vld [vmem:[#allocation2 + $0x2c8] sm:$0xff]  ;;  %v4544_v44 = vld [vmem:[#allocation4 + $0x70] sm:$0xff] }
 0x90d   :  { %6711 = vmatprep.subr.bf16.mxu0 %v6710_v27  ;;  %v6790_v27 = vpack.c.bf16 %v4323_v19, %v4319_v62  ;;  %v4361_v62 = vld [vmem:[#allocation2 + $0x3e8] sm:$0xff]  ;;  %v6804_v19 = vpack.c.bf16 %v4346_v53, %v4342_v7  ;;  %v4553_v7 = vld [vmem:[#allocation4 + $0xb8] sm:$0xff] }
 0x90e   :  { %6773 = vmatpush1.bf16.msra.mxu1 %v6772_v34  ;;  %v4331_v34 = vld [vmem:[#allocation2 + $0x2f8] sm:$0xff] }
 0x90f   :  { %6775 = vmatprep.subr.bf16.mxu1 %v6774_v35  ;;  %v6730_v35 = vpack.c.bf16 %v4329_v22, %v4325_v21  ;;  %v6744_v21 = vpack.c.bf16 %v4352_v11, %v4348_v10  ;;  %v4359_v22 = vld [vmem:[#allocation2 + $0x3d8] sm:$0xff]  ;;  %v4552_v11 = vld [vmem:[#allocation4 + $0xb0] sm:$0xff] }
 0x910   :  { %6713 = vmatpush1.bf16.msra.mxu0 %v6712_v38  ;;  %v4333_v38 = vld [vmem:[#allocation2 + $0x308] sm:$0xff] }
 0x911   :  { %6715 = vmatprep.subr.bf16.mxu0 %v6714_v41  ;;  %v6794_v41 = vpack.c.bf16 %v4331_v34, %v4327_v26  ;;  %v4358_v34 = vld [vmem:[#allocation2 + $0x3d0] sm:$0xff] }
 0x912   :  { %6777 = vmatpush1.bf16.msra.mxu1 %v6776_v36  ;;  %v4339_v36 = vld [vmem:[#allocation2 + $0x338] sm:$0xff] }
 0x913   :  { %6779 = vmatprep.subr.bf16.mxu1 %v6778_v46  ;;  %v6734_v46 = vpack.c.bf16 %v4337_v29, %v4333_v38  ;;  %v4886_v38 = vld [vmem:[%s7526_s0 + $0x38] sm:$0xff]  ;;  %v4531_v29 = vld [vmem:[#allocation4 + $0x8] sm:$0xff] }
 0x914   :  { %6717 = vmatpush1.bf16.msra.mxu0 %v6716_v50  ;;  %v4341_v50 = vld [vmem:[#allocation2 + $0x348] sm:$0xff] }
 0x915   :  { %6719 = vmatprep.subr.bf16.mxu0 %v6718_v54  ;;  %v6798_v54 = vpack.c.bf16 %v4339_v36, %v4335_v45  ;;  %v4534_v45 = vld [vmem:[#allocation4 + $0x20] sm:$0xff] }
 0x916   :  { %6781 = vmatpush1.bf16.msra.mxu1 %v6780_v61  ;;  %v4347_v61 = vld [vmem:[#allocation2 + $0x378] sm:$0xff] }
 0x917   :  { %6783 = vmatprep.subr.bf16.mxu1 %v6782_v63  ;;  %v6738_v63 = vpack.c.bf16 %v4345_v51, %v4341_v50  ;;  %v6880_v50 = vpack.c.bf16 %v4536_v48, %v4532_v47  ;;  %v4539_v51 = vld [vmem:[#allocation4 + $0x48] sm:$0xff]  ;;  %v4577_v48 = vld [vmem:[#allocation4 + $0x178] sm:$0xff] }
 0x918   :  { %6721 = vmatpush1.bf16.msra.mxu0 %v6720_v3  ;;  %v4349_v3 = vld [vmem:[#allocation2 + $0x388] sm:$0xff] }
 0x919   :  { %6723 = vmatprep.subr.bf16.mxu0 %v6722_v6  ;;  %v6802_v6 = vpack.c.bf16 %v4347_v61, %v4343_v60  ;;  %v4542_v60 = vld [vmem:[#allocation4 + $0x60] sm:$0xff] }
 0x91a   :  { %6785 = vmatpush1.bf16.msra.mxu1 %v6784_v9  ;;  %v4355_v9 = vld [vmem:[#allocation2 + $0x3b8] sm:$0xff] }
 0x91b   :  { %6787 = vmatprep.subr.bf16.mxu1 %v6786_v59  ;;  %v6742_v59 = vpack.c.bf16 %v4353_v4, %v4349_v3  ;;  %v4547_v3 = vld [vmem:[#allocation4 + $0x88] sm:$0xff]  ;;  %v6884_v4 = vpack.c.bf16 %v4544_v44, %v4540_v1  ;;  %v4585_v44 = vld [vmem:[#allocation4 + $0x1b8] sm:$0xff] }
 0x91c   :  { %6725 = vmatpush1.bf16.msra.mxu0 %v6724_v14  ;;  %v4357_v14 = vld [vmem:[#allocation2 + $0x3c8] sm:$0xff] }
 0x91d   :  { %6727 = vmatprep.subr.bf16.mxu0 %v6726_v12  ;;  %v6806_v12 = vpack.c.bf16 %v4355_v9, %v4351_v18  ;;  %v4546_v18 = vld [vmem:[#allocation4 + $0x80] sm:$0xff] }
 0x91e   :  { %6789 = vmatpush1.bf16.msra.mxu1 %v6788_v25  ;;  %v4363_v25 = vld [vmem:[#allocation2 + $0x3f8] sm:$0xff]  ;;  %v4550_v9 = vld [vmem:[#allocation4 + $0xa0] sm:$0xff] }
 0x91f   :  { %6791 = vmatprep.subr.bf16.mxu1 %v6790_v27  ;;  %v6746_v27 = vpack.c.bf16 %v4361_v62, %v4357_v14  ;;  %v6810_v26 = vpack.c.bf16 %v4363_v25, %v4359_v22  ;;  %v6824_v10 = vpack.c.bf16 %v4550_v9, %v4546_v18  ;;  %v4555_v14 = vld [vmem:[#allocation4 + $0xc8] sm:$0xff]  ;;  %v4558_v25 = vld [vmem:[#allocation4 + $0xe0] sm:$0xff] }
 0x920   :  { %6729 = vmatpush1.bf16.msra.mxu0 %v6728_v32  ;;  %v6808_v32 = vpack.c.bf16 %v4354_v13, %v4350_v20  ;;  %v4559_v62 = vld [vmem:[#allocation4 + $0xe8] sm:$0xff]  ;;  %v4557_v20 = vld [vmem:[#allocation4 + $0xd8] sm:$0xff] }
 0x921   :  { %6731 = vmatprep.subr.bf16.mxu0 %v6730_v35  ;;  %v4362_v35 = vld [vmem:[#allocation2 + $0x3f0] sm:$0xff]  ;;  %v4561_v13 = vld [vmem:[#allocation4 + $0xf8] sm:$0xff]  ;;  %v4587_v18 = vld [vmem:[#allocation4 + $0x1c8] sm:$0xff] }
 0x922   :  { %6793 = vmatpush1.bf16.msra.mxu1 %v6792_v40  ;;  %v6812_v37 = vpack.c.bf16 %v4362_v35, %v4358_v34  ;;  %v4535_v40 = vld [vmem:[#allocation4 + $0x28] sm:$0xff]  ;;  %v6890_v22 = vpack.c.bf16 %v4561_v13, %v4557_v20  ;;  %v4565_v34 = vld [vmem:[#allocation4 + $0x118] sm:$0xff]  ;;  %v4588_v20 = vld [vmem:[#allocation4 + $0x1d0] sm:$0xff] }
 0x923   :  { %6795 = vmatprep.subr.bf16.mxu1 %v6794_v41  ;;  %v4533_v41 = vld [vmem:[#allocation4 + $0x18] sm:$0xff]  ;;  %v6814_v33 = vpack.c.bf16 %v4535_v40, %v4531_v29  ;;  %v4562_v29 = vld [vmem:[#allocation4 + $0x100] sm:$0xff]  ;;  %v4591_v9 = vld [vmem:[#allocation4 + $0x1e8] sm:$0xff] }
 0x924   :  { %6733 = vmatpush1.bf16.msra.mxu0 %v6732_v43  ;;  %v4530_v43 = vld [vmem:[#allocation4] sm:$0xff]  ;;  %v6878_v36 = vpack.c.bf16 %v4537_v42, %v4533_v41  ;;  %v4564_v41 = vld [vmem:[#allocation4 + $0x110] sm:$0xff] }
 0x925   :  { %6735 = vmatprep.subr.bf16.mxu0 %v6734_v46  ;;  %v6816_v46 = vpack.c.bf16 %v4534_v45, %v4530_v43  ;;  %v4566_v40 = vld [vmem:[#allocation4 + $0x120] sm:$0xff]  ;;  %v4568_v42 = vld [vmem:[#allocation4 + $0x130] sm:$0xff]  ;;  %v4571_v45 = vld [vmem:[#allocation4 + $0x148] sm:$0xff] }
 0x926   :  { %6797 = vmatpush1.bf16.msra.mxu1 %v6796_v52  ;;  %v4543_v52 = vld [vmem:[#allocation4 + $0x68] sm:$0xff]  ;;  %v6896_v43 = vpack.c.bf16 %v4568_v42, %v4564_v41  ;;  %v4592_v13 = vld [vmem:[#allocation4 + $0x1f0] sm:$0xff]  ;;  %v4605_v41 = vld [vmem:[#allocation4 + $0x258] sm:$0xff] }
 0x927   :  { %6799 = vmatprep.subr.bf16.mxu1 %v6798_v54  ;;  %v4541_v54 = vld [vmem:[#allocation4 + $0x58] sm:$0xff]  ;;  %v6818_v55 = vpack.c.bf16 %v4543_v52, %v4539_v51  ;;  %v4574_v51 = vld [vmem:[#allocation4 + $0x160] sm:$0xff] }
 0x928   :  { %6737 = vmatpush1.bf16.msra.mxu0 %v6736_v0  ;;  %v4538_v0 = vld [vmem:[#allocation4 + $0x40] sm:$0xff]  ;;  %v6882_v61 = vpack.c.bf16 %v4545_v58, %v4541_v54  ;;  %v4576_v58 = vld [vmem:[#allocation4 + $0x170] sm:$0xff]  ;;  %v4609_v42 = vld [vmem:[#allocation4 + $0x278] sm:$0xff] }
 0x929   :  { %6739 = vmatprep.subr.bf16.mxu0 %v6738_v63  ;;  %v6820_v63 = vpack.c.bf16 %v4542_v60, %v4538_v0  ;;  %v4579_v60 = vld [vmem:[#allocation4 + $0x188] sm:$0xff] }
 0x92a   :  { %6801 = vmatpush1.bf16.msra.mxu1 %v6800_v49  ;;  %v4551_v49 = vld [vmem:[#allocation4 + $0xa8] sm:$0xff] }
 0x92b   :  { %6803 = vmatprep.subr.bf16.mxu1 %v6802_v6  ;;  %v4549_v6 = vld [vmem:[#allocation4 + $0x98] sm:$0xff]  ;;  %v6822_v53 = vpack.c.bf16 %v4551_v49, %v4547_v3  ;;  %v4578_v3 = vld [vmem:[#allocation4 + $0x180] sm:$0xff] }
 0x92c   :  { %6741 = vmatpush1.bf16.msra.mxu0 %v6740_v8  ;;  %v6886_v8 = vpack.c.bf16 %v4553_v7, %v4549_v6  ;;  %v4580_v7 = vld [vmem:[#allocation4 + $0x190] sm:$0xff] }
 0x92d   :  { %6743 = vmatprep.subr.bf16.mxu0 %v6742_v59  ;;  %v4548_v59 = vld [vmem:[#allocation4 + $0x90] sm:$0xff] }
 0x92e   :  { %6805 = vmatpush1.bf16.msra.mxu1 %v6804_v19  ;;  %v6888_v19 = vpack.c.bf16 %v4552_v11, %v4548_v59  ;;  %v4589_v59 = vld [vmem:[#allocation4 + $0x1d8] sm:$0xff] }
 0x92f   :  { %6807 = vmatprep.subr.bf16.mxu1 %v6806_v12  ;;  %v6826_v12 = vpack.c.bf16 %v4559_v62, %v4555_v14  ;;  %v4593_v11 = vld [vmem:[#allocation4 + $0x1f8] sm:$0xff]  ;;  %v4586_v14 = vld [vmem:[#allocation4 + $0x1c0] sm:$0xff] }
 0x930   :  { %6745 = vmatpush1.bf16.msra.mxu0 %v6744_v21  ;;  %v4554_v21 = vld [vmem:[#allocation4 + $0xc0] sm:$0xff] }
 0x931   :  { %6747 = vmatprep.subr.bf16.mxu0 %v6746_v27  ;;  %v4556_v27 = vld [vmem:[#allocation4 + $0xd0] sm:$0xff]  ;;  %v6828_v31 = vpack.c.bf16 %v4558_v25, %v4554_v21  ;;  %v4590_v62 = vld [vmem:[#allocation4 + $0x1e0] sm:$0xff]  ;;  %v6908_v21 = vpack.c.bf16 %v4592_v13, %v4588_v20  ;;  %v4599_v25 = vld [vmem:[#allocation4 + $0x228] sm:$0xff] }
 0x932   :  { %6809 = vmatpush1.bf16.msra.mxu1 %v6808_v32  ;;  %v4563_v32 = vld [vmem:[#allocation4 + $0x108] sm:$0xff]  ;;  %v6892_v35 = vpack.c.bf16 %v4560_v28, %v4556_v27  ;;  %v4597_v27 = vld [vmem:[#allocation4 + $0x218] sm:$0xff] }
 0x933   :  { %6811 = vmatprep.subr.bf16.mxu1 %v6810_v26  ;;  %v4567_v26 = vld [vmem:[#allocation4 + $0x128] sm:$0xff]  ;;  %v4633_v13 = vld [vmem:[#allocation4 + $0x338] sm:$0xff] }
 0x934   :  { %6749 = vmatpush1.bf16.msra.mxu0 %v6748_v23  ;;  %v6830_v23 = vpack.c.bf16 %v4567_v26, %v4563_v32  ;;  %v4594_v32 = vld [vmem:[#allocation4 + $0x200] sm:$0xff] }
 0x935   :  { %6815 = vmatprep.subr.bf16.mxu0 %v6814_v33  ;;  %v6832_v33 = vpack.c.bf16 %v4566_v40, %v4562_v29  ;;  %v4598_v26 = vld [vmem:[#allocation4 + $0x220] sm:$0xff]  ;;  %v4603_v29 = vld [vmem:[#allocation4 + $0x248] sm:$0xff] }
 0x936   :  { %6813 = vmatpush1.bf16.msra.mxu1 %v6812_v37  ;;  %v4569_v37 = vld [vmem:[#allocation4 + $0x138] sm:$0xff]  ;;  %v4607_v40 = vld [vmem:[#allocation4 + $0x268] sm:$0xff] }
 0x937   :  { %4429 = vmatmul.mubr.f32.vlgmr.msra.gmra.mrb[28].mxu0 %v4886_v38  ;;  %6879 = vmatprep.subr.bf16.mxu1 %v6878_v36  ;;  %v4575_v36 = vld [vmem:[#allocation4 + $0x168] sm:$0xff] }
 0x938   :  { %6817 = vmatpush1.bf16.msra.mxu0 %v6816_v46  ;;  %v4573_v46 = vld [vmem:[#allocation4 + $0x158] sm:$0xff]  ;;  %v6834_v47 = vpack.c.bf16 %v4575_v36, %v4571_v45  ;;  %v4606_v45 = vld [vmem:[#allocation4 + $0x260] sm:$0xff]  ;;  %v6914_v36 = vpack.c.bf16 %v4609_v42, %v4605_v41  ;;  %v4640_v42 = vld [vmem:[#allocation4 + $0x370] sm:$0xff] }
 0x939   :  { %4500 = vmatmul.mubr.f32.vlgmr.msra.gmra.mrb[28].mxu1 %v4886_v38  ;;  %6819 = vmatprep.subr.bf16.mxu0 %v6818_v55  ;;  %v6894_v38 = vpack.c.bf16 %v4569_v37, %v4565_v34  ;;  %v6898_v52 = vpack.c.bf16 %v4577_v48, %v4573_v46  ;;  %v4572_v55 = vld [vmem:[#allocation4 + $0x150] sm:$0xff] }
 0x93a   :  { %6881 = vmatpush1.bf16.msra.mxu1 %v6880_v50  ;;  %v4570_v50 = vld [vmem:[#allocation4 + $0x140] sm:$0xff]  ;;  %v6900_v0 = vpack.c.bf16 %v4576_v58, %v4572_v55  ;;  %v4600_v37 = vld [vmem:[#allocation4 + $0x230] sm:$0xff]  ;;  %v4617_v58 = vld [vmem:[#allocation4 + $0x2b8] sm:$0xff] }
 0x93b   :  { %6883 = vmatprep.subr.bf16.mxu1 %v6882_v61  ;;  %v6836_v54 = vpack.c.bf16 %v4574_v51, %v4570_v50  ;;  %v4583_v61 = vld [vmem:[#allocation4 + $0x1a8] sm:$0xff]  ;;  %v4608_v48 = vld [vmem:[#allocation4 + $0x270] sm:$0xff] }
 0x93c   :  { %6821 = vmatpush1.bf16.msra.mxu0 %v6820_v63  ;;  %v4581_v63 = vld [vmem:[#allocation4 + $0x198] sm:$0xff]  ;;  %v6838_v1 = vpack.c.bf16 %v4583_v61, %v4579_v60  ;;  %v4611_v51 = vld [vmem:[#allocation4 + $0x288] sm:$0xff]  ;;  %v4614_v60 = vld [vmem:[#allocation4 + $0x2a0] sm:$0xff] }
 0x93d   :  { %6823 = vmatprep.subr.bf16.mxu0 %v6822_v53  ;;  %v6902_v49 = vpack.c.bf16 %v4585_v44, %v4581_v63  ;;  %v4584_v53 = vld [vmem:[#allocation4 + $0x1b0] sm:$0xff] }
 0x93e   :  { %6885 = vmatpush1.bf16.msra.mxu1 %v6884_v4  ;;  %v4582_v4 = vld [vmem:[#allocation4 + $0x1a0] sm:$0xff]  ;;  %v4616_v44 = vld [vmem:[#allocation4 + $0x2b0] sm:$0xff] }
 0x93f   :  { %6887 = vmatprep.subr.bf16.mxu1 %v6886_v8  ;;  %v6840_v6 = vpack.c.bf16 %v4582_v4, %v4578_v3  ;;  %v6904_v8 = vpack.c.bf16 %v4584_v53, %v4580_v7  ;;  %v4619_v4 = vld [vmem:[#allocation4 + $0x2c8] sm:$0xff]  ;;  %v4625_v53 = vld [vmem:[#allocation4 + $0x2f8] sm:$0xff] }
 0x940   :  { %6825 = vmatpush1.bf16.msra.mxu0 %v6824_v10  ;;  %v6842_v10 = vpack.c.bf16 %v4591_v9, %v4587_v18  ;;  %v4622_v18 = vld [vmem:[#allocation4 + $0x2e0] sm:$0xff] }
 0x941   :  { %6827 = vmatprep.subr.bf16.mxu0 %v6826_v12  ;;  %v6844_v12 = vpack.c.bf16 %v4590_v62, %v4586_v14  ;;  %v4627_v62 = vld [vmem:[#allocation4 + $0x308] sm:$0xff] }
 0x942   :  { %6889 = vmatpush1.bf16.msra.mxu1 %v6888_v19  ;;  %v6906_v19 = vpack.c.bf16 %v4593_v11, %v4589_v59  ;;  %v4624_v11 = vld [vmem:[#allocation4 + $0x2f0] sm:$0xff] }
 0x943   :  { %6891 = vmatprep.subr.bf16.mxu1 %v6890_v22  ;;  %v4595_v22 = vld [vmem:[#allocation4 + $0x208] sm:$0xff] }
 0x944   :  { %6829 = vmatpush1.bf16.msra.mxu0 %v6828_v31  ;;  %v6846_v28 = vpack.c.bf16 %v4599_v25, %v4595_v22  ;;  %v4601_v31 = vld [vmem:[#allocation4 + $0x238] sm:$0xff]  ;;  %v4630_v22 = vld [vmem:[#allocation4 + $0x320] sm:$0xff] }
 0x945   :  { %6831 = vmatprep.subr.bf16.mxu0 %v6830_v23  ;;  %v6910_v34 = vpack.c.bf16 %v4601_v31, %v4597_v27  ;;  %v4596_v23 = vld [vmem:[#allocation4 + $0x210] sm:$0xff] }
 0x946   :  { %6893 = vmatpush1.bf16.msra.mxu1 %v6892_v35  ;;  %v6848_v35 = vpack.c.bf16 %v4598_v26, %v4594_v32  ;;  %v4632_v31 = vld [vmem:[#allocation4 + $0x330] sm:$0xff]  ;;  %v4635_v26 = vld [vmem:[#allocation4 + $0x348] sm:$0xff] }
 0x947   :  { %6895 = vmatprep.subr.bf16.mxu1 %v6894_v38  ;;  %v6912_v38 = vpack.c.bf16 %v4600_v37, %v4596_v23  ;;  %v4641_v37 = vld [vmem:[#allocation4 + $0x378] sm:$0xff] }
 0x948   :  { %6833 = vmatpush1.bf16.msra.mxu0 %v6832_v33  ;;  %v6850_v33 = vpack.c.bf16 %v4607_v40, %v4603_v29  ;;  %v4638_v29 = vld [vmem:[#allocation4 + $0x360] sm:$0xff] }
 0x949   :  { %6835 = vmatprep.subr.bf16.mxu0 %v6834_v47  ;;  %v4604_v47 = vld [vmem:[#allocation4 + $0x250] sm:$0xff] }
 0x94a   :  { %6897 = vmatpush1.bf16.msra.mxu1 %v6896_v43  ;;  %v4602_v43 = vld [vmem:[#allocation4 + $0x240] sm:$0xff]  ;;  %v6916_v50 = vpack.c.bf16 %v4608_v48, %v4604_v47  ;;  %v4649_v47 = vld [vmem:[#allocation4 + $0x3b8] sm:$0xff] }
 0x94b   :  { %6899 = vmatprep.subr.bf16.mxu1 %v6898_v52  ;;  %v6852_v46 = vpack.c.bf16 %v4606_v45, %v4602_v43  ;;  %v4615_v52 = vld [vmem:[#allocation4 + $0x2a8] sm:$0xff] }
 0x94c   :  { %6837 = vmatpush1.bf16.msra.mxu0 %v6836_v54  ;;  %v4613_v54 = vld [vmem:[#allocation4 + $0x298] sm:$0xff]  ;;  %v6854_v55 = vpack.c.bf16 %v4615_v52, %v4611_v51  ;;  %v4643_v43 = vld [vmem:[#allocation4 + $0x388] sm:$0xff]  ;;  %v4642_v51 = vld [vmem:[#allocation4 + $0x380] sm:$0xff] }
 0x94d   :  { %6839 = vmatprep.subr.bf16.mxu0 %v6838_v1  ;;  %v6918_v61 = vpack.c.bf16 %v4617_v58, %v4613_v54  ;;  %v4612_v1 = vld [vmem:[#allocation4 + $0x290] sm:$0xff]  ;;  %v4646_v52 = vld [vmem:[#allocation4 + $0x3a0] sm:$0xff] }
 0x94e   :  { %6901 = vmatpush1.bf16.msra.mxu1 %v6900_v0  ;;  %v4610_v0 = vld [vmem:[#allocation4 + $0x280] sm:$0xff]  ;;  %v6920_v3 = vpack.c.bf16 %v4616_v44, %v4612_v1  ;;  %v4644_v54 = vld [vmem:[#allocation4 + $0x390] sm:$0xff]  ;;  %v4653_v1 = vld [vmem:[#allocation4 + $0x3d8] sm:$0xff] }
 0x94f   :  { %6903 = vmatprep.subr.bf16.mxu1 %v6902_v49  ;;  %v6856_v63 = vpack.c.bf16 %v4614_v60, %v4610_v0  ;;  %v4623_v49 = vld [vmem:[#allocation4 + $0x2e8] sm:$0xff]  ;;  %v4648_v58 = vld [vmem:[#allocation4 + $0x3b0] sm:$0xff]  ;;  %v4657_v44 = vld [vmem:[#allocation4 + $0x3f8] sm:$0xff] }
 0x950   :  { %6841 = vmatpush1.bf16.msra.mxu0 %v6840_v6  ;;  %v4621_v6 = vld [vmem:[#allocation4 + $0x2d8] sm:$0xff]  ;;  %v6858_v7 = vpack.c.bf16 %v4623_v49, %v4619_v4  ;;  %v4651_v0 = vld [vmem:[#allocation4 + $0x3c8] sm:$0xff]  ;;  %v6938_v4 = vpack.c.bf16 %v4657_v44, %v4653_v1  ;;  %v4654_v49 = vld [vmem:[#allocation4 + $0x3e0] sm:$0xff] }
 0x951   :  { %6843 = vmatprep.subr.bf16.mxu0 %v6842_v10  ;;  %v6922_v9 = vpack.c.bf16 %v4625_v53, %v4621_v6  ;;  %v4620_v10 = vld [vmem:[#allocation4 + $0x2d0] sm:$0xff]  ;;  %v4655_v60 = vld [vmem:[#allocation4 + $0x3e8] sm:$0xff] }
 0x952   :  { %6905 = vmatpush1.bf16.msra.mxu1 %v6904_v8  ;;  %v4618_v8 = vld [vmem:[#allocation4 + $0x2c0] sm:$0xff]  ;;  %v6924_v14 = vpack.c.bf16 %v4624_v11, %v4620_v10  ;;  %v4652_v6 = vld [vmem:[#allocation4 + $0x3d0] sm:$0xff] }
 0x953   :  { %6907 = vmatprep.subr.bf16.mxu1 %v6906_v19  ;;  %v6860_v59 = vpack.c.bf16 %v4622_v18, %v4618_v8  ;;  %v4631_v19 = vld [vmem:[#allocation4 + $0x328] sm:$0xff] }
 0x954   :  { %6845 = vmatpush1.bf16.msra.mxu0 %v6844_v12  ;;  %v4629_v12 = vld [vmem:[#allocation4 + $0x318] sm:$0xff]  ;;  %v6862_v20 = vpack.c.bf16 %v4631_v19, %v4627_v62 }
 0x955   :  { %6847 = vmatprep.subr.bf16.mxu0 %v6846_v28  ;;  %v6926_v25 = vpack.c.bf16 %v4633_v13, %v4629_v12  ;;  %v4628_v28 = vld [vmem:[#allocation4 + $0x310] sm:$0xff] }
 0x956   :  { %6909 = vmatpush1.bf16.msra.mxu1 %v6908_v21  ;;  %v4626_v21 = vld [vmem:[#allocation4 + $0x300] sm:$0xff]  ;;  %v6928_v32 = vpack.c.bf16 %v4632_v31, %v4628_v28 }
 0x957   :  { %6911 = vmatprep.subr.bf16.mxu1 %v6910_v34  ;;  %v6864_v27 = vpack.c.bf16 %v4630_v22, %v4626_v21  ;;  %v4639_v34 = vld [vmem:[#allocation4 + $0x368] sm:$0xff] }
 0x958   :  { %6849 = vmatpush1.bf16.msra.mxu0 %v6848_v35  ;;  %v4637_v35 = vld [vmem:[#allocation4 + $0x358] sm:$0xff]  ;;  %v6866_v23 = vpack.c.bf16 %v4639_v34, %v4635_v26 }
 0x959   :  { %6851 = vmatprep.subr.bf16.mxu0 %v6850_v33  ;;  %v6930_v40 = vpack.c.bf16 %v4641_v37, %v4637_v35  ;;  %v4636_v33 = vld [vmem:[#allocation4 + $0x350] sm:$0xff] }
 0x95a   :  { %6913 = vmatpush1.bf16.msra.mxu1 %v6912_v38  ;;  %v4634_v38 = vld [vmem:[#allocation4 + $0x340] sm:$0xff]  ;;  %v6932_v45 = vpack.c.bf16 %v4640_v42, %v4636_v33 }
 0x95b   :  { %6915 = vmatprep.subr.bf16.mxu1 %v6914_v36  ;;  %v6868_v41 = vpack.c.bf16 %v4638_v29, %v4634_v38  ;;  %v4647_v36 = vld [vmem:[#allocation4 + $0x3a8] sm:$0xff] }
 0x95c   :  { %6853 = vmatpush1.bf16.msra.mxu0 %v6852_v46  ;;  %v4645_v46 = vld [vmem:[#allocation4 + $0x398] sm:$0xff]  ;;  %v6870_v48 = vpack.c.bf16 %v4647_v36, %v4643_v43 }
 0x95d   :  { %6855 = vmatprep.subr.bf16.mxu0 %v6854_v55  ;;  %v6872_v55 = vpack.c.bf16 %v4646_v52, %v4642_v51 }
 0x95e   :  { %6917 = vmatpush1.bf16.msra.mxu1 %v6916_v50  ;;  %v6934_v50 = vpack.c.bf16 %v4649_v47, %v4645_v46 }
 0x95f   :  { %6919 = vmatprep.subr.bf16.mxu1 %v6918_v61  ;;  %v6936_v61 = vpack.c.bf16 %v4648_v58, %v4644_v54 }
 0x960   :  { %6857 = vmatpush1.bf16.msra.mxu0 %v6856_v63  ;;  %v6874_v63 = vpack.c.bf16 %v4655_v60, %v4651_v0 }
 0x961   :  { %6859 = vmatprep.subr.bf16.mxu0 %v6858_v7  ;;  %v4656_v7 = vld [vmem:[#allocation4 + $0x3f0] sm:$0xff] }
 0x962   :  { %6921 = vmatpush1.bf16.msra.mxu1 %v6920_v3  ;;  %v4650_v3 = vld [vmem:[#allocation4 + $0x3c0] sm:$0xff]  ;;  %v6940_v8 = vpack.c.bf16 %v4656_v7, %v4652_v6 }
 0x963   :  { %6923 = vmatprep.subr.bf16.mxu1 %v6922_v9  ;;  %v6876_v53 = vpack.c.bf16 %v4654_v49, %v4650_v3 }
 0x964   :  { %6861 = vmatpush1.bf16.msra.mxu0 %v6860_v59 }
 0x965   :  { %6863 = vmatprep.subr.bf16.mxu0 %v6862_v20 }
 0x966   :  { %6925 = vmatpush1.bf16.msra.mxu1 %v6924_v14 }
 0x967   :  { %6927 = vmatprep.subr.bf16.mxu1 %v6926_v25 }
 0x968   :  { %6865 = vmatpush1.bf16.msra.mxu0 %v6864_v27 }
 0x969   :  { %6867 = vmatprep.subr.bf16.mxu0 %v6866_v23 }
 0x96a   :  { %6929 = vmatpush1.bf16.msra.mxu1 %v6928_v32 }
 0x96b   :  { %6931 = vmatprep.subr.bf16.mxu1 %v6930_v40 }
 0x96c   :  { %6869 = vmatpush1.bf16.msra.mxu0 %v6868_v41 }
 0x96d   :  { %6871 = vmatprep.subr.bf16.mxu0 %v6870_v48 }
 0x96e   :  { %6933 = vmatpush1.bf16.msra.mxu1 %v6932_v45 }
 0x96f   :  { %6935 = vmatprep.subr.bf16.mxu1 %v6934_v50 }
 0x970   :  { %6873 = vmatpush1.bf16.msra.mxu0 %v6872_v55 }
 0x971   :  { %6875 = vmatprep.subr.bf16.mxu0 %v6874_v63 }
 0x972   :  { %6937 = vmatpush1.bf16.msra.mxu1 %v6936_v61 }
 0x973   :  { %6939 = vmatprep.subr.bf16.mxu1 %v6938_v4 }
 0x974   :  { %6877 = vmatpush1.bf16.msra.mxu0 %v6876_v53 }
 0x976   :  { %6941 = vmatpush1.bf16.msra.mxu1 %v6940_v8 }
 0x9ca   :  { %v4132_v18 = vpop.f32.mrb[26].mxu0  ;;  %v4203_v9 = vpop.f32.mrb[26].mxu1 }
 0x9cb   :  { %v4133_v59 = vadd.f32 %v4132_v18, %v7357_v56  ;;  %v4134_v10 = vpop.f32.mrb[27].mxu0  ;;  %v4205_v11 = vpop.f32.mrb[27].mxu1  ;;  %v4204_v13 = vadd.f32 %v4203_v9, %v7372_v15 }
 0x9cc   :  { %v4135_v14 = vadd.f32 %v4134_v10, %v7361_v57  ;;  %v4206_v12 = vadd.f32 %v4205_v11, %v7367_v2 }
 0x9cd   :  { %v4882_v62 = vmul.f32 -1.442695, %v4133_v59 }
 0x9ce   :  { %v4883_v19 = vmul.f32 -1.442695, %v4135_v14  ;;  %v4884_v20 = vmul.f32 -1.442695, %v4206_v12 }
 0x9cf   :  { %7155 = vpow2.f32 %v4882_v62 }
 0x9d0   :  { %7157 = vpow2.f32 %v4883_v19 }
 0x9d1   :  { %7159 = vpow2.f32 %v4884_v20 }
 0x9d2   :  { %7161 = vtanh.f32 %v4204_v13 }
 0x9d9   :  { %v7156_v21 = vpop.eup %7155 }
 0x9da   :  { %v7158_v22 = vpop.eup %7157  ;;  %v4211_v25 = vadd.f32 1.0, %v7156_v21 }
 0x9db   :  { %v4217_v27 = vadd.f32 1.0, %v7158_v22  ;;  %v7160_v28 = vpop.eup %7159 }
 0x9dc   :  { %7163 = vrcp.f32 %v4211_v25  ;;  %v7162_v31 = vpop.eup %7161  ;;  %v4224_v35 = vadd.f32 1.0, %v7160_v28 }
 0x9dd   :  { %7165 = vrcp.f32 %v4217_v27 }
 0x9de   :  { %7167 = vrcp.f32 %v4224_v35 }
 0x9e6   :  { %v7164_v32 = vpop.eup %7163 }
 0x9e7   :  { %v7166_v26 = vpop.eup %7165  ;;  %v4228_v34 = vmul.f32 %v7164_v32, %v7162_v31 }
 0x9e8   :  { %v4227_v23 = vmul.f32 %v7166_v26, %v7485_v39  ;;  %v7168_v38 = vpop.eup %7167 }
 0x9ea   :  { %v7507_v37 = vadd.f32 %v4228_v34, %v4227_v23 }
 0x9ec   :  { %7169 = vtanh.f32 %v7507_v37 }
 0x9f6   :  { %v7170_v29 = vpop.eup %7169 }
 0x9f7   :  { %v4231_v40 = vmul.f32 %v7170_v29, %v7168_v38 }
 0x9f9   :  { %4885 = vst [vmem:[%s7531_s5 + $0x30] sm:$0xff] %v4231_v40  ;;  %4722 = vmatprep.mubr.f32.mxu0 %v4231_v40  ;;  %4793 = vmatprep.mubr.f32.mxu1 %v4231_v40 }
 0xa0a   :  { %v4430_v41 = vpop.f32.mrb[28].mxu0 }
 0xa0b   :  { %v4431_v33 = vadd.f32 %v4430_v41, %v7326_v16  ;;  %v4432_v42 = vpop.f32.mrb[29].mxu0 }
 0xa0c   :  { %v4433_v39 = vadd.f32 %v4432_v42, %v7330_v17  ;;  %v4501_v43 = vpop.f32.mrb[28].mxu1 }
 0xa0d   :  { %v4887_v45 = vmul.f32 -1.442695, %v4431_v33  ;;  %v4503_v36 = vpop.f32.mrb[29].mxu1  ;;  %v4502_v50 = vadd.f32 %v4501_v43, %v7343_v30 }
 0xa0e   :  { %v4888_v46 = vmul.f32 -1.442695, %v4433_v39  ;;  %v4504_v47 = vadd.f32 %v4503_v36, %v7337_v24 }
 0xa0f   :  { %7171 = vpow2.f32 %v4887_v45 }
 0xa10   :  { %7173 = vpow2.f32 %v4888_v46  ;;  %v4889_v48 = vmul.f32 -1.442695, %v4504_v47 }
 0xa12   :  { %7175 = vpow2.f32 %v4889_v48 }
 0xa13   :  { %7177 = vtanh.f32 %v4502_v50 }
 0xa19   :  { %v7172_v51 = vpop.eup %7171 }
 0xa1a   :  { %v7174_v52 = vpop.eup %7173  ;;  %v4509_v54 = vadd.f32 1.0, %v7172_v51 }
 0xa1b   :  { %v4515_v16 = vadd.f32 1.0, %v7174_v52 }
 0xa1c   :  { %7179 = vrcp.f32 %v4509_v54  ;;  %v7176_v17 = vpop.eup %7175 }
 0xa1d   :  { %7181 = vrcp.f32 %v4515_v16  ;;  %v7178_v55 = vpop.eup %7177  ;;  %v4522_v0 = vadd.f32 1.0, %v7176_v17 }
 0xa1f   :  { %7183 = vrcp.f32 %v4522_v0 }
 0xa26   :  { %v7180_v58 = vpop.eup %7179 }
 0xa27   :  { %v7182_v60 = vpop.eup %7181  ;;  %v4526_v61 = vmul.f32 %v7180_v58, %v7178_v55 }
 0xa28   :  { %v4525_v63 = vmul.f32 %v7182_v60, %v7496_v5 }
 0xa29   :  { %v7184_v30 = vpop.eup %7183 }
 0xa2a   :  { %v4527_v24 = vadd.f32 %v4526_v61, %v4525_v63 }
 0xa2c   :  { %7185 = vtanh.f32 %v4527_v24 }
 0xa36   :  { %v7186_v1 = vpop.eup %7185 }
 0xa37   :  { %v4529_v44 = vmul.f32 %v7186_v1, %v7184_v30 }
 0xa39   :  { %4723 = vmatmul.mubr.f32.vlgmr.msra.gmra.mrb[30].mxu0 %v4529_v44  ;;  %4794 = vmatmul.mubr.f32.vlgmr.msra.gmra.mrb[30].mxu1 %v4529_v44 }
 0xb0c   :  { %v4724_v3 = vpop.f32.mrb[30].mxu0  ;;  %v4795_v4 = vpop.f32.mrb[30].mxu1 }
 0xb0d   :  { %v4725_v49 = vadd.f32 %v4724_v3, %v7357_v56  ;;  %v4726_v6 = vpop.f32.mrb[31].mxu0  ;;  %v4797_v7 = vpop.f32.mrb[31].mxu1  ;;  %v4796_v59 = vadd.f32 %v4795_v4, %v7372_v15 }
 0xb0e   :  { %v4727_v53 = vadd.f32 %v4726_v6, %v7361_v57  ;;  %v4798_v5 = vadd.f32 %v4797_v7, %v7367_v2 }
 0xb0f   :  { %v4890_v8 = vmul.f32 -1.442695, %v4725_v49 }
 0xb10   :  { %v4891_v18 = vmul.f32 -1.442695, %v4727_v53  ;;  %v4892_v9 = vmul.f32 -1.442695, %v4798_v5 }
 0xb11   :  { %7187 = vpow2.f32 %v4890_v8 }
 0xb12   :  { %7189 = vpow2.f32 %v4891_v18 }
 0xb13   :  { %7191 = vpow2.f32 %v4892_v9 }
 0xb14   :  { %7193 = vtanh.f32 %v4796_v59 }
 0xb1b   :  { %v7188_v10 = vpop.eup %7187 }
 0xb1c   :  { %v7190_v11 = vpop.eup %7189  ;;  %v4803_v14 = vadd.f32 1.0, %v7188_v10 }
 0xb1d   :  { %v4809_v62 = vadd.f32 1.0, %v7190_v11  ;;  %v7192_v56 = vpop.eup %7191 }
 0xb1e   :  { %7195 = vrcp.f32 %v4803_v14  ;;  %v7194_v19 = vpop.eup %7193  ;;  %v4816_v13 = vadd.f32 1.0, %v7192_v56 }
 0xb1f   :  { %7197 = vrcp.f32 %v4809_v62 }
 0xb20   :  { %7199 = vrcp.f32 %v4816_v13 }
 0xb28   :  { %v7196_v57 = vpop.eup %7195 }
 0xb29   :  { %v7198_v12 = vpop.eup %7197  ;;  %v4820_v20 = vmul.f32 %v7196_v57, %v7194_v19 }
 0xb2a   :  { %v4819_v21 = vmul.f32 %v7198_v12, %v7507_v37  ;;  %v7200_v15 = vpop.eup %7199 }
 0xb2c   :  { %v4821_v2 = vadd.f32 %v4820_v20, %v4819_v21 }
 0xb2e   :  { %7201 = vtanh.f32 %v4821_v2 }
 0xb38   :  { %v7202_v22 = vpop.eup %7201 }
 0xb39   :  { %v4823_v25 = vmul.f32 %v7202_v22, %v7200_v15 }
 0xb3b   :  { %4893 = vst [vmem:[%s7531_s5 + $0x38] sm:$0xff] %v4823_v25 }
 0xb3c   :  { %4830 = vsyncpa [#allocation3], 1 }
 0xb3d   :  { %4831 = vsyncpa [#allocation5], 1 }

</bundles_post_ra>
